<compile_context>
chip_gen: v6e
topology: v6e:2x2x1
jax: 0.10.0
libtpu: 0.0.40
codegen_flags: <defaults>
</compile_context>

<pallas_src>
import functools
import math

import jax
import jax.numpy as jnp
from jax.experimental import pallas as pl
from jax.experimental.pallas import tpu as pltpu

LN_EPS = 1e-12   # HF ViT layer_norm_eps default
LAMDA = 0.1

_SQRT_2_OVER_PI = math.sqrt(2.0 / math.pi)


def _gelu_tanh(x):
    # tanh-approx GELU: the transcendental goes to the EUP slot.  Max abs
    # deviation from exact (erf) GELU ~5e-4.
    return 0.5 * x * (1.0 + jnp.tanh(_SQRT_2_OVER_PI * (x + 0.044715 * x * x * x)))


def _layernorm(x, g, b, eps=LN_EPS):
    m = jnp.mean(x, axis=-1, keepdims=True)
    v = jnp.mean((x - m) ** 2, axis=-1, keepdims=True)
    return (x - m) * jax.lax.rsqrt(v + eps) * g + b


def _vit_cada_kernel(num_heads, mlp_chunk, matmul_dtype,
                     x_ref,
                     ln1_g, ln1_b,
                     wq, bq, wk, bk, wv, bv,
                     wo, bo,
                     a1_wd, a1_bd, a1_wu, a1_bu,
                     ln2_g, ln2_b,
                     wi, bi, wo2, bo2,
                     a2_wd, a2_bd, a2_wu, a2_bu,
                     out_ref):
    Bt, S, D = x_ref.shape
    dh = D // num_heads
    rows = Bt * S
    md = matmul_dtype

    def mm(a, w):
        # Weights arrive already in matmul_dtype (cast host-side); only the
        # activation is cast at the dot boundary.  Accumulation stays f32.
        return jnp.dot(a.astype(md), w, preferred_element_type=jnp.float32)

    # Flatten (Bt, S) into one M axis for all row-wise work.
    x2 = x_ref[...].reshape(rows, D).astype(jnp.float32)

    # hidden_states = layernorm_before(hidden_states)
    h = _layernorm(x2, ln1_g[...], ln1_b[...])

    # QKV projections as single (rows, D) x (D, D) matmuls.
    # 1/sqrt(dh) is pre-folded into wq / bq on the host.
    q = mm(h, wq[...]) + bq[...]
    k = mm(h, wk[...]) + bk[...]
    v = mm(h, wv[...]) + bv[...]

    q3 = q.reshape(Bt, S, D)
    k3 = k.reshape(Bt, S, D)
    v3 = v.reshape(Bt, S, D)

    # Multi-head self-attention.  Each head's context is immediately pushed
    # through the two consumers of `sa` (attention.output.dense and the
    # SNS-folded cal_msha down-projection) and accumulated full-width, so the
    # concatenated sa tensor / lane-masked scratch stores never exist.
    xl1_acc = None   # -> sa @ wo            (rows, D)
    ad1_acc = None   # -> sa_sns @ a1_wd     (rows, D_ad_pad)
    for i in range(num_heads):
        sl = slice(i * dh, (i + 1) * dh)
        qh = q3[:, :, sl]
        kh = k3[:, :, sl]
        vh = v3[:, :, sl]
        s = jnp.einsum('bqd,bkd->bqk', qh.astype(md), kh.astype(md),
                       preferred_element_type=jnp.float32)
        s = s - jnp.max(s, axis=-1, keepdims=True)
        p = jnp.exp(s)
        p = p * pl.reciprocal(jnp.sum(p, axis=-1, keepdims=True), approx=True)
        ctx = jnp.einsum('bqk,bkd->bqd', p.astype(md), vh.astype(md),
                         preferred_element_type=jnp.float32)
        ctx2 = ctx.reshape(rows, dh)
        xl1_h = mm(ctx2, wo[sl, :])      # static row-slice of the weight ref
        ad1_h = mm(ctx2, a1_wd[sl, :])
        xl1_acc = xl1_h if xl1_acc is None else xl1_acc + xl1_h
        ad1_acc = ad1_h if ad1_acc is None else ad1_acc + ad1_h

    # x_l1 = attention.output.dense(sa_out)
    x_l1 = xl1_acc + bo[...]
    # cal1 = cal_msha(sns(sa_out));  sns folded into a1_wd/a1_bd, lamda into a1_wu/a1_bu.
    cal1 = mm(jnp.maximum(ad1_acc + a1_bd[...], 0.0), a1_wu[...]) + a1_bu[...]

    # x_prime = hidden_states(post-LN) + x_l1 + lamda*cal1 ; then layernorm_after
    x_prime = h + x_l1 + cal1
    x_prime = _layernorm(x_prime, ln2_g[...], ln2_b[...])

    # mlp_out = output(intermediate(x_prime), x_prime), chunked along the 4D dim
    # so the (rows, 4D) intermediate is never materialized.
    d_mlp = wi.shape[-1]
    mlp = x_prime + bo2[...]
    n0 = 0
    while n0 < d_mlp:
        n1 = min(n0 + mlp_chunk, d_mlp)
        mid = _gelu_tanh(mm(x_prime, wi[:, n0:n1]) + bi[:, n0:n1])
        mlp = mlp + mm(mid, wo2[n0:n1, :])
        n0 = n1

    # cal2 = cal_mlp(sns(x_prime));  sns / lamda pre-folded as above.
    cal2 = mm(jnp.maximum(mm(x_prime, a2_wd[...]) + a2_bd[...], 0.0),
              a2_wu[...]) + a2_bu[...]

    out_ref[...] = (mlp + cal2).reshape(Bt, S, D).astype(out_ref.dtype)


KERNEL_PARAM_ORDER = ("ln1_g", "ln1_b",
                      "wq", "bq", "wk", "bk", "wv", "bv",
                      "wo", "bo",
                      "a1_wd", "a1_bd", "a1_wu", "a1_bu",
                      "ln2_g", "ln2_b",
                      "wi", "bi", "wo2", "bo2",
                      "a2_wd", "a2_bd", "a2_wu", "a2_bu")

_MATMUL_WEIGHTS = {"wq", "wk", "wv", "wo", "wi", "wo2",
                   "a1_wd", "a1_wu", "a2_wd", "a2_wu"}


def _prepare_params(params, num_heads, matmul_dtype, adapter_pad):
    """Host-side constant folding, padding and dtype casting (amortized)."""
    D = params["wq"].shape[0]
    dh = D // num_heads
    scale = 1.0 / math.sqrt(dh)
    sns_g = params["sns_g"].reshape(D, 1)
    sns_b = params["sns_b"].reshape(1, D)

    p = {}
    p["ln1_g"], p["ln1_b"] = params["ln1_g"], params["ln1_b"]
    p["ln2_g"], p["ln2_b"] = params["ln2_g"], params["ln2_b"]
    # 1/sqrt(dh) folded into the query projection.
    p["wq"], p["bq"] = params["wq"] * scale, params["bq"] * scale
    p["wk"], p["bk"] = params["wk"], params["bk"]
    p["wv"], p["bv"] = params["wv"], params["bv"]
    p["wo"], p["bo"] = params["wo"], params["bo"]
    p["wi"], p["bi"] = params["wi"], params["bi"]
    p["wo2"], p["bo2"] = params["wo2"], params["bo2"]
    # SNS (x*g + b) folded into the adapter down-projections; lamda into the
    # up-projections.
    for tag in ("a1", "a2"):
        wd, bd = params[f"{tag}_wd"], params[f"{tag}_bd"]
        p[f"{tag}_wd"] = sns_g * wd
        p[f"{tag}_bd"] = bd + sns_b @ wd
        p[f"{tag}_wu"] = params[f"{tag}_wu"] * LAMDA
        p[f"{tag}_bu"] = params[f"{tag}_bu"] * LAMDA

    # Zero-pad the adapter hidden dim to a lane-dense multiple of `adapter_pad`.
    d_ad = p["a1_wd"].shape[1]
    if adapter_pad:
        d_ad_p = ((d_ad + adapter_pad - 1) // adapter_pad) * adapter_pad
        pad = d_ad_p - d_ad
        if pad:
            for tag in ("a1", "a2"):
                p[f"{tag}_wd"] = jnp.pad(p[f"{tag}_wd"], ((0, 0), (0, pad)))
                p[f"{tag}_bd"] = jnp.pad(p[f"{tag}_bd"], ((0, 0), (0, pad)))
                p[f"{tag}_wu"] = jnp.pad(p[f"{tag}_wu"], ((0, pad), (0, 0)))

    # Cast the matmul weights to matmul_dtype on the host (half the resident
    # VMEM for bf16 and no in-kernel astype sweeps).  Biases / LN stay f32.
    for k in _MATMUL_WEIGHTS:
        p[k] = p[k].astype(matmul_dtype)
    return [p[k] for k in KERNEL_PARAM_ORDER]


def vit_block_with_cada(x, params, num_heads, *, batch_block=None,
                        matmul_dtype=jnp.bfloat16, mlp_chunk=512,
                        adapter_pad=128):
    """Forward pass of ViTBlockWithCADA (cadablock=True).

    matmul_dtype: bf16 by default (MXU-native on v5e/v6e/v7x).  Use
                  jnp.float32 for tight numerical validation.
    """
    B, S, D = x.shape
    assert D % num_heads == 0

    if batch_block is None:
        # One large grid step is preferred on single-TC parts (v5e/v6e); aim
        # for ~512 rows of matmul work per step.  On v7x, pass an explicit
        # batch_block giving a grid divisible by 2 to use both TensorCores.
        bt = max(1, min(B, max(1, 512 // S)))
        while B % bt != 0:
            bt -= 1
        batch_block = bt
    Bt = batch_block
    assert B % Bt == 0

    weights = _prepare_params(params, num_heads, matmul_dtype, adapter_pad)
    d_mlp = params["wi"].shape[1]
    mlp_chunk = max(128, min(mlp_chunk, d_mlp))

    in_specs = [pl.BlockSpec((Bt, S, D), lambda b: (b, 0, 0))]
    for w in weights:
        # Whole weight tensor resident in VMEM, same block every step.
        in_specs.append(pl.BlockSpec(w.shape, lambda b, n=w.ndim: (0,) * n))
    out_specs = pl.BlockSpec((Bt, S, D), lambda b: (b, 0, 0))

    # Explicit scoped-VMEM budget: double-buffered io blocks + (conservatively
    # double-buffered) resident weights + live intermediates + headroom.
    io_block = Bt * S * D * x.dtype.itemsize
    weight_bytes = sum(int(w.size) * w.dtype.itemsize for w in weights)
    interm = Bt * S * (10 * D + mlp_chunk + 2 * S) * 4
    vmem_bytes = 4 * io_block + 2 * weight_bytes + interm + (4 << 20)
    vmem_limit = int(min(max(vmem_bytes, 16 << 20), 100 << 20))

    kernel = functools.partial(_vit_cada_kernel, num_heads, mlp_chunk,
                               matmul_dtype)
    return pl.pallas_call(
        kernel,
        out_shape=jax.ShapeDtypeStruct((B, S, D), x.dtype),
        grid_spec=pltpu.PrefetchScalarGridSpec(
            num_scalar_prefetch=0,
            grid=(B // Bt,),
            in_specs=in_specs,
            out_specs=out_specs),
        compiler_params=pltpu.CompilerParams(
            dimension_semantics=("parallel",),
            vmem_limit_bytes=vmem_limit),
    )(x, *weights)


def reference(x, p, num_heads):
    """Pure-JAX reference mirroring the PyTorch forward (for validation)."""
    B, S, D = x.shape
    dh = D // num_heads
    hi = jax.lax.Precision.HIGHEST
    dot = lambda a, b: jnp.matmul(a, b, precision=hi)

    def ln(y, g, b):
        m = y.mean(-1, keepdims=True)
        v = ((y - m) ** 2).mean(-1, keepdims=True)
        return (y - m) * jax.lax.rsqrt(v + LN_EPS) * g + b

    def gelu(y):  # exact (erf) GELU, matching torch.nn.functional.gelu default
        return 0.5 * y * (1.0 + jax.lax.erf(y / jnp.sqrt(2.0)))

    h = ln(x, p["ln1_g"][0], p["ln1_b"][0])
    q = dot(h, p["wq"]) + p["bq"][0]
    k = dot(h, p["wk"]) + p["bk"][0]
    v = dot(h, p["wv"]) + p["bv"][0]
    qh = q.reshape(B, S, num_heads, dh).transpose(0, 2, 1, 3)
    kh = k.reshape(B, S, num_heads, dh).transpose(0, 2, 1, 3)
    vh = v.reshape(B, S, num_heads, dh).transpose(0, 2, 1, 3)
    s = jnp.einsum("bhqd,bhkd->bhqk", qh, kh, precision=hi) / jnp.sqrt(float(dh))
    prob = jax.nn.softmax(s, axis=-1)
    ctx = jnp.einsum("bhqk,bhkd->bhqd", prob, vh, precision=hi)
    sa = ctx.transpose(0, 2, 1, 3).reshape(B, S, D)

    sns1 = sa * p["sns_g"][0] + p["sns_b"][0]
    cal1 = dot(jnp.maximum(dot(sns1, p["a1_wd"]) + p["a1_bd"][0], 0.0), p["a1_wu"]) + p["a1_bu"][0]
    x_l1 = dot(sa, p["wo"]) + p["bo"][0]
    x_prime = h + x_l1 + LAMDA * cal1
    x_prime = ln(x_prime, p["ln2_g"][0], p["ln2_b"][0])
    mid = gelu(dot(x_prime, p["wi"]) + p["bi"][0])
    mlp_out = dot(mid, p["wo2"]) + p["bo2"][0] + x_prime
    sns2 = x_prime * p["sns_g"][0] + p["sns_b"][0]
    cal2 = dot(jnp.maximum(dot(sns2, p["a2_wd"]) + p["a2_bd"][0], 0.0), p["a2_wu"]) + p["a2_bu"][0]
    return mlp_out + LAMDA * cal2


if __name__ == "__main__":
    B, S = 4, 32          # batch, sequence
    D = 128               # embed_dim (lane-dense: multiple of 128)
    H = 4                 # attention heads (head dim 32)
    D_MLP = 512           # ViT intermediate size (4 * embed_dim)
    D_AD = 32             # adapter hidden_dim

    key = jax.random.PRNGKey(0)
    ks = iter(jax.random.split(key, 40))

    def nrm(shape, scale=0.05):
        return scale * jax.random.normal(next(ks), shape, dtype=jnp.float32)

    params = {
        "ln1_g": 1.0 + nrm((1, D)), "ln1_b": nrm((1, D)),
        "wq": nrm((D, D)), "bq": nrm((1, D)),
        "wk": nrm((D, D)), "bk": nrm((1, D)),
        "wv": nrm((D, D)), "bv": nrm((1, D)),
        "wo": nrm((D, D)), "bo": nrm((1, D)),
        "sns_g": 1.0 + nrm((1, D)), "sns_b": nrm((1, D)),
        "a1_wd": nrm((D, D_AD)), "a1_bd": nrm((1, D_AD)),
        "a1_wu": nrm((D_AD, D)), "a1_bu": nrm((1, D)),
        "ln2_g": 1.0 + nrm((1, D)), "ln2_b": nrm((1, D)),
        "wi": nrm((D, D_MLP)), "bi": nrm((1, D_MLP)),
        "wo2": nrm((D_MLP, D)), "bo2": nrm((1, D)),
        "a2_wd": nrm((D, D_AD)), "a2_bd": nrm((1, D_AD)),
        "a2_wu": nrm((D_AD, D)), "a2_bu": nrm((1, D)),
    }

    x = jax.random.normal(next(ks), (B, S, D), dtype=jnp.float32)
    ref = reference(x, params, num_heads=H)

    # Tight check: f32 matmuls (tolerance covers tanh-GELU, approx reciprocal
    # and the host-side constant folds).
    out_f32 = jax.block_until_ready(
        vit_block_with_cada(x, params, num_heads=H, matmul_dtype=jnp.float32))
    assert out_f32.shape == (B, S, D)
    err32 = float(jnp.max(jnp.abs(out_f32 - ref)))
    assert jnp.allclose(out_f32, ref, rtol=3e-3, atol=3e-3), err32

    # Production path: bf16 matmul operands (loose smoke check).
    out_bf16 = jax.block_until_ready(
        vit_block_with_cada(x, params, num_heads=H))
    err16 = float(jnp.max(jnp.abs(out_bf16 - ref)))
    assert jnp.allclose(out_bf16, ref, rtol=1e-1, atol=1e-1), err16

    print("KERNEL_OK")
</pallas_src>

<mosaic_0001>
module attributes {stable_mosaic.version = 11 : i64} {
  func.func @_vit_cada_kernel(%arg0: i32, %arg1: memref<4x32x128xf32, #tpu.memory_space<vmem>>, %arg2: memref<1x128xf32, #tpu.memory_space<vmem>>, %arg3: memref<1x128xf32, #tpu.memory_space<vmem>>, %arg4: memref<128x128xf32, #tpu.memory_space<vmem>>, %arg5: memref<1x128xf32, #tpu.memory_space<vmem>>, %arg6: memref<128x128xf32, #tpu.memory_space<vmem>>, %arg7: memref<1x128xf32, #tpu.memory_space<vmem>>, %arg8: memref<128x128xf32, #tpu.memory_space<vmem>>, %arg9: memref<1x128xf32, #tpu.memory_space<vmem>>, %arg10: memref<128x128xf32, #tpu.memory_space<vmem>>, %arg11: memref<1x128xf32, #tpu.memory_space<vmem>>, %arg12: memref<128x128xf32, #tpu.memory_space<vmem>>, %arg13: memref<1x128xf32, #tpu.memory_space<vmem>>, %arg14: memref<128x128xf32, #tpu.memory_space<vmem>>, %arg15: memref<1x128xf32, #tpu.memory_space<vmem>>, %arg16: memref<1x128xf32, #tpu.memory_space<vmem>>, %arg17: memref<1x128xf32, #tpu.memory_space<vmem>>, %arg18: memref<128x512xf32, #tpu.memory_space<vmem>>, %arg19: memref<1x512xf32, #tpu.memory_space<vmem>>, %arg20: memref<512x128xf32, #tpu.memory_space<vmem>>, %arg21: memref<1x128xf32, #tpu.memory_space<vmem>>, %arg22: memref<128x128xf32, #tpu.memory_space<vmem>>, %arg23: memref<1x128xf32, #tpu.memory_space<vmem>>, %arg24: memref<128x128xf32, #tpu.memory_space<vmem>>, %arg25: memref<1x128xf32, #tpu.memory_space<vmem>>, %arg26: memref<4x32x128xf32, #tpu.memory_space<vmem>>) attributes {dimension_semantics = [#tpu.dimension_semantics<parallel>], iteration_bounds = array<i64: 1>, scalar_prefetch = 0 : i64, scratch_operands = 0 : i64, tpu.core_type = #tpu.core_type<tc>, window_params = [{transform_indices = @transform_0, window_bounds = array<i64: 4, 32, 128>}, {pipeline_mode = #tpu.pipeline_mode<synchronous>, transform_indices = @transform_1, window_bounds = array<i64: 1, 128>}, {pipeline_mode = #tpu.pipeline_mode<synchronous>, transform_indices = @transform_2, window_bounds = array<i64: 1, 128>}, {pipeline_mode = #tpu.pipeline_mode<synchronous>, transform_indices = @transform_3, window_bounds = array<i64: 128, 128>}, {pipeline_mode = #tpu.pipeline_mode<synchronous>, transform_indices = @transform_4, window_bounds = array<i64: 1, 128>}, {pipeline_mode = #tpu.pipeline_mode<synchronous>, transform_indices = @transform_5, window_bounds = array<i64: 128, 128>}, {pipeline_mode = #tpu.pipeline_mode<synchronous>, transform_indices = @transform_6, window_bounds = array<i64: 1, 128>}, {pipeline_mode = #tpu.pipeline_mode<synchronous>, transform_indices = @transform_7, window_bounds = array<i64: 128, 128>}, {pipeline_mode = #tpu.pipeline_mode<synchronous>, transform_indices = @transform_8, window_bounds = array<i64: 1, 128>}, {pipeline_mode = #tpu.pipeline_mode<synchronous>, transform_indices = @transform_9, window_bounds = array<i64: 128, 128>}, {pipeline_mode = #tpu.pipeline_mode<synchronous>, transform_indices = @transform_10, window_bounds = array<i64: 1, 128>}, {pipeline_mode = #tpu.pipeline_mode<synchronous>, transform_indices = @transform_11, window_bounds = array<i64: 128, 128>}, {pipeline_mode = #tpu.pipeline_mode<synchronous>, transform_indices = @transform_12, window_bounds = array<i64: 1, 128>}, {pipeline_mode = #tpu.pipeline_mode<synchronous>, transform_indices = @transform_13, window_bounds = array<i64: 128, 128>}, {pipeline_mode = #tpu.pipeline_mode<synchronous>, transform_indices = @transform_14, window_bounds = array<i64: 1, 128>}, {pipeline_mode = #tpu.pipeline_mode<synchronous>, transform_indices = @transform_15, window_bounds = array<i64: 1, 128>}, {pipeline_mode = #tpu.pipeline_mode<synchronous>, transform_indices = @transform_16, window_bounds = array<i64: 1, 128>}, {pipeline_mode = #tpu.pipeline_mode<synchronous>, transform_indices = @transform_17, window_bounds = array<i64: 128, 512>}, {pipeline_mode = #tpu.pipeline_mode<synchronous>, transform_indices = @transform_18, window_bounds = array<i64: 1, 512>}, {pipeline_mode = #tpu.pipeline_mode<synchronous>, transform_indices = @transform_19, window_bounds = array<i64: 512, 128>}, {pipeline_mode = #tpu.pipeline_mode<synchronous>, transform_indices = @transform_20, window_bounds = array<i64: 1, 128>}, {pipeline_mode = #tpu.pipeline_mode<synchronous>, transform_indices = @transform_21, window_bounds = array<i64: 128, 128>}, {pipeline_mode = #tpu.pipeline_mode<synchronous>, transform_indices = @transform_22, window_bounds = array<i64: 1, 128>}, {pipeline_mode = #tpu.pipeline_mode<synchronous>, transform_indices = @transform_23, window_bounds = array<i64: 128, 128>}, {pipeline_mode = #tpu.pipeline_mode<synchronous>, transform_indices = @transform_24, window_bounds = array<i64: 1, 128>}, {transform_indices = @transform_25, window_bounds = array<i64: 4, 32, 128>}]} {
    %c0 = arith.constant 0 : index
    %c0_0 = arith.constant 0 : index
    %c0_1 = arith.constant 0 : index
    %0 = vector.load %arg1[%c0, %c0_0, %c0_1] : memref<4x32x128xf32, #tpu.memory_space<vmem>>, vector<4x32x128xf32>
    %1 = vector.shape_cast %0 : vector<4x32x128xf32> to vector<128x128xf32>
    %c0_2 = arith.constant 0 : index
    %c0_3 = arith.constant 0 : index
    %2 = vector.load %arg2[%c0_2, %c0_3] : memref<1x128xf32, #tpu.memory_space<vmem>>, vector<1x128xf32>
    %c0_4 = arith.constant 0 : index
    %c0_5 = arith.constant 0 : index
    %3 = vector.load %arg3[%c0_4, %c0_5] : memref<1x128xf32, #tpu.memory_space<vmem>>, vector<1x128xf32>
    %cst = arith.constant dense<0.000000e+00> : vector<128xf32>
    %4 = vector.multi_reduction <add>, %1, %cst [1] : vector<128x128xf32> to vector<128xf32>
    %5 = vector.shape_cast %4 : vector<128xf32> to vector<128x1xf32>
    %cst_6 = arith.constant 1.280000e+02 : f32
    %6 = vector.broadcast %cst_6 : f32 to vector<128x1xf32>
    %7 = arith.divf %5, %6 : vector<128x1xf32>
    %8 = vector.broadcast %7 : vector<128x1xf32> to vector<128x128xf32>
    %9 = arith.subf %1, %8 : vector<128x128xf32>
    %10 = arith.mulf %9, %9 : vector<128x128xf32>
    %cst_7 = arith.constant dense<0.000000e+00> : vector<128xf32>
    %11 = vector.multi_reduction <add>, %10, %cst_7 [1] : vector<128x128xf32> to vector<128xf32>
    %12 = vector.shape_cast %11 : vector<128xf32> to vector<128x1xf32>
    %cst_8 = arith.constant 1.280000e+02 : f32
    %13 = vector.broadcast %cst_8 : f32 to vector<128x1xf32>
    %14 = arith.divf %12, %13 : vector<128x1xf32>
    %15 = vector.broadcast %7 : vector<128x1xf32> to vector<128x128xf32>
    %16 = arith.subf %1, %15 : vector<128x128xf32>
    %cst_9 = arith.constant 9.99999996E-13 : f32
    %17 = vector.broadcast %cst_9 : f32 to vector<128x1xf32>
    %18 = arith.addf %14, %17 : vector<128x1xf32>
    %19 = math.rsqrt %18 : vector<128x1xf32>
    %20 = vector.broadcast %19 : vector<128x1xf32> to vector<128x128xf32>
    %21 = arith.mulf %16, %20 : vector<128x128xf32>
    %22 = vector.broadcast %2 : vector<1x128xf32> to vector<128x128xf32>
    %23 = arith.mulf %21, %22 : vector<128x128xf32>
    %24 = vector.broadcast %3 : vector<1x128xf32> to vector<128x128xf32>
    %25 = arith.addf %23, %24 : vector<128x128xf32>
    %c0_10 = arith.constant 0 : index
    %c0_11 = arith.constant 0 : index
    %26 = vector.load %arg4[%c0_10, %c0_11] : memref<128x128xf32, #tpu.memory_space<vmem>>, vector<128x128xf32>
    %cst_12 = arith.constant dense<0.000000e+00> : vector<128x128xf32>
    %27 = tpu.matmul %25, %26, %cst_12 {dimension_numbers = #tpu.dot_dimension_numbers<[1], [0], [0], [1], [0, 0, 1, 1], [], []>} : vector<128x128xf32>, vector<128x128xf32>, vector<128x128xf32> -> vector<128x128xf32>
    %c0_13 = arith.constant 0 : index
    %c0_14 = arith.constant 0 : index
    %28 = vector.load %arg5[%c0_13, %c0_14] : memref<1x128xf32, #tpu.memory_space<vmem>>, vector<1x128xf32>
    %29 = vector.broadcast %28 : vector<1x128xf32> to vector<128x128xf32>
    %30 = arith.addf %27, %29 : vector<128x128xf32>
    %c0_15 = arith.constant 0 : index
    %c0_16 = arith.constant 0 : index
    %31 = vector.load %arg6[%c0_15, %c0_16] : memref<128x128xf32, #tpu.memory_space<vmem>>, vector<128x128xf32>
    %cst_17 = arith.constant dense<0.000000e+00> : vector<128x128xf32>
    %32 = tpu.matmul %25, %31, %cst_17 {dimension_numbers = #tpu.dot_dimension_numbers<[1], [0], [0], [1], [0, 0, 1, 1], [], []>} : vector<128x128xf32>, vector<128x128xf32>, vector<128x128xf32> -> vector<128x128xf32>
    %c0_18 = arith.constant 0 : index
    %c0_19 = arith.constant 0 : index
    %33 = vector.load %arg7[%c0_18, %c0_19] : memref<1x128xf32, #tpu.memory_space<vmem>>, vector<1x128xf32>
    %34 = vector.broadcast %33 : vector<1x128xf32> to vector<128x128xf32>
    %35 = arith.addf %32, %34 : vector<128x128xf32>
    %c0_20 = arith.constant 0 : index
    %c0_21 = arith.constant 0 : index
    %36 = vector.load %arg8[%c0_20, %c0_21] : memref<128x128xf32, #tpu.memory_space<vmem>>, vector<128x128xf32>
    %cst_22 = arith.constant dense<0.000000e+00> : vector<128x128xf32>
    %37 = tpu.matmul %25, %36, %cst_22 {dimension_numbers = #tpu.dot_dimension_numbers<[1], [0], [0], [1], [0, 0, 1, 1], [], []>} : vector<128x128xf32>, vector<128x128xf32>, vector<128x128xf32> -> vector<128x128xf32>
    %c0_23 = arith.constant 0 : index
    %c0_24 = arith.constant 0 : index
    %38 = vector.load %arg9[%c0_23, %c0_24] : memref<1x128xf32, #tpu.memory_space<vmem>>, vector<1x128xf32>
    %39 = vector.broadcast %38 : vector<1x128xf32> to vector<128x128xf32>
    %40 = arith.addf %37, %39 : vector<128x128xf32>
    %41 = vector.shape_cast %30 : vector<128x128xf32> to vector<4x32x128xf32>
    %42 = vector.shape_cast %35 : vector<128x128xf32> to vector<4x32x128xf32>
    %43 = vector.shape_cast %40 : vector<128x128xf32> to vector<4x32x128xf32>
    %44 = vector.extract_strided_slice %41 {offsets = [0, 0, 0], sizes = [4, 32, 32], strides = [1, 1, 1]} : vector<4x32x128xf32> to vector<4x32x32xf32>
    %45 = vector.extract_strided_slice %42 {offsets = [0, 0, 0], sizes = [4, 32, 32], strides = [1, 1, 1]} : vector<4x32x128xf32> to vector<4x32x32xf32>
    %46 = vector.extract_strided_slice %43 {offsets = [0, 0, 0], sizes = [4, 32, 32], strides = [1, 1, 1]} : vector<4x32x128xf32> to vector<4x32x32xf32>
    "tpu.trace_start"() <{level = 10 : i32, message = "bqd,bkd->bqk"}> : () -> ()
    %cst_25 = arith.constant dense<0.000000e+00> : vector<4x32x32xf32>
    %47 = tpu.matmul %44, %45, %cst_25 {dimension_numbers = #tpu.dot_dimension_numbers<[2], [2], [1], [1], [0, 0, 0, 1, 1, 1], [0], [0]>} : vector<4x32x32xf32>, vector<4x32x32xf32>, vector<4x32x32xf32> -> vector<4x32x32xf32>
    "tpu.trace_stop"() : () -> ()
    %cst_26 = arith.constant dense<0xFF800000> : vector<4x32xf32>
    %48 = vector.multi_reduction <maximumf>, %47, %cst_26 [2] : vector<4x32x32xf32> to vector<4x32xf32>
    %49 = vector.shape_cast %48 : vector<4x32xf32> to vector<4x32x1xf32>
    %50 = vector.broadcast %49 : vector<4x32x1xf32> to vector<4x32x32xf32>
    %51 = arith.subf %47, %50 : vector<4x32x32xf32>
    %52 = math.exp %51 : vector<4x32x32xf32>
    %cst_27 = arith.constant dense<0.000000e+00> : vector<4x32xf32>
    %53 = vector.multi_reduction <add>, %52, %cst_27 [2] : vector<4x32x32xf32> to vector<4x32xf32>
    %54 = vector.shape_cast %53 : vector<4x32xf32> to vector<4x32x1xf32>
    %55 = tpu.reciprocal %54 {approx = true} : vector<4x32x1xf32> -> vector<4x32x1xf32>
    %56 = vector.broadcast %55 : vector<4x32x1xf32> to vector<4x32x32xf32>
    %57 = arith.mulf %52, %56 : vector<4x32x32xf32>
    "tpu.trace_start"() <{level = 10 : i32, message = "bqk,bkd->bqd"}> : () -> ()
    %cst_28 = arith.constant dense<0.000000e+00> : vector<4x32x32xf32>
    %58 = tpu.matmul %57, %46, %cst_28 {dimension_numbers = #tpu.dot_dimension_numbers<[2], [1], [1], [2], [0, 0, 0, 1, 1, 2], [0], [0]>} : vector<4x32x32xf32>, vector<4x32x32xf32>, vector<4x32x32xf32> -> vector<4x32x32xf32>
    "tpu.trace_stop"() : () -> ()
    %59 = vector.shape_cast %58 : vector<4x32x32xf32> to vector<128x32xf32>
    %c0_29 = arith.constant 0 : index
    %c0_30 = arith.constant 0 : index
    %60 = vector.load %arg10[%c0_29, %c0_30] : memref<128x128xf32, #tpu.memory_space<vmem>>, vector<32x128xf32>
    %cst_31 = arith.constant dense<0.000000e+00> : vector<128x128xf32>
    %61 = tpu.matmul %59, %60, %cst_31 {dimension_numbers = #tpu.dot_dimension_numbers<[1], [0], [0], [1], [0, 0, 1, 1], [], []>} : vector<128x32xf32>, vector<32x128xf32>, vector<128x128xf32> -> vector<128x128xf32>
    %c0_32 = arith.constant 0 : index
    %c0_33 = arith.constant 0 : index
    %62 = vector.load %arg12[%c0_32, %c0_33] : memref<128x128xf32, #tpu.memory_space<vmem>>, vector<32x128xf32>
    %cst_34 = arith.constant dense<0.000000e+00> : vector<128x128xf32>
    %63 = tpu.matmul %59, %62, %cst_34 {dimension_numbers = #tpu.dot_dimension_numbers<[1], [0], [0], [1], [0, 0, 1, 1], [], []>} : vector<128x32xf32>, vector<32x128xf32>, vector<128x128xf32> -> vector<128x128xf32>
    %64 = vector.extract_strided_slice %41 {offsets = [0, 0, 32], sizes = [4, 32, 32], strides = [1, 1, 1]} : vector<4x32x128xf32> to vector<4x32x32xf32>
    %65 = vector.extract_strided_slice %42 {offsets = [0, 0, 32], sizes = [4, 32, 32], strides = [1, 1, 1]} : vector<4x32x128xf32> to vector<4x32x32xf32>
    %66 = vector.extract_strided_slice %43 {offsets = [0, 0, 32], sizes = [4, 32, 32], strides = [1, 1, 1]} : vector<4x32x128xf32> to vector<4x32x32xf32>
    "tpu.trace_start"() <{level = 10 : i32, message = "bqd,bkd->bqk"}> : () -> ()
    %cst_35 = arith.constant dense<0.000000e+00> : vector<4x32x32xf32>
    %67 = tpu.matmul %64, %65, %cst_35 {dimension_numbers = #tpu.dot_dimension_numbers<[2], [2], [1], [1], [0, 0, 0, 1, 1, 1], [0], [0]>} : vector<4x32x32xf32>, vector<4x32x32xf32>, vector<4x32x32xf32> -> vector<4x32x32xf32>
    "tpu.trace_stop"() : () -> ()
    %cst_36 = arith.constant dense<0xFF800000> : vector<4x32xf32>
    %68 = vector.multi_reduction <maximumf>, %67, %cst_36 [2] : vector<4x32x32xf32> to vector<4x32xf32>
    %69 = vector.shape_cast %68 : vector<4x32xf32> to vector<4x32x1xf32>
    %70 = vector.broadcast %69 : vector<4x32x1xf32> to vector<4x32x32xf32>
    %71 = arith.subf %67, %70 : vector<4x32x32xf32>
    %72 = math.exp %71 : vector<4x32x32xf32>
    %cst_37 = arith.constant dense<0.000000e+00> : vector<4x32xf32>
    %73 = vector.multi_reduction <add>, %72, %cst_37 [2] : vector<4x32x32xf32> to vector<4x32xf32>
    %74 = vector.shape_cast %73 : vector<4x32xf32> to vector<4x32x1xf32>
    %75 = tpu.reciprocal %74 {approx = true} : vector<4x32x1xf32> -> vector<4x32x1xf32>
    %76 = vector.broadcast %75 : vector<4x32x1xf32> to vector<4x32x32xf32>
    %77 = arith.mulf %72, %76 : vector<4x32x32xf32>
    "tpu.trace_start"() <{level = 10 : i32, message = "bqk,bkd->bqd"}> : () -> ()
    %cst_38 = arith.constant dense<0.000000e+00> : vector<4x32x32xf32>
    %78 = tpu.matmul %77, %66, %cst_38 {dimension_numbers = #tpu.dot_dimension_numbers<[2], [1], [1], [2], [0, 0, 0, 1, 1, 2], [0], [0]>} : vector<4x32x32xf32>, vector<4x32x32xf32>, vector<4x32x32xf32> -> vector<4x32x32xf32>
    "tpu.trace_stop"() : () -> ()
    %79 = vector.shape_cast %78 : vector<4x32x32xf32> to vector<128x32xf32>
    %c32 = arith.constant 32 : index
    %c0_39 = arith.constant 0 : index
    %80 = vector.load %arg10[%c32, %c0_39] : memref<128x128xf32, #tpu.memory_space<vmem>>, vector<32x128xf32>
    %cst_40 = arith.constant dense<0.000000e+00> : vector<128x128xf32>
    %81 = tpu.matmul %79, %80, %cst_40 {dimension_numbers = #tpu.dot_dimension_numbers<[1], [0], [0], [1], [0, 0, 1, 1], [], []>} : vector<128x32xf32>, vector<32x128xf32>, vector<128x128xf32> -> vector<128x128xf32>
    %c32_41 = arith.constant 32 : index
    %c0_42 = arith.constant 0 : index
    %82 = vector.load %arg12[%c32_41, %c0_42] : memref<128x128xf32, #tpu.memory_space<vmem>>, vector<32x128xf32>
    %cst_43 = arith.constant dense<0.000000e+00> : vector<128x128xf32>
    %83 = tpu.matmul %79, %82, %cst_43 {dimension_numbers = #tpu.dot_dimension_numbers<[1], [0], [0], [1], [0, 0, 1, 1], [], []>} : vector<128x32xf32>, vector<32x128xf32>, vector<128x128xf32> -> vector<128x128xf32>
    %84 = arith.addf %61, %81 : vector<128x128xf32>
    %85 = arith.addf %63, %83 : vector<128x128xf32>
    %86 = vector.extract_strided_slice %41 {offsets = [0, 0, 64], sizes = [4, 32, 32], strides = [1, 1, 1]} : vector<4x32x128xf32> to vector<4x32x32xf32>
    %87 = vector.extract_strided_slice %42 {offsets = [0, 0, 64], sizes = [4, 32, 32], strides = [1, 1, 1]} : vector<4x32x128xf32> to vector<4x32x32xf32>
    %88 = vector.extract_strided_slice %43 {offsets = [0, 0, 64], sizes = [4, 32, 32], strides = [1, 1, 1]} : vector<4x32x128xf32> to vector<4x32x32xf32>
    "tpu.trace_start"() <{level = 10 : i32, message = "bqd,bkd->bqk"}> : () -> ()
    %cst_44 = arith.constant dense<0.000000e+00> : vector<4x32x32xf32>
    %89 = tpu.matmul %86, %87, %cst_44 {dimension_numbers = #tpu.dot_dimension_numbers<[2], [2], [1], [1], [0, 0, 0, 1, 1, 1], [0], [0]>} : vector<4x32x32xf32>, vector<4x32x32xf32>, vector<4x32x32xf32> -> vector<4x32x32xf32>
    "tpu.trace_stop"() : () -> ()
    %cst_45 = arith.constant dense<0xFF800000> : vector<4x32xf32>
    %90 = vector.multi_reduction <maximumf>, %89, %cst_45 [2] : vector<4x32x32xf32> to vector<4x32xf32>
    %91 = vector.shape_cast %90 : vector<4x32xf32> to vector<4x32x1xf32>
    %92 = vector.broadcast %91 : vector<4x32x1xf32> to vector<4x32x32xf32>
    %93 = arith.subf %89, %92 : vector<4x32x32xf32>
    %94 = math.exp %93 : vector<4x32x32xf32>
    %cst_46 = arith.constant dense<0.000000e+00> : vector<4x32xf32>
    %95 = vector.multi_reduction <add>, %94, %cst_46 [2] : vector<4x32x32xf32> to vector<4x32xf32>
    %96 = vector.shape_cast %95 : vector<4x32xf32> to vector<4x32x1xf32>
    %97 = tpu.reciprocal %96 {approx = true} : vector<4x32x1xf32> -> vector<4x32x1xf32>
    %98 = vector.broadcast %97 : vector<4x32x1xf32> to vector<4x32x32xf32>
    %99 = arith.mulf %94, %98 : vector<4x32x32xf32>
    "tpu.trace_start"() <{level = 10 : i32, message = "bqk,bkd->bqd"}> : () -> ()
    %cst_47 = arith.constant dense<0.000000e+00> : vector<4x32x32xf32>
    %100 = tpu.matmul %99, %88, %cst_47 {dimension_numbers = #tpu.dot_dimension_numbers<[2], [1], [1], [2], [0, 0, 0, 1, 1, 2], [0], [0]>} : vector<4x32x32xf32>, vector<4x32x32xf32>, vector<4x32x32xf32> -> vector<4x32x32xf32>
    "tpu.trace_stop"() : () -> ()
    %101 = vector.shape_cast %100 : vector<4x32x32xf32> to vector<128x32xf32>
    %c64 = arith.constant 64 : index
    %c0_48 = arith.constant 0 : index
    %102 = vector.load %arg10[%c64, %c0_48] : memref<128x128xf32, #tpu.memory_space<vmem>>, vector<32x128xf32>
    %cst_49 = arith.constant dense<0.000000e+00> : vector<128x128xf32>
    %103 = tpu.matmul %101, %102, %cst_49 {dimension_numbers = #tpu.dot_dimension_numbers<[1], [0], [0], [1], [0, 0, 1, 1], [], []>} : vector<128x32xf32>, vector<32x128xf32>, vector<128x128xf32> -> vector<128x128xf32>
    %c64_50 = arith.constant 64 : index
    %c0_51 = arith.constant 0 : index
    %104 = vector.load %arg12[%c64_50, %c0_51] : memref<128x128xf32, #tpu.memory_space<vmem>>, vector<32x128xf32>
    %cst_52 = arith.constant dense<0.000000e+00> : vector<128x128xf32>
    %105 = tpu.matmul %101, %104, %cst_52 {dimension_numbers = #tpu.dot_dimension_numbers<[1], [0], [0], [1], [0, 0, 1, 1], [], []>} : vector<128x32xf32>, vector<32x128xf32>, vector<128x128xf32> -> vector<128x128xf32>
    %106 = arith.addf %84, %103 : vector<128x128xf32>
    %107 = arith.addf %85, %105 : vector<128x128xf32>
    %108 = vector.extract_strided_slice %41 {offsets = [0, 0, 96], sizes = [4, 32, 32], strides = [1, 1, 1]} : vector<4x32x128xf32> to vector<4x32x32xf32>
    %109 = vector.extract_strided_slice %42 {offsets = [0, 0, 96], sizes = [4, 32, 32], strides = [1, 1, 1]} : vector<4x32x128xf32> to vector<4x32x32xf32>
    %110 = vector.extract_strided_slice %43 {offsets = [0, 0, 96], sizes = [4, 32, 32], strides = [1, 1, 1]} : vector<4x32x128xf32> to vector<4x32x32xf32>
    "tpu.trace_start"() <{level = 10 : i32, message = "bqd,bkd->bqk"}> : () -> ()
    %cst_53 = arith.constant dense<0.000000e+00> : vector<4x32x32xf32>
    %111 = tpu.matmul %108, %109, %cst_53 {dimension_numbers = #tpu.dot_dimension_numbers<[2], [2], [1], [1], [0, 0, 0, 1, 1, 1], [0], [0]>} : vector<4x32x32xf32>, vector<4x32x32xf32>, vector<4x32x32xf32> -> vector<4x32x32xf32>
    "tpu.trace_stop"() : () -> ()
    %cst_54 = arith.constant dense<0xFF800000> : vector<4x32xf32>
    %112 = vector.multi_reduction <maximumf>, %111, %cst_54 [2] : vector<4x32x32xf32> to vector<4x32xf32>
    %113 = vector.shape_cast %112 : vector<4x32xf32> to vector<4x32x1xf32>
    %114 = vector.broadcast %113 : vector<4x32x1xf32> to vector<4x32x32xf32>
    %115 = arith.subf %111, %114 : vector<4x32x32xf32>
    %116 = math.exp %115 : vector<4x32x32xf32>
    %cst_55 = arith.constant dense<0.000000e+00> : vector<4x32xf32>
    %117 = vector.multi_reduction <add>, %116, %cst_55 [2] : vector<4x32x32xf32> to vector<4x32xf32>
    %118 = vector.shape_cast %117 : vector<4x32xf32> to vector<4x32x1xf32>
    %119 = tpu.reciprocal %118 {approx = true} : vector<4x32x1xf32> -> vector<4x32x1xf32>
    %120 = vector.broadcast %119 : vector<4x32x1xf32> to vector<4x32x32xf32>
    %121 = arith.mulf %116, %120 : vector<4x32x32xf32>
    "tpu.trace_start"() <{level = 10 : i32, message = "bqk,bkd->bqd"}> : () -> ()
    %cst_56 = arith.constant dense<0.000000e+00> : vector<4x32x32xf32>
    %122 = tpu.matmul %121, %110, %cst_56 {dimension_numbers = #tpu.dot_dimension_numbers<[2], [1], [1], [2], [0, 0, 0, 1, 1, 2], [0], [0]>} : vector<4x32x32xf32>, vector<4x32x32xf32>, vector<4x32x32xf32> -> vector<4x32x32xf32>
    "tpu.trace_stop"() : () -> ()
    %123 = vector.shape_cast %122 : vector<4x32x32xf32> to vector<128x32xf32>
    %c96 = arith.constant 96 : index
    %c0_57 = arith.constant 0 : index
    %124 = vector.load %arg10[%c96, %c0_57] : memref<128x128xf32, #tpu.memory_space<vmem>>, vector<32x128xf32>
    %cst_58 = arith.constant dense<0.000000e+00> : vector<128x128xf32>
    %125 = tpu.matmul %123, %124, %cst_58 {dimension_numbers = #tpu.dot_dimension_numbers<[1], [0], [0], [1], [0, 0, 1, 1], [], []>} : vector<128x32xf32>, vector<32x128xf32>, vector<128x128xf32> -> vector<128x128xf32>
    %c96_59 = arith.constant 96 : index
    %c0_60 = arith.constant 0 : index
    %126 = vector.load %arg12[%c96_59, %c0_60] : memref<128x128xf32, #tpu.memory_space<vmem>>, vector<32x128xf32>
    %cst_61 = arith.constant dense<0.000000e+00> : vector<128x128xf32>
    %127 = tpu.matmul %123, %126, %cst_61 {dimension_numbers = #tpu.dot_dimension_numbers<[1], [0], [0], [1], [0, 0, 1, 1], [], []>} : vector<128x32xf32>, vector<32x128xf32>, vector<128x128xf32> -> vector<128x128xf32>
    %128 = arith.addf %106, %125 : vector<128x128xf32>
    %129 = arith.addf %107, %127 : vector<128x128xf32>
    %c0_62 = arith.constant 0 : index
    %c0_63 = arith.constant 0 : index
    %130 = vector.load %arg11[%c0_62, %c0_63] : memref<1x128xf32, #tpu.memory_space<vmem>>, vector<1x128xf32>
    %131 = vector.broadcast %130 : vector<1x128xf32> to vector<128x128xf32>
    %132 = arith.addf %128, %131 : vector<128x128xf32>
    %c0_64 = arith.constant 0 : index
    %c0_65 = arith.constant 0 : index
    %133 = vector.load %arg13[%c0_64, %c0_65] : memref<1x128xf32, #tpu.memory_space<vmem>>, vector<1x128xf32>
    %134 = vector.broadcast %133 : vector<1x128xf32> to vector<128x128xf32>
    %135 = arith.addf %129, %134 : vector<128x128xf32>
    %cst_66 = arith.constant 0.000000e+00 : f32
    %136 = vector.broadcast %cst_66 : f32 to vector<128x128xf32>
    %137 = arith.maximumf %135, %136 : vector<128x128xf32>
    %c0_67 = arith.constant 0 : index
    %c0_68 = arith.constant 0 : index
    %138 = vector.load %arg14[%c0_67, %c0_68] : memref<128x128xf32, #tpu.memory_space<vmem>>, vector<128x128xf32>
    %cst_69 = arith.constant dense<0.000000e+00> : vector<128x128xf32>
    %139 = tpu.matmul %137, %138, %cst_69 {dimension_numbers = #tpu.dot_dimension_numbers<[1], [0], [0], [1], [0, 0, 1, 1], [], []>} : vector<128x128xf32>, vector<128x128xf32>, vector<128x128xf32> -> vector<128x128xf32>
    %c0_70 = arith.constant 0 : index
    %c0_71 = arith.constant 0 : index
    %140 = vector.load %arg15[%c0_70, %c0_71] : memref<1x128xf32, #tpu.memory_space<vmem>>, vector<1x128xf32>
    %141 = vector.broadcast %140 : vector<1x128xf32> to vector<128x128xf32>
    %142 = arith.addf %139, %141 : vector<128x128xf32>
    %143 = arith.addf %25, %132 : vector<128x128xf32>
    %144 = arith.addf %143, %142 : vector<128x128xf32>
    %c0_72 = arith.constant 0 : index
    %c0_73 = arith.constant 0 : index
    %145 = vector.load %arg16[%c0_72, %c0_73] : memref<1x128xf32, #tpu.memory_space<vmem>>, vector<1x128xf32>
    %c0_74 = arith.constant 0 : index
    %c0_75 = arith.constant 0 : index
    %146 = vector.load %arg17[%c0_74, %c0_75] : memref<1x128xf32, #tpu.memory_space<vmem>>, vector<1x128xf32>
    %cst_76 = arith.constant dense<0.000000e+00> : vector<128xf32>
    %147 = vector.multi_reduction <add>, %144, %cst_76 [1] : vector<128x128xf32> to vector<128xf32>
    %148 = vector.shape_cast %147 : vector<128xf32> to vector<128x1xf32>
    %cst_77 = arith.constant 1.280000e+02 : f32
    %149 = vector.broadcast %cst_77 : f32 to vector<128x1xf32>
    %150 = arith.divf %148, %149 : vector<128x1xf32>
    %151 = vector.broadcast %150 : vector<128x1xf32> to vector<128x128xf32>
    %152 = arith.subf %144, %151 : vector<128x128xf32>
    %153 = arith.mulf %152, %152 : vector<128x128xf32>
    %cst_78 = arith.constant dense<0.000000e+00> : vector<128xf32>
    %154 = vector.multi_reduction <add>, %153, %cst_78 [1] : vector<128x128xf32> to vector<128xf32>
    %155 = vector.shape_cast %154 : vector<128xf32> to vector<128x1xf32>
    %cst_79 = arith.constant 1.280000e+02 : f32
    %156 = vector.broadcast %cst_79 : f32 to vector<128x1xf32>
    %157 = arith.divf %155, %156 : vector<128x1xf32>
    %158 = vector.broadcast %150 : vector<128x1xf32> to vector<128x128xf32>
    %159 = arith.subf %144, %158 : vector<128x128xf32>
    %cst_80 = arith.constant 9.99999996E-13 : f32
    %160 = vector.broadcast %cst_80 : f32 to vector<128x1xf32>
    %161 = arith.addf %157, %160 : vector<128x1xf32>
    %162 = math.rsqrt %161 : vector<128x1xf32>
    %163 = vector.broadcast %162 : vector<128x1xf32> to vector<128x128xf32>
    %164 = arith.mulf %159, %163 : vector<128x128xf32>
    %165 = vector.broadcast %145 : vector<1x128xf32> to vector<128x128xf32>
    %166 = arith.mulf %164, %165 : vector<128x128xf32>
    %167 = vector.broadcast %146 : vector<1x128xf32> to vector<128x128xf32>
    %168 = arith.addf %166, %167 : vector<128x128xf32>
    %c0_81 = arith.constant 0 : index
    %c0_82 = arith.constant 0 : index
    %169 = vector.load %arg21[%c0_81, %c0_82] : memref<1x128xf32, #tpu.memory_space<vmem>>, vector<1x128xf32>
    %170 = vector.broadcast %169 : vector<1x128xf32> to vector<128x128xf32>
    %171 = arith.addf %168, %170 : vector<128x128xf32>
    %c0_83 = arith.constant 0 : index
    %c0_84 = arith.constant 0 : index
    %172 = vector.load %arg18[%c0_83, %c0_84] : memref<128x512xf32, #tpu.memory_space<vmem>>, vector<128x512xf32>
    %cst_85 = arith.constant dense<0.000000e+00> : vector<128x512xf32>
    %173 = tpu.matmul %168, %172, %cst_85 {dimension_numbers = #tpu.dot_dimension_numbers<[1], [0], [0], [1], [0, 0, 1, 1], [], []>} : vector<128x128xf32>, vector<128x512xf32>, vector<128x512xf32> -> vector<128x512xf32>
    %c0_86 = arith.constant 0 : index
    %c0_87 = arith.constant 0 : index
    %174 = vector.load %arg19[%c0_86, %c0_87] : memref<1x512xf32, #tpu.memory_space<vmem>>, vector<1x512xf32>
    %175 = vector.broadcast %174 : vector<1x512xf32> to vector<128x512xf32>
    %176 = arith.addf %173, %175 : vector<128x512xf32>
    %cst_88 = arith.constant 5.000000e-01 : f32
    %177 = vector.broadcast %cst_88 : f32 to vector<128x512xf32>
    %178 = arith.mulf %177, %176 : vector<128x512xf32>
    %cst_89 = arith.constant 4.471500e-02 : f32
    %179 = vector.broadcast %cst_89 : f32 to vector<128x512xf32>
    %180 = arith.mulf %179, %176 : vector<128x512xf32>
    %181 = arith.mulf %180, %176 : vector<128x512xf32>
    %182 = arith.mulf %181, %176 : vector<128x512xf32>
    %183 = arith.addf %176, %182 : vector<128x512xf32>
    %cst_90 = arith.constant 0.797884583 : f32
    %184 = vector.broadcast %cst_90 : f32 to vector<128x512xf32>
    %185 = arith.mulf %184, %183 : vector<128x512xf32>
    %186 = math.tanh %185 : vector<128x512xf32>
    %cst_91 = arith.constant 1.000000e+00 : f32
    %187 = vector.broadcast %cst_91 : f32 to vector<128x512xf32>
    %188 = arith.addf %187, %186 : vector<128x512xf32>
    %189 = arith.mulf %178, %188 : vector<128x512xf32>
    %c0_92 = arith.constant 0 : index
    %c0_93 = arith.constant 0 : index
    %190 = vector.load %arg20[%c0_92, %c0_93] : memref<512x128xf32, #tpu.memory_space<vmem>>, vector<512x128xf32>
    %cst_94 = arith.constant dense<0.000000e+00> : vector<128x128xf32>
    %191 = tpu.matmul %189, %190, %cst_94 {dimension_numbers = #tpu.dot_dimension_numbers<[1], [0], [0], [1], [0, 0, 1, 1], [], []>} : vector<128x512xf32>, vector<512x128xf32>, vector<128x128xf32> -> vector<128x128xf32>
    %192 = arith.addf %171, %191 : vector<128x128xf32>
    %c0_95 = arith.constant 0 : index
    %c0_96 = arith.constant 0 : index
    %193 = vector.load %arg22[%c0_95, %c0_96] : memref<128x128xf32, #tpu.memory_space<vmem>>, vector<128x128xf32>
    %cst_97 = arith.constant dense<0.000000e+00> : vector<128x128xf32>
    %194 = tpu.matmul %168, %193, %cst_97 {dimension_numbers = #tpu.dot_dimension_numbers<[1], [0], [0], [1], [0, 0, 1, 1], [], []>} : vector<128x128xf32>, vector<128x128xf32>, vector<128x128xf32> -> vector<128x128xf32>
    %c0_98 = arith.constant 0 : index
    %c0_99 = arith.constant 0 : index
    %195 = vector.load %arg23[%c0_98, %c0_99] : memref<1x128xf32, #tpu.memory_space<vmem>>, vector<1x128xf32>
    %196 = vector.broadcast %195 : vector<1x128xf32> to vector<128x128xf32>
    %197 = arith.addf %194, %196 : vector<128x128xf32>
    %cst_100 = arith.constant 0.000000e+00 : f32
    %198 = vector.broadcast %cst_100 : f32 to vector<128x128xf32>
    %199 = arith.maximumf %197, %198 : vector<128x128xf32>
    %c0_101 = arith.constant 0 : index
    %c0_102 = arith.constant 0 : index
    %200 = vector.load %arg24[%c0_101, %c0_102] : memref<128x128xf32, #tpu.memory_space<vmem>>, vector<128x128xf32>
    %cst_103 = arith.constant dense<0.000000e+00> : vector<128x128xf32>
    %201 = tpu.matmul %199, %200, %cst_103 {dimension_numbers = #tpu.dot_dimension_numbers<[1], [0], [0], [1], [0, 0, 1, 1], [], []>} : vector<128x128xf32>, vector<128x128xf32>, vector<128x128xf32> -> vector<128x128xf32>
    %c0_104 = arith.constant 0 : index
    %c0_105 = arith.constant 0 : index
    %202 = vector.load %arg25[%c0_104, %c0_105] : memref<1x128xf32, #tpu.memory_space<vmem>>, vector<1x128xf32>
    %203 = vector.broadcast %202 : vector<1x128xf32> to vector<128x128xf32>
    %204 = arith.addf %201, %203 : vector<128x128xf32>
    %205 = arith.addf %192, %204 : vector<128x128xf32>
    %206 = vector.shape_cast %205 : vector<128x128xf32> to vector<4x32x128xf32>
    %c0_106 = arith.constant 0 : index
    %c0_107 = arith.constant 0 : index
    %c0_108 = arith.constant 0 : index
    %207 = vector.load %arg26[%c0_106, %c0_107, %c0_108] : memref<4x32x128xf32, #tpu.memory_space<vmem>>, vector<4x32x128xf32>
    tpu.vector_store %arg26[%c0_106, %c0_107, %c0_108], %206 {strides = array<i32>} : memref<4x32x128xf32, #tpu.memory_space<vmem>>, vector<4x32x128xf32>,
    return
  }
  func.func @transform_0(%arg0: i32) -> (i32, i32, i32) {
    %c0_i32 = arith.constant 0 : i32
    %c0_i32_0 = arith.constant 0 : i32
    %c0_i32_1 = arith.constant 0 : i32
    return %arg0, %c0_i32, %c0_i32_0 : i32, i32, i32
  }
  func.func @transform_1(%arg0: i32) -> (i32, i32) {
    %c0_i32 = arith.constant 0 : i32
    %c0_i32_0 = arith.constant 0 : i32
    %c0_i32_1 = arith.constant 0 : i32
    return %c0_i32, %c0_i32_0 : i32, i32
  }
  func.func @transform_2(%arg0: i32) -> (i32, i32) {
    %c0_i32 = arith.constant 0 : i32
    %c0_i32_0 = arith.constant 0 : i32
    %c0_i32_1 = arith.constant 0 : i32
    return %c0_i32, %c0_i32_0 : i32, i32
  }
  func.func @transform_3(%arg0: i32) -> (i32, i32) {
    %c0_i32 = arith.constant 0 : i32
    %c0_i32_0 = arith.constant 0 : i32
    %c0_i32_1 = arith.constant 0 : i32
    return %c0_i32, %c0_i32_0 : i32, i32
  }
  func.func @transform_4(%arg0: i32) -> (i32, i32) {
    %c0_i32 = arith.constant 0 : i32
    %c0_i32_0 = arith.constant 0 : i32
    %c0_i32_1 = arith.constant 0 : i32
    return %c0_i32, %c0_i32_0 : i32, i32
  }
  func.func @transform_5(%arg0: i32) -> (i32, i32) {
    %c0_i32 = arith.constant 0 : i32
    %c0_i32_0 = arith.constant 0 : i32
    %c0_i32_1 = arith.constant 0 : i32
    return %c0_i32, %c0_i32_0 : i32, i32
  }
  func.func @transform_6(%arg0: i32) -> (i32, i32) {
    %c0_i32 = arith.constant 0 : i32
    %c0_i32_0 = arith.constant 0 : i32
    %c0_i32_1 = arith.constant 0 : i32
    return %c0_i32, %c0_i32_0 : i32, i32
  }
  func.func @transform_7(%arg0: i32) -> (i32, i32) {
    %c0_i32 = arith.constant 0 : i32
    %c0_i32_0 = arith.constant 0 : i32
    %c0_i32_1 = arith.constant 0 : i32
    return %c0_i32, %c0_i32_0 : i32, i32
  }
  func.func @transform_8(%arg0: i32) -> (i32, i32) {
    %c0_i32 = arith.constant 0 : i32
    %c0_i32_0 = arith.constant 0 : i32
    %c0_i32_1 = arith.constant 0 : i32
    return %c0_i32, %c0_i32_0 : i32, i32
  }
  func.func @transform_9(%arg0: i32) -> (i32, i32) {
    %c0_i32 = arith.constant 0 : i32
    %c0_i32_0 = arith.constant 0 : i32
    %c0_i32_1 = arith.constant 0 : i32
    return %c0_i32, %c0_i32_0 : i32, i32
  }
  func.func @transform_10(%arg0: i32) -> (i32, i32) {
    %c0_i32 = arith.constant 0 : i32
    %c0_i32_0 = arith.constant 0 : i32
    %c0_i32_1 = arith.constant 0 : i32
    return %c0_i32, %c0_i32_0 : i32, i32
  }
  func.func @transform_11(%arg0: i32) -> (i32, i32) {
    %c0_i32 = arith.constant 0 : i32
    %c0_i32_0 = arith.constant 0 : i32
    %c0_i32_1 = arith.constant 0 : i32
    return %c0_i32, %c0_i32_0 : i32, i32
  }
  func.func @transform_12(%arg0: i32) -> (i32, i32) {
    %c0_i32 = arith.constant 0 : i32
    %c0_i32_0 = arith.constant 0 : i32
    %c0_i32_1 = arith.constant 0 : i32
    return %c0_i32, %c0_i32_0 : i32, i32
  }
  func.func @transform_13(%arg0: i32) -> (i32, i32) {
    %c0_i32 = arith.constant 0 : i32
    %c0_i32_0 = arith.constant 0 : i32
    %c0_i32_1 = arith.constant 0 : i32
    return %c0_i32, %c0_i32_0 : i32, i32
  }
  func.func @transform_14(%arg0: i32) -> (i32, i32) {
    %c0_i32 = arith.constant 0 : i32
    %c0_i32_0 = arith.constant 0 : i32
    %c0_i32_1 = arith.constant 0 : i32
    return %c0_i32, %c0_i32_0 : i32, i32
  }
  func.func @transform_15(%arg0: i32) -> (i32, i32) {
    %c0_i32 = arith.constant 0 : i32
    %c0_i32_0 = arith.constant 0 : i32
    %c0_i32_1 = arith.constant 0 : i32
    return %c0_i32, %c0_i32_0 : i32, i32
  }
  func.func @transform_16(%arg0: i32) -> (i32, i32) {
    %c0_i32 = arith.constant 0 : i32
    %c0_i32_0 = arith.constant 0 : i32
    %c0_i32_1 = arith.constant 0 : i32
    return %c0_i32, %c0_i32_0 : i32, i32
  }
  func.func @transform_17(%arg0: i32) -> (i32, i32) {
    %c0_i32 = arith.constant 0 : i32
    %c0_i32_0 = arith.constant 0 : i32
    %c0_i32_1 = arith.constant 0 : i32
    return %c0_i32, %c0_i32_0 : i32, i32
  }
  func.func @transform_18(%arg0: i32) -> (i32, i32) {
    %c0_i32 = arith.constant 0 : i32
    %c0_i32_0 = arith.constant 0 : i32
    %c0_i32_1 = arith.constant 0 : i32
    return %c0_i32, %c0_i32_0 : i32, i32
  }
  func.func @transform_19(%arg0: i32) -> (i32, i32) {
    %c0_i32 = arith.constant 0 : i32
    %c0_i32_0 = arith.constant 0 : i32
    %c0_i32_1 = arith.constant 0 : i32
    return %c0_i32, %c0_i32_0 : i32, i32
  }
  func.func @transform_20(%arg0: i32) -> (i32, i32) {
    %c0_i32 = arith.constant 0 : i32
    %c0_i32_0 = arith.constant 0 : i32
    %c0_i32_1 = arith.constant 0 : i32
    return %c0_i32, %c0_i32_0 : i32, i32
  }
  func.func @transform_21(%arg0: i32) -> (i32, i32) {
    %c0_i32 = arith.constant 0 : i32
    %c0_i32_0 = arith.constant 0 : i32
    %c0_i32_1 = arith.constant 0 : i32
    return %c0_i32, %c0_i32_0 : i32, i32
  }
  func.func @transform_22(%arg0: i32) -> (i32, i32) {
    %c0_i32 = arith.constant 0 : i32
    %c0_i32_0 = arith.constant 0 : i32
    %c0_i32_1 = arith.constant 0 : i32
    return %c0_i32, %c0_i32_0 : i32, i32
  }
  func.func @transform_23(%arg0: i32) -> (i32, i32) {
    %c0_i32 = arith.constant 0 : i32
    %c0_i32_0 = arith.constant 0 : i32
    %c0_i32_1 = arith.constant 0 : i32
    return %c0_i32, %c0_i32_0 : i32, i32
  }
  func.func @transform_24(%arg0: i32) -> (i32, i32) {
    %c0_i32 = arith.constant 0 : i32
    %c0_i32_0 = arith.constant 0 : i32
    %c0_i32_1 = arith.constant 0 : i32
    return %c0_i32, %c0_i32_0 : i32, i32
  }
  func.func @transform_25(%arg0: i32) -> (i32, i32, i32) {
    %c0_i32 = arith.constant 0 : i32
    %c0_i32_0 = arith.constant 0 : i32
    %c0_i32_1 = arith.constant 0 : i32
    return %arg0, %c0_i32, %c0_i32_0 : i32, i32, i32
  }
}

</mosaic_0001>

<bundles_post_ra>
// kernel: tpu_custom_call.1
= control target key start
LH: loop header
LB: loop body
LE: loop exit
PB: predicated region body
PF: predicated region fallthrough
CT: control target
= control target key end

     0   :  { %s15639_s0 = inlined_call_operand.hbm [shape: f32[4,32,128], index: 0, kind: input, shape index: {}]   ;;  %s15640_s1 = inlined_call_operand.vmem [shape: f32[1,128], index: 1, kind: input, shape index: {}]   ;;  %s15641_s2 = inlined_call_operand.vmem [shape: f32[1,128], index: 2, kind: input, shape index: {}]   ;;  %s15642_s3 = inlined_call_operand.hbm [shape: f32[128,128], index: 3, kind: input, shape index: {}]   ;;  %s15643_s4 = inlined_call_operand.vmem [shape: f32[1,128], index: 4, kind: input, shape index: {}]   ;;  %s15644_s5 = inlined_call_operand.hbm [shape: f32[128,128], index: 5, kind: input, shape index: {}]   ;;  %s15645_s6 = inlined_call_operand.vmem [shape: f32[1,128], index: 6, kind: input, shape index: {}]   ;;  %s15646_s7 = inlined_call_operand.hbm [shape: f32[128,128], index: 7, kind: input, shape index: {}]   ;;  %s15647_s8 = inlined_call_operand.vmem [shape: f32[1,128], index: 8, kind: input, shape index: {}]   ;;  %s15648_s9 = inlined_call_operand.hbm [shape: f32[128,128], index: 9, kind: input, shape index: {}]   ;;  %s15649_s10 = inlined_call_operand.vmem [shape: f32[1,128], index: 10, kind: input, shape index: {}]   ;;  %s15650_s11 = inlined_call_operand.hbm [shape: f32[128,128], index: 11, kind: input, shape index: {}]   ;;  %s15651_s12 = inlined_call_operand.vmem [shape: f32[1,128], index: 12, kind: input, shape index: {}]   ;;  %s15652_s13 = inlined_call_operand.hbm [shape: f32[128,128], index: 13, kind: input, shape index: {}]   ;;  %s15653_s14 = inlined_call_operand.vmem [shape: f32[1,128], index: 14, kind: input, shape index: {}]   ;;  %s15654_s15 = inlined_call_operand.vmem [shape: f32[1,128], index: 15, kind: input, shape index: {}]   ;;  %s15655_s16 = inlined_call_operand.vmem [shape: f32[1,128], index: 16, kind: input, shape index: {}]   ;;  %s15656_s17 = inlined_call_operand.hbm [shape: f32[128,512], index: 17, kind: input, shape index: {}]   ;;  %s15657_s18 = inlined_call_operand.vmem [shape: f32[1,512], index: 18, kind: input, shape index: {}]   ;;  %s15658_s19 = inlined_call_operand.hbm [shape: f32[512,128], index: 19, kind: input, shape index: {}]   ;;  %s15659_s20 = inlined_call_operand.vmem [shape: f32[1,128], index: 20, kind: input, shape index: {}]   ;;  %s15660_s21 = inlined_call_operand.hbm [shape: f32[128,128], index: 21, kind: input, shape index: {}]   ;;  %s15661_s22 = inlined_call_operand.vmem [shape: f32[1,128], index: 22, kind: input, shape index: {}]   ;;  %s15662_s23 = inlined_call_operand.hbm [shape: f32[128,128], index: 23, kind: input, shape index: {}]   ;;  %s15663_s24 = inlined_call_operand.vmem [shape: f32[1,128], index: 24, kind: input, shape index: {}]   ;;  %s15664_s25 = inlined_call_operand.hbm [shape: f32[4,32,128], index: 25, kind: output, shape index: {}]  }
   0x1   :  { %15795 = sst [smem:[#allocation119_spill]] %s15639_s0 }
   0x2   :  { %15796 = sst [smem:[#allocation120_spill]] %s15640_s1 }
   0x3   :  { %15797 = sst [smem:[#allocation121_spill]] %s15641_s2 }
   0x4   :  { %15798 = sst [smem:[#allocation122_spill]] %s15642_s3 }
   0x5   :  { %15799 = sst [smem:[#allocation123_spill]] %s15643_s4 }
   0x6   :  { %15800 = sst [smem:[#allocation124_spill]] %s15644_s5 }
   0x7   :  { %15801 = sst [smem:[#allocation125_spill]] %s15645_s6 }
   0x8   :  { %15802 = sst [smem:[#allocation126_spill]] %s15646_s7 }
   0x9   :  { %15803 = sst [smem:[#allocation127_spill]] %s15647_s8 }
   0xa   :  { %15804 = sst [smem:[#allocation128_spill]] %s15648_s9 }
   0xb   :  { %30 = vsyncpa [#allocation3], 0 }
   0xc   :  { %31 = vsyncpa [#allocation6], 0 }
   0xd   :  { %32 = vsyncpa [#allocation9], 0 }
   0xe   :  { %33 = vsyncpa [#allocation12], 0 }
   0xf   :  { %34 = vsyncpa [#allocation15], 0 }
  0x10   :  { %35 = vsyncpa [#allocation18], 0 }
  0x11   :  { %36 = vsyncpa [#allocation4], 0  ;;  %s11839_s29 = smov [#allocation5]   ;;  %s11840_s6 = smov [#allocation8]  }
  0x12   :  { %s58_s2 = sshll.u32 %s11839_s29, 4  ;;  %s86_s30 = sshll.u32 %s11840_s6, 4  ;;  %s59_s2 = int_to_ptr.vmem [resolvable:$true] %s58_s2  ;;  %s87_s30 = int_to_ptr.vmem [resolvable:$true] %s86_s30 }
  0x13   :  { %s11593_s7 = scalar_lea.vmem %s59_s2, 2048  ;;  %p11598_p1 = scmp.lt.s32.totalorder %s59_s2, %s59_s2 }
  0x14   :  { %p11594_p0 = scmp.ne.s32.totalorder %s59_s2, %s11593_s7  ;;  %p11599_p2 = scmp.lt.s32.totalorder %s11593_s7, %s11593_s7 }
  0x16   :  { %p11600_p3 = por %p11599_p2, %p11598_p1 }
  0x18   :  { %p11601_p4 = pnand %p11600_p3, %p11594_p0 }
  0x1a   :  { %11604 = shalt.err (!%p11601_p4)
}
  0x1b   :  { %s11841_s3 = smov 128   ;;  %s11842_s26 = smov 8  }
  0x1c   :  { %s15805_s27 = sld [smem:[#allocation122_spill]]  ;;  %s11613_s4 = scalar_lea.vmem %s87_s30, 2048 }
  0x1d   :  { %p11614_p5 = scmp.ne.s32.totalorder %s87_s30, %s11613_s4  ;;  %p11618_p6 = scmp.lt.s32.totalorder %s87_s30, %s87_s30 }
  0x1e   :  { %p11619_p7 = scmp.lt.s32.totalorder %s11613_s4, %s11613_s4 }
  0x20   :  { %p11620_p8 = por %p11619_p7, %p11618_p6 }
  0x22   :  { %64 = dma.hbm_to_vmem [thread:$0]  %s15805_s27, 2048, %s59_s2, [#allocation6], %s11841_s3, %s11841_s3, %s11842_s26  }
  0x23   :  { %p11621_p9 = pnand %p11620_p8, %p11614_p5 }
  0x25   :  { %11624 = shalt.err (!%p11621_p9)
}
  0x26   :  { %s15806_s5 = sld [smem:[#allocation126_spill]]  ;;  %s11843_s0 = smov [#allocation11]  }
  0x27   :  { %s114_s29 = sshll.u32 %s11843_s0, 4  ;;  %s11844_s6 = smov [#allocation14]   ;;  %s115_s29 = int_to_ptr.vmem [resolvable:$true] %s114_s29 }
  0x28   :  { %s146_s7 = sshll.u32 %s11844_s6, 4  ;;  %s11633_s2 = scalar_lea.vmem %s115_s29, 2048  ;;  %s147_s7 = int_to_ptr.vmem [resolvable:$true] %s146_s7 }
  0x29   :  { %p11634_p10 = scmp.ne.s32.totalorder %s115_s29, %s11633_s2  ;;  %p11638_p11 = scmp.lt.s32.totalorder %s115_s29, %s115_s29 }
  0x2a   :  { %p11639_p12 = scmp.lt.s32.totalorder %s11633_s2, %s11633_s2 }
  0x2c   :  { %92 = dma.hbm_to_vmem [thread:$0]  %s15806_s5, 2048, %s87_s30, [#allocation9], %s11841_s3, %s11841_s3, %s11842_s26  }
  0x2d   :  { %p11640_p13 = por %p11639_p12, %p11638_p11 }
  0x2f   :  { %p11641_p0 = pnand %p11640_p13, %p11634_p10 }
  0x31   :  { %11644 = shalt.err (!%p11641_p0)
}
  0x32   :  { %120 = dma.hbm_to_vmem [thread:$0]  %s15650_s11, 2048, %s115_s29, [#allocation12], %s11841_s3, %s11841_s3, %s11842_s26  }
  0x33   :  { %s11653_s30 = scalar_lea.vmem %s147_s7, 8192  ;;  %p11658_p2 = scmp.lt.s32.totalorder %s147_s7, %s147_s7 }
  0x34   :  { %p11654_p1 = scmp.ne.s32.totalorder %s147_s7, %s11653_s30  ;;  %p11659_p3 = scmp.lt.s32.totalorder %s11653_s30, %s11653_s30 }
  0x36   :  { %p11660_p4 = por %p11659_p3, %p11658_p2 }
  0x38   :  { %p11661_p5 = pnand %p11660_p4, %p11654_p1 }
  0x3a   :  { %11664 = shalt.err (!%p11661_p5)
}
  0x3b   :  { %s11845_s27 = smov 512   ;;  %s11846_s4 = smov 32  }
  0x3c   :  { %152 = dma.hbm_to_vmem [thread:$0]  %s15656_s17, 8192, %s147_s7, [#allocation15], %s11845_s27, %s11845_s27, %s11846_s4  }
  0x3d   :  { %s11847_s5 = smov [#allocation17]   ;;  %s11848_s6 = smov [#allocation2]  }
  0x3e   :  { %s174_s0 = sshll.u32 %s11847_s5, 4  ;;  %s42_s2 = sshll.u32 %s11848_s6, 4  ;;  %s175_s0 = int_to_ptr.vmem [resolvable:$true] %s174_s0  ;;  %s43_s2 = int_to_ptr.vmem [resolvable:$true] %s42_s2 }
  0x3f   :  { %s11673_s11 = scalar_lea.vmem %s175_s0, 2048  ;;  %p11678_p7 = scmp.lt.s32.totalorder %s175_s0, %s175_s0 }
  0x40   :  { %p11674_p6 = scmp.ne.s32.totalorder %s175_s0, %s11673_s11  ;;  %p11679_p8 = scmp.lt.s32.totalorder %s11673_s11, %s11673_s11 }
  0x42   :  { %p11680_p9 = por %p11679_p8, %p11678_p7 }
  0x44   :  { %p11681_p10 = pnand %p11680_p9, %p11674_p6 }
  0x46   :  { %11684 = shalt.err (!%p11681_p10)
}
  0x47   :  { %180 = dma.hbm_to_vmem [thread:$0]  %s15660_s21, 2048, %s175_s0, [#allocation18], %s11841_s3, %s11841_s3, %s11842_s26  }
  0x48   :  { %s11693_s17 = scalar_lea.vmem %s43_s2, 2048  ;;  %p11698_p12 = scmp.lt.s32.totalorder %s43_s2, %s43_s2 }
  0x49   :  { %p11694_p11 = scmp.ne.s32.totalorder %s43_s2, %s11693_s17  ;;  %p11699_p13 = scmp.lt.s32.totalorder %s11693_s17, %s11693_s17 }
  0x4b   :  { %p11700_p0 = por %p11699_p13, %p11698_p12 }
  0x4d   :  { %p11701_p1 = pnand %p11700_p0, %p11694_p11 }
  0x4f   :  { %11704 = shalt.err (!%p11701_p1)
}
  0x50   :  { %s15807_s30 = sld [smem:[#allocation119_spill]]  ;;  %s11849_s27 = smov [#allocation7]  }
  0x51   :  { %s72_s28 = sshll.u32 %s11849_s27, 4  ;;  %s11850_s9 = smov [#allocation10]   ;;  %s73_s28 = int_to_ptr.vmem [resolvable:$true] %s72_s28 }
  0x52   :  { %s100_s5 = sshll.u32 %s11850_s9, 4  ;;  %s11713_s21 = scalar_lea.vmem %s73_s28, 2048  ;;  %s101_s5 = int_to_ptr.vmem [resolvable:$true] %s100_s5 }
  0x53   :  { %p11714_p2 = scmp.ne.s32.totalorder %s73_s28, %s11713_s21  ;;  %p11718_p3 = scmp.lt.s32.totalorder %s73_s28, %s73_s28 }
  0x54   :  { %p11719_p4 = scmp.lt.s32.totalorder %s11713_s21, %s11713_s21 }
  0x56   :  { %48 = dma.hbm_to_vmem [thread:$0]  %s15807_s30, 2048, %s43_s2, [#allocation3], %s11841_s3, %s11841_s3, %s11842_s26  }
  0x57   :  { %p11720_p5 = por %p11719_p4, %p11718_p3 }
  0x59   :  { %p11721_p6 = pnand %p11720_p5, %p11714_p2 }
  0x5b   :  { %11724 = shalt.err (!%p11721_p6)
}
  0x5c   :  { %s15808_s11 = sld [smem:[#allocation124_spill]]  ;;  %s11733_s2 = scalar_lea.vmem %s101_s5, 2048 }
  0x5d   :  { %p11734_p7 = scmp.ne.s32.totalorder %s101_s5, %s11733_s2  ;;  %p11738_p8 = scmp.lt.s32.totalorder %s101_s5, %s101_s5 }
  0x5e   :  { %p11739_p9 = scmp.lt.s32.totalorder %s11733_s2, %s11733_s2 }
  0x60   :  { %p11740_p10 = por %p11739_p9, %p11738_p8 }
  0x62   :  { %78 = dma.hbm_to_vmem [thread:$0]  %s15808_s11, 2048, %s73_s28, [#allocation6], %s11841_s3, %s11841_s3, %s11842_s26  }
  0x63   :  { %p11741_p11 = pnand %p11740_p10, %p11734_p7 }
  0x65   :  { %11744 = shalt.err (!%p11741_p11)
}
  0x66   :  { %s15809_s17 = sld [smem:[#allocation128_spill]]  ;;  %s11851_s7 = smov [#allocation13]  }
  0x67   :  { %s128_s8 = sshll.u32 %s11851_s7, 4  ;;  %s11852_s30 = smov [#allocation16]   ;;  %s129_s8 = int_to_ptr.vmem [resolvable:$true] %s128_s8 }
  0x68   :  { %s160_s27 = sshll.u32 %s11852_s30, 4  ;;  %s11753_s28 = scalar_lea.vmem %s129_s8, 2048  ;;  %s161_s27 = int_to_ptr.vmem [resolvable:$true] %s160_s27 }
  0x69   :  { %p11754_p12 = scmp.ne.s32.totalorder %s129_s8, %s11753_s28  ;;  %p11758_p13 = scmp.lt.s32.totalorder %s129_s8, %s129_s8 }
  0x6a   :  { %p11759_p0 = scmp.lt.s32.totalorder %s11753_s28, %s11753_s28 }
  0x6c   :  { %106 = dma.hbm_to_vmem [thread:$0]  %s15809_s17, 2048, %s101_s5, [#allocation9], %s11841_s3, %s11841_s3, %s11842_s26  }
  0x6d   :  { %p11760_p1 = por %p11759_p0, %p11758_p13 }
  0x6f   :  { %p11761_p2 = pnand %p11760_p1, %p11754_p12 }
  0x71   :  { %11764 = shalt.err (!%p11761_p2)
}
  0x72   :  { %134 = dma.hbm_to_vmem [thread:$0]  %s15652_s13, 2048, %s129_s8, [#allocation12], %s11841_s3, %s11841_s3, %s11842_s26  }
  0x73   :  { %s11773_s5 = scalar_lea.vmem %s161_s27, 8192  ;;  %p11778_p4 = scmp.lt.s32.totalorder %s161_s27, %s161_s27 }
  0x74   :  { %p11774_p3 = scmp.ne.s32.totalorder %s161_s27, %s11773_s5  ;;  %p11779_p5 = scmp.lt.s32.totalorder %s11773_s5, %s11773_s5 }
  0x76   :  { %p11780_p6 = por %p11779_p5, %p11778_p4 }
  0x78   :  { %p11781_p7 = pnand %p11780_p6, %p11774_p3 }
  0x7a   :  { %11784 = shalt.err (!%p11781_p7)
}
  0x7b   :  { %166 = dma.hbm_to_vmem [thread:$0]  %s15658_s19, 8192, %s161_s27, [#allocation15], %s11841_s3, %s11841_s3, %s11842_s26  }
  0x7c   :  { %s11853_s11 = smov [#allocation19]  }
  0x7d   :  { %s188_s2 = sshll.u32 %s11853_s11, 4  ;;  %s189_s2 = int_to_ptr.vmem [resolvable:$true] %s188_s2 }
  0x7e   :  { %s11793_s29 = scalar_lea.vmem %s189_s2, 2048  ;;  %p11798_p9 = scmp.lt.s32.totalorder %s189_s2, %s189_s2 }
  0x7f   :  { %p11794_p8 = scmp.ne.s32.totalorder %s189_s2, %s11793_s29  ;;  %p11799_p10 = scmp.lt.s32.totalorder %s11793_s29, %s11793_s29 }
  0x81   :  { %p11800_p11 = por %p11799_p10, %p11798_p9 }
  0x83   :  { %p11801_p12 = pnand %p11800_p11, %p11794_p8 }
  0x85   :  { %11804 = shalt.err (!%p11801_p12)
}
  0x86   :  { %194 = dma.hbm_to_vmem [thread:$0]  %s15662_s23, 2048, %s189_s2, [#allocation18], %s11841_s3, %s11841_s3, %s11842_s26  }
  0x87   :  { %11825 = dma.done.wait [#allocation3], 2048  }
  0x88   :  { %11826 = vsyncadd [#allocation3], 4294965248 }
  0x89   :  { %11827 = dma.done.wait [#allocation6], 4096  }
  0x8a   :  { %11828 = vsyncadd [#allocation6], 4294963200 }
  0x8b   :  { %11829 = dma.done.wait [#allocation9], 4096  }
  0x8c   :  { %11830 = vsyncadd [#allocation9], 4294963200 }
  0x8d   :  { %11831 = dma.done.wait [#allocation12], 4096  }
  0x8e   :  { %11832 = vsyncadd [#allocation12], 4294963200 }
  0x8f   :  { %11833 = dma.done.wait [#allocation15], 16384  }
  0x90   :  { %11834 = vsyncadd [#allocation15], 4294950912 }
  0x91   :  { %11835 = dma.done.wait [#allocation18], 4096  }
  0x92   :  { %11836 = vsyncadd [#allocation18], 4294963200  ;;  %v230_v0 = vld [vmem:[#allocation2] sm:$0xff]  ;;  %v232_v1 = vld [vmem:[#allocation2 + $0x10] sm:$0xff]  ;;  %s15810_s17 = sld [smem:[#allocation120_spill]]  ;;  %vm973_vm0 = vcmask 261120  }
  0x93   :  { %248 = vadd.xlane.f32.xlu0 %v230_v0  ;;  %252 = vadd.xlane.f32.xlu1 %v232_v1  ;;  %v231_v2 = vld [vmem:[#allocation2 + $0x8] sm:$0xff]  ;;  %v233_v3 = vld [vmem:[#allocation2 + $0x18] sm:$0xff]  ;;  %v234_v4 = vld [vmem:[#allocation2 + $0x20] sm:$0xff]  ;;  %s15811_s30 = sld [smem:[#allocation121_spill]]  ;;  %s11854_s6 = smov 96  }
  0x94   :  { %v235_v5 = vld [vmem:[#allocation2 + $0x28] sm:$0xff]  ;;  %v12052_v6 = vld [vmem:[#allocation2 + $0x30] sm:$0xff]  ;;  %v12054_v7 = vld [vmem:[#allocation2 + $0x38] sm:$0xff]  ;;  %s15828_s9 = sld [smem:[#allocation125_spill]]  ;;  %s11855_s13 = smov 64  }
  0x95   :  { %v12058_v8 = vld [vmem:[#allocation2 + $0x40] sm:$0xff]  ;;  %v12060_v9 = vld [vmem:[#allocation2 + $0x48] sm:$0xff]  ;;  %v12064_v10 = vld [vmem:[#allocation2 + $0x50] sm:$0xff]  ;;  %s15830_s0 = sld [smem:[#allocation123_spill]] }
  0x96   :  { %v12066_v11 = vld [vmem:[#allocation2 + $0x58] sm:$0xff]  ;;  %v12070_v12 = vld [vmem:[#allocation2 + $0x60] sm:$0xff]  ;;  %v12072_v13 = vld [vmem:[#allocation2 + $0x68] sm:$0xff]  ;;  %s15846_s29 = sld [smem:[#allocation127_spill]] }
  0x97   :  { %250 = vadd.xlane.f32.xlu0 %v231_v2  ;;  %254 = vadd.xlane.f32.xlu1 %v233_v3  ;;  %v12076_v14 = vld [vmem:[#allocation2 + $0x70] sm:$0xff]  ;;  %v12078_v15 = vld [vmem:[#allocation2 + $0x78] sm:$0xff]  ;;  %v482_v52 = vld [vmem:[#allocation5 + $0x68] sm:$0xff] }
  0x98   :  { %v484_v16 = vld [vmem:[#allocation5 + $0x78] sm:$0xff]  ;;  %v483_v18 = vld [vmem:[#allocation5 + $0x70] sm:$0xff]  ;;  %v650_v53 = vld [vmem:[#allocation7 + $0x68] sm:$0xff] }
  0x99   :  { %v652_v17 = vld [vmem:[#allocation7 + $0x78] sm:$0xff]  ;;  %10046 = vmatprep.subr.mxu0 %v484_v16  ;;  %v651_v19 = vld [vmem:[#allocation7 + $0x70] sm:$0xff]  ;;  %v481_v57 = vld [vmem:[#allocation5 + $0x60] sm:$0xff] }
  0x9a   :  { %10102 = vmatprep.subr.mxu1 %v652_v17  ;;  %10047 = vmatpush3.msra.mxu0 %v484_v16  ;;  %v649_v58 = vld [vmem:[#allocation7 + $0x60] sm:$0xff] }
  0x9b   :  { %256 = vadd.xlane.f32.xlu0 %v234_v4  ;;  %258 = vadd.xlane.f32.xlu1 %v235_v5 }
  0x9c   :  { %10103 = vmatpush3.msra.mxu1 %v652_v17  ;;  %10048 = vmatprep.subr.mxu0 %v483_v18 }
  0x9d   :  { %10104 = vmatprep.subr.mxu1 %v651_v19  ;;  %10049 = vmatpush3.msra.mxu0 %v483_v18 }
  0x9e   :  { %10105 = vmatpush3.msra.mxu1 %v651_v19  ;;  %10050 = vmatprep.subr.mxu0 %v482_v52 }
  0x9f   :  { %260 = vadd.xlane.f32.xlu0 %v12052_v6  ;;  %262 = vadd.xlane.f32.xlu1 %v12054_v7 }
  0xa0   :  { %10106 = vmatprep.subr.mxu1 %v650_v53  ;;  %10051 = vmatpush3.msra.mxu0 %v482_v52  ;;  %v470_v52 = vld [vmem:[#allocation5 + $0x8] sm:$0xff] }
  0xa1   :  { %10107 = vmatpush3.msra.mxu1 %v650_v53  ;;  %10052 = vmatprep.subr.mxu0 %v481_v57  ;;  %v638_v53 = vld [vmem:[#allocation7 + $0x8] sm:$0xff] }
  0xa2   :  { %10108 = vmatprep.subr.mxu1 %v649_v58  ;;  %10053 = vmatpush3.msra.mxu0 %v481_v57 }
  0xa3   :  { %264 = vadd.xlane.f32.xlu0 %v12058_v8  ;;  %266 = vadd.xlane.f32.xlu1 %v12060_v9 }
  0xa4   :  { %10109 = vmatpush3.msra.mxu1 %v649_v58 }
  0xa7   :  { %268 = vadd.xlane.f32.xlu0 %v12064_v10  ;;  %270 = vadd.xlane.f32.xlu1 %v12066_v11 }
  0xab   :  { %272 = vadd.xlane.f32.xlu0 %v12070_v12  ;;  %274 = vadd.xlane.f32.xlu1 %v12072_v13 }
  0xaf   :  { %276 = vadd.xlane.f32.xlu0 %v12076_v14  ;;  %278 = vadd.xlane.f32.xlu1 %v12078_v15 }
 0x11c   :  { %v249_v20 = vpop.xlane.xlu0 %248  ;;  %v253_v21 = vpop.xlane.xlu1 %252 }
 0x11d   :  { %v281_v22 = vmul.f32 0.0078125, %v249_v20  ;;  %v283_v23 = vmul.f32 0.0078125, %v253_v21  ;;  %v478_v21 = vld [vmem:[#allocation5 + $0x48] sm:$0xff] }
 0x11f   :  { %v12082_v24 = vsub.f32 %v230_v0, %v281_v22  ;;  %v12084_v25 = vsub.f32 %v232_v1, %v283_v23  ;;  %v646_v22 = vld [vmem:[#allocation7 + $0x48] sm:$0xff] }
 0x120   :  { %v251_v26 = vpop.xlane.xlu0 %250  ;;  %v255_v27 = vpop.xlane.xlu1 %254 }
 0x121   :  { %v282_v28 = vmul.f32 0.0078125, %v251_v26  ;;  %v313_v29 = vmul.f32 %v12082_v24, %v12082_v24  ;;  %v284_v30 = vmul.f32 0.0078125, %v255_v27  ;;  %v315_v31 = vmul.f32 %v12084_v25, %v12084_v25  ;;  %v477_v26 = vld [vmem:[#allocation5 + $0x40] sm:$0xff] }
 0x122   :  { %v645_v27 = vld [vmem:[#allocation7 + $0x40] sm:$0xff] }
 0x123   :  { %329 = vadd.xlane.f32.xlu0 %v313_v29  ;;  %v12090_v32 = vsub.f32 %v231_v2, %v282_v28  ;;  %v12092_v33 = vsub.f32 %v233_v3, %v284_v30  ;;  %v480_v3 = vld [vmem:[#allocation5 + $0x58] sm:$0xff] }
 0x124   :  { %v257_v34 = vpop.xlane.xlu0 %256  ;;  %v259_v35 = vpop.xlane.xlu1 %258  ;;  %10054 = vmatprep.subr.mxu0 %v480_v3 }
 0x125   :  { %v285_v36 = vmul.f32 0.0078125, %v257_v34  ;;  %v314_v37 = vmul.f32 %v12090_v32, %v12090_v32  ;;  %v286_v38 = vmul.f32 0.0078125, %v259_v35  ;;  %v316_v39 = vmul.f32 %v12092_v33, %v12092_v33  ;;  %10055 = vmatpush3.msra.mxu0 %v480_v3  ;;  %v644_v35 = vld [vmem:[#allocation7 + $0x38] sm:$0xff] }
 0x127   :  { %333 = vadd.xlane.f32.xlu0 %v315_v31  ;;  %331 = vadd.xlane.f32.xlu1 %v314_v37  ;;  %v12098_v40 = vsub.f32 %v234_v4, %v285_v36  ;;  %v12100_v41 = vsub.f32 %v235_v5, %v286_v38  ;;  %v648_v4 = vld [vmem:[#allocation7 + $0x58] sm:$0xff] }
 0x128   :  { %v261_v42 = vpop.xlane.xlu0 %260  ;;  %v263_v43 = vpop.xlane.xlu1 %262  ;;  %10110 = vmatprep.subr.mxu1 %v648_v4 }
 0x129   :  { %v287_v44 = vmul.f32 0.0078125, %v261_v42  ;;  %v317_v45 = vmul.f32 %v12098_v40, %v12098_v40  ;;  %v288_v46 = vmul.f32 0.0078125, %v263_v43  ;;  %v318_v47 = vmul.f32 %v12100_v41, %v12100_v41  ;;  %10111 = vmatpush3.msra.mxu1 %v648_v4  ;;  %v643_v42 = vld [vmem:[#allocation7 + $0x30] sm:$0xff]  ;;  %v474_v43 = vld [vmem:[#allocation5 + $0x28] sm:$0xff] }
 0x12b   :  { %335 = vadd.xlane.f32.xlu1 %v316_v39  ;;  %337 = vadd.xlane.f32.xlu0 %v317_v45  ;;  %v12107_v48 = vsub.f32 %v12052_v6, %v287_v44  ;;  %v12110_v49 = vsub.f32 %v12054_v7, %v288_v46  ;;  %v475_v39 = vld [vmem:[#allocation5 + $0x30] sm:$0xff]  ;;  %v642_v44 = vld [vmem:[#allocation7 + $0x28] sm:$0xff]  ;;  %v641_v45 = vld [vmem:[#allocation7 + $0x20] sm:$0xff] }
 0x12c   :  { %v265_v50 = vpop.xlane.xlu0 %264  ;;  %v267_v51 = vpop.xlane.xlu1 %266  ;;  %v472_v46 = vld [vmem:[#allocation5 + $0x18] sm:$0xff] }
 0x12d   :  { %v289_v54 = vmul.f32 0.0078125, %v265_v50  ;;  %v319_v55 = vmul.f32 %v12107_v48, %v12107_v48  ;;  %v290_v56 = vmul.f32 0.0078125, %v267_v51  ;;  %v320_v59 = vmul.f32 %v12110_v49, %v12110_v49  ;;  %v471_v50 = vld [vmem:[#allocation5 + $0x10] sm:$0xff] }
 0x12e   :  { %v639_v51 = vld [vmem:[#allocation7 + $0x10] sm:$0xff] }
 0x12f   :  { %339 = vadd.xlane.f32.xlu1 %v318_v47  ;;  %341 = vadd.xlane.f32.xlu0 %v319_v55  ;;  %v12117_v60 = vsub.f32 %v12058_v8, %v289_v54  ;;  %v12120_v61 = vsub.f32 %v12060_v9, %v290_v56  ;;  %v479_v8 = vld [vmem:[#allocation5 + $0x50] sm:$0xff]  ;;  %v640_v47 = vld [vmem:[#allocation7 + $0x18] sm:$0xff]  ;;  %v469_v54 = vld [vmem:[#allocation5] sm:$0xff] }
 0x130   :  { %v269_v62 = vpop.xlane.xlu0 %268  ;;  %v271_v63 = vpop.xlane.xlu1 %270  ;;  %v647_v9 = vld [vmem:[#allocation7 + $0x50] sm:$0xff]  ;;  %10056 = vmatprep.subr.mxu0 %v479_v8  ;;  %v637_v55 = vld [vmem:[#allocation7] sm:$0xff]  ;;  %v12156_v56 = vld [vmem:[#allocation8 + $0x78] sm:$0xff] }
 0x131   :  { %v291_v0 = vmul.f32 0.0078125, %v269_v62  ;;  %v321_v1 = vmul.f32 %v12117_v60, %v12117_v60  ;;  %v292_v2 = vmul.f32 0.0078125, %v271_v63  ;;  %v322_v5 = vmul.f32 %v12120_v61, %v12120_v61  ;;  %10112 = vmatprep.subr.mxu1 %v647_v9  ;;  %10057 = vmatpush3.msra.mxu0 %v479_v8 }
 0x132   :  { %10113 = vmatpush3.msra.mxu1 %v647_v9  ;;  %10058 = vmatprep.subr.mxu0 %v478_v21 }
 0x133   :  { %343 = vadd.xlane.f32.xlu1 %v320_v59  ;;  %345 = vadd.xlane.f32.xlu0 %v321_v1  ;;  %v12127_v6 = vsub.f32 %v12064_v10, %v291_v0  ;;  %v12130_v7 = vsub.f32 %v12066_v11, %v292_v2 }
 0x134   :  { %v273_v16 = vpop.xlane.xlu0 %272  ;;  %v275_v17 = vpop.xlane.xlu1 %274  ;;  %10114 = vmatprep.subr.mxu1 %v646_v22  ;;  %10059 = vmatpush3.msra.mxu0 %v478_v21 }
 0x135   :  { %v293_v18 = vmul.f32 0.0078125, %v273_v16  ;;  %v323_v19 = vmul.f32 %v12127_v6, %v12127_v6  ;;  %v294_v20 = vmul.f32 0.0078125, %v275_v17  ;;  %v324_v10 = vmul.f32 %v12130_v7, %v12130_v7  ;;  %10115 = vmatpush3.msra.mxu1 %v646_v22  ;;  %10060 = vmatprep.subr.mxu0 %v477_v26 }
 0x136   :  { %10116 = vmatprep.subr.mxu1 %v645_v27  ;;  %10061 = vmatpush3.msra.mxu0 %v477_v26 }
 0x137   :  { %347 = vadd.xlane.f32.xlu1 %v322_v5  ;;  %349 = vadd.xlane.f32.xlu0 %v323_v19  ;;  %v12137_v11 = vsub.f32 %v12070_v12, %v293_v18  ;;  %v12140_v23 = vsub.f32 %v12072_v13, %v294_v20  ;;  %v476_v12 = vld [vmem:[#allocation5 + $0x38] sm:$0xff] }
 0x138   :  { %v277_v28 = vpop.xlane.xlu0 %276  ;;  %v279_v29 = vpop.xlane.xlu1 %278  ;;  %10117 = vmatpush3.msra.mxu1 %v645_v27  ;;  %10062 = vmatprep.subr.mxu0 %v476_v12 }
 0x139   :  { %v295_v30 = vmul.f32 0.0078125, %v277_v28  ;;  %v325_v31 = vmul.f32 %v12137_v11, %v12137_v11  ;;  %v296_v34 = vmul.f32 0.0078125, %v279_v29  ;;  %v326_v13 = vmul.f32 %v12140_v23, %v12140_v23  ;;  %10118 = vmatprep.subr.mxu1 %v644_v35  ;;  %10063 = vmatpush3.msra.mxu0 %v476_v12 }
 0x13a   :  { %10119 = vmatpush3.msra.mxu1 %v644_v35  ;;  %10064 = vmatprep.subr.mxu0 %v475_v39 }
 0x13b   :  { %351 = vadd.xlane.f32.xlu1 %v324_v10  ;;  %353 = vadd.xlane.f32.xlu0 %v325_v31  ;;  %v12147_v36 = vsub.f32 %v12076_v14, %v295_v30  ;;  %v12150_v37 = vsub.f32 %v12078_v15, %v296_v34  ;;  %v473_v15 = vld [vmem:[#allocation5 + $0x20] sm:$0xff] }
 0x13c   :  { %10120 = vmatprep.subr.mxu1 %v643_v42  ;;  %10065 = vmatpush3.msra.mxu0 %v475_v39  ;;  %v12163_v31 = vld [vmem:[%s15810_s17] ss:$0 sm:$0xff] }
 0x13d   :  { %v327_v38 = vmul.f32 %v12147_v36, %v12147_v36  ;;  %v328_v14 = vmul.f32 %v12150_v37, %v12150_v37  ;;  %10121 = vmatpush3.msra.mxu1 %v643_v42  ;;  %10066 = vmatprep.subr.mxu0 %v474_v43  ;;  %v12169_v39 = vld [vmem:[%s15811_s30] ss:$0 sm:$0xff] }
 0x13e   :  { %10122 = vmatprep.subr.mxu1 %v642_v44  ;;  %10067 = vmatpush3.msra.mxu0 %v474_v43 }
 0x13f   :  { %355 = vadd.xlane.f32.xlu1 %v326_v13  ;;  %357 = vadd.xlane.f32.xlu0 %v327_v38 }
 0x140   :  { %10123 = vmatpush3.msra.mxu1 %v642_v44  ;;  %10068 = vmatprep.subr.mxu0 %v473_v15 }
 0x141   :  { %10124 = vmatprep.subr.mxu1 %v641_v45  ;;  %10069 = vmatpush3.msra.mxu0 %v473_v15 }
 0x142   :  { %10125 = vmatpush3.msra.mxu1 %v641_v45  ;;  %10070 = vmatprep.subr.mxu0 %v472_v46 }
 0x143   :  { %359 = vadd.xlane.f32.xlu1 %v328_v14  ;;  %10126 = vmatprep.subr.mxu1 %v640_v47 }
 0x144   :  { %10071 = vmatpush3.msra.mxu0 %v472_v46  ;;  %10127 = vmatpush3.msra.mxu1 %v640_v47 }
 0x145   :  { %10072 = vmatprep.subr.mxu0 %v471_v50  ;;  %10128 = vmatprep.subr.mxu1 %v639_v51 }
 0x146   :  { %10073 = vmatpush3.msra.mxu0 %v471_v50  ;;  %10129 = vmatpush3.msra.mxu1 %v639_v51 }
 0x147   :  { %10074 = vmatprep.subr.mxu0 %v470_v52  ;;  %10130 = vmatprep.subr.mxu1 %v638_v53 }
 0x148   :  { %10075 = vmatpush3.msra.mxu0 %v470_v52  ;;  %10131 = vmatpush3.msra.mxu1 %v638_v53 }
 0x149   :  { %10076 = vmatprep.subr.mxu0 %v469_v54  ;;  %10132 = vmatprep.subr.mxu1 %v637_v55 }
 0x14a   :  { %10077 = vmatpush3.msra.mxu0 %v469_v54  ;;  %10133 = vmatpush3.msra.mxu1 %v637_v55 }
 0x14b   :  { %10158 = vmatprep.subr.mxu0 %v12156_v56  ;;  %11086 = vmatprep.subr.mxu1 %v12156_v56 }
 0x1ac   :  { %v330_v57 = vpop.xlane.xlu0 %329 }
 0x1ad   :  { %v361_v58 = vmul.f32 0.0078125, %v330_v57 }
 0x1af   :  { %v377_v59 = vadd.f32 1e-12, %v361_v58 }
 0x1b0   :  { %v332_v62 = vpop.xlane.xlu1 %331  ;;  %v334_v63 = vpop.xlane.xlu0 %333 }
 0x1b1   :  { %11137 = vrsqrt.f32 %v377_v59  ;;  %v362_v0 = vmul.f32 0.0078125, %v332_v62  ;;  %v363_v1 = vmul.f32 0.0078125, %v334_v63 }
 0x1b3   :  { %v378_v2 = vadd.f32 1e-12, %v362_v0  ;;  %v379_v3 = vadd.f32 1e-12, %v363_v1 }
 0x1b4   :  { %v336_v4 = vpop.xlane.xlu1 %335  ;;  %v338_v5 = vpop.xlane.xlu0 %337 }
 0x1b5   :  { %11139 = vrsqrt.f32 %v378_v2  ;;  %v364_v8 = vmul.f32 0.0078125, %v336_v4  ;;  %v365_v9 = vmul.f32 0.0078125, %v338_v5  ;;  %v819_v5 = vld [vmem:[#allocation8 + $0x70] sm:$0xff] }
 0x1b6   :  { %11141 = vrsqrt.f32 %v379_v3 }
 0x1b7   :  { %v380_v16 = vadd.f32 1e-12, %v364_v8  ;;  %v381_v17 = vadd.f32 1e-12, %v365_v9 }
 0x1b8   :  { %v340_v18 = vpop.xlane.xlu1 %339  ;;  %v342_v19 = vpop.xlane.xlu0 %341 }
 0x1b9   :  { %11143 = vrsqrt.f32 %v380_v16  ;;  %v366_v20 = vmul.f32 0.0078125, %v340_v18  ;;  %v367_v21 = vmul.f32 0.0078125, %v342_v19 }
 0x1ba   :  { %11145 = vrsqrt.f32 %v381_v17 }
 0x1bb   :  { %v382_v22 = vadd.f32 1e-12, %v366_v20  ;;  %v383_v10 = vadd.f32 1e-12, %v367_v21  ;;  %v818_v21 = vld [vmem:[#allocation8 + $0x68] sm:$0xff] }
 0x1bc   :  { %v344_v26 = vpop.xlane.xlu1 %343  ;;  %v346_v27 = vpop.xlane.xlu0 %345 }
 0x1bd   :  { %11147 = vrsqrt.f32 %v382_v22  ;;  %v368_v28 = vmul.f32 0.0078125, %v344_v26  ;;  %v369_v29 = vmul.f32 0.0078125, %v346_v27 }
 0x1be   :  { %v11138_v30 = vpop.eup %11137  ;;  %11149 = vrsqrt.f32 %v383_v10 }
 0x1bf   :  { %v384_v34 = vadd.f32 1e-12, %v368_v28  ;;  %v385_v12 = vadd.f32 1e-12, %v369_v29  ;;  %v409_v35 = vmul.f32 %v11138_v30, %v12082_v24  ;;  %v817_v30 = vld [vmem:[#allocation8 + $0x60] sm:$0xff] }
 0x1c0   :  { %v348_v13 = vpop.xlane.xlu1 %347  ;;  %v350_v38 = vpop.xlane.xlu0 %349 }
 0x1c1   :  { %11151 = vrsqrt.f32 %v384_v34  ;;  %v370_v42 = vmul.f32 0.0078125, %v348_v13  ;;  %v371_v14 = vmul.f32 0.0078125, %v350_v38  ;;  %v431_v43 = vmul.f32 %v12163_v31, %v409_v35  ;;  %v816_v38 = vld [vmem:[#allocation8 + $0x58] sm:$0xff] }
 0x1c2   :  { %v11140_v44 = vpop.eup %11139  ;;  %11153 = vrsqrt.f32 %v385_v12 }
 0x1c3   :  { %v11142_v15 = vpop.eup %11141  ;;  %v386_v45 = vadd.f32 1e-12, %v370_v42  ;;  %v387_v46 = vadd.f32 1e-12, %v371_v14  ;;  %v12173_v47 = vadd.f32 %v12169_v39, %v431_v43  ;;  %v410_v24 = vmul.f32 %v11140_v44, %v12090_v32  ;;  %v815_v44 = vld [vmem:[#allocation8 + $0x50] sm:$0xff] }
 0x1c4   :  { %v352_v50 = vpop.xlane.xlu1 %351  ;;  %v354_v51 = vpop.xlane.xlu0 %353  ;;  %v411_v52 = vmul.f32 %v11142_v15, %v12084_v25 }
 0x1c5   :  { %15812 = vst [vmem:[#allocation28_spill] sm:$0xff] %v12173_v47  ;;  %11155 = vrsqrt.f32 %v386_v45  ;;  %v372_v53 = vmul.f32 0.0078125, %v352_v50  ;;  %v373_v54 = vmul.f32 0.0078125, %v354_v51  ;;  %10078 = vmatprep.mubr.f32.mxu0 %v12173_v47  ;;  %10134 = vmatprep.mubr.f32.mxu1 %v12173_v47  ;;  %v432_v55 = vmul.f32 %v12163_v31, %v410_v24  ;;  %v814_v24 = vld [vmem:[#allocation8 + $0x48] sm:$0xff] }
 0x1c6   :  { %v11144_v57 = vpop.eup %11143  ;;  %11157 = vrsqrt.f32 %v387_v46  ;;  %v433_v58 = vmul.f32 %v12163_v31, %v411_v52 }
 0x1c7   :  { %v11146_v59 = vpop.eup %11145  ;;  %v388_v62 = vadd.f32 1e-12, %v372_v53  ;;  %v12182_v32 = vadd.f32 %v12169_v39, %v432_v55  ;;  %v412_v25 = vmul.f32 %v11144_v57, %v12092_v33  ;;  %v389_v63 = vadd.f32 1e-12, %v373_v54  ;;  %v813_v53 = vld [vmem:[#allocation8 + $0x40] sm:$0xff] }
 0x1c8   :  { %v356_v0 = vpop.xlane.xlu1 %355  ;;  %v358_v1 = vpop.xlane.xlu0 %357  ;;  %v12186_v2 = vadd.f32 %v12169_v39, %v433_v58  ;;  %v413_v3 = vmul.f32 %v11146_v59, %v12098_v40  ;;  %v812_v58 = vld [vmem:[#allocation8 + $0x38] sm:$0xff] }
 0x1c9   :  { %15813 = vst [vmem:[#allocation29_spill] sm:$0xff] %v12182_v32  ;;  %v374_v4 = vmul.f32 0.0078125, %v356_v0  ;;  %10079 = vmatmul.mubr.f32.vlgmr.msra.gmra.mxu0 %v12182_v32  ;;  %10135 = vmatmul.mubr.f32.vlgmr.msra.gmra.mxu1 %v12182_v32  ;;  %v434_v8 = vmul.f32 %v12163_v31, %v412_v25  ;;  %11159 = vrsqrt.f32 %v388_v62  ;;  %v375_v16 = vmul.f32 0.0078125, %v358_v1 }
 0x1ca   :  { %15814 = vst [vmem:[#allocation30_spill] sm:$0xff] %v12186_v2  ;;  %v11148_v9 = vpop.eup %11147  ;;  %10081 = vmatprep.mubr.f32.mxu0 %v12186_v2  ;;  %10137 = vmatprep.mubr.f32.mxu1 %v12186_v2  ;;  %v435_v33 = vmul.f32 %v12163_v31, %v413_v3  ;;  %11161 = vrsqrt.f32 %v389_v63  ;;  %v811_v63 = vld [vmem:[#allocation8 + $0x30] sm:$0xff] }
 0x1cb   :  { %v11150_v17 = vpop.eup %11149  ;;  %10159 = vmatpush3.msra.mxu0 %v12156_v56  ;;  %11102 = vmatpush3.msra.mxu1 %v12156_v56  ;;  %v12198_v40 = vadd.f32 %v12169_v39, %v434_v8  ;;  %v414_v18 = vmul.f32 %v11148_v9, %v12100_v41  ;;  %v390_v19 = vadd.f32 1e-12, %v374_v4  ;;  %v391_v27 = vadd.f32 1e-12, %v375_v16  ;;  %v810_v4 = vld [vmem:[#allocation8 + $0x28] sm:$0xff]  ;;  %v809_v9 = vld [vmem:[#allocation8 + $0x20] sm:$0xff] }
 0x1cc   :  { %10160 = vmatprep.subr.mxu0 %v819_v5  ;;  %11087 = vmatprep.subr.mxu1 %v819_v5  ;;  %v360_v20 = vpop.xlane.xlu1 %359  ;;  %v12202_v22 = vadd.f32 %v12169_v39, %v435_v33  ;;  %v415_v10 = vmul.f32 %v11150_v17, %v12107_v48  ;;  %v808_v33 = vld [vmem:[#allocation8 + $0x18] sm:$0xff] }
 0x1cd   :  { %15815 = vst [vmem:[#allocation31_spill] sm:$0xff] %v12198_v40  ;;  %10161 = vmatpush3.msra.mxu0 %v819_v5  ;;  %11103 = vmatpush3.msra.mxu1 %v819_v5  ;;  %v436_v56 = vmul.f32 %v12163_v31, %v414_v18  ;;  %v376_v28 = vmul.f32 0.0078125, %v360_v20  ;;  %11163 = vrsqrt.f32 %v390_v19  ;;  %v807_v18 = vld [vmem:[#allocation8 + $0x10] sm:$0xff]  ;;  %v805_v20 = vld [vmem:[#allocation8] sm:$0xff] }
 0x1ce   :  { %15816 = vst [vmem:[#allocation32_spill] sm:$0xff] %v12202_v22  ;;  %v11152_v26 = vpop.eup %11151  ;;  %10082 = vmatmul.mubr.f32.gmra.mxu0 %v12198_v40  ;;  %10138 = vmatmul.mubr.f32.gmra.mxu1 %v12198_v40  ;;  %v437_v41 = vmul.f32 %v12163_v31, %v415_v10  ;;  %11165 = vrsqrt.f32 %v391_v27 }
 0x1cf   :  { %v11154_v29 = vpop.eup %11153  ;;  %10162 = vmatprep.subr.mxu0 %v818_v21  ;;  %11088 = vmatprep.subr.mxu1 %v818_v21  ;;  %v416_v34 = vmul.f32 %v11152_v26, %v12110_v49  ;;  %v12213_v48 = vadd.f32 %v12169_v39, %v436_v56  ;;  %v392_v13 = vadd.f32 1e-12, %v376_v28  ;;  %v12311_v26 = vld [vmem:[%s15830_s0] ss:$0 sm:$0xff] }
 0x1d0   :  { %10084 = vmatprep.mubr.f32.mxu0 %v12202_v22  ;;  %10140 = vmatprep.mubr.f32.mxu1 %v12202_v22  ;;  %v417_v12 = vmul.f32 %v11154_v29, %v12117_v60  ;;  %v12217_v49 = vadd.f32 %v12169_v39, %v437_v41 }
 0x1d1   :  { %15817 = vst [vmem:[#allocation33_spill] sm:$0xff] %v12213_v48  ;;  %10163 = vmatpush3.msra.mxu0 %v818_v21  ;;  %11104 = vmatpush3.msra.mxu1 %v818_v21  ;;  %v438_v42 = vmul.f32 %v12163_v31, %v416_v34  ;;  %11167 = vrsqrt.f32 %v392_v13 }
 0x1d2   :  { %v11156_v35 = vpop.eup %11155  ;;  %10164 = vmatprep.subr.mxu0 %v817_v30  ;;  %11089 = vmatprep.subr.mxu1 %v817_v30  ;;  %15818 = vst [vmem:[#allocation34_spill] sm:$0xff] %v12217_v49  ;;  %v439_v60 = vmul.f32 %v12163_v31, %v417_v12 }
 0x1d3   :  { %v11158_v14 = vpop.eup %11157  ;;  %10165 = vmatpush3.msra.mxu0 %v817_v30  ;;  %11105 = vmatpush3.msra.mxu1 %v817_v30  ;;  %v418_v43 = vmul.f32 %v11156_v35, %v12120_v61  ;;  %v12227_v15 = vadd.f32 %v12169_v39, %v438_v42 }
 0x1d4   :  { %10085 = vmatmul.mubr.f32.gmra.mxu0 %v12213_v48  ;;  %10141 = vmatmul.mubr.f32.gmra.mxu1 %v12213_v48  ;;  %v419_v45 = vmul.f32 %v11158_v14, %v12127_v6  ;;  %v12231_v61 = vadd.f32 %v12169_v39, %v439_v60 }
 0x1d5   :  { %10166 = vmatprep.subr.mxu0 %v816_v38  ;;  %11090 = vmatprep.subr.mxu1 %v816_v38  ;;  %15819 = vst [vmem:[#allocation35_spill] sm:$0xff] %v12227_v15  ;;  %v440_v50 = vmul.f32 %v12163_v31, %v418_v43 }
 0x1d6   :  { %10087 = vmatprep.mubr.f32.mxu0 %v12217_v49  ;;  %10143 = vmatprep.mubr.f32.mxu1 %v12217_v49  ;;  %v11160_v46 = vpop.eup %11159  ;;  %15820 = vst [vmem:[#allocation36_spill] sm:$0xff] %v12231_v61  ;;  %v441_v6 = vmul.f32 %v12163_v31, %v419_v45 }
 0x1d7   :  { %10167 = vmatpush3.msra.mxu0 %v816_v38  ;;  %11106 = vmatpush3.msra.mxu1 %v816_v38  ;;  %v11162_v51 = vpop.eup %11161  ;;  %v420_v52 = vmul.f32 %v11160_v46, %v12130_v7  ;;  %v12241_v54 = vadd.f32 %v12169_v39, %v440_v50 }
 0x1d8   :  { %10168 = vmatprep.subr.mxu0 %v815_v44  ;;  %11091 = vmatprep.subr.mxu1 %v815_v44  ;;  %v421_v55 = vmul.f32 %v11162_v51, %v12137_v11  ;;  %v12245_v7 = vadd.f32 %v12169_v39, %v441_v6 }
 0x1d9   :  { %10169 = vmatpush3.msra.mxu0 %v815_v44  ;;  %11107 = vmatpush3.msra.mxu1 %v815_v44  ;;  %15821 = vst [vmem:[#allocation37_spill] sm:$0xff] %v12241_v54  ;;  %v442_v59 = vmul.f32 %v12163_v31, %v420_v52 }
 0x1da   :  { %10088 = vmatmul.mubr.f32.gmra.mxu0 %v12227_v15  ;;  %10144 = vmatmul.mubr.f32.gmra.mxu1 %v12227_v15  ;;  %v11164_v57 = vpop.eup %11163  ;;  %15822 = vst [vmem:[#allocation38_spill] sm:$0xff] %v12245_v7  ;;  %v443_v11 = vmul.f32 %v12163_v31, %v421_v55 }
 0x1db   :  { %10170 = vmatprep.subr.mxu0 %v814_v24  ;;  %11092 = vmatprep.subr.mxu1 %v814_v24  ;;  %v11166_v62 = vpop.eup %11165  ;;  %v422_v25 = vmul.f32 %v11164_v57, %v12140_v23  ;;  %v12255_v0 = vadd.f32 %v12169_v39, %v442_v59 }
 0x1dc   :  { %10090 = vmatprep.mubr.f32.mxu0 %v12231_v61  ;;  %10146 = vmatprep.mubr.f32.mxu1 %v12231_v61  ;;  %v423_v1 = vmul.f32 %v11166_v62, %v12147_v36  ;;  %v12259_v23 = vadd.f32 %v12169_v39, %v443_v11 }
 0x1dd   :  { %10171 = vmatpush3.msra.mxu0 %v814_v24  ;;  %11108 = vmatpush3.msra.mxu1 %v814_v24  ;;  %15823 = vst [vmem:[#allocation39_spill] sm:$0xff] %v12255_v0  ;;  %v444_v5 = vmul.f32 %v12163_v31, %v422_v25 }
 0x1de   :  { %10172 = vmatprep.subr.mxu0 %v813_v53  ;;  %11093 = vmatprep.subr.mxu1 %v813_v53  ;;  %v11168_v3 = vpop.eup %11167  ;;  %15824 = vst [vmem:[#allocation40_spill] sm:$0xff] %v12259_v23  ;;  %v445_v8 = vmul.f32 %v12163_v31, %v423_v1 }
 0x1df   :  { %10173 = vmatpush3.msra.mxu0 %v813_v53  ;;  %11109 = vmatpush3.msra.mxu1 %v813_v53  ;;  %v424_v36 = vmul.f32 %v11168_v3, %v12150_v37  ;;  %v12269_v16 = vadd.f32 %v12169_v39, %v444_v5 }
 0x1e0   :  { %10091 = vmatmul.mubr.f32.gmra.mxu0 %v12241_v54  ;;  %10147 = vmatmul.mubr.f32.gmra.mxu1 %v12241_v54  ;;  %v12272_v17 = vadd.f32 %v12169_v39, %v445_v8 }
 0x1e1   :  { %10174 = vmatprep.subr.mxu0 %v812_v58  ;;  %11094 = vmatprep.subr.mxu1 %v812_v58  ;;  %15825 = vst [vmem:[#allocation41_spill] sm:$0xff] %v12269_v16  ;;  %v446_v37 = vmul.f32 %v12163_v31, %v424_v36  ;;  %v806_v31 = vld [vmem:[#allocation8 + $0x8] sm:$0xff] }
 0x1e2   :  { %10093 = vmatprep.mubr.f32.mxu0 %v12245_v7  ;;  %10149 = vmatprep.mubr.f32.mxu1 %v12245_v7  ;;  %15826 = vst [vmem:[#allocation42_spill] sm:$0xff] %v12272_v17 }
 0x1e3   :  { %10175 = vmatpush3.msra.mxu0 %v812_v58  ;;  %11110 = vmatpush3.msra.mxu1 %v812_v58  ;;  %v12280_v19 = vadd.f32 %v12169_v39, %v446_v37  ;;  %v12303_v39 = vld [vmem:[%s15828_s9] ss:$0 sm:$0xff] }
 0x1e4   :  { %10176 = vmatprep.subr.mxu0 %v811_v63  ;;  %11095 = vmatprep.subr.mxu1 %v811_v63 }
 0x1e5   :  { %10177 = vmatpush3.msra.mxu0 %v811_v63  ;;  %11111 = vmatpush3.msra.mxu1 %v811_v63  ;;  %15827 = vst [vmem:[#allocation43_spill] sm:$0xff] %v12280_v19 }
 0x1e6   :  { %10094 = vmatmul.mubr.f32.gmra.mxu0 %v12255_v0  ;;  %10150 = vmatmul.mubr.f32.gmra.mxu1 %v12255_v0 }
 0x1e7   :  { %10178 = vmatprep.subr.mxu0 %v810_v4  ;;  %11096 = vmatprep.subr.mxu1 %v810_v4 }
 0x1e8   :  { %10096 = vmatprep.mubr.f32.mxu0 %v12259_v23  ;;  %10152 = vmatprep.mubr.f32.mxu1 %v12259_v23 }
 0x1e9   :  { %10179 = vmatpush3.msra.mxu0 %v810_v4  ;;  %11112 = vmatpush3.msra.mxu1 %v810_v4 }
 0x1ea   :  { %10180 = vmatprep.subr.mxu0 %v809_v9  ;;  %11097 = vmatprep.subr.mxu1 %v809_v9 }
 0x1eb   :  { %10181 = vmatpush3.msra.mxu0 %v809_v9  ;;  %11113 = vmatpush3.msra.mxu1 %v809_v9 }
 0x1ec   :  { %10097 = vmatmul.mubr.f32.gmra.mxu0 %v12269_v16  ;;  %10153 = vmatmul.mubr.f32.gmra.mxu1 %v12269_v16 }
 0x1ed   :  { %10182 = vmatprep.subr.mxu0 %v808_v33  ;;  %11098 = vmatprep.subr.mxu1 %v808_v33 }
 0x1ee   :  { %10099 = vmatprep.mubr.f32.mxu0 %v12272_v17  ;;  %10155 = vmatprep.mubr.f32.mxu1 %v12272_v17 }
 0x1ef   :  { %10183 = vmatpush3.msra.mxu0 %v808_v33  ;;  %11114 = vmatpush3.msra.mxu1 %v808_v33 }
 0x1f0   :  { %10184 = vmatprep.subr.mxu0 %v807_v18  ;;  %11099 = vmatprep.subr.mxu1 %v807_v18 }
 0x1f1   :  { %10185 = vmatpush3.msra.mxu0 %v807_v18  ;;  %11115 = vmatpush3.msra.mxu1 %v807_v18 }
 0x1f2   :  { %10100 = vmatmul.mubr.f32.gmra.mxu0 %v12280_v19  ;;  %10156 = vmatmul.mubr.f32.gmra.mxu1 %v12280_v19 }
 0x1f3   :  { %10186 = vmatprep.subr.mxu0 %v806_v31  ;;  %11100 = vmatprep.subr.mxu1 %v806_v31 }
 0x1f4   :  { %10187 = vmatpush3.msra.mxu0 %v806_v31  ;;  %11116 = vmatpush3.msra.mxu1 %v806_v31 }
 0x1f5   :  { %10190 = vmatprep.mubr.f32.mxu0 %v12173_v47  ;;  %10202 = vmatprep.mubr.f32.mxu1 %v12231_v61 }
 0x1f6   :  { %10188 = vmatprep.subr.mxu0 %v805_v20  ;;  %11101 = vmatprep.subr.mxu1 %v805_v20 }
 0x1f7   :  { %10189 = vmatpush3.msra.mxu0 %v805_v20  ;;  %11117 = vmatpush3.msra.mxu1 %v805_v20 }
 0x1f8   :  { %10191 = vmatmul.mubr.f32.vlgmr.msra.gmra.mxu0 %v12182_v32  ;;  %10203 = vmatmul.mubr.f32.vlgmr.msra.gmra.mxu1 %v12241_v54 }
 0x1f9   :  { %10193 = vmatprep.mubr.f32.mxu0 %v12186_v2  ;;  %10205 = vmatprep.mubr.f32.mxu1 %v12245_v7 }
 0x1fc   :  { %10194 = vmatmul.mubr.f32.gmra.mxu0 %v12198_v40  ;;  %10206 = vmatmul.mubr.f32.gmra.mxu1 %v12255_v0 }
 0x1fd   :  { %10196 = vmatprep.mubr.f32.mxu0 %v12202_v22  ;;  %10208 = vmatprep.mubr.f32.mxu1 %v12259_v23 }
 0x200   :  { %10197 = vmatmul.mubr.f32.gmra.mxu0 %v12213_v48  ;;  %10209 = vmatmul.mubr.f32.gmra.mxu1 %v12269_v16 }
 0x201   :  { %10199 = vmatprep.mubr.f32.mxu0 %v12217_v49  ;;  %10211 = vmatprep.mubr.f32.mxu1 %v12272_v17 }
 0x204   :  { %10200 = vmatmul.mubr.f32.gmra.mxu0 %v12227_v15  ;;  %10212 = vmatmul.mubr.f32.gmra.mxu1 %v12280_v19 }
 0x289   :  { %v10080_v21 = vpop.f32.mrf.mxu0  ;;  %v10136_v10 = vpop.f32.mrf.mxu1 }
 0x28a   :  { %v12306_v56 = vadd.f32 %v10136_v10, %v12303_v39  ;;  %v12322_v30 = vadd.f32 %v10080_v21, %v12311_v26 }
 0x28b   :  { %v558_v27 = vpop.f32.mrf.mxu0  ;;  %v726_v28 = vpop.f32.mrf.mxu1 }
 0x28c   :  { %15829 = vst [vmem:[#allocation44_spill] sm:$0xff] %v12306_v56  ;;  %v12314_v41 = vadd.f32 %v12311_v26, %v558_v27  ;;  %v12317_v29 = vadd.f32 %v12303_v39, %v726_v28  ;;  %1992 = vrot.lane.b32.xlu1 %v12306_v56, %s11854_s6  ;;  %15833 = vst [vmem:[#allocation47_spill] sm:$0xff] %v12322_v30 }
 0x28e   :  { %15831 = vst [vmem:[#allocation45_spill] sm:$0xff] %v12314_v41  ;;  %15832 = vst [vmem:[#allocation46_spill] sm:$0xff] %v12317_v29  ;;  %v10083_v34 = vpop.f32.mrf.mxu0  ;;  %v10139_v12 = vpop.f32.mrf.mxu1  ;;  %1990 = vrot.lane.b32.xlu0 %v12317_v29, %s11854_s6  ;;  %10222 = vmatprep.mubr.msk.f32.mxu1 %vm973_vm0, %v12314_v41 }
 0x28f   :  { %v12329_v35 = vadd.f32 %v10139_v12, %v12303_v39  ;;  %v12339_v14 = vadd.f32 %v10083_v34, %v12311_v26 }
 0x290   :  { %v568_v13 = vpop.f32.mrf.mxu0  ;;  %v736_v38 = vpop.f32.mrf.mxu1  ;;  %1984 = vrot.lane.b32.xlu1 %v12322_v30, %s11854_s6 }
 0x291   :  { %15834 = vst [vmem:[#allocation48_spill] sm:$0xff] %v12329_v35  ;;  %v12334_v42 = vadd.f32 %v12303_v39, %v736_v38  ;;  %10214 = vmatprep.subr.msk.mxu1 %vm973_vm0, %v12329_v35  ;;  %15836 = vst [vmem:[#allocation50_spill] sm:$0xff] %v12339_v14  ;;  %v12356_v46 = vadd.f32 %v12311_v26, %v568_v13 }
 0x292   :  { %10215 = vmatpush3.xpose.msk.msra.mxu1 %vm973_vm0, %v12329_v35  ;;  %1982 = vrot.lane.b32.xlu0 %v12314_v41, %s11854_s6 }
 0x293   :  { %15835 = vst [vmem:[#allocation49_spill] sm:$0xff] %v12334_v42  ;;  %10216 = vmatprep.subr.msk.mxu1 %vm973_vm0, %v12334_v42  ;;  %15837 = vst [vmem:[#allocation51_spill] sm:$0xff] %v12356_v46 }
 0x294   :  { %v10086_v60 = vpop.f32.mrf.mxu0  ;;  %v10142_v43 = vpop.f32.mrf.mxu1  ;;  %1988 = vrot.lane.b32.xlu1 %v12339_v14, %s11854_s6 }
 0x295   :  { %v12370_v6 = vadd.f32 %v10142_v43, %v12303_v39  ;;  %v12444_v20 = vadd.f32 %v10086_v60, %v12311_v26 }
 0x296   :  { %v578_v44 = vpop.f32.mrf.mxu0  ;;  %v746_v45 = vpop.f32.mrf.mxu1  ;;  %10217 = vmatpush3.xpose.msk.msra.mxu1 %vm973_vm0, %v12334_v42  ;;  %1996 = vrot.lane.b32.xlu0 %v12329_v35, %s11854_s6 }
 0x297   :  { %10218 = vmatprep.subr.msk.mxu1 %vm973_vm0, %v12306_v56  ;;  %15839 = vst [vmem:[#allocation53_spill] sm:$0xff] %v12370_v6  ;;  %v12384_v59 = vadd.f32 %v12303_v39, %v746_v45  ;;  %v12402_v63 = vadd.f32 %v12311_v26, %v578_v44  ;;  %15845 = vst [vmem:[#allocation59_spill] sm:$0xff] %v12444_v20  ;;  %v12483_v44 = vld [vmem:[%s15846_s29] ss:$0 sm:$0xff] }
 0x298   :  { %1994 = vrot.lane.b32.xlu1 %v12334_v42, %s11854_s6 }
 0x299   :  { %15841 = vst [vmem:[#allocation55_spill] sm:$0xff] %v12384_v59  ;;  %15842 = vst [vmem:[#allocation56_spill] sm:$0xff] %v12402_v63 }
 0x29a   :  { %v10089_v24 = vpop.f32.mrf.mxu0  ;;  %v10145_v50 = vpop.f32.mrf.mxu1  ;;  %10219 = vmatpush3.xpose.msk.msra.mxu1 %vm973_vm0, %v12306_v56  ;;  %1986 = vrot.lane.b32.xlu0 %v12356_v46, %s11854_s6 }
 0x29b   :  { %v12365_v51 = vadd.f32 %v10145_v50, %v12303_v39  ;;  %10220 = vmatprep.subr.msk.mxu1 %vm973_vm0, %v12317_v29  ;;  %v12463_v34 = vadd.f32 %v10089_v24, %v12311_v26 }
 0x29c   :  { %v588_v52 = vpop.f32.mrf.mxu0  ;;  %v756_v53 = vpop.f32.mrf.mxu1 }
 0x29d   :  { %15838 = vst [vmem:[#allocation52_spill] sm:$0xff] %v12365_v51  ;;  %2113 = vrot.lane.b32.xlu1 %v12365_v51, %s11854_s6  ;;  %v12379_v55 = vadd.f32 %v12303_v39, %v756_v53  ;;  %v12449_v21 = vadd.f32 %v12311_v26, %v588_v52 }
 0x29e   :  { %10221 = vmatpush3.xpose.msk.msra.mxu1 %vm973_vm0, %v12317_v29  ;;  %2109 = vrot.lane.b32.xlu0 %v12370_v6, %s11854_s6 }
 0x29f   :  { %15840 = vst [vmem:[#allocation54_spill] sm:$0xff] %v12379_v55  ;;  %10228 = vmatprep.subr.msk.mxu1 %vm973_vm0, %v12365_v51 }
 0x2a0   :  { %v10092_v57 = vpop.f32.mrf.mxu0  ;;  %v10148_v58 = vpop.f32.mrf.mxu1 }
 0x2a1   :  { %2111 = vrot.lane.b32.xlu1 %v12379_v55, %s11854_s6  ;;  %10223 = vmatmul.mubr.msk.f32.vlgmr.msra.gmra.mxu1 %vm973_vm0, %v12322_v30  ;;  %v12435_v37 = vadd.f32 %v10148_v58, %v12303_v39  ;;  %v12490_v45 = vadd.f32 %v10092_v57, %v12311_v26 }
 0x2a2   :  { %v598_v62 = vpop.f32.mrf.mxu0  ;;  %v766_v11 = vpop.f32.mrf.mxu1  ;;  %10225 = vmatprep.mubr.msk.f32.mxu1 %vm973_vm0, %v12356_v46  ;;  %10229 = vmatpush3.xpose.msk.msra.mxu1 %vm973_vm0, %v12365_v51 }
 0x2a3   :  { %v12395_v25 = vadd.f32 %v12311_v26, %v598_v62  ;;  %2107 = vrot.lane.b32.xlu0 %v12384_v59, %s11854_s6  ;;  %10230 = vmatprep.subr.msk.mxu1 %vm973_vm0, %v12379_v55  ;;  %v12452_v10 = vadd.f32 %v12303_v39, %v766_v11 }
 0x2a5   :  { %10250 = vmatprep.mubr.msk.f32.mxu0 %vm973_vm0, %v12395_v25  ;;  %10226 = vmatmul.mubr.msk.f32.gmra.mxu1 %vm973_vm0, %v12339_v14 }
 0x2a6   :  { %v10095_v1 = vpop.f32.mrf.mxu0  ;;  %v10151_v3 = vpop.f32.mrf.mxu1  ;;  %10231 = vmatpush3.xpose.msk.msra.mxu1 %vm973_vm0, %v12379_v55  ;;  %10236 = vmatprep.mubr.msk.f32.mxu1 %vm973_vm0, %v12402_v63 }
 0x2a7   :  { %v12413_v4 = vadd.f32 %v10151_v3, %v12303_v39  ;;  %10232 = vmatprep.subr.msk.mxu1 %vm973_vm0, %v12370_v6  ;;  %v12514_v11 = vadd.f32 %v10095_v1, %v12311_v26 }
 0x2a8   :  { %v608_v5 = vpop.f32.mrf.mxu0  ;;  %v776_v8 = vpop.f32.mrf.mxu1 }
 0x2a9   :  { %15843 = vst [vmem:[#allocation57_spill] sm:$0xff] %v12413_v4  ;;  %v12418_v36 = vadd.f32 %v12303_v39, %v776_v8  ;;  %10242 = vmatprep.subr.msk.mxu0 %vm973_vm0, %v12413_v4  ;;  %2230 = vrot.lane.b32.xlu1 %v12413_v4, %s11854_s6  ;;  %v12497_v24 = vadd.f32 %v12311_v26, %v608_v5 }
 0x2aa   :  { %10243 = vmatpush3.xpose.msk.msra.mxu0 %vm973_vm0, %v12413_v4  ;;  %10233 = vmatpush3.xpose.msk.msra.mxu1 %vm973_vm0, %v12370_v6 }
 0x2ab   :  { %15844 = vst [vmem:[#allocation58_spill] sm:$0xff] %v12418_v36  ;;  %10244 = vmatprep.subr.msk.mxu0 %vm973_vm0, %v12418_v36  ;;  %10234 = vmatprep.subr.msk.mxu1 %vm973_vm0, %v12384_v59 }
 0x2ac   :  { %v12432_v9 = vpop.f32.mrf.mxu0  ;;  %v10154_v33 = vpop.f32.mrf.mxu1 }
 0x2ad   :  { %2228 = vrot.lane.b32.xlu1 %v12418_v36, %s11854_s6  ;;  %v12500_v53 = vadd.f32 %v10154_v33, %v12303_v39 }
 0x2ae   :  { %v618_v18 = vpop.f32.mrf.mxu0  ;;  %v786_v31 = vpop.f32.mrf.mxu1  ;;  %10245 = vmatpush3.xpose.msk.msra.mxu0 %vm973_vm0, %v12418_v36  ;;  %10235 = vmatpush3.xpose.msk.msra.mxu1 %vm973_vm0, %v12384_v59 }
 0x2af   :  { %10246 = vmatprep.subr.msk.mxu0 %vm973_vm0, %v12435_v37  ;;  %v12471_v60 = vadd.f32 %v12311_v26, %v618_v18  ;;  %v12519_v8 = vadd.f32 %v12303_v39, %v786_v31 }
 0x2b1   :  { %10237 = vmatmul.mubr.msk.f32.vlgmr.msra.gmra.mxu1 %vm973_vm0, %v12444_v20 }
 0x2b2   :  { %v12456_v27 = vpop.f32.mrf.mxu0  ;;  %v10157_v28 = vpop.f32.mrf.mxu1  ;;  %10247 = vmatpush3.xpose.msk.msra.mxu0 %vm973_vm0, %v12435_v37  ;;  %10239 = vmatprep.mubr.msk.f32.mxu1 %vm973_vm0, %v12449_v21 }
 0x2b3   :  { %v12466_v12 = vadd.f32 %v10157_v28, %v12303_v39  ;;  %10248 = vmatprep.subr.msk.mxu0 %vm973_vm0, %v12452_v10 }
 0x2b4   :  { %v628_v13 = vpop.f32.mrf.mxu0  ;;  %v796_v38 = vpop.f32.mrf.mxu1 }
 0x2b5   :  { %v12474_v43 = vadd.f32 %v12303_v39, %v796_v38  ;;  %10256 = vmatprep.subr.msk.mxu1 %vm973_vm0, %v12466_v12  ;;  %10240 = vmatmul.mubr.msk.f32.gmra.mxu1 %vm973_vm0, %v12463_v34 }
 0x2b6   :  { %10249 = vmatpush3.xpose.msk.msra.mxu0 %vm973_vm0, %v12452_v10  ;;  %10257 = vmatpush3.xpose.msk.msra.mxu1 %vm973_vm0, %v12466_v12 }
 0x2b7   :  { %10258 = vmatprep.subr.msk.mxu1 %vm973_vm0, %v12474_v43  ;;  %10264 = vmatprep.mubr.msk.f32.mxu1 %vm973_vm0, %v12471_v60 }
 0x2b8   :  { %v10192_v50 = vpop.f32.mrf.mxu0  ;;  %v10204_v52 = vpop.f32.mrf.mxu1 }
 0x2b9   :  { %v12503_v58 = vadd.f32 %v10204_v52, %v12483_v44  ;;  %10251 = vmatmul.mubr.msk.f32.vlgmr.msra.gmra.mxu0 %vm973_vm0, %v12490_v45  ;;  %v12538_v38 = vadd.f32 %v10192_v50, %v12483_v44  ;;  %v12556_v50 = vadd.f32 %v12311_v26, %v628_v13  ;;  %v12575_v13 = vadd.f32 %v12456_v27, %v12311_v26 }
 0x2ba   :  { %v894_v57 = vpop.f32.mrf.mxu0  ;;  %v12507_v62 = vpop.f32.mrf.mxu1  ;;  %10253 = vmatprep.mubr.msk.f32.mxu0 %vm973_vm0, %v12497_v24  ;;  %10259 = vmatpush3.xpose.msk.msra.mxu1 %vm973_vm0, %v12474_v43 }
 0x2bb   :  { %15847 = vst [vmem:[#allocation60_spill] sm:$0xff] %v12503_v58  ;;  %10260 = vmatprep.subr.msk.mxu1 %vm973_vm0, %v12500_v53  ;;  %v12552_v17 = vadd.f32 %v12483_v44, %v894_v57 }
 0x2bc   :  { %v10195_v3 = vpop.f32.mrf.mxu0  ;;  %v10207_v5 = vpop.f32.mrf.mxu1 }
 0x2bd   :  { %v12522_v33 = vadd.f32 %v10195_v3, %v12483_v44  ;;  %10254 = vmatmul.mubr.msk.f32.gmra.mxu0 %vm973_vm0, %v12514_v11  ;;  %v12560_v19 = vadd.f32 %v10207_v5, %v12483_v44 }
 0x2be   :  { %v904_v18 = vpop.f32.mrf.mxu0  ;;  %v12526_v28 = vpop.f32.mrf.mxu1  ;;  %10261 = vmatpush3.xpose.msk.msra.mxu1 %vm973_vm0, %v12500_v53 }
 0x2bf   :  { %v12531_v1 = vadd.f32 %v12483_v44, %v904_v18  ;;  %10270 = vmatprep.subr.mxu0 %v12522_v33  ;;  %10262 = vmatprep.subr.msk.mxu1 %vm973_vm0, %v12519_v8  ;;  %v12549_v18 = vadd.f32 %v12432_v9, %v12311_v26  ;;  %15848 = vst [vmem:[#allocation61_spill] sm:$0xff] %v12560_v19 }
 0x2c0   :  { %v10198_v39 = vpop.f32.mrf.mxu0  ;;  %v10210_v31 = vpop.f32.mrf.mxu1  ;;  %10271 = vmatpush3.msra.mxu0 %v12522_v33 }
 0x2c1   :  { %v12541_v52 = vadd.f32 %v10210_v31, %v12483_v44  ;;  %10272 = vmatprep.subr.mxu0 %v12531_v1 }
 0x2c2   :  { %v914_v3 = vpop.f32.mrf.mxu0  ;;  %10273 = vmatpush3.msra.mxu0 %v12531_v1  ;;  %10263 = vmatpush3.xpose.msk.msra.mxu1 %vm973_vm0, %v12519_v8  ;;  %v12568_v9 = vpop.f32.mrf.mxu1 }
 0x2c3   :  { %10274 = vmatprep.subr.mxu0 %v12538_v38  ;;  %v12591_v26 = vadd.f32 %v12483_v44, %v914_v3 }
 0x2c4   :  { %v10201_v31 = vpop.f32.mrf.mxu0  ;;  %10275 = vmatpush3.msra.mxu0 %v12538_v38  ;;  %v10213_v16 = vpop.f32.mrf.mxu1 }
 0x2c5   :  { %v12563_v23 = vadd.f32 %v10201_v31, %v12483_v44  ;;  %10276 = vmatprep.subr.mxu0 %v12552_v17  ;;  %10265 = vmatmul.mubr.msk.f32.vlgmr.msra.gmra.mxu1 %vm973_vm0, %v12549_v18  ;;  %v12584_v31 = vadd.f32 %v10198_v39, %v12483_v44  ;;  %15849 = vst [vmem:[#allocation62_spill] sm:$0xff] %v12591_v26 }
 0x2c6   :  { %v924_v57 = vpop.f32.mrf.mxu0  ;;  %10277 = vmatpush3.msra.mxu0 %v12552_v17  ;;  %10267 = vmatprep.mubr.msk.f32.mxu1 %vm973_vm0, %v12556_v50  ;;  %v12596_v27 = vadd.f32 %v10213_v16, %v12483_v44  ;;  %v12601_v39 = vpop.f32.mrf.mxu1 }
 0x2c7   :  { %v12578_v5 = vadd.f32 %v12483_v44, %v924_v57  ;;  %10298 = vmatprep.subr.mxu0 %v12560_v19  ;;  %10284 = vmatprep.subr.mxu1 %v12563_v23 }
 0x2c8   :  { %10285 = vmatpush3.msra.mxu1 %v12563_v23  ;;  %15850 = vst [vmem:[#allocation63_spill] sm:$0xff] %v12596_v27 }
 0x2c9   :  { %10286 = vmatprep.subr.mxu1 %v12578_v5  ;;  %10268 = vmatmul.mubr.msk.f32.gmra.mxu1 %vm973_vm0, %v12575_v13 }
 0x2ca   :  { %10287 = vmatpush3.msra.mxu1 %v12578_v5 }
 0x2cb   :  { %10288 = vmatprep.subr.mxu1 %v12584_v31 }
 0x2cc   :  { %10289 = vmatpush3.msra.mxu1 %v12584_v31 }
 0x2cd   :  { %10290 = vmatprep.subr.mxu1 %v12591_v26 }
 0x2ce   :  { %10291 = vmatpush3.msra.mxu1 %v12591_v26 }
 0x2cf   :  { %10312 = vmatprep.subr.mxu1 %v12596_v27 }
 0x300   :  { %v12677_v4 = vpop.permute.xlu0 %1990 }
 0x301   :  { %15854 = vst [vmem:[#allocation67_spill] sm:$0xff] %v12677_v4 }
 0x304   :  { %v12681_v30 = vpop.permute.xlu0 %1982 }
 0x305   :  { %15856 = vst [vmem:[#allocation69_spill] sm:$0xff] %v12681_v30 }
 0x361   :  { %v12603_v57 = vpop.f32.mrf.mxu1 }
 0x362   :  { %v1413_v3 = vsel %vm973_vm0, %v12603_v57, -inf }
 0x363   :  { %1414 = vmax.xlane.f32.xlu1 %v1413_v3  ;;  %v12607_v7 = vpop.f32.mrf.mxu1 }
 0x364   :  { %v1410_v16 = vsel %vm973_vm0, %v12607_v7, -inf }
 0x365   :  { %1411 = vmax.xlane.f32.xlu0 %v1410_v16  ;;  %v12611_v0 = vpop.f32.mrf.mxu1 }
 0x366   :  { %v1419_v61 = vsel %vm973_vm0, %v12611_v0, -inf }
 0x367   :  { %1420 = vmax.xlane.f32.xlu1 %v1419_v61  ;;  %v12615_v54 = vpop.f32.mrf.mxu1 }
 0x368   :  { %v1416_v49 = vsel %vm973_vm0, %v12615_v54, -inf }
 0x369   :  { %1417 = vmax.xlane.f32.xlu0 %v1416_v49 }
 0x371   :  { %v12619_v15 = vpop.f32.mrf.mxu1 }
 0x372   :  { %v1425_v3 = vsel %vm973_vm0, %v12619_v15, -inf }
 0x373   :  { %1426 = vmax.xlane.f32.xlu0 %v1425_v3  ;;  %v12623_v22 = vpop.f32.mrf.mxu1 }
 0x374   :  { %v1422_v40 = vsel %vm973_vm0, %v12623_v22, -inf }
 0x375   :  { %v12625_v16 = vpop.f32.mrf.mxu1 }
 0x376   :  { %v1431_v46 = vsel %vm973_vm0, %v12625_v16, -inf }
 0x377   :  { %1423 = vmax.xlane.f32.xlu0 %v1422_v40  ;;  %v12629_v61 = vpop.f32.mrf.mxu1 }
 0x378   :  { %v1428_v2 = vsel %vm973_vm0, %v12629_v61, -inf }
 0x379   :  { %v12631_v48 = vpop.f32.mrf.mxu0 }
 0x37a   :  { %v1437_v49 = vsel %vm973_vm0, %v12631_v48, -inf }
 0x37b   :  { %1438 = vmax.xlane.f32.xlu1 %v1437_v49  ;;  %v12637_v3 = vpop.f32.mrf.mxu0  ;;  %1429 = vmax.xlane.f32.xlu0 %v1428_v2 }
 0x37c   :  { %v1434_v32 = vsel %vm973_vm0, %v12637_v3, -inf }
 0x37d   :  { %v12639_v47 = vpop.f32.mrf.mxu0 }
 0x37e   :  { %v1443_v2 = vsel %vm973_vm0, %v12639_v47, -inf }
 0x37f   :  { %1435 = vmax.xlane.f32.xlu1 %v1434_v32  ;;  %v12643_v40 = vpop.f32.mrf.mxu0 }
 0x380   :  { %v1440_v59 = vsel %vm973_vm0, %v12643_v40, -inf }
 0x381   :  { %1441 = vmax.xlane.f32.xlu0 %v1440_v59 }
 0x383   :  { %1432 = vmax.xlane.f32.xlu1 %v1431_v46 }
 0x385   :  { %v12649_v49 = vpop.f32.mrf.mxu1 }
 0x386   :  { %v1449_v32 = vsel %vm973_vm0, %v12649_v49, -inf }
 0x387   :  { %1444 = vmax.xlane.f32.xlu1 %v1443_v2  ;;  %v12653_v36 = vpop.f32.mrf.mxu1 }
 0x388   :  { %v1446_v6 = vsel %vm973_vm0, %v12653_v36, -inf }
 0x389   :  { %1447 = vmax.xlane.f32.xlu0 %v1446_v6  ;;  %v12659_v59 = vpop.f32.mrf.mxu1  ;;  %v12671_v6 = vpop.permute.xlu1 %1992 }
 0x38a   :  { %v1455_v46 = vsel %vm973_vm0, %v12659_v59, -inf  ;;  %15851 = vst [vmem:[#allocation64_spill] sm:$0xff] %v12671_v6 }
 0x38b   :  { %1450 = vmax.xlane.f32.xlu1 %v1449_v32  ;;  %v12661_v14 = vpop.f32.mrf.mxu1 }
 0x38c   :  { %v1452_v2 = vsel %vm973_vm0, %v12661_v14, -inf }
 0x38d   :  { %1453 = vmax.xlane.f32.xlu0 %v1452_v2  ;;  %v12673_v41 = vpop.permute.xlu1 %1984 }
 0x38e   :  { %15852 = vst [vmem:[#allocation65_spill] sm:$0xff] %v12673_v41 }
 0x38f   :  { %1456 = vmax.xlane.f32.xlu1 %v1455_v46  ;;  %v12685_v46 = vpop.permute.xlu0 %1996 }
 0x391   :  { %v12675_v32 = vpop.permute.xlu1 %1988 }
 0x392   :  { %15853 = vst [vmem:[#allocation66_spill] sm:$0xff] %v12675_v32 }
 0x393   :  { %v12689_v56 = vpop.permute.xlu0 %1986 }
 0x394   :  { %15858 = vst [vmem:[#allocation71_spill] sm:$0xff] %v12689_v56 }
 0x395   :  { %v12679_v29 = vpop.permute.xlu1 %1994 }
 0x396   :  { %15855 = vst [vmem:[#allocation68_spill] sm:$0xff] %v12679_v29 }
 0x397   :  { %v12693_v55 = vpop.permute.xlu0 %2109 }
 0x398   :  { %15860 = vst [vmem:[#allocation73_spill] sm:$0xff] %v12693_v55 }
 0x399   :  { %v12683_v2 = vpop.permute.xlu1 %2113 }
 0x39b   :  { %v12697_v51 = vpop.permute.xlu0 %2107 }
 0x39c   :  { %15862 = vst [vmem:[#allocation75_spill] sm:$0xff] %v12697_v51 }
 0x3a0   :  { %2101 = vrot.lane.b32.xlu1 %v12444_v20, %s11854_s6  ;;  %v12687_v20 = vpop.permute.xlu1 %2111 }
 0x3a1   :  { %15857 = vst [vmem:[#allocation70_spill] sm:$0xff] %v12687_v20 }
 0x3a3   :  { %2099 = vrot.lane.b32.xlu0 %v12402_v63, %s11854_s6 }
 0x3a4   :  { %v12691_v63 = vpop.permute.xlu1 %2230 }
 0x3a5   :  { %15859 = vst [vmem:[#allocation72_spill] sm:$0xff] %v12691_v63 }
 0x3a8   :  { %v12695_v35 = vpop.permute.xlu1 %2228 }
 0x3a9   :  { %15861 = vst [vmem:[#allocation74_spill] sm:$0xff] %v12695_v35 }
 0x3ec   :  { %v1415_v42 = vpop.xlane.xlu1 %1414 }
 0x3ed   :  { %v1459_v32 = vsub.f32 %v12603_v57, %v1415_v42 }
 0x3ee   :  { %v1412_v41 = vpop.xlane.xlu0 %1411 }
 0x3ef   :  { %v1476_v4 = vmul.f32 1.442695, %v1459_v32  ;;  %v1458_v30 = vsub.f32 %v12607_v7, %v1412_v41 }
 0x3f0   :  { %v1421_v6 = vpop.xlane.xlu1 %1420 }
 0x3f1   :  { %11169 = vpow2.f32 %v1476_v4  ;;  %v1474_v20 = vmul.f32 1.442695, %v1458_v30  ;;  %v1461_v56 = vsub.f32 %v12611_v0, %v1421_v6 }
 0x3f2   :  { %v1418_v29 = vpop.xlane.xlu0 %1417 }
 0x3f3   :  { %11171 = vpow2.f32 %v1474_v20  ;;  %v1480_v63 = vmul.f32 1.442695, %v1461_v56  ;;  %v1460_v55 = vsub.f32 %v12615_v54, %v1418_v29 }
 0x3f5   :  { %11173 = vpow2.f32 %v1480_v63  ;;  %v1478_v35 = vmul.f32 1.442695, %v1460_v55 }
 0x3f7   :  { %11175 = vpow2.f32 %v1478_v35 }
 0x3fc   :  { %v1427_v51 = vpop.xlane.xlu0 %1426 }
 0x3fd   :  { %v1463_v42 = vsub.f32 %v12619_v15, %v1427_v51 }
 0x3fe   :  { %v12704_v57 = vpop.eup %11169 }
 0x3ff   :  { %v1484_v32 = vmul.f32 1.442695, %v1463_v42  ;;  %v1509_v7 = vsel %vm973_vm0, %v12704_v57, 0.0 }
 0x400   :  { %v12708_v41 = vpop.eup %11171  ;;  %1510 = vadd.xlane.f32.xlu1 %v1509_v7  ;;  %v1424_v0 = vpop.xlane.xlu0 %1423 }
 0x401   :  { %11177 = vpow2.f32 %v1484_v32  ;;  %v1462_v56 = vsub.f32 %v12623_v22, %v1424_v0  ;;  %v1506_v54 = vsel %vm973_vm0, %v12708_v41, 0.0 }
 0x402   :  { %v12713_v29 = vpop.eup %11173  ;;  %1507 = vadd.xlane.f32.xlu0 %v1506_v54 }
 0x403   :  { %v1482_v15 = vmul.f32 1.442695, %v1462_v56  ;;  %v1515_v30 = vsel %vm973_vm0, %v12713_v29, 0.0 }
 0x404   :  { %v12717_v35 = vpop.eup %11175  ;;  %v1439_v51 = vpop.xlane.xlu1 %1438  ;;  %1516 = vadd.xlane.f32.xlu1 %v1515_v30 }
 0x405   :  { %v1430_v55 = vpop.xlane.xlu0 %1429  ;;  %v1467_v63 = vsub.f32 %v12631_v48, %v1439_v51  ;;  %11179 = vpow2.f32 %v1482_v15  ;;  %v1512_v4 = vsel %vm973_vm0, %v12717_v35, 0.0 }
 0x406   :  { %v1464_v22 = vsub.f32 %v12629_v61, %v1430_v55  ;;  %1513 = vadd.xlane.f32.xlu0 %v1512_v4 }
 0x407   :  { %v1492_v20 = vmul.f32 1.442695, %v1467_v63 }
 0x408   :  { %v1486_v6 = vmul.f32 1.442695, %v1464_v22  ;;  %v1436_v42 = vpop.xlane.xlu1 %1435 }
 0x409   :  { %11181 = vpow2.f32 %v1492_v20  ;;  %v1466_v32 = vsub.f32 %v12637_v3, %v1436_v42 }
 0x40a   :  { %11183 = vpow2.f32 %v1486_v6  ;;  %v1442_v7 = vpop.xlane.xlu0 %1441 }
 0x40b   :  { %v1490_v0 = vmul.f32 1.442695, %v1466_v32  ;;  %v1468_v56 = vsub.f32 %v12643_v40, %v1442_v7 }
 0x40c   :  { %v1433_v54 = vpop.xlane.xlu1 %1432 }
 0x40d   :  { %11185 = vpow2.f32 %v1490_v0  ;;  %v1465_v48 = vsub.f32 %v12625_v16, %v1433_v54  ;;  %v1494_v61 = vmul.f32 1.442695, %v1468_v56 }
 0x40e   :  { %v12726_v15 = vpop.eup %11177 }
 0x40f   :  { %v1488_v30 = vmul.f32 1.442695, %v1465_v48  ;;  %11187 = vpow2.f32 %v1494_v61  ;;  %v1521_v51 = vsel %vm973_vm0, %v12726_v15, 0.0 }
 0x410   :  { %v1445_v55 = vpop.xlane.xlu1 %1444  ;;  %1522 = vadd.xlane.f32.xlu0 %v1521_v51 }
 0x411   :  { %11189 = vpow2.f32 %v1488_v30  ;;  %v1469_v3 = vsub.f32 %v12639_v47, %v1445_v55 }
 0x412   :  { %v12731_v63 = vpop.eup %11179  ;;  %v1448_v40 = vpop.xlane.xlu0 %1447 }
 0x413   :  { %v1496_v22 = vmul.f32 1.442695, %v1469_v3  ;;  %v1470_v4 = vsub.f32 %v12653_v36, %v1448_v40  ;;  %v1518_v16 = vsel %vm973_vm0, %v12731_v63, 0.0 }
 0x414   :  { %v1451_v20 = vpop.xlane.xlu1 %1450  ;;  %1519 = vadd.xlane.f32.xlu0 %v1518_v16 }
 0x415   :  { %11191 = vpow2.f32 %v1496_v22  ;;  %v1471_v6 = vsub.f32 %v12649_v49, %v1451_v20  ;;  %v1498_v42 = vmul.f32 1.442695, %v1470_v4 }
 0x416   :  { %v12737_v32 = vpop.eup %11181  ;;  %v1454_v16 = vpop.xlane.xlu0 %1453 }
 0x417   :  { %v12739_v7 = vpop.eup %11183  ;;  %v1500_v47 = vmul.f32 1.442695, %v1471_v6  ;;  %11193 = vpow2.f32 %v1498_v42  ;;  %v1533_v0 = vsel %vm973_vm0, %v12737_v32, 0.0  ;;  %v1472_v6 = vsub.f32 %v12661_v14, %v1454_v16 }
 0x418   :  { %1534 = vadd.xlane.f32.xlu1 %v1533_v0  ;;  %v1524_v36 = vsel %vm973_vm0, %v12739_v7, 0.0  ;;  %v1457_v20 = vpop.xlane.xlu1 %1456 }
 0x419   :  { %11195 = vpow2.f32 %v1500_v47  ;;  %1525 = vadd.xlane.f32.xlu0 %v1524_v36  ;;  %v1473_v42 = vsub.f32 %v12659_v59, %v1457_v20  ;;  %v1502_v47 = vmul.f32 1.442695, %v1472_v6 }
 0x41a   :  { %v12745_v56 = vpop.eup %11185  ;;  %v12811_v59 = vpop.permute.xlu0 %2099 }
 0x41b   :  { %v1530_v49 = vsel %vm973_vm0, %v12745_v56, 0.0  ;;  %v1504_v0 = vmul.f32 1.442695, %v1473_v42  ;;  %11197 = vpow2.f32 %v1502_v47 }
 0x41c   :  { %v12749_v54 = vpop.eup %11187  ;;  %1531 = vadd.xlane.f32.xlu1 %v1530_v49  ;;  %v12805_v14 = vpop.permute.xlu1 %2101 }
 0x41d   :  { %v1536_v48 = vsel %vm973_vm0, %v12749_v54, 0.0  ;;  %11199 = vpow2.f32 %v1504_v0 }
 0x41e   :  { %v12753_v61 = vpop.eup %11189  ;;  %1537 = vadd.xlane.f32.xlu0 %v1536_v48 }
 0x41f   :  { %v1527_v30 = vsel %vm973_vm0, %v12753_v61, 0.0 }
 0x420   :  { %1528 = vadd.xlane.f32.xlu1 %v1527_v30 }
 0x422   :  { %v12757_v51 = vpop.eup %11191 }
 0x423   :  { %v1539_v55 = vsel %vm973_vm0, %v12757_v51, 0.0 }
 0x424   :  { %v12761_v3 = vpop.eup %11193  ;;  %1540 = vadd.xlane.f32.xlu1 %v1539_v55 }
 0x425   :  { %v1542_v40 = vsel %vm973_vm0, %v12761_v3, 0.0 }
 0x426   :  { %v12765_v22 = vpop.eup %11195  ;;  %1543 = vadd.xlane.f32.xlu0 %v1542_v40 }
 0x427   :  { %v1545_v4 = vsel %vm973_vm0, %v12765_v22, 0.0 }
 0x428   :  { %1546 = vadd.xlane.f32.xlu1 %v1545_v4  ;;  %v12775_v36 = vpop.eup %11197 }
 0x429   :  { %v1548_v48 = vsel %vm973_vm0, %v12775_v36, 0.0 }
 0x42a   :  { %v12777_v49 = vpop.eup %11199 }
 0x42b   :  { %v1551_v30 = vsel %vm973_vm0, %v12777_v49, 0.0 }
 0x439   :  { %2347 = vrot.lane.b32.xlu1 %v12466_v12, %s11854_s6 }
 0x43c   :  { %2226 = vrot.lane.b32.xlu0 %v12435_v37, %s11854_s6 }
 0x45b   :  { %1549 = vadd.xlane.f32.xlu0 %v1548_v48 }
 0x45d   :  { %1552 = vadd.xlane.f32.xlu1 %v1551_v30  ;;  %v12837_v30 = vadd.f32 %v12483_v44, %v12526_v28 }
 0x45f   :  { %15863 = vst [vmem:[#allocation76_spill] sm:$0xff] %v12837_v30 }
 0x46e   :  { %2105 = vrot.lane.b32.xlu1 %v12463_v34, %s11854_s6 }
 0x471   :  { %2103 = vrot.lane.b32.xlu0 %v12449_v21, %s11854_s6 }
 0x472   :  { %2345 = vrot.lane.b32.xlu1 %v12474_v43, %s11854_s6 }
 0x475   :  { %2224 = vrot.lane.b32.xlu0 %v12452_v10, %s11854_s6 }
 0x476   :  { %2218 = vrot.lane.b32.xlu1 %v12490_v45, %s11854_s6 }
 0x479   :  { %2216 = vrot.lane.b32.xlu0 %v12395_v25, %s11854_s6 }
 0x47a   :  { %2220 = vrot.lane.b32.xlu1 %v12497_v24, %s11854_s6 }
 0x47d   :  { %2343 = vrot.lane.b32.xlu0 %v12500_v53, %s11854_s6 }
 0x47e   :  { %2341 = vrot.lane.b32.xlu1 %v12519_v8, %s11854_s6 }
 0x481   :  { %2222 = vrot.lane.b32.xlu0 %v12514_v11, %s11854_s6 }
 0x482   :  { %2335 = vrot.lane.b32.xlu1 %v12549_v18, %s11854_s6 }
 0x485   :  { %2333 = vrot.lane.b32.xlu0 %v12471_v60, %s11854_s6 }
 0x486   :  { %2339 = vrot.lane.b32.xlu1 %v12575_v13, %s11854_s6 }
 0x489   :  { %2337 = vrot.lane.b32.xlu0 %v12556_v50, %s11854_s6  ;;  %v1511_v55 = vpop.xlane.xlu1 %1510 }
 0x48a   :  { %2634 = vrot.lane.b32.xlu1 %v12531_v1, %s11854_s6  ;;  %11201 = vrcp.f32 %v1511_v55 }
 0x48b   :  { %v1508_v40 = vpop.xlane.xlu0 %1507 }
 0x48c   :  { %11203 = vrcp.f32 %v1508_v40 }
 0x48d   :  { %2636 = vrot.lane.b32.xlu0 %v12522_v33, %s11854_s6  ;;  %v1517_v4 = vpop.xlane.xlu1 %1516 }
 0x48e   :  { %2630 = vrot.lane.b32.xlu1 %v12552_v17, %s11854_s6  ;;  %11205 = vrcp.f32 %v1517_v4 }
 0x48f   :  { %v1514_v16 = vpop.xlane.xlu0 %1513 }
 0x490   :  { %11207 = vrcp.f32 %v1514_v16 }
 0x491   :  { %2632 = vrot.lane.b32.xlu0 %v12538_v38, %s11854_s6 }
 0x492   :  { %2747 = vrot.lane.b32.xlu1 %v12578_v5, %s11854_s6 }
 0x495   :  { %2749 = vrot.lane.b32.xlu0 %v12563_v23, %s11854_s6 }
 0x496   :  { %2745 = vrot.lane.b32.xlu1 %v12584_v31, %s11854_s6 }
 0x497   :  { %v11202_v20 = vpop.eup %11201 }
 0x498   :  { %v1571_v0 = vmul.f32 %v11202_v20, %v12704_v57 }
 0x499   :  { %v11204_v6 = vpop.eup %11203  ;;  %2862 = vrot.lane.b32.xlu0 %v12560_v19, %s11854_s6  ;;  %v1523_v42 = vpop.xlane.xlu0 %1522 }
 0x49a   :  { %2743 = vrot.lane.b32.xlu1 %v12591_v26, %s11854_s6  ;;  %v1570_v47 = vmul.f32 %v11204_v6, %v12708_v41  ;;  %11209 = vrcp.f32 %v1523_v42  ;;  %v12851_v41 = vadd.f32 %v12483_v44, %v12507_v62 }
 0x49b   :  { %v11206_v48 = vpop.eup %11205 }
 0x49c   :  { %10278 = vmatprep.mubr.msk.f32.mxu0 %vm973_vm0, %v1570_v47  ;;  %v1573_v28 = vmul.f32 %v11206_v48, %v12713_v29  ;;  %15864 = vst [vmem:[#allocation77_spill] sm:$0xff] %v12851_v41  ;;  %v12865_v48 = vadd.f32 %v12483_v44, %v12601_v39  ;;  %v12874_v39 = vadd.f32 %v12483_v44, %v12568_v9 }
 0x49d   :  { %v11208_v55 = vpop.eup %11207  ;;  %10279 = vmatmul.mubr.msk.f32.vlgmr.msra.gmra.mxu0 %vm973_vm0, %v1571_v0  ;;  %v1520_v40 = vpop.xlane.xlu0 %1519 }
 0x49e   :  { %2860 = vrot.lane.b32.xlu1 %v12837_v30, %s11854_s6  ;;  %10299 = vmatpush3.msra.mxu0 %v12560_v19  ;;  %11211 = vrcp.f32 %v1520_v40  ;;  %v1572_v57 = vmul.f32 %v11208_v55, %v12717_v35  ;;  %15865 = vst [vmem:[#allocation78_spill] sm:$0xff] %v12865_v48  ;;  %15866 = vst [vmem:[#allocation79_spill] sm:$0xff] %v12874_v39 }
 0x49f   :  { %10300 = vmatprep.subr.mxu0 %v12837_v30 }
 0x4a0   :  { %10301 = vmatpush3.msra.mxu0 %v12837_v30  ;;  %10281 = vmatprep.mubr.msk.f32.mxu0 %vm973_vm0, %v1572_v57 }
 0x4a1   :  { %v1535_v4 = vpop.xlane.xlu1 %1534  ;;  %10302 = vmatprep.subr.mxu0 %v12503_v58  ;;  %10282 = vmatmul.mubr.msk.f32.gmra.mxu0 %vm973_vm0, %v1573_v28 }
 0x4a2   :  { %10303 = vmatpush3.msra.mxu0 %v12503_v58  ;;  %v1526_v35 = vpop.xlane.xlu0 %1525 }
 0x4a3   :  { %11213 = vrcp.f32 %v1526_v35  ;;  %10304 = vmatprep.subr.mxu0 %v12851_v41 }
 0x4a4   :  { %10305 = vmatpush3.msra.mxu0 %v12851_v41  ;;  %11215 = vrcp.f32 %v1535_v4 }
 0x4a5   :  { %v1532_v29 = vpop.xlane.xlu1 %1531  ;;  %10326 = vmatprep.subr.msk.mxu0 %vm973_vm0, %v12685_v46 }
 0x4a6   :  { %11217 = vrcp.f32 %v1532_v29 }
 0x4a7   :  { %v1538_v62 = vpop.xlane.xlu0 %1537  ;;  %v11210_v20 = vpop.eup %11209 }
 0x4a8   :  { %11219 = vrcp.f32 %v1538_v62  ;;  %v1575_v47 = vmul.f32 %v11210_v20, %v12726_v15  ;;  %v15869_v20 = vld [vmem:[#allocation69_spill] sm:$0xff] }
 0x4a9   :  { %v1529_v16 = vpop.xlane.xlu1 %1528 }
 0x4aa   :  { %11221 = vrcp.f32 %v1529_v16  ;;  %v15868_v16 = vld [vmem:[#allocation64_spill] sm:$0xff] }
 0x4ab   :  { %v11212_v6 = vpop.eup %11211 }
 0x4ac   :  { %v1574_v42 = vmul.f32 %v11212_v6, %v12731_v63 }
 0x4ad   :  { %v1541_v0 = vpop.xlane.xlu1 %1540 }
 0x4ae   :  { %11223 = vrcp.f32 %v1541_v0  ;;  %10292 = vmatprep.mubr.msk.f32.mxu1 %vm973_vm0, %v1574_v42  ;;  %v15873_v42 = vld [vmem:[#allocation65_spill] sm:$0xff] }
 0x4af   :  { %v1544_v55 = vpop.xlane.xlu0 %1543  ;;  %10293 = vmatmul.mubr.msk.f32.vlgmr.msra.gmra.mxu1 %vm973_vm0, %v1575_v47  ;;  %v15874_v47 = vld [vmem:[#allocation71_spill] sm:$0xff]  ;;  %v15876_v0 = vld [vmem:[#allocation73_spill] sm:$0xff] }
 0x4b0   :  { %v11214_v40 = vpop.eup %11213  ;;  %11225 = vrcp.f32 %v1544_v55  ;;  %10313 = vmatpush3.msra.mxu1 %v12596_v27  ;;  %v15877_v55 = vld [vmem:[#allocation66_spill] sm:$0xff] }
 0x4b1   :  { %v1547_v57 = vpop.xlane.xlu1 %1546  ;;  %10314 = vmatprep.subr.mxu1 %v12865_v48  ;;  %v1576_v15 = vmul.f32 %v11214_v40, %v12739_v7  ;;  %v11216_v63 = vpop.eup %11215 }
 0x4b2   :  { %11227 = vrcp.f32 %v1547_v57  ;;  %10315 = vmatpush3.msra.mxu1 %v12865_v48  ;;  %v1579_v7 = vmul.f32 %v11216_v63, %v12737_v32  ;;  %v15867_v32 = vld [vmem:[#allocation68_spill] sm:$0xff]  ;;  %v15878_v57 = vld [vmem:[#allocation75_spill] sm:$0xff] }
 0x4b3   :  { %v11218_v28 = vpop.eup %11217  ;;  %10295 = vmatprep.mubr.msk.f32.mxu1 %vm973_vm0, %v1576_v15  ;;  %10316 = vmatprep.subr.mxu1 %v12541_v52  ;;  %v2227_v40 = vpop.permute.xlu0 %2226 }
 0x4b4   :  { %v1578_v4 = vmul.f32 %v11218_v28, %v12745_v56  ;;  %10317 = vmatpush3.msra.mxu1 %v12541_v52 }
 0x4b5   :  { %v11220_v35 = vpop.eup %11219  ;;  %10318 = vmatprep.subr.mxu1 %v12874_v39  ;;  %v2348_v15 = vpop.permute.xlu1 %2347 }
 0x4b6   :  { %10306 = vmatprep.mubr.msk.f32.mxu0 %vm973_vm0, %v1578_v4  ;;  %10319 = vmatpush3.msra.mxu1 %v12874_v39  ;;  %v1580_v44 = vmul.f32 %v11220_v35, %v12749_v54 }
 0x4b7   :  { %v11222_v9 = vpop.eup %11221  ;;  %10307 = vmatmul.mubr.msk.f32.vlgmr.msra.gmra.mxu0 %vm973_vm0, %v1579_v7  ;;  %10340 = vmatprep.subr.msk.mxu1 %vm973_vm0, %v12683_v2 }
 0x4b8   :  { %10327 = vmatpush3.xpose.msk.msra.mxu0 %vm973_vm0, %v12685_v46  ;;  %v1577_v56 = vmul.f32 %v11222_v9, %v12753_v61  ;;  %10309 = vmatprep.mubr.msk.f32.mxu0 %vm973_vm0, %v1580_v44 }
 0x4b9   :  { %10328 = vmatprep.subr.msk.mxu0 %vm973_vm0, %v15867_v32 }
 0x4ba   :  { %10296 = vmatmul.mubr.msk.f32.gmra.mxu1 %vm973_vm0, %v1577_v56 }
 0x4bb   :  { %v11224_v29 = vpop.eup %11223 }
 0x4bc   :  { %10329 = vmatpush3.xpose.msk.msra.mxu0 %vm973_vm0, %v15867_v32  ;;  %v1581_v54 = vmul.f32 %v11224_v29, %v12757_v51  ;;  %v15870_v51 = vld [vmem:[#allocation67_spill] sm:$0xff] }
 0x4bd   :  { %v11226_v62 = vpop.eup %11225  ;;  %10330 = vmatprep.subr.msk.mxu0 %vm973_vm0, %v15868_v16 }
 0x4be   :  { %10310 = vmatmul.mubr.msk.f32.gmra.mxu0 %vm973_vm0, %v1581_v54  ;;  %v1582_v46 = vmul.f32 %v11226_v62, %v12761_v3  ;;  %v15871_v3 = vld [vmem:[#allocation70_spill] sm:$0xff] }
 0x4bf   :  { %v11228_v61 = vpop.eup %11227  ;;  %10334 = vmatprep.mubr.msk.f32.mxu0 %vm973_vm0, %v15869_v20 }
 0x4c0   :  { %v1583_v6 = vmul.f32 %v11228_v61, %v12765_v22  ;;  %10331 = vmatpush3.xpose.msk.msra.mxu0 %vm973_vm0, %v15868_v16  ;;  %10320 = vmatprep.mubr.msk.f32.mxu1 %vm973_vm0, %v1582_v46  ;;  %v15872_v22 = vld [vmem:[#allocation72_spill] sm:$0xff] }
 0x4c1   :  { %10332 = vmatprep.subr.msk.mxu0 %vm973_vm0, %v15870_v51 }
 0x4c2   :  { %10321 = vmatmul.mubr.msk.f32.vlgmr.msra.gmra.mxu1 %vm973_vm0, %v1583_v6 }
 0x4c3   :  { %10341 = vmatpush3.xpose.msk.msra.mxu1 %vm973_vm0, %v12683_v2  ;;  %v15875_v2 = vld [vmem:[#allocation74_spill] sm:$0xff] }
 0x4c4   :  { %10333 = vmatpush3.xpose.msk.msra.mxu0 %vm973_vm0, %v15870_v51  ;;  %10342 = vmatprep.subr.msk.mxu1 %vm973_vm0, %v15871_v3 }
 0x4c5   :  { %10354 = vmatprep.subr.msk.mxu0 %vm973_vm0, %v15872_v22 }
 0x4c7   :  { %10335 = vmatmul.mubr.msk.f32.vlgmr.msra.gmra.mxu0 %vm973_vm0, %v15873_v42  ;;  %10343 = vmatpush3.xpose.msk.msra.mxu1 %vm973_vm0, %v15871_v3 }
 0x4c8   :  { %10337 = vmatprep.mubr.msk.f32.mxu0 %vm973_vm0, %v15874_v47  ;;  %10355 = vmatpush3.xpose.msk.msra.mxu0 %vm973_vm0, %v15872_v22 }
 0x4c9   :  { %10356 = vmatprep.subr.msk.mxu0 %vm973_vm0, %v15875_v2  ;;  %10344 = vmatprep.subr.msk.mxu1 %vm973_vm0, %v15876_v0 }
 0x4cb   :  { %10338 = vmatmul.mubr.msk.f32.gmra.mxu0 %vm973_vm0, %v15877_v55  ;;  %10345 = vmatpush3.xpose.msk.msra.mxu1 %vm973_vm0, %v15876_v0 }
 0x4cc   :  { %10357 = vmatpush3.xpose.msk.msra.mxu0 %vm973_vm0, %v15875_v2  ;;  %10346 = vmatprep.subr.msk.mxu1 %vm973_vm0, %v15878_v57 }
 0x4cd   :  { %10358 = vmatprep.subr.msk.mxu0 %vm973_vm0, %v2227_v40 }
 0x4cf   :  { %10347 = vmatpush3.xpose.msk.msra.mxu1 %vm973_vm0, %v15878_v57 }
 0x4d0   :  { %10359 = vmatpush3.xpose.msk.msra.mxu0 %vm973_vm0, %v2227_v40  ;;  %10368 = vmatprep.subr.msk.mxu1 %vm973_vm0, %v2348_v15 }
 0x4e4   :  { %v1550_v63 = vpop.xlane.xlu0 %1549 }
 0x4e5   :  { %11229 = vrcp.f32 %v1550_v63 }
 0x4e6   :  { %v1553_v28 = vpop.xlane.xlu1 %1552 }
 0x4e7   :  { %11231 = vrcp.f32 %v1553_v28 }
 0x4e8   :  { %v2104_v4 = vpop.permute.xlu0 %2103 }
 0x4ea   :  { %v2106_v35 = vpop.permute.xlu1 %2105 }
 0x4ec   :  { %v2225_v7 = vpop.permute.xlu0 %2224 }
 0x4ed   :  { %10360 = vmatprep.subr.msk.mxu0 %vm973_vm0, %v2225_v7 }
 0x4ee   :  { %v2346_v44 = vpop.permute.xlu1 %2345  ;;  %10361 = vmatpush3.xpose.msk.msra.mxu0 %vm973_vm0, %v2225_v7 }
 0x4f0   :  { %v2217_v9 = vpop.permute.xlu0 %2216 }
 0x4f1   :  { %10362 = vmatprep.mubr.msk.f32.mxu0 %vm973_vm0, %v2217_v9 }
 0x4f2   :  { %v11230_v56 = vpop.eup %11229  ;;  %v2219_v32 = vpop.permute.xlu1 %2218 }
 0x4f3   :  { %10363 = vmatmul.mubr.msk.f32.vlgmr.msra.gmra.mxu0 %vm973_vm0, %v2219_v32  ;;  %v1584_v29 = vmul.f32 %v11230_v56, %v12775_v36 }
 0x4f4   :  { %v11232_v54 = vpop.eup %11231  ;;  %v2344_v62 = vpop.permute.xlu0 %2343 }
 0x4f5   :  { %10323 = vmatprep.mubr.msk.f32.mxu1 %vm973_vm0, %v1584_v29  ;;  %v1585_v16 = vmul.f32 %v11232_v54, %v12777_v49 }
 0x4f6   :  { %v2221_v46 = vpop.permute.xlu1 %2220 }
 0x4f7   :  { %10365 = vmatprep.mubr.msk.f32.mxu0 %vm973_vm0, %v2221_v46  ;;  %10324 = vmatmul.mubr.msk.f32.gmra.mxu1 %vm973_vm0, %v1585_v16 }
 0x4f8   :  { %10348 = vmatprep.mubr.msk.f32.mxu1 %vm973_vm0, %v12811_v59  ;;  %v2223_v61 = vpop.permute.xlu0 %2222 }
 0x4f9   :  { %10366 = vmatmul.mubr.msk.f32.gmra.mxu0 %vm973_vm0, %v2223_v61 }
 0x4fa   :  { %v2342_v20 = vpop.permute.xlu1 %2341 }
 0x4fb   :  { %10349 = vmatmul.mubr.msk.f32.vlgmr.msra.gmra.mxu1 %vm973_vm0, %v12805_v14 }
 0x4fc   :  { %10369 = vmatpush3.xpose.msk.msra.mxu1 %vm973_vm0, %v2348_v15  ;;  %10351 = vmatprep.mubr.msk.f32.mxu1 %vm973_vm0, %v2104_v4  ;;  %v2334_v36 = vpop.permute.xlu0 %2333 }
 0x4fd   :  { %10370 = vmatprep.subr.msk.mxu1 %vm973_vm0, %v2346_v44 }
 0x4fe   :  { %v2336_v49 = vpop.permute.xlu1 %2335 }
 0x4ff   :  { %10352 = vmatmul.mubr.msk.f32.gmra.mxu1 %vm973_vm0, %v2106_v35 }
 0x500   :  { %10371 = vmatpush3.xpose.msk.msra.mxu1 %vm973_vm0, %v2346_v44  ;;  %10376 = vmatprep.mubr.msk.f32.mxu1 %vm973_vm0, %v2334_v36  ;;  %v2338_v59 = vpop.permute.xlu0 %2337 }
 0x501   :  { %10372 = vmatprep.subr.msk.mxu1 %vm973_vm0, %v2344_v62 }
 0x502   :  { %v2340_v6 = vpop.permute.xlu1 %2339 }
 0x504   :  { %10373 = vmatpush3.xpose.msk.msra.mxu1 %vm973_vm0, %v2344_v62  ;;  %v2637_v14 = vpop.permute.xlu0 %2636 }
 0x505   :  { %10374 = vmatprep.subr.msk.mxu1 %vm973_vm0, %v2342_v20  ;;  %10382 = vmatprep.subr.mxu0 %v2637_v14 }
 0x506   :  { %v2635_v51 = vpop.permute.xlu1 %2634  ;;  %10383 = vmatpush3.msra.mxu0 %v2637_v14 }
 0x507   :  { %10384 = vmatprep.subr.mxu0 %v2635_v51 }
 0x508   :  { %10375 = vmatpush3.xpose.msk.msra.mxu1 %vm973_vm0, %v2342_v20  ;;  %10385 = vmatpush3.msra.mxu0 %v2635_v51  ;;  %v2633_v3 = vpop.permute.xlu0 %2632 }
 0x509   :  { %10386 = vmatprep.subr.mxu0 %v2633_v3 }
 0x50a   :  { %v2631_v22 = vpop.permute.xlu1 %2630  ;;  %10387 = vmatpush3.msra.mxu0 %v2633_v3 }
 0x50b   :  { %10377 = vmatmul.mubr.msk.f32.vlgmr.msra.gmra.mxu1 %vm973_vm0, %v2336_v49  ;;  %10388 = vmatprep.subr.mxu0 %v2631_v22 }
 0x50c   :  { %10379 = vmatprep.mubr.msk.f32.mxu1 %vm973_vm0, %v2338_v59  ;;  %10389 = vmatpush3.msra.mxu0 %v2631_v22  ;;  %v2750_v42 = vpop.permute.xlu0 %2749 }
 0x50d   :  { %10396 = vmatprep.subr.mxu1 %v2750_v42 }
 0x50e   :  { %v2748_v47 = vpop.permute.xlu1 %2747  ;;  %10397 = vmatpush3.msra.mxu1 %v2750_v42 }
 0x50f   :  { %10380 = vmatmul.mubr.msk.f32.gmra.mxu1 %vm973_vm0, %v2340_v6  ;;  %10398 = vmatprep.subr.mxu1 %v2748_v47 }
 0x510   :  { %10399 = vmatpush3.msra.mxu1 %v2748_v47  ;;  %v12971_v2 = vpop.permute.xlu0 %2862 }
 0x511   :  { %10410 = vmatprep.subr.mxu0 %v12971_v2 }
 0x512   :  { %v2746_v0 = vpop.permute.xlu1 %2745 }
 0x513   :  { %10400 = vmatprep.subr.mxu1 %v2746_v0 }
 0x514   :  { %10401 = vmatpush3.msra.mxu1 %v2746_v0 }
 0x516   :  { %v2744_v55 = vpop.permute.xlu1 %2743 }
 0x517   :  { %10402 = vmatprep.subr.mxu1 %v2744_v55 }
 0x518   :  { %10403 = vmatpush3.msra.mxu1 %v2744_v55 }
 0x55d   :  { %v12974_v40 = vpop.f32.mrf.mxu0 }
 0x55f   :  { %v12976_v57 = vpop.f32.mrf.mxu0 }
 0x561   :  { %v12978_v15 = vpop.f32.mrf.mxu0 }
 0x562   :  { %15879 = vst [vmem:[#allocation68_spill] sm:$0xff] %v12978_v15 }
 0x563   :  { %v12980_v63 = vpop.f32.mrf.mxu0 }
 0x564   :  { %15880 = vst [vmem:[#allocation64_spill] sm:$0xff] %v12980_v63 }
 0x56f   :  { %v13006_v46 = vpop.f32.mrf.mxu1 }
 0x570   :  { %15885 = vst [vmem:[#allocation65_spill] sm:$0xff] %v13006_v46 }
 0x571   :  { %v13008_v61 = vpop.f32.mrf.mxu1 }
 0x572   :  { %15886 = vst [vmem:[#allocation71_spill] sm:$0xff] %v13008_v61 }
 0x577   :  { %v12982_v28 = vpop.f32.mrf.mxu0 }
 0x578   :  { %15881 = vst [vmem:[#allocation69_spill] sm:$0xff] %v12982_v28 }
 0x579   :  { %v12984_v4 = vpop.f32.mrf.mxu0 }
 0x57a   :  { %15882 = vst [vmem:[#allocation67_spill] sm:$0xff] %v12984_v4  ;;  %v13010_v20 = vpop.f32.mrf.mxu1 }
 0x57b   :  { %15887 = vst [vmem:[#allocation74_spill] sm:$0xff] %v13010_v20 }
 0x57c   :  { %v13012_v36 = vpop.f32.mrf.mxu1 }
 0x57d   :  { %15888 = vst [vmem:[#allocation73_spill] sm:$0xff] %v13012_v36 }
 0x57e   :  { %v12986_v35 = vpop.f32.mrf.mxu0 }
 0x57f   :  { %15883 = vst [vmem:[#allocation70_spill] sm:$0xff] %v12986_v35  ;;  %v13076_v35 = vpop.permute.xlu1 %2860 }
 0x580   :  { %v12988_v7 = vpop.f32.mrf.mxu0 }
 0x581   :  { %15884 = vst [vmem:[#allocation72_spill] sm:$0xff] %v12988_v7 }
 0x582   :  { %v13014_v49 = vpop.f32.mrf.mxu1 }
 0x583   :  { %15889 = vst [vmem:[#allocation66_spill] sm:$0xff] %v13014_v49 }
 0x584   :  { %v13016_v59 = vpop.f32.mrf.mxu1 }
 0x585   :  { %15890 = vst [vmem:[#allocation75_spill] sm:$0xff] %v13016_v59 }
 0x587   :  { %v12990_v44 = vpop.f32.mrf.mxu0 }
 0x588   :  { %v2453_v9 = vsel %vm973_vm0, %v12990_v44, -inf }
 0x589   :  { %2454 = vmax.xlane.f32.xlu1 %v2453_v9  ;;  %v12994_v56 = vpop.f32.mrf.mxu0 }
 0x58a   :  { %v2450_v32 = vsel %vm973_vm0, %v12994_v56, -inf }
 0x58b   :  { %2451 = vmax.xlane.f32.xlu0 %v2450_v32  ;;  %v12998_v29 = vpop.f32.mrf.mxu0 }
 0x58c   :  { %v2459_v54 = vsel %vm973_vm0, %v12998_v29, -inf }
 0x58d   :  { %v13002_v62 = vpop.f32.mrf.mxu0 }
 0x58e   :  { %v2456_v16 = vsel %vm973_vm0, %v13002_v62, -inf }
 0x58f   :  { %2460 = vmax.xlane.f32.xlu0 %v2459_v54 }
 0x593   :  { %2457 = vmax.xlane.f32.xlu0 %v2456_v16 }
 0x5b3   :  { %v13022_v51 = vpop.f32.mrf.mxu0 }
 0x5b4   :  { %v2477_v9 = vsel %vm973_vm0, %v13022_v51, -inf }
 0x5b5   :  { %v13032_v0 = vpop.f32.mrf.mxu0 }
 0x5b6   :  { %v2474_v32 = vsel %vm973_vm0, %v13032_v0, -inf }
 0x5b7   :  { %v13018_v6 = vpop.f32.mrf.mxu1 }
 0x5b8   :  { %15891 = vst [vmem:[#allocation80_spill] sm:$0xff] %v13018_v6 }
 0x5b9   :  { %v13020_v14 = vpop.f32.mrf.mxu1 }
 0x5ba   :  { %15892 = vst [vmem:[#allocation81_spill] sm:$0xff] %v13020_v14 }
 0x5bb   :  { %v13024_v3 = vpop.f32.mrf.mxu1 }
 0x5bc   :  { %v2465_v22 = vsel %vm973_vm0, %v13024_v3, -inf }
 0x5bd   :  { %2466 = vmax.xlane.f32.xlu1 %v2465_v22  ;;  %v13028_v42 = vpop.f32.mrf.mxu1  ;;  %v13044_v22 = vpop.f32.mrf.mxu0 }
 0x5be   :  { %v2462_v47 = vsel %vm973_vm0, %v13028_v42, -inf  ;;  %v2483_v6 = vsel %vm973_vm0, %v13044_v22, -inf }
 0x5bf   :  { %2463 = vmax.xlane.f32.xlu0 %v2462_v47  ;;  %v13034_v55 = vpop.f32.mrf.mxu1 }
 0x5c0   :  { %v2471_v16 = vsel %vm973_vm0, %v13034_v55, -inf }
 0x5c1   :  { %2478 = vmax.xlane.f32.xlu1 %v2477_v9  ;;  %v13040_v54 = vpop.f32.mrf.mxu1 }
 0x5c2   :  { %v2468_v47 = vsel %vm973_vm0, %v13040_v54, -inf }
 0x5c3   :  { %2475 = vmax.xlane.f32.xlu0 %v2474_v32  ;;  %v13056_v32 = vpop.f32.mrf.mxu0 }
 0x5c5   :  { %2472 = vmax.xlane.f32.xlu1 %v2471_v16  ;;  %v2480_v16 = vsel %vm973_vm0, %v13056_v32, -inf }
 0x5c7   :  { %2469 = vmax.xlane.f32.xlu0 %v2468_v47 }
 0x5c9   :  { %2484 = vmax.xlane.f32.xlu1 %v2483_v6 }
 0x5cb   :  { %v13054_v9 = vpop.f32.mrf.mxu1 }
 0x5cc   :  { %v2489_v6 = vsel %vm973_vm0, %v13054_v9, -inf }
 0x5cd   :  { %v13058_v14 = vpop.f32.mrf.mxu1 }
 0x5cf   :  { %v13062_v47 = vpop.f32.mrf.mxu1 }
 0x5d0   :  { %v2495_v49 = vsel %vm973_vm0, %v13062_v47, -inf }
 0x5da   :  { %2856 = vrot.lane.b32.xlu1 %v12851_v41, %s11854_s6  ;;  %v2486_v41 = vsel %vm973_vm0, %v13058_v14, -inf }
 0x5dd   :  { %2858 = vrot.lane.b32.xlu0 %v12503_v58, %s11854_s6  ;;  %v13068_v58 = vpop.f32.mrf.mxu1 }
 0x5de   :  { %v2492_v59 = vsel %vm973_vm0, %v13068_v58, -inf }
 0x5fc   :  { %2481 = vmax.xlane.f32.xlu0 %v2480_v16 }
 0x5fe   :  { %2490 = vmax.xlane.f32.xlu1 %v2489_v6 }
 0x600   :  { %2487 = vmax.xlane.f32.xlu0 %v2486_v41 }
 0x602   :  { %2496 = vmax.xlane.f32.xlu1 %v2495_v49 }
 0x604   :  { %2493 = vmax.xlane.f32.xlu0 %v2492_v59 }
 0x612   :  { %v2455_v6 = vpop.xlane.xlu1 %2454 }
 0x613   :  { %2973 = vrot.lane.b32.xlu1 %v12865_v48, %s11854_s6  ;;  %v2499_v41 = vsub.f32 %v12990_v44, %v2455_v6 }
 0x614   :  { %v2452_v16 = vpop.xlane.xlu0 %2451 }
 0x615   :  { %v2498_v28 = vsub.f32 %v12994_v56, %v2452_v16  ;;  %v2516_v4 = vmul.f32 1.442695, %v2499_v41 }
 0x617   :  { %v2514_v59 = vmul.f32 1.442695, %v2498_v28  ;;  %11233 = vpow2.f32 %v2516_v4 }
 0x618   :  { %v2461_v7 = vpop.xlane.xlu0 %2460 }
 0x619   :  { %v2501_v20 = vsub.f32 %v12998_v29, %v2461_v7  ;;  %11235 = vpow2.f32 %v2514_v59 }
 0x61a   :  { %2975 = vrot.lane.b32.xlu0 %v12596_v27, %s11854_s6 }
 0x61b   :  { %v2520_v48 = vmul.f32 1.442695, %v2501_v20 }
 0x61c   :  { %v2458_v49 = vpop.xlane.xlu0 %2457 }
 0x61d   :  { %v2500_v36 = vsub.f32 %v13002_v62, %v2458_v49  ;;  %11237 = vpow2.f32 %v2520_v48 }
 0x61f   :  { %v2518_v46 = vmul.f32 1.442695, %v2500_v36 }
 0x621   :  { %11239 = vpow2.f32 %v2518_v46 }
 0x624   :  { %v13084_v27 = vpop.eup %11233 }
 0x625   :  { %v2549_v44 = vsel %vm973_vm0, %v13084_v27, 0.0 }
 0x626   :  { %v13086_v61 = vpop.eup %11235 }
 0x627   :  { %v2546_v28 = vsel %vm973_vm0, %v13086_v61, 0.0 }
 0x62a   :  { %v13090_v56 = vpop.eup %11237 }
 0x62b   :  { %v2555_v48 = vsel %vm973_vm0, %v13090_v56, 0.0 }
 0x62e   :  { %v13094_v7 = vpop.eup %11239 }
 0x62f   :  { %v2552_v4 = vsel %vm973_vm0, %v13094_v7, 0.0 }
 0x637   :  { %2550 = vadd.xlane.f32.xlu1 %v2549_v44 }
 0x639   :  { %2547 = vadd.xlane.f32.xlu0 %v2546_v28 }
 0x63b   :  { %2556 = vadd.xlane.f32.xlu1 %v2555_v48 }
 0x63d   :  { %2553 = vadd.xlane.f32.xlu0 %v2552_v4 }
 0x646   :  { %v2467_v29 = vpop.xlane.xlu1 %2466 }
 0x647   :  { %v2503_v62 = vsub.f32 %v13024_v3, %v2467_v29 }
 0x648   :  { %v2464_v46 = vpop.xlane.xlu0 %2463 }
 0x649   :  { %v2524_v20 = vmul.f32 1.442695, %v2503_v62  ;;  %v2502_v36 = vsub.f32 %v13028_v42, %v2464_v46 }
 0x64a   :  { %v2479_v16 = vpop.xlane.xlu1 %2478 }
 0x64b   :  { %11241 = vpow2.f32 %v2524_v20  ;;  %v2522_v6 = vmul.f32 1.442695, %v2502_v36  ;;  %v2507_v41 = vsub.f32 %v13022_v51, %v2479_v16 }
 0x64c   :  { %v2476_v49 = vpop.xlane.xlu0 %2475 }
 0x64d   :  { %11243 = vpow2.f32 %v2522_v6  ;;  %v2532_v59 = vmul.f32 1.442695, %v2507_v41  ;;  %v2506_v44 = vsub.f32 %v13032_v0, %v2476_v49 }
 0x64e   :  { %v2473_v28 = vpop.xlane.xlu1 %2472 }
 0x64f   :  { %11245 = vpow2.f32 %v2532_v59  ;;  %v2530_v48 = vmul.f32 1.442695, %v2506_v44  ;;  %v2505_v4 = vsub.f32 %v13034_v55, %v2473_v28 }
 0x650   :  { %v2470_v3 = vpop.xlane.xlu0 %2469 }
 0x651   :  { %11247 = vpow2.f32 %v2530_v48  ;;  %v2528_v29 = vmul.f32 1.442695, %v2505_v4  ;;  %v2504_v42 = vsub.f32 %v13040_v54, %v2470_v3 }
 0x652   :  { %v2485_v62 = vpop.xlane.xlu1 %2484 }
 0x653   :  { %11249 = vpow2.f32 %v2528_v29  ;;  %v2526_v46 = vmul.f32 1.442695, %v2504_v42  ;;  %v2509_v51 = vsub.f32 %v13044_v22, %v2485_v62 }
 0x654   :  { %v13135_v3 = vpop.permute.xlu0 %2858 }
 0x655   :  { %11251 = vpow2.f32 %v2526_v46  ;;  %v2536_v20 = vmul.f32 1.442695, %v2509_v51 }
 0x656   :  { %v13137_v29 = vpop.permute.xlu1 %2856 }
 0x657   :  { %11253 = vpow2.f32 %v2536_v20 }
 0x658   :  { %v13107_v36 = vpop.eup %11241 }
 0x659   :  { %v2561_v0 = vsel %vm973_vm0, %v13107_v36, 0.0 }
 0x65a   :  { %v13111_v16 = vpop.eup %11243  ;;  %2562 = vadd.xlane.f32.xlu1 %v2561_v0 }
 0x65b   :  { %v2558_v55 = vsel %vm973_vm0, %v13111_v16, 0.0 }
 0x65c   :  { %v13115_v54 = vpop.eup %11245  ;;  %2559 = vadd.xlane.f32.xlu0 %v2558_v55 }
 0x65d   :  { %v2573_v22 = vsel %vm973_vm0, %v13115_v54, 0.0 }
 0x65e   :  { %v13119_v6 = vpop.eup %11247  ;;  %2574 = vadd.xlane.f32.xlu1 %v2573_v22 }
 0x65f   :  { %v2570_v41 = vsel %vm973_vm0, %v13119_v6, 0.0 }
 0x660   :  { %v13123_v49 = vpop.eup %11249  ;;  %2571 = vadd.xlane.f32.xlu0 %v2570_v41 }
 0x661   :  { %v2567_v59 = vsel %vm973_vm0, %v13123_v49, 0.0 }
 0x662   :  { %v13127_v44 = vpop.eup %11251  ;;  %2568 = vadd.xlane.f32.xlu1 %v2567_v59 }
 0x663   :  { %v2564_v28 = vsel %vm973_vm0, %v13127_v44, 0.0 }
 0x664   :  { %v13131_v48 = vpop.eup %11253  ;;  %2565 = vadd.xlane.f32.xlu0 %v2564_v28 }
 0x665   :  { %v2579_v4 = vsel %vm973_vm0, %v13131_v48, 0.0 }
 0x666   :  { %2580 = vadd.xlane.f32.xlu1 %v2579_v4 }
 0x685   :  { %v2482_v42 = vpop.xlane.xlu0 %2481 }
 0x686   :  { %v2508_v62 = vsub.f32 %v13056_v32, %v2482_v42 }
 0x687   :  { %v2491_v46 = vpop.xlane.xlu1 %2490 }
 0x688   :  { %v2534_v51 = vmul.f32 1.442695, %v2508_v62  ;;  %v2511_v20 = vsub.f32 %v13054_v9, %v2491_v46 }
 0x689   :  { %v2488_v0 = vpop.xlane.xlu0 %2487 }
 0x68a   :  { %11255 = vpow2.f32 %v2534_v51  ;;  %v2540_v55 = vmul.f32 1.442695, %v2511_v20  ;;  %v2510_v22 = vsub.f32 %v13058_v14, %v2488_v0  ;;  %v15893_v0 = vld [vmem:[#allocation49_spill] sm:$0xff] }
 0x68b   :  { %v2497_v41 = vpop.xlane.xlu1 %2496 }
 0x68c   :  { %11257 = vpow2.f32 %v2540_v55  ;;  %v2538_v59 = vmul.f32 1.442695, %v2510_v22  ;;  %v2513_v28 = vsub.f32 %v13062_v47, %v2497_v41  ;;  %v15894_v55 = vld [vmem:[#allocation52_spill] sm:$0xff] }
 0x68d   :  { %v2494_v4 = vpop.xlane.xlu0 %2493  ;;  %v15895_v22 = vld [vmem:[#allocation48_spill] sm:$0xff] }
 0x68e   :  { %11259 = vpow2.f32 %v2538_v59  ;;  %v2544_v15 = vmul.f32 1.442695, %v2513_v28  ;;  %v2512_v63 = vsub.f32 %v13068_v58, %v2494_v4  ;;  %v15896_v59 = vld [vmem:[#allocation54_spill] sm:$0xff]  ;;  %v15897_v28 = vld [vmem:[#allocation44_spill] sm:$0xff] }
 0x68f   :  { %v13177_v41 = vpop.permute.xlu1 %2973 }
 0x690   :  { %11261 = vpow2.f32 %v2544_v15  ;;  %v2542_v32 = vmul.f32 1.442695, %v2512_v63 }
 0x691   :  { %v13144_v42 = vpop.permute.xlu0 %2975 }
 0x692   :  { %11263 = vpow2.f32 %v2542_v32  ;;  %10424 = vmatprep.subr.mxu1 %v13144_v42  ;;  %v15898_v32 = vld [vmem:[#allocation47_spill] sm:$0xff] }
 0x697   :  { %v13147_v9 = vpop.eup %11255 }
 0x698   :  { %v2576_v14 = vsel %vm973_vm0, %v13147_v9, 0.0 }
 0x699   :  { %v13151_v62 = vpop.eup %11257  ;;  %2577 = vadd.xlane.f32.xlu0 %v2576_v14 }
 0x69a   :  { %v2585_v58 = vsel %vm973_vm0, %v13151_v62, 0.0 }
 0x69b   :  { %v13153_v47 = vpop.eup %11259 }
 0x69c   :  { %v2582_v15 = vsel %vm973_vm0, %v13153_v47, 0.0 }
 0x69d   :  { %v13159_v63 = vpop.eup %11261  ;;  %2586 = vadd.xlane.f32.xlu0 %v2585_v58  ;;  %2583 = vadd.xlane.f32.xlu1 %v2582_v15  ;;  %v15899_v58 = vld [vmem:[#allocation46_spill] sm:$0xff] }
 0x69e   :  { %v2591_v51 = vsel %vm973_vm0, %v13159_v63, 0.0 }
 0x69f   :  { %v13161_v46 = vpop.eup %11263 }
 0x6a0   :  { %v2588_v20 = vsel %vm973_vm0, %v13161_v46, 0.0 }
 0x6a1   :  { %2592 = vadd.xlane.f32.xlu0 %v2591_v51  ;;  %2589 = vadd.xlane.f32.xlu1 %v2588_v20  ;;  %v15900_v51 = vld [vmem:[#allocation57_spill] sm:$0xff] }
 0x6b2   :  { %2969 = vrot.lane.b32.xlu1 %v12874_v39, %s11854_s6 }
 0x6b6   :  { %3774 = vrot.lane.b32.xlu1 %v15893_v0, %s11855_s13 }
 0x6b7   :  { %2971 = vrot.lane.b32.xlu0 %v12541_v52, %s11854_s6 }
 0x6ba   :  { %3893 = vrot.lane.b32.xlu1 %v15894_v55, %s11855_s13 }
 0x6bb   :  { %3776 = vrot.lane.b32.xlu0 %v15895_v22, %s11855_s13 }
 0x6be   :  { %3891 = vrot.lane.b32.xlu1 %v15896_v59, %s11855_s13  ;;  %v15901_v59 = vld [vmem:[#allocation45_spill] sm:$0xff] }
 0x6bf   :  { %3772 = vrot.lane.b32.xlu0 %v15897_v28, %s11855_s13 }
 0x6c0   :  { %v2551_v4 = vpop.xlane.xlu1 %2550 }
 0x6c1   :  { %11265 = vrcp.f32 %v2551_v4  ;;  %v15902_v4 = vld [vmem:[#allocation50_spill] sm:$0xff] }
 0x6c2   :  { %3764 = vrot.lane.b32.xlu1 %v15898_v32, %s11855_s13  ;;  %v2548_v14 = vpop.xlane.xlu0 %2547  ;;  %v15903_v32 = vld [vmem:[#allocation53_spill] sm:$0xff] }
 0x6c3   :  { %11267 = vrcp.f32 %v2548_v14  ;;  %3770 = vrot.lane.b32.xlu0 %v15899_v58, %s11855_s13  ;;  %v15904_v14 = vld [vmem:[#allocation58_spill] sm:$0xff] }
 0x6c4   :  { %v2557_v15 = vpop.xlane.xlu1 %2556 }
 0x6c5   :  { %11269 = vrcp.f32 %v2557_v15  ;;  %v15905_v15 = vld [vmem:[#allocation51_spill] sm:$0xff] }
 0x6c6   :  { %4010 = vrot.lane.b32.xlu1 %v15900_v51, %s11855_s13  ;;  %v2554_v20 = vpop.xlane.xlu0 %2553  ;;  %v15906_v51 = vld [vmem:[#allocation59_spill] sm:$0xff] }
 0x6c7   :  { %11271 = vrcp.f32 %v2554_v20  ;;  %3762 = vrot.lane.b32.xlu0 %v15901_v59, %s11855_s13 }
 0x6ca   :  { %3768 = vrot.lane.b32.xlu1 %v15902_v4, %s11855_s13  ;;  %v15907_v4 = vld [vmem:[#allocation55_spill] sm:$0xff] }
 0x6cb   :  { %3889 = vrot.lane.b32.xlu0 %v15903_v32, %s11855_s13 }
 0x6ce   :  { %4008 = vrot.lane.b32.xlu1 %v15904_v14, %s11855_s13  ;;  %v11266_v58 = vpop.eup %11265 }
 0x6cf   :  { %3766 = vrot.lane.b32.xlu0 %v15905_v15, %s11855_s13  ;;  %v2611_v20 = vmul.f32 %v11266_v58, %v13084_v27  ;;  %v15908_v27 = vld [vmem:[#allocation56_spill] sm:$0xff] }
 0x6d0   :  { %v11268_v0 = vpop.eup %11267 }
 0x6d1   :  { %v2610_v39 = vmul.f32 %v11268_v0, %v13086_v61 }
 0x6d2   :  { %3881 = vrot.lane.b32.xlu1 %v15906_v51, %s11855_s13  ;;  %v11270_v55 = vpop.eup %11269 }
 0x6d3   :  { %3887 = vrot.lane.b32.xlu0 %v15907_v4, %s11855_s13  ;;  %10390 = vmatprep.mubr.msk.f32.mxu0 %vm973_vm0, %v2610_v39  ;;  %v2613_v61 = vmul.f32 %v11270_v55, %v13090_v56 }
 0x6d4   :  { %v11272_v32 = vpop.eup %11271  ;;  %10391 = vmatmul.mubr.msk.f32.vlgmr.msra.gmra.mxu0 %vm973_vm0, %v2611_v20 }
 0x6d5   :  { %10411 = vmatpush3.msra.mxu0 %v12971_v2  ;;  %v2612_v14 = vmul.f32 %v11272_v32, %v13094_v7 }
 0x6d6   :  { %10412 = vmatprep.subr.mxu0 %v13076_v35  ;;  %4127 = vrot.lane.b32.xlu1 %v12466_v12, %s11855_s13 }
 0x6d7   :  { %10413 = vmatpush3.msra.mxu0 %v13076_v35  ;;  %3879 = vrot.lane.b32.xlu0 %v15908_v27, %s11855_s13 }
 0x6d8   :  { %10393 = vmatprep.mubr.msk.f32.mxu0 %vm973_vm0, %v2612_v14  ;;  %10414 = vmatprep.subr.mxu0 %v13135_v3 }
 0x6d9   :  { %10394 = vmatmul.mubr.msk.f32.gmra.mxu0 %vm973_vm0, %v2613_v61 }
 0x6da   :  { %10415 = vmatpush3.msra.mxu0 %v13135_v3  ;;  %3885 = vrot.lane.b32.xlu1 %v12463_v34, %s11855_s13 }
 0x6db   :  { %10416 = vmatprep.subr.mxu0 %v13137_v29  ;;  %4006 = vrot.lane.b32.xlu0 %v12435_v37, %s11855_s13 }
 0x6dc   :  { %10417 = vmatpush3.msra.mxu0 %v13137_v29 }
 0x6de   :  { %4125 = vrot.lane.b32.xlu1 %v12474_v43, %s11855_s13 }
 0x6df   :  { %3883 = vrot.lane.b32.xlu0 %v12449_v21, %s11855_s13 }
 0x6e2   :  { %3998 = vrot.lane.b32.xlu1 %v12490_v45, %s11855_s13 }
 0x6e3   :  { %v2563_v39 = vpop.xlane.xlu1 %2562  ;;  %4004 = vrot.lane.b32.xlu0 %v12452_v10, %s11855_s13 }
 0x6e4   :  { %11273 = vrcp.f32 %v2563_v39  ;;  %v1977_v39 = vld [vmem:[#allocation10 + $0x18] sm:$0xff] }
 0x6e5   :  { %v2560_v2 = vpop.xlane.xlu0 %2559 }
 0x6e6   :  { %11275 = vrcp.f32 %v2560_v2  ;;  %4000 = vrot.lane.b32.xlu1 %v12497_v24, %s11855_s13 }
 0x6e7   :  { %v2575_v35 = vpop.xlane.xlu1 %2574  ;;  %3996 = vrot.lane.b32.xlu0 %v12395_v25, %s11855_s13 }
 0x6e8   :  { %11277 = vrcp.f32 %v2575_v35 }
 0x6e9   :  { %v2572_v56 = vpop.xlane.xlu0 %2571 }
 0x6ea   :  { %11279 = vrcp.f32 %v2572_v56  ;;  %4121 = vrot.lane.b32.xlu1 %v12519_v8, %s11855_s13 }
 0x6eb   :  { %v2569_v7 = vpop.xlane.xlu1 %2568  ;;  %4123 = vrot.lane.b32.xlu0 %v12500_v53, %s11855_s13 }
 0x6ec   :  { %11281 = vrcp.f32 %v2569_v7 }
 0x6ed   :  { %v2566_v3 = vpop.xlane.xlu0 %2565 }
 0x6ee   :  { %11283 = vrcp.f32 %v2566_v3  ;;  %4115 = vrot.lane.b32.xlu1 %v12549_v18, %s11855_s13 }
 0x6ef   :  { %4002 = vrot.lane.b32.xlu0 %v12514_v11, %s11855_s13  ;;  %v2581_v2 = vpop.xlane.xlu1 %2580 }
 0x6f0   :  { %11285 = vrcp.f32 %v2581_v2 }
 0x6f1   :  { %v11274_v29 = vpop.eup %11273 }
 0x6f2   :  { %4119 = vrot.lane.b32.xlu1 %v12575_v13, %s11855_s13  ;;  %v2615_v32 = vmul.f32 %v11274_v29, %v13107_v36 }
 0x6f3   :  { %v11276_v0 = vpop.eup %11275  ;;  %4113 = vrot.lane.b32.xlu0 %v12471_v60, %s11855_s13 }
 0x6f4   :  { %v2614_v55 = vmul.f32 %v11276_v0, %v13111_v16 }
 0x6f5   :  { %v11278_v58 = vpop.eup %11277 }
 0x6f6   :  { %4410 = vrot.lane.b32.xlu1 %v12531_v1, %s11855_s13  ;;  %10404 = vmatprep.mubr.msk.f32.mxu1 %vm973_vm0, %v2614_v55  ;;  %v2619_v36 = vmul.f32 %v11278_v58, %v13115_v54  ;;  %v3081_v54 = vld [vmem:[#allocation10 + $0x38] sm:$0xff] }
 0x6f7   :  { %v11280_v14 = vpop.eup %11279  ;;  %4117 = vrot.lane.b32.xlu0 %v12556_v50, %s11855_s13  ;;  %10405 = vmatmul.mubr.msk.f32.vlgmr.msra.gmra.mxu1 %vm973_vm0, %v2615_v32 }
 0x6f8   :  { %10425 = vmatpush3.msra.mxu1 %v13144_v42  ;;  %v2618_v20 = vmul.f32 %v11280_v14, %v13119_v6  ;;  %10438 = vmatprep.subr.mxu0 %v3081_v54  ;;  %v3278_v14 = vld [vmem:[#allocation11 + $0x38] sm:$0xff] }
 0x6f9   :  { %10426 = vmatprep.subr.mxu1 %v13177_v41  ;;  %v11282_v16 = vpop.eup %11281 }
 0x6fa   :  { %10427 = vmatpush3.msra.mxu1 %v13177_v41  ;;  %4406 = vrot.lane.b32.xlu1 %v12552_v17, %s11855_s13  ;;  %v2617_v42 = vmul.f32 %v11282_v16, %v13123_v49  ;;  %v3080_v49 = vld [vmem:[#allocation10 + $0x30] sm:$0xff]  ;;  %v3078_v41 = vld [vmem:[#allocation10 + $0x20] sm:$0xff] }
 0x6fb   :  { %v11284_v61 = vpop.eup %11283  ;;  %10418 = vmatprep.mubr.msk.f32.mxu0 %vm973_vm0, %v2618_v20  ;;  %4412 = vrot.lane.b32.xlu0 %v12522_v33, %s11855_s13 }
 0x6fc   :  { %10419 = vmatmul.mubr.msk.f32.vlgmr.msra.gmra.mxu0 %vm973_vm0, %v2619_v36  ;;  %v2616_v6 = vmul.f32 %v11284_v61, %v13127_v44  ;;  %v3079_v44 = vld [vmem:[#allocation10 + $0x28] sm:$0xff] }
 0x6fd   :  { %10439 = vmatpush3.msra.mxu0 %v3081_v54  ;;  %v11286_v55 = vpop.eup %11285  ;;  %v3277_v54 = vld [vmem:[#allocation11 + $0x30] sm:$0xff] }
 0x6fe   :  { %4519 = vrot.lane.b32.xlu1 %v12578_v5, %s11855_s13  ;;  %10407 = vmatprep.mubr.msk.f32.mxu1 %vm973_vm0, %v2616_v6  ;;  %v2621_v16 = vmul.f32 %v11286_v55, %v13131_v48  ;;  %v1974_v55 = vld [vmem:[#allocation10] sm:$0xff] }
 0x6ff   :  { %4408 = vrot.lane.b32.xlu0 %v12538_v38, %s11855_s13  ;;  %10408 = vmatmul.mubr.msk.f32.gmra.mxu1 %vm973_vm0, %v2617_v42 }
 0x700   :  { %10440 = vmatprep.subr.mxu0 %v3080_v49 }
 0x701   :  { %10441 = vmatpush3.msra.mxu0 %v3080_v49 }
 0x702   :  { %4517 = vrot.lane.b32.xlu1 %v12584_v31, %s11855_s13  ;;  %10442 = vmatprep.subr.mxu0 %v3079_v44 }
 0x703   :  { %4521 = vrot.lane.b32.xlu0 %v12563_v23, %s11855_s13  ;;  %10443 = vmatpush3.msra.mxu0 %v3079_v44  ;;  %v3276_v44 = vld [vmem:[#allocation11 + $0x28] sm:$0xff] }
 0x704   :  { %10444 = vmatprep.subr.mxu0 %v3078_v41 }
 0x705   :  { %10445 = vmatpush3.msra.mxu0 %v3078_v41 }
 0x706   :  { %4515 = vrot.lane.b32.xlu1 %v12591_v26, %s11855_s13  ;;  %10502 = vmatprep.subr.mxu0 %v1977_v39 }
 0x707   :  { %4630 = vrot.lane.b32.xlu0 %v12560_v19, %s11855_s13 }
 0x70a   :  { %4628 = vrot.lane.b32.xlu1 %v12837_v30, %s11855_s13 }
 0x722   :  { %v2578_v35 = vpop.xlane.xlu0 %2577 }
 0x723   :  { %11287 = vrcp.f32 %v2578_v35 }
 0x726   :  { %v2584_v56 = vpop.xlane.xlu1 %2583  ;;  %v2587_v7 = vpop.xlane.xlu0 %2586 }
 0x727   :  { %11289 = vrcp.f32 %v2584_v56 }
 0x728   :  { %11291 = vrcp.f32 %v2587_v7  ;;  %v1975_v7 = vld [vmem:[#allocation10 + $0x8] sm:$0xff] }
 0x72a   :  { %v2590_v3 = vpop.xlane.xlu1 %2589  ;;  %v2593_v29 = vpop.xlane.xlu0 %2592 }
 0x72b   :  { %11293 = vrcp.f32 %v2590_v3  ;;  %v1979_v3 = vld [vmem:[#allocation11 + $0x8] sm:$0xff] }
 0x72c   :  { %11295 = vrcp.f32 %v2593_v29 }
 0x72e   :  { %v2972_v0 = vpop.permute.xlu0 %2971  ;;  %v2970_v58 = vpop.permute.xlu1 %2969 }
 0x72f   :  { %10428 = vmatprep.subr.mxu1 %v2972_v0 }
 0x730   :  { %v11288_v32 = vpop.eup %11287  ;;  %10429 = vmatpush3.msra.mxu1 %v2972_v0 }
 0x731   :  { %10430 = vmatprep.subr.mxu1 %v2970_v58  ;;  %v2620_v20 = vmul.f32 %v11288_v32, %v13147_v9  ;;  %v1978_v32 = vld [vmem:[#allocation11] sm:$0xff] }
 0x732   :  { %10431 = vmatpush3.msra.mxu1 %v2970_v58  ;;  %v13303_v29 = vpop.permute.xlu1 %3774 }
 0x733   :  { %10421 = vmatprep.mubr.msk.f32.mxu0 %vm973_vm0, %v2620_v20  ;;  %10470 = vmatprep.subr.mxu1 %v3278_v14 }
 0x734   :  { %v11290_v36 = vpop.eup %11289  ;;  %10422 = vmatmul.mubr.msk.f32.gmra.mxu0 %vm973_vm0, %v2621_v16 }
 0x735   :  { %v11292_v61 = vpop.eup %11291  ;;  %v2622_v6 = vmul.f32 %v11290_v36, %v13153_v47  ;;  %v3275_v47 = vld [vmem:[#allocation11 + $0x20] sm:$0xff] }
 0x736   :  { %v2623_v42 = vmul.f32 %v11292_v61, %v13151_v62  ;;  %v1981_v62 = vld [vmem:[#allocation11 + $0x18] sm:$0xff]  ;;  %v13311_v58 = vpop.permute.xlu1 %3893 }
 0x737   :  { %10432 = vmatprep.mubr.msk.f32.mxu1 %vm973_vm0, %v2622_v6 }
 0x738   :  { %v11294_v49 = vpop.eup %11293  ;;  %10433 = vmatmul.mubr.msk.f32.vlgmr.msra.gmra.mxu1 %vm973_vm0, %v2623_v42 }
 0x739   :  { %v11296_v9 = vpop.eup %11295  ;;  %v2624_v48 = vmul.f32 %v11294_v49, %v13161_v46  ;;  %10471 = vmatpush3.msra.mxu1 %v3278_v14  ;;  %v1980_v46 = vld [vmem:[#allocation11 + $0x10] sm:$0xff] }
 0x73a   :  { %v2625_v41 = vmul.f32 %v11296_v9, %v13159_v63  ;;  %10472 = vmatprep.subr.mxu1 %v3277_v54  ;;  %v1976_v63 = vld [vmem:[#allocation10 + $0x10] sm:$0xff] }
 0x73b   :  { %10435 = vmatprep.mubr.msk.f32.mxu1 %vm973_vm0, %v2624_v48  ;;  %10473 = vmatpush3.msra.mxu1 %v3277_v54  ;;  %v3892_v54 = vpop.permute.xlu1 %3891 }
 0x73c   :  { %10436 = vmatmul.mubr.msk.f32.gmra.mxu1 %vm973_vm0, %v2625_v41  ;;  %10474 = vmatprep.subr.mxu1 %v3276_v44 }
 0x73d   :  { %10475 = vmatpush3.msra.mxu1 %v3276_v44 }
 0x73e   :  { %10476 = vmatprep.subr.mxu1 %v3275_v47 }
 0x73f   :  { %10477 = vmatpush3.msra.mxu1 %v3275_v47  ;;  %v13331_v9 = vpop.permute.xlu1 %3764 }
 0x740   :  { %10534 = vmatprep.subr.mxu1 %v1981_v62 }
 0x743   :  { %v13335_v44 = vpop.permute.xlu1 %4010 }
 0x747   :  { %v13337_v47 = vpop.permute.xlu1 %3768 }
 0x794   :  { %v10392_v2 = vpop.f32.mrf.mxu0 }
 0x796   :  { %v2720_v35 = vpop.f32.mrf.mxu0 }
 0x797   :  { %10446 = vmatprep.mubr.msk.f32.mxu0 %vm973_vm0, %v2720_v35  ;;  %10478 = vmatprep.mubr.msk.f32.mxu1 %vm973_vm0, %v2720_v35 }
 0x798   :  { %10447 = vmatmul.mubr.msk.f32.vlgmr.msra.gmra.mxu0 %vm973_vm0, %v10392_v2  ;;  %10479 = vmatmul.mubr.msk.f32.vlgmr.msra.gmra.mxu1 %vm973_vm0, %v10392_v2  ;;  %v13341_v2 = vpop.permute.xlu1 %4008 }
 0x799   :  { %v10395_v56 = vpop.f32.mrf.mxu0  ;;  %10503 = vmatpush3.msra.mxu0 %v1977_v39  ;;  %10535 = vmatpush3.msra.mxu1 %v1981_v62  ;;  %v13309_v39 = vpop.permute.xlu0 %3776 }
 0x79a   :  { %10504 = vmatprep.subr.mxu0 %v1976_v63  ;;  %10536 = vmatprep.subr.mxu1 %v1980_v46 }
 0x79b   :  { %v2730_v0 = vpop.f32.mrf.mxu0  ;;  %10505 = vmatpush3.msra.mxu0 %v1976_v63  ;;  %10537 = vmatpush3.msra.mxu1 %v1980_v46 }
 0x79c   :  { %10449 = vmatprep.mubr.msk.f32.mxu0 %vm973_vm0, %v2730_v0  ;;  %10481 = vmatprep.mubr.msk.f32.mxu1 %vm973_vm0, %v2730_v0  ;;  %v13343_v63 = vpop.permute.xlu1 %3881 }
 0x79d   :  { %10506 = vmatprep.subr.mxu0 %v1975_v7  ;;  %10538 = vmatprep.subr.mxu1 %v1979_v3  ;;  %v3773_v42 = vpop.permute.xlu0 %3772 }
 0x79e   :  { %10450 = vmatmul.mubr.msk.f32.gmra.mxu0 %vm973_vm0, %v10395_v56  ;;  %10482 = vmatmul.mubr.msk.f32.gmra.mxu1 %vm973_vm0, %v10395_v56 }
 0x79f   :  { %10507 = vmatpush3.msra.mxu0 %v1975_v7  ;;  %10539 = vmatpush3.msra.mxu1 %v1979_v3 }
 0x7a0   :  { %10508 = vmatprep.subr.mxu0 %v1974_v55  ;;  %10540 = vmatprep.subr.mxu1 %v1978_v32  ;;  %v13347_v56 = vpop.permute.xlu1 %4127 }
 0x7a1   :  { %10509 = vmatpush3.msra.mxu0 %v1974_v55  ;;  %10541 = vmatpush3.msra.mxu1 %v1978_v32  ;;  %v13329_v49 = vpop.permute.xlu0 %3770 }
 0x7a2   :  { %10566 = vmatprep.subr.msk.mxu0 %vm973_vm0, %v13309_v39  ;;  %10580 = vmatprep.subr.msk.mxu1 %vm973_vm0, %v13311_v58 }
 0x7a4   :  { %v13355_v32 = vpop.permute.xlu1 %3885 }
 0x7a5   :  { %v13333_v48 = vpop.permute.xlu0 %3762 }
 0x7a9   :  { %v3890_v41 = vpop.permute.xlu0 %3889 }
 0x7ad   :  { %v13339_v62 = vpop.permute.xlu0 %3766 }
 0x7b1   :  { %v3888_v35 = vpop.permute.xlu0 %3887 }
 0x7b5   :  { %v13345_v46 = vpop.permute.xlu0 %3879 }
 0x7b7   :  { %v10406_v14 = vpop.f32.mrf.mxu1 }
 0x7b9   :  { %v2833_v20 = vpop.f32.mrf.mxu1  ;;  %v13349_v3 = vpop.permute.xlu0 %4006 }
 0x7ba   :  { %10452 = vmatprep.mubr.msk.f32.mxu0 %vm973_vm0, %v2833_v20  ;;  %10484 = vmatprep.mubr.msk.f32.mxu1 %vm973_vm0, %v2833_v20 }
 0x7bb   :  { %10453 = vmatmul.mubr.msk.f32.gmra.mxu0 %vm973_vm0, %v10406_v14  ;;  %10485 = vmatmul.mubr.msk.f32.gmra.mxu1 %vm973_vm0, %v10406_v14 }
 0x7bc   :  { %v10420_v16 = vpop.f32.mrf.mxu0 }
 0x7bd   :  { %v13357_v20 = vpop.permute.xlu0 %3883 }
 0x7be   :  { %v2946_v6 = vpop.f32.mrf.mxu0 }
 0x7bf   :  { %v10409_v36 = vpop.f32.mrf.mxu1 }
 0x7c1   :  { %v2843_v61 = vpop.f32.mrf.mxu1 }
 0x7c2   :  { %10455 = vmatprep.mubr.msk.f32.mxu0 %vm973_vm0, %v2843_v61  ;;  %10487 = vmatprep.mubr.msk.f32.mxu1 %vm973_vm0, %v2843_v61  ;;  %v13363_v61 = vpop.permute.xlu1 %4125 }
 0x7c3   :  { %10456 = vmatmul.mubr.msk.f32.gmra.mxu0 %vm973_vm0, %v10409_v36  ;;  %10488 = vmatmul.mubr.msk.f32.gmra.mxu1 %vm973_vm0, %v10409_v36 }
 0x7c4   :  { %10458 = vmatprep.mubr.msk.f32.mxu0 %vm973_vm0, %v2946_v6  ;;  %10490 = vmatprep.mubr.msk.f32.mxu1 %vm973_vm0, %v2946_v6  ;;  %v13369_v6 = vpop.permute.xlu0 %4004 }
 0x7c7   :  { %10459 = vmatmul.mubr.msk.f32.gmra.mxu0 %vm973_vm0, %v10420_v16  ;;  %10491 = vmatmul.mubr.msk.f32.gmra.mxu1 %vm973_vm0, %v10420_v16 }
 0x7f4   :  { %v10423_v7 = vpop.f32.mrf.mxu0 }
 0x7f6   :  { %v2956_v0 = vpop.f32.mrf.mxu0 }
 0x7f7   :  { %10461 = vmatprep.mubr.msk.f32.mxu0 %vm973_vm0, %v2956_v0  ;;  %10493 = vmatprep.mubr.msk.f32.mxu1 %vm973_vm0, %v2956_v0  ;;  %v15909_v0 = vld [vmem:[#allocation64_spill] sm:$0xff] }
 0x7f8   :  { %v10434_v55 = vpop.f32.mrf.mxu1  ;;  %10462 = vmatmul.mubr.msk.f32.gmra.mxu0 %vm973_vm0, %v10423_v7  ;;  %10494 = vmatmul.mubr.msk.f32.gmra.mxu1 %vm973_vm0, %v10423_v7  ;;  %v13379_v7 = vpop.permute.xlu1 %3998 }
 0x7fa   :  { %v3059_v14 = vpop.f32.mrf.mxu1 }
 0x7fb   :  { %10464 = vmatprep.mubr.msk.f32.mxu0 %vm973_vm0, %v3059_v14  ;;  %10496 = vmatprep.mubr.msk.f32.mxu1 %vm973_vm0, %v3059_v14  ;;  %v15914_v14 = vld [vmem:[#allocation74_spill] sm:$0xff] }
 0x7fc   :  { %v10437_v16 = vpop.f32.mrf.mxu1  ;;  %10465 = vmatmul.mubr.msk.f32.gmra.mxu0 %vm973_vm0, %v10434_v55  ;;  %10497 = vmatmul.mubr.msk.f32.gmra.mxu1 %vm973_vm0, %v10434_v55  ;;  %v15912_v55 = vld [vmem:[#allocation65_spill] sm:$0xff] }
 0x7fe   :  { %v3069_v36 = vpop.f32.mrf.mxu1 }
 0x7ff   :  { %10467 = vmatprep.mubr.msk.f32.mxu0 %vm973_vm0, %v3069_v36  ;;  %10499 = vmatprep.mubr.msk.f32.mxu1 %vm973_vm0, %v3069_v36  ;;  %v15916_v36 = vld [vmem:[#allocation69_spill] sm:$0xff] }
 0x800   :  { %10468 = vmatmul.mubr.msk.f32.gmra.mxu0 %vm973_vm0, %v10437_v16  ;;  %10500 = vmatmul.mubr.msk.f32.gmra.mxu1 %vm973_vm0, %v10437_v16 }
 0x801   :  { %10510 = vmatprep.mubr.msk.f32.mxu0 %vm973_vm0, %v12976_v57  ;;  %10542 = vmatprep.mubr.msk.f32.mxu1 %vm973_vm0, %v12976_v57  ;;  %v13389_v57 = vpop.permute.xlu0 %3996 }
 0x804   :  { %10511 = vmatmul.mubr.msk.f32.vlgmr.msra.gmra.mxu0 %vm973_vm0, %v12974_v40  ;;  %10543 = vmatmul.mubr.msk.f32.vlgmr.msra.gmra.mxu1 %vm973_vm0, %v12974_v40  ;;  %v15910_v40 = vld [vmem:[#allocation68_spill] sm:$0xff] }
 0x805   :  { %10567 = vmatpush3.xpose.msk.msra.mxu0 %vm973_vm0, %v13309_v39  ;;  %10581 = vmatpush3.xpose.msk.msra.mxu1 %vm973_vm0, %v13311_v58  ;;  %v15911_v39 = vld [vmem:[#allocation71_spill] sm:$0xff]  ;;  %v13405_v58 = vpop.permute.xlu1 %4000 }
 0x806   :  { %10513 = vmatprep.mubr.msk.f32.mxu0 %vm973_vm0, %v15909_v0  ;;  %10545 = vmatprep.mubr.msk.f32.mxu1 %vm973_vm0, %v15909_v0  ;;  %v15918_v0 = vld [vmem:[#allocation70_spill] sm:$0xff] }
 0x807   :  { %10568 = vmatprep.subr.msk.mxu0 %vm973_vm0, %v13303_v29  ;;  %10582 = vmatprep.subr.msk.mxu1 %vm973_vm0, %v3892_v54 }
 0x808   :  { %10514 = vmatmul.mubr.msk.f32.gmra.mxu0 %vm973_vm0, %v15910_v40  ;;  %10546 = vmatmul.mubr.msk.f32.gmra.mxu1 %vm973_vm0, %v15910_v40 }
 0x809   :  { %10569 = vmatpush3.xpose.msk.msra.mxu0 %vm973_vm0, %v13303_v29  ;;  %10583 = vmatpush3.xpose.msk.msra.mxu1 %vm973_vm0, %v3892_v54  ;;  %v4124_v29 = vpop.permute.xlu0 %4123  ;;  %v15913_v54 = vld [vmem:[#allocation73_spill] sm:$0xff] }
 0x80a   :  { %10516 = vmatprep.mubr.msk.f32.mxu0 %vm973_vm0, %v15911_v39  ;;  %10548 = vmatprep.mubr.msk.f32.mxu1 %vm973_vm0, %v15911_v39  ;;  %v15919_v39 = vld [vmem:[#allocation75_spill] sm:$0xff] }
 0x80b   :  { %10570 = vmatprep.subr.msk.mxu0 %vm973_vm0, %v3773_v42  ;;  %10584 = vmatprep.subr.msk.mxu1 %vm973_vm0, %v3890_v41 }
 0x80c   :  { %10517 = vmatmul.mubr.msk.f32.gmra.mxu0 %vm973_vm0, %v15912_v55  ;;  %10549 = vmatmul.mubr.msk.f32.gmra.mxu1 %vm973_vm0, %v15912_v55  ;;  %v15920_v55 = vld [vmem:[#allocation66_spill] sm:$0xff] }
 0x80d   :  { %10571 = vmatpush3.xpose.msk.msra.mxu0 %vm973_vm0, %v3773_v42  ;;  %10585 = vmatpush3.xpose.msk.msra.mxu1 %vm973_vm0, %v3890_v41  ;;  %v4122_v42 = vpop.permute.xlu1 %4121  ;;  %v15915_v41 = vld [vmem:[#allocation67_spill] sm:$0xff]  ;;  %v13433_v16 = vpop.permute.xlu0 %4002 }
 0x80e   :  { %10519 = vmatprep.mubr.msk.f32.mxu0 %vm973_vm0, %v15913_v54  ;;  %10551 = vmatprep.mubr.msk.f32.mxu1 %vm973_vm0, %v15913_v54 }
 0x80f   :  { %10572 = vmatprep.subr.msk.mxu0 %vm973_vm0, %v13329_v49  ;;  %10586 = vmatprep.subr.msk.mxu1 %vm973_vm0, %v3888_v35 }
 0x810   :  { %10520 = vmatmul.mubr.msk.f32.gmra.mxu0 %vm973_vm0, %v15914_v14  ;;  %10552 = vmatmul.mubr.msk.f32.gmra.mxu1 %vm973_vm0, %v15914_v14  ;;  %v15921_v14 = vld [vmem:[#allocation81_spill] sm:$0xff] }
 0x811   :  { %10573 = vmatpush3.xpose.msk.msra.mxu0 %vm973_vm0, %v13329_v49  ;;  %10587 = vmatpush3.xpose.msk.msra.mxu1 %vm973_vm0, %v3888_v35  ;;  %v15917_v49 = vld [vmem:[#allocation72_spill] sm:$0xff]  ;;  %v4116_v35 = vpop.permute.xlu1 %4115  ;;  %v4114_v40 = vpop.permute.xlu0 %4113 }
 0x812   :  { %10522 = vmatprep.mubr.msk.f32.mxu0 %vm973_vm0, %v15915_v41  ;;  %10554 = vmatprep.mubr.msk.f32.mxu1 %vm973_vm0, %v15915_v41 }
 0x813   :  { %10594 = vmatprep.subr.msk.mxu0 %vm973_vm0, %v13335_v44  ;;  %10608 = vmatprep.subr.msk.mxu1 %vm973_vm0, %v13347_v56 }
 0x814   :  { %10523 = vmatmul.mubr.msk.f32.gmra.mxu0 %vm973_vm0, %v15916_v36  ;;  %10555 = vmatmul.mubr.msk.f32.gmra.mxu1 %vm973_vm0, %v15916_v36  ;;  %v15922_v36 = vld [vmem:[#allocation80_spill] sm:$0xff] }
 0x815   :  { %10525 = vmatprep.mubr.msk.f32.mxu0 %vm973_vm0, %v15917_v49  ;;  %10557 = vmatprep.mubr.msk.f32.mxu1 %vm973_vm0, %v15917_v49  ;;  %v4120_v54 = vpop.permute.xlu1 %4119  ;;  %v4118_v41 = vpop.permute.xlu0 %4117 }
 0x818   :  { %10526 = vmatmul.mubr.msk.f32.gmra.mxu0 %vm973_vm0, %v15918_v0  ;;  %10558 = vmatmul.mubr.msk.f32.gmra.mxu1 %vm973_vm0, %v15918_v0 }
 0x819   :  { %10528 = vmatprep.mubr.msk.f32.mxu0 %vm973_vm0, %v15919_v39  ;;  %10560 = vmatprep.mubr.msk.f32.mxu1 %vm973_vm0, %v15919_v39  ;;  %v4411_v49 = vpop.permute.xlu1 %4410  ;;  %v4413_v0 = vpop.permute.xlu0 %4412 }
 0x81c   :  { %10529 = vmatmul.mubr.msk.f32.gmra.mxu0 %vm973_vm0, %v15920_v55  ;;  %10561 = vmatmul.mubr.msk.f32.gmra.mxu1 %vm973_vm0, %v15920_v55 }
 0x81d   :  { %10531 = vmatprep.mubr.msk.f32.mxu0 %vm973_vm0, %v15921_v14  ;;  %10563 = vmatprep.mubr.msk.f32.mxu1 %vm973_vm0, %v15921_v14 }
 0x820   :  { %10532 = vmatmul.mubr.msk.f32.gmra.mxu0 %vm973_vm0, %v15922_v36  ;;  %10564 = vmatmul.mubr.msk.f32.gmra.mxu1 %vm973_vm0, %v15922_v36 }
 0x821   :  { %10574 = vmatprep.mubr.msk.f32.mxu0 %vm973_vm0, %v13333_v48  ;;  %10588 = vmatprep.mubr.msk.f32.mxu1 %vm973_vm0, %v13345_v46  ;;  %v4409_v48 = vpop.permute.xlu0 %4408 }
 0x824   :  { %10575 = vmatmul.mubr.msk.f32.vlgmr.msra.gmra.mxu0 %vm973_vm0, %v13331_v9  ;;  %10589 = vmatmul.mubr.msk.f32.vlgmr.msra.gmra.mxu1 %vm973_vm0, %v13343_v63  ;;  %v4407_v9 = vpop.permute.xlu1 %4406 }
 0x825   :  { %10595 = vmatpush3.xpose.msk.msra.mxu0 %vm973_vm0, %v13335_v44  ;;  %10609 = vmatpush3.xpose.msk.msra.mxu1 %vm973_vm0, %v13347_v56 }
 0x826   :  { %10577 = vmatprep.mubr.msk.f32.mxu0 %vm973_vm0, %v13339_v62  ;;  %10591 = vmatprep.mubr.msk.f32.mxu1 %vm973_vm0, %v13357_v20 }
 0x827   :  { %10596 = vmatprep.subr.msk.mxu0 %vm973_vm0, %v13341_v2  ;;  %10610 = vmatprep.subr.msk.mxu1 %vm973_vm0, %v13363_v61 }
 0x828   :  { %10578 = vmatmul.mubr.msk.f32.gmra.mxu0 %vm973_vm0, %v13337_v47  ;;  %10592 = vmatmul.mubr.msk.f32.gmra.mxu1 %vm973_vm0, %v13355_v32  ;;  %v4520_v44 = vpop.permute.xlu1 %4519  ;;  %v4522_v47 = vpop.permute.xlu0 %4521 }
 0x829   :  { %10597 = vmatpush3.xpose.msk.msra.mxu0 %vm973_vm0, %v13341_v2  ;;  %10611 = vmatpush3.xpose.msk.msra.mxu1 %vm973_vm0, %v13363_v61 }
 0x82a   :  { %10598 = vmatprep.subr.msk.mxu0 %vm973_vm0, %v13349_v3  ;;  %10602 = vmatprep.mubr.msk.f32.mxu0 %vm973_vm0, %v13389_v57 }
 0x82b   :  { %10612 = vmatprep.subr.msk.mxu1 %vm973_vm0, %v4124_v29  ;;  %10616 = vmatprep.mubr.msk.f32.mxu1 %vm973_vm0, %v4114_v40 }
 0x82c   :  { %v4518_v62 = vpop.permute.xlu1 %4517  ;;  %v13519_v63 = vpop.permute.xlu0 %4630 }
 0x82d   :  { %10599 = vmatpush3.xpose.msk.msra.mxu0 %vm973_vm0, %v13349_v3  ;;  %10613 = vmatpush3.xpose.msk.msra.mxu1 %vm973_vm0, %v4124_v29 }
 0x82e   :  { %10600 = vmatprep.subr.msk.mxu0 %vm973_vm0, %v13369_v6  ;;  %10614 = vmatprep.subr.msk.mxu1 %vm973_vm0, %v4122_v42 }
 0x830   :  { %v4516_v2 = vpop.permute.xlu1 %4515 }
 0x831   :  { %10601 = vmatpush3.xpose.msk.msra.mxu0 %vm973_vm0, %v13369_v6  ;;  %10615 = vmatpush3.xpose.msk.msra.mxu1 %vm973_vm0, %v4122_v42 }
 0x832   :  { %10622 = vmatprep.subr.mxu0 %v4413_v0  ;;  %10636 = vmatprep.subr.mxu1 %v4522_v47 }
 0x834   :  { %10603 = vmatmul.mubr.msk.f32.vlgmr.msra.gmra.mxu0 %vm973_vm0, %v13379_v7  ;;  %10617 = vmatmul.mubr.msk.f32.vlgmr.msra.gmra.mxu1 %vm973_vm0, %v4116_v35 }
 0x835   :  { %10605 = vmatprep.mubr.msk.f32.mxu0 %vm973_vm0, %v13405_v58  ;;  %10619 = vmatprep.mubr.msk.f32.mxu1 %vm973_vm0, %v4118_v41 }
 0x836   :  { %10623 = vmatpush3.msra.mxu0 %v4413_v0  ;;  %10637 = vmatpush3.msra.mxu1 %v4522_v47 }
 0x837   :  { %10624 = vmatprep.subr.mxu0 %v4411_v49  ;;  %10638 = vmatprep.subr.mxu1 %v4520_v44 }
 0x838   :  { %10625 = vmatpush3.msra.mxu0 %v4411_v49  ;;  %10639 = vmatpush3.msra.mxu1 %v4520_v44 }
 0x839   :  { %10606 = vmatmul.mubr.msk.f32.gmra.mxu0 %vm973_vm0, %v13433_v16  ;;  %10620 = vmatmul.mubr.msk.f32.gmra.mxu1 %vm973_vm0, %v4120_v54 }
 0x83a   :  { %10626 = vmatprep.subr.mxu0 %v4409_v48  ;;  %10640 = vmatprep.subr.mxu1 %v4518_v62 }
 0x83b   :  { %10627 = vmatpush3.msra.mxu0 %v4409_v48  ;;  %10641 = vmatpush3.msra.mxu1 %v4518_v62 }
 0x83c   :  { %10628 = vmatprep.subr.mxu0 %v4407_v9  ;;  %10642 = vmatprep.subr.mxu1 %v4516_v2 }
 0x83d   :  { %10629 = vmatpush3.msra.mxu0 %v4407_v9  ;;  %10643 = vmatpush3.msra.mxu1 %v4516_v2 }
 0x83e   :  { %10650 = vmatprep.subr.mxu0 %v13519_v63 }
 0x858   :  { %v13522_v46 = vpop.f32.mrf.mxu0  ;;  %v13524_v56 = vpop.f32.mrf.mxu1 }
 0x859   :  { %15923 = vst [vmem:[#allocation48_spill] sm:$0xff] %v13522_v46  ;;  %15924 = vst [vmem:[#allocation44_spill] sm:$0xff] %v13524_v56 }
 0x85a   :  { %v13526_v3 = vpop.f32.mrf.mxu0  ;;  %v13528_v32 = vpop.f32.mrf.mxu1 }
 0x85b   :  { %15925 = vst [vmem:[#allocation45_spill] sm:$0xff] %v13526_v3  ;;  %15926 = vst [vmem:[#allocation51_spill] sm:$0xff] %v13528_v32 }
 0x85e   :  { %v13530_v20 = vpop.f32.mrf.mxu0  ;;  %v13532_v61 = vpop.f32.mrf.mxu1 }
 0x85f   :  { %15927 = vst [vmem:[#allocation59_spill] sm:$0xff] %v13530_v20  ;;  %15928 = vst [vmem:[#allocation55_spill] sm:$0xff] %v13532_v61 }
 0x860   :  { %v13534_v6 = vpop.f32.mrf.mxu0  ;;  %v13536_v7 = vpop.f32.mrf.mxu1 }
 0x861   :  { %15929 = vst [vmem:[#allocation56_spill] sm:$0xff] %v13534_v6  ;;  %15930 = vst [vmem:[#allocation64_spill] sm:$0xff] %v13536_v7 }
 0x87b   :  { %v13538_v57 = vpop.f32.mrf.mxu0  ;;  %v13540_v58 = vpop.f32.mrf.mxu1 }
 0x87c   :  { %15931 = vst [vmem:[#allocation68_spill] sm:$0xff] %v13538_v57  ;;  %15932 = vst [vmem:[#allocation71_spill] sm:$0xff] %v13540_v58  ;;  %v15982_v58 = vld [vmem:[#allocation78_spill] sm:$0xff]  ;;  %v13701_v57 = vpop.permute.xlu1 %4628 }
 0x87d   :  { %v13542_v29 = vpop.f32.mrf.mxu0  ;;  %v13544_v42 = vpop.f32.mrf.mxu1 }
 0x87e   :  { %15933 = vst [vmem:[#allocation65_spill] sm:$0xff] %v13542_v29  ;;  %15934 = vst [vmem:[#allocation73_spill] sm:$0xff] %v13544_v42 }
 0x883   :  { %v13546_v16 = vpop.f32.mrf.mxu0  ;;  %v13548_v35 = vpop.f32.mrf.mxu1 }
 0x884   :  { %15935 = vst [vmem:[#allocation74_spill] sm:$0xff] %v13546_v16  ;;  %15936 = vst [vmem:[#allocation67_spill] sm:$0xff] %v13548_v35 }
 0x885   :  { %v13550_v40 = vpop.f32.mrf.mxu0  ;;  %v13552_v39 = vpop.f32.mrf.mxu1 }
 0x886   :  { %15937 = vst [vmem:[#allocation69_spill] sm:$0xff] %v13550_v40  ;;  %15938 = vst [vmem:[#allocation72_spill] sm:$0xff] %v13552_v39 }
 0x887   :  { %v13554_v55 = vpop.f32.mrf.mxu0  ;;  %v13556_v54 = vpop.f32.mrf.mxu1 }
 0x888   :  { %15939 = vst [vmem:[#allocation70_spill] sm:$0xff] %v13554_v55  ;;  %15940 = vst [vmem:[#allocation75_spill] sm:$0xff] %v13556_v54 }
 0x889   :  { %v13558_v14 = vpop.f32.mrf.mxu0  ;;  %v13560_v41 = vpop.f32.mrf.mxu1 }
 0x88a   :  { %15941 = vst [vmem:[#allocation66_spill] sm:$0xff] %v13558_v14  ;;  %15942 = vst [vmem:[#allocation81_spill] sm:$0xff] %v13560_v41 }
 0x8b8   :  { %v10463_v36 = vpop.f32.mrf.mxu0  ;;  %v10495_v49 = vpop.f32.mrf.mxu1 }
 0x8ba   :  { %v13562_v0 = vpop.f32.mrf.mxu0  ;;  %v13564_v9 = vpop.f32.mrf.mxu1 }
 0x8bb   :  { %15943 = vst [vmem:[#allocation80_spill] sm:$0xff] %v13562_v0  ;;  %15944 = vst [vmem:[#allocation82_spill] sm:$0xff] %v13564_v9 }
 0x8bc   :  { %v10466_v48 = vpop.f32.mrf.mxu0  ;;  %v10498_v44 = vpop.f32.mrf.mxu1 }
 0x8be   :  { %v13566_v47 = vpop.f32.mrf.mxu0  ;;  %v13568_v62 = vpop.f32.mrf.mxu1 }
 0x8bf   :  { %15945 = vst [vmem:[#allocation83_spill] sm:$0xff] %v13566_v47  ;;  %15946 = vst [vmem:[#allocation84_spill] sm:$0xff] %v13568_v62 }
 0x8c0   :  { %v10469_v2 = vpop.f32.mrf.mxu0  ;;  %v10501_v40 = vpop.f32.mrf.mxu1 }
 0x8c2   :  { %v13570_v29 = vpop.f32.mrf.mxu0  ;;  %v13572_v6 = vpop.f32.mrf.mxu1 }
 0x8c3   :  { %15947 = vst [vmem:[#allocation85_spill] sm:$0xff] %v13570_v29  ;;  %15948 = vst [vmem:[#allocation86_spill] sm:$0xff] %v13572_v6 }
 0x8c4   :  { %v13574_v14 = vpop.f32.mrf.mxu0  ;;  %v13576_v3 = vpop.f32.mrf.mxu1 }
 0x8c5   :  { %15949 = vst [vmem:[#allocation87_spill] sm:$0xff] %v13574_v14  ;;  %15950 = vst [vmem:[#allocation88_spill] sm:$0xff] %v13576_v3 }
 0x8c6   :  { %v13578_v41 = vpop.f32.mrf.mxu0  ;;  %v13580_v0 = vpop.f32.mrf.mxu1 }
 0x8c7   :  { %15951 = vst [vmem:[#allocation89_spill] sm:$0xff] %v13578_v41  ;;  %15952 = vst [vmem:[#allocation90_spill] sm:$0xff] %v13580_v0 }
 0x8c8   :  { %v13582_v9 = vpop.f32.mrf.mxu0  ;;  %v13584_v39 = vpop.f32.mrf.mxu1 }
 0x8c9   :  { %15953 = vst [vmem:[#allocation91_spill] sm:$0xff] %v13582_v9  ;;  %15954 = vst [vmem:[#allocation92_spill] sm:$0xff] %v13584_v39 }
 0x8ca   :  { %v13586_v47 = vpop.f32.mrf.mxu0  ;;  %v13588_v62 = vpop.f32.mrf.mxu1 }
 0x8cb   :  { %15955 = vst [vmem:[#allocation93_spill] sm:$0xff] %v13586_v47  ;;  %15956 = vst [vmem:[#allocation94_spill] sm:$0xff] %v13588_v62 }
 0x8cc   :  { %v13590_v42 = vpop.f32.mrf.mxu0  ;;  %v13592_v29 = vpop.f32.mrf.mxu1 }
 0x8cd   :  { %15957 = vst [vmem:[#allocation95_spill] sm:$0xff] %v13590_v42  ;;  %15958 = vst [vmem:[#allocation96_spill] sm:$0xff] %v13592_v29 }
 0x8ce   :  { %v13594_v6 = vpop.f32.mrf.mxu0  ;;  %v13596_v7 = vpop.f32.mrf.mxu1 }
 0x8cf   :  { %15959 = vst [vmem:[#allocation97_spill] sm:$0xff] %v13594_v6  ;;  %15960 = vst [vmem:[#allocation98_spill] sm:$0xff] %v13596_v7 }
 0x8d0   :  { %v13598_v32 = vpop.f32.mrf.mxu0  ;;  %v13600_v41 = vpop.f32.mrf.mxu1 }
 0x8d1   :  { %15961 = vst [vmem:[#allocation99_spill] sm:$0xff] %v13598_v32  ;;  %15962 = vst [vmem:[#allocation100_spill] sm:$0xff] %v13600_v41 }
 0x8d2   :  { %v13602_v0 = vpop.f32.mrf.mxu0  ;;  %v13604_v19 = vpop.f32.mrf.mxu1 }
 0x8d3   :  { %15963 = vst [vmem:[#allocation101_spill] sm:$0xff] %v13602_v0  ;;  %15964 = vst [vmem:[#allocation102_spill] sm:$0xff] %v13604_v19 }
 0x8d4   :  { %v13606_v30 = vpop.f32.mrf.mxu0  ;;  %v13608_v47 = vpop.f32.mrf.mxu1 }
 0x8d5   :  { %15965 = vst [vmem:[#allocation103_spill] sm:$0xff] %v13606_v30  ;;  %15966 = vst [vmem:[#allocation104_spill] sm:$0xff] %v13608_v47 }
 0x8d6   :  { %v13610_v62 = vpop.f32.mrf.mxu0  ;;  %v13612_v54 = vpop.f32.mrf.mxu1 }
 0x8d7   :  { %15967 = vst [vmem:[#allocation105_spill] sm:$0xff] %v13610_v62  ;;  %15968 = vst [vmem:[#allocation106_spill] sm:$0xff] %v13612_v54 }
 0x8d8   :  { %v10527_v55 = vpop.f32.mrf.mxu0  ;;  %v10559_v6 = vpop.f32.mrf.mxu1 }
 0x8d9   :  { %v13614_v35 = vadd.f32 %v10527_v55, %v10463_v36  ;;  %v13616_v7 = vadd.f32 %v10559_v6, %v10495_v49 }
 0x8da   :  { %v13618_v32 = vpop.f32.mrf.mxu0  ;;  %v13620_v41 = vpop.f32.mrf.mxu1 }
 0x8db   :  { %15969 = vst [vmem:[#allocation107_spill] sm:$0xff] %v13614_v35  ;;  %15970 = vst [vmem:[#allocation108_spill] sm:$0xff] %v13616_v7 }
 0x8dc   :  { %15971 = vst [vmem:[#allocation109_spill] sm:$0xff] %v13618_v32  ;;  %15972 = vst [vmem:[#allocation110_spill] sm:$0xff] %v13620_v41  ;;  %v10530_v0 = vpop.f32.mrf.mxu0  ;;  %v10562_v19 = vpop.f32.mrf.mxu1 }
 0x8dd   :  { %v13622_v16 = vadd.f32 %v10530_v0, %v10466_v48  ;;  %v13624_v30 = vadd.f32 %v10562_v19, %v10498_v44 }
 0x8de   :  { %v13626_v47 = vpop.f32.mrf.mxu0  ;;  %v13628_v62 = vpop.f32.mrf.mxu1 }
 0x8df   :  { %15973 = vst [vmem:[#allocation111_spill] sm:$0xff] %v13622_v16  ;;  %15974 = vst [vmem:[#allocation112_spill] sm:$0xff] %v13624_v30 }
 0x8e0   :  { %15975 = vst [vmem:[#allocation113_spill] sm:$0xff] %v13626_v47  ;;  %15976 = vst [vmem:[#allocation114_spill] sm:$0xff] %v13628_v62  ;;  %v10533_v54 = vpop.f32.mrf.mxu0  ;;  %v10565_v29 = vpop.f32.mrf.mxu1 }
 0x8e1   :  { %v13630_v55 = vadd.f32 %v10533_v54, %v10469_v2  ;;  %v13632_v6 = vadd.f32 %v10565_v29, %v10501_v40 }
 0x8e2   :  { %v13634_v36 = vpop.f32.mrf.mxu0  ;;  %v13636_v49 = vpop.f32.mrf.mxu1 }
 0x8e3   :  { %15977 = vst [vmem:[#allocation115_spill] sm:$0xff] %v13630_v55  ;;  %15978 = vst [vmem:[#allocation116_spill] sm:$0xff] %v13632_v6 }
 0x8e4   :  { %15979 = vst [vmem:[#allocation117_spill] sm:$0xff] %v13634_v36  ;;  %15980 = vst [vmem:[#allocation118_spill] sm:$0xff] %v13636_v49  ;;  %v10576_v32 = vpop.f32.mrf.mxu0  ;;  %v13638_v41 = vpop.f32.mrf.mxu1 }
 0x8e5   :  { %v4233_v19 = vsel %vm973_vm0, %v10576_v32, -inf  ;;  %v4245_v29 = vsel %vm973_vm0, %v13638_v41, -inf }
 0x8e6   :  { %4234 = vmax.xlane.f32.xlu1 %v4233_v19  ;;  %v3860_v0 = vpop.f32.mrf.mxu0  ;;  %v13641_v48 = vpop.f32.mrf.mxu1 }
 0x8e7   :  { %v4230_v44 = vsel %vm973_vm0, %v3860_v0, -inf  ;;  %v4242_v54 = vsel %vm973_vm0, %v13641_v48, -inf }
 0x8e8   :  { %4231 = vmax.xlane.f32.xlu0 %v4230_v44  ;;  %v13646_v40 = vpop.f32.mrf.mxu1  ;;  %v10579_v2 = vpop.f32.mrf.mxu0 }
 0x8e9   :  { %v4251_v19 = vsel %vm973_vm0, %v13646_v40, -inf  ;;  %v4239_v36 = vsel %vm973_vm0, %v10579_v2, -inf }
 0x8ea   :  { %4246 = vmax.xlane.f32.xlu1 %v4245_v29  ;;  %v13653_v47 = vpop.f32.mrf.mxu0  ;;  %v13657_v49 = vpop.f32.mrf.mxu1 }
 0x8eb   :  { %v4236_v44 = vsel %vm973_vm0, %v13653_v47, -inf  ;;  %v4248_v6 = vsel %vm973_vm0, %v13657_v49, -inf }
 0x8ec   :  { %4243 = vmax.xlane.f32.xlu0 %v4242_v54 }
 0x8ee   :  { %4252 = vmax.xlane.f32.xlu1 %v4251_v19 }
 0x8f0   :  { %4240 = vmax.xlane.f32.xlu0 %v4239_v36 }
 0x8f4   :  { %v13659_v29 = vpop.f32.mrf.mxu0  ;;  %4237 = vmax.xlane.f32.xlu0 %v4236_v44  ;;  %v13663_v62 = vpop.f32.mrf.mxu1 }
 0x8f5   :  { %v4257_v54 = vsel %vm973_vm0, %v13659_v29, -inf  ;;  %v4269_v36 = vsel %vm973_vm0, %v13663_v62, -inf }
 0x8f6   :  { %4258 = vmax.xlane.f32.xlu1 %v4257_v54  ;;  %v13665_v19 = vpop.f32.mrf.mxu0  ;;  %v13671_v55 = vpop.f32.mrf.mxu1 }
 0x8f7   :  { %v4254_v44 = vsel %vm973_vm0, %v13665_v19, -inf }
 0x8f8   :  { %4249 = vmax.xlane.f32.xlu0 %v4248_v6  ;;  %v4266_v6 = vsel %vm973_vm0, %v13671_v55, -inf }
 0x8f9   :  { %v13673_v30 = vpop.f32.mrf.mxu0  ;;  %v13679_v16 = vpop.f32.mrf.mxu1 }
 0x8fa   :  { %4270 = vmax.xlane.f32.xlu1 %v4269_v36  ;;  %v4263_v54 = vsel %vm973_vm0, %v13673_v30, -inf  ;;  %v4275_v35 = vsel %vm973_vm0, %v13679_v16, -inf }
 0x8fb   :  { %v13683_v7 = vpop.f32.mrf.mxu0  ;;  %v13695_v42 = vpop.f32.mrf.mxu1 }
 0x8fc   :  { %4255 = vmax.xlane.f32.xlu0 %v4254_v44  ;;  %v4260_v36 = vsel %vm973_vm0, %v13683_v7, -inf  ;;  %v15981_v44 = vld [vmem:[#allocation77_spill] sm:$0xff] }
 0x8fe   :  { %4264 = vmax.xlane.f32.xlu1 %v4263_v54  ;;  %v15983_v54 = vld [vmem:[#allocation60_spill] sm:$0xff] }
 0x900   :  { %4267 = vmax.xlane.f32.xlu0 %v4266_v6  ;;  %v4272_v6 = vsel %vm973_vm0, %v13695_v42, -inf }
 0x902   :  { %4276 = vmax.xlane.f32.xlu1 %v4275_v35  ;;  %v15984_v35 = vld [vmem:[#allocation63_spill] sm:$0xff] }
 0x904   :  { %4261 = vmax.xlane.f32.xlu0 %v4260_v36 }
 0x913   :  { %4624 = vrot.lane.b32.xlu1 %v15981_v44, %s11855_s13 }
 0x917   :  { %4737 = vrot.lane.b32.xlu1 %v15982_v58, %s11855_s13 }
 0x91a   :  { %4626 = vrot.lane.b32.xlu0 %v15983_v54, %s11855_s13 }
 0x939   :  { %4273 = vmax.xlane.f32.xlu0 %v4272_v6 }
 0x94f   :  { %4739 = vrot.lane.b32.xlu0 %v15984_v35, %s11855_s13 }
 0x96f   :  { %v4235_v36 = vpop.xlane.xlu1 %4234 }
 0x970   :  { %v4279_v39 = vsub.f32 %v10576_v32, %v4235_v36 }
 0x971   :  { %v4232_v44 = vpop.xlane.xlu0 %4231 }
 0x972   :  { %v4296_v61 = vmul.f32 1.442695, %v4279_v39  ;;  %v4278_v9 = vsub.f32 %v3860_v0, %v4232_v44 }
 0x973   :  { %v4247_v58 = vpop.xlane.xlu1 %4246 }
 0x974   :  { %11297 = vpow2.f32 %v4296_v61  ;;  %v4294_v20 = vmul.f32 1.442695, %v4278_v9  ;;  %v4283_v54 = vsub.f32 %v13638_v41, %v4247_v58 }
 0x975   :  { %v4244_v3 = vpop.xlane.xlu0 %4243 }
 0x976   :  { %11299 = vpow2.f32 %v4294_v20  ;;  %v4304_v56 = vmul.f32 1.442695, %v4283_v54  ;;  %v4282_v6 = vsub.f32 %v13641_v48, %v4244_v3 }
 0x977   :  { %v4253_v14 = vpop.xlane.xlu1 %4252 }
 0x978   :  { %11301 = vpow2.f32 %v4304_v56  ;;  %v4302_v35 = vmul.f32 1.442695, %v4282_v6  ;;  %v4285_v46 = vsub.f32 %v13646_v40, %v4253_v14 }
 0x979   :  { %v4241_v26 = vpop.xlane.xlu0 %4240 }
 0x97a   :  { %11303 = vpow2.f32 %v4302_v35  ;;  %v4281_v32 = vsub.f32 %v10579_v2, %v4241_v26  ;;  %v4308_v39 = vmul.f32 1.442695, %v4285_v46 }
 0x97c   :  { %v4300_v0 = vmul.f32 1.442695, %v4281_v32 }
 0x97d   :  { %v4238_v44 = vpop.xlane.xlu0 %4237 }
 0x97e   :  { %11305 = vpow2.f32 %v4300_v0  ;;  %v4280_v61 = vsub.f32 %v13653_v47, %v4238_v44 }
 0x97f   :  { %v4259_v58 = vpop.xlane.xlu1 %4258  ;;  %11307 = vpow2.f32 %v4308_v39 }
 0x980   :  { %v4298_v20 = vmul.f32 1.442695, %v4280_v61  ;;  %v4287_v41 = vsub.f32 %v13659_v29, %v4259_v58 }
 0x981   :  { %v13708_v3 = vpop.eup %11297  ;;  %v4250_v56 = vpop.xlane.xlu0 %4249 }
 0x982   :  { %11309 = vpow2.f32 %v4298_v20  ;;  %v4312_v9 = vmul.f32 1.442695, %v4287_v41  ;;  %v4284_v14 = vsub.f32 %v13657_v49, %v4250_v56  ;;  %v4329_v26 = vsel %vm973_vm0, %v13708_v3, 0.0 }
 0x983   :  { %v13713_v46 = vpop.eup %11299  ;;  %v4271_v48 = vpop.xlane.xlu1 %4270  ;;  %4330 = vadd.xlane.f32.xlu1 %v4329_v26 }
 0x984   :  { %11311 = vpow2.f32 %v4312_v9  ;;  %v4306_v47 = vmul.f32 1.442695, %v4284_v14  ;;  %v4291_v40 = vsub.f32 %v13663_v62, %v4271_v48  ;;  %v4326_v2 = vsel %vm973_vm0, %v13713_v46, 0.0 }
 0x985   :  { %v13718_v29 = vpop.eup %11301  ;;  %4327 = vadd.xlane.f32.xlu0 %v4326_v2  ;;  %v4256_v54 = vpop.xlane.xlu0 %4255 }
 0x986   :  { %11313 = vpow2.f32 %v4306_v47  ;;  %v4320_v49 = vmul.f32 1.442695, %v4291_v40  ;;  %v4286_v35 = vsub.f32 %v13665_v19, %v4256_v54  ;;  %v4341_v36 = vsel %vm973_vm0, %v13718_v29, 0.0 }
 0x987   :  { %v13723_v6 = vpop.eup %11303  ;;  %v4265_v32 = vpop.xlane.xlu1 %4264  ;;  %4342 = vadd.xlane.f32.xlu1 %v4341_v36 }
 0x988   :  { %11315 = vpow2.f32 %v4320_v49  ;;  %v4310_v62 = vmul.f32 1.442695, %v4286_v35  ;;  %v4289_v39 = vsub.f32 %v13673_v30, %v4265_v32  ;;  %v4338_v0 = vsel %vm973_vm0, %v13723_v6, 0.0 }
 0x989   :  { %4339 = vadd.xlane.f32.xlu0 %v4338_v0  ;;  %v4268_v44 = vpop.xlane.xlu0 %4267 }
 0x98a   :  { %v4290_v61 = vsub.f32 %v13671_v55, %v4268_v44  ;;  %v4316_v19 = vmul.f32 1.442695, %v4289_v39  ;;  %11317 = vpow2.f32 %v4310_v62 }
 0x98b   :  { %v13729_v58 = vpop.eup %11305  ;;  %v4277_v20 = vpop.xlane.xlu1 %4276 }
 0x98c   :  { %v4318_v41 = vmul.f32 1.442695, %v4290_v61  ;;  %v4293_v56 = vsub.f32 %v13679_v16, %v4277_v20  ;;  %v4335_v9 = vsel %vm973_vm0, %v13729_v58, 0.0  ;;  %v13734_v14 = vpop.eup %11307 }
 0x98d   :  { %4336 = vadd.xlane.f32.xlu1 %v4335_v9  ;;  %v4262_v30 = vpop.xlane.xlu0 %4261  ;;  %v4347_v40 = vsel %vm973_vm0, %v13734_v14, 0.0 }
 0x98e   :  { %11319 = vpow2.f32 %v4318_v41  ;;  %v4324_v26 = vmul.f32 1.442695, %v4293_v56  ;;  %v4288_v48 = vsub.f32 %v13683_v7, %v4262_v30 }
 0x98f   :  { %v13737_v55 = vpop.eup %11309  ;;  %11321 = vpow2.f32 %v4316_v19 }
 0x990   :  { %11323 = vpow2.f32 %v4324_v26  ;;  %v4314_v47 = vmul.f32 1.442695, %v4288_v48  ;;  %v4332_v16 = vsel %vm973_vm0, %v13737_v55, 0.0 }
 0x991   :  { %v13743_v2 = vpop.eup %11311  ;;  %4348 = vadd.xlane.f32.xlu1 %v4347_v40  ;;  %4333 = vadd.xlane.f32.xlu0 %v4332_v16  ;;  %v13777_v9 = vpop.permute.xlu0 %4626  ;;  %v15985_v40 = vld [vmem:[#allocation52_spill] sm:$0xff] }
 0x992   :  { %11325 = vpow2.f32 %v4314_v47  ;;  %v4353_v7 = vsel %vm973_vm0, %v13743_v2, 0.0 }
 0x993   :  { %v13745_v54 = vpop.eup %11313 }
 0x994   :  { %v4344_v49 = vsel %vm973_vm0, %v13745_v54, 0.0 }
 0x995   :  { %v13751_v35 = vpop.eup %11315  ;;  %4354 = vadd.xlane.f32.xlu1 %v4353_v7  ;;  %4345 = vadd.xlane.f32.xlu0 %v4344_v49 }
 0x996   :  { %v4365_v36 = vsel %vm973_vm0, %v13751_v35, 0.0 }
 0x997   :  { %v13755_v32 = vpop.eup %11317 }
 0x998   :  { %v4350_v0 = vsel %vm973_vm0, %v13755_v32, 0.0 }
 0x999   :  { %4366 = vadd.xlane.f32.xlu0 %v4365_v36 }
 0x99b   :  { %v13757_v62 = vpop.eup %11319 }
 0x99c   :  { %v13759_v39 = vpop.eup %11321  ;;  %v4362_v44 = vsel %vm973_vm0, %v13757_v62, 0.0 }
 0x99d   :  { %v13765_v61 = vpop.eup %11323  ;;  %4351 = vadd.xlane.f32.xlu0 %v4350_v0  ;;  %4363 = vadd.xlane.f32.xlu1 %v4362_v44  ;;  %v4359_v20 = vsel %vm973_vm0, %v13759_v39, 0.0 }
 0x99e   :  { %v4371_v19 = vsel %vm973_vm0, %v13765_v61, 0.0 }
 0x99f   :  { %v13771_v41 = vpop.eup %11325 }
 0x9a0   :  { %v4356_v56 = vsel %vm973_vm0, %v13771_v41, 0.0 }
 0x9a1   :  { %4372 = vadd.xlane.f32.xlu0 %v4371_v19  ;;  %4360 = vadd.xlane.f32.xlu1 %v4359_v20 }
 0x9a5   :  { %4357 = vadd.xlane.f32.xlu0 %v4356_v56 }
 0x9bb   :  { %4735 = vrot.lane.b32.xlu0 %v12541_v52, %s11855_s13 }
 0x9bf   :  { %5234 = vrot.lane.b32.xlu0 %v15895_v22, %s11846_s4  ;;  %v15986_v22 = vld [vmem:[#allocation53_spill] sm:$0xff] }
 0x9c2   :  { %v4274_v30 = vpop.xlane.xlu0 %4273 }
 0x9c3   :  { %v4292_v26 = vsub.f32 %v13695_v42, %v4274_v30  ;;  %5230 = vrot.lane.b32.xlu0 %v15897_v28, %s11846_s4 }
 0x9c5   :  { %v4322_v48 = vmul.f32 1.442695, %v4292_v26 }
 0x9c6   :  { %v13784_v47 = vpop.permute.xlu0 %4739 }
 0x9c7   :  { %11327 = vpow2.f32 %v4322_v48  ;;  %5220 = vrot.lane.b32.xlu0 %v15901_v59, %s11846_s4  ;;  %10664 = vmatprep.subr.mxu1 %v13784_v47  ;;  %v15987_v59 = vld [vmem:[#allocation57_spill] sm:$0xff] }
 0x9cb   :  { %5351 = vrot.lane.b32.xlu0 %v15985_v40, %s11846_s4 }
 0x9cf   :  { %5224 = vrot.lane.b32.xlu0 %v15905_v15, %s11846_s4  ;;  %v15988_v15 = vld [vmem:[#allocation79_spill] sm:$0xff] }
 0x9d3   :  { %5347 = vrot.lane.b32.xlu0 %v15986_v22, %s11846_s4 }
 0x9d4   :  { %v13795_v42 = vpop.eup %11327 }
 0x9d5   :  { %v4368_v28 = vsel %vm973_vm0, %v13795_v42, 0.0 }
 0x9d6   :  { %4369 = vadd.xlane.f32.xlu1 %v4368_v28 }
 0x9d7   :  { %5337 = vrot.lane.b32.xlu0 %v15908_v27, %s11846_s4  ;;  %v15989_v27 = vld [vmem:[#allocation49_spill] sm:$0xff] }
 0x9db   :  { %5468 = vrot.lane.b32.xlu0 %v15987_v59, %s11846_s4 }
 0x9df   :  { %5341 = vrot.lane.b32.xlu0 %v12449_v21, %s11846_s4  ;;  %v15990_v21 = vld [vmem:[#allocation46_spill] sm:$0xff] }
 0x9e3   :  { %5464 = vrot.lane.b32.xlu0 %v12435_v37, %s11846_s4  ;;  %v15992_v37 = vld [vmem:[#allocation54_spill] sm:$0xff] }
 0x9e7   :  { %5454 = vrot.lane.b32.xlu0 %v12395_v25, %s11846_s4  ;;  %4733 = vrot.lane.b32.xlu1 %v15988_v15, %s11855_s13  ;;  %v15991_v25 = vld [vmem:[#allocation47_spill] sm:$0xff] }
 0x9eb   :  { %5585 = vrot.lane.b32.xlu0 %v12466_v12, %s11846_s4  ;;  %5232 = vrot.lane.b32.xlu1 %v15989_v27, %s11846_s4  ;;  %v15993_v12 = vld [vmem:[#allocation50_spill] sm:$0xff] }
 0x9ef   :  { %5458 = vrot.lane.b32.xlu0 %v12497_v24, %s11846_s4  ;;  %5228 = vrot.lane.b32.xlu1 %v15990_v21, %s11846_s4  ;;  %v4625_v24 = vpop.permute.xlu1 %4624 }
 0x9f3   :  { %5581 = vrot.lane.b32.xlu0 %v12500_v53, %s11846_s4  ;;  %5222 = vrot.lane.b32.xlu1 %v15991_v25, %s11846_s4  ;;  %v4738_v53 = vpop.permute.xlu1 %4737  ;;  %v5042_v25 = vld [vmem:[#allocation11 + $0x58] sm:$0xff] }
 0x9f7   :  { %5571 = vrot.lane.b32.xlu0 %v12471_v60, %s11846_s4  ;;  %5349 = vrot.lane.b32.xlu1 %v15992_v37, %s11846_s4  ;;  %v15994_v60 = vld [vmem:[#allocation58_spill] sm:$0xff] }
 0x9fb   :  { %5575 = vrot.lane.b32.xlu0 %v12556_v50, %s11846_s4  ;;  %5226 = vrot.lane.b32.xlu1 %v15993_v12, %s11846_s4 }
 0x9ff   :  { %5870 = vrot.lane.b32.xlu0 %v12522_v33, %s11846_s4  ;;  %5345 = vrot.lane.b32.xlu1 %v15907_v4, %s11846_s4 }
 0xa03   :  { %5866 = vrot.lane.b32.xlu0 %v12538_v38, %s11846_s4  ;;  %5339 = vrot.lane.b32.xlu1 %v15906_v51, %s11846_s4 }
 0xa07   :  { %5979 = vrot.lane.b32.xlu0 %v12563_v23, %s11846_s4  ;;  %5466 = vrot.lane.b32.xlu1 %v15994_v60, %s11846_s4  ;;  %v5039_v60 = vld [vmem:[#allocation11 + $0x40] sm:$0xff] }
 0xa0b   :  { %5975 = vrot.lane.b32.xlu0 %v12584_v31, %s11846_s4  ;;  %5343 = vrot.lane.b32.xlu1 %v12463_v34, %s11846_s4 }
 0xa0c   :  { %v4331_v33 = vpop.xlane.xlu1 %4330 }
 0xa0d   :  { %11329 = vrcp.f32 %v4331_v33 }
 0xa0e   :  { %v4328_v50 = vpop.xlane.xlu0 %4327 }
 0xa0f   :  { %11331 = vrcp.f32 %v4328_v50  ;;  %5462 = vrot.lane.b32.xlu1 %v12452_v10, %s11846_s4 }
 0xa10   :  { %v4343_v38 = vpop.xlane.xlu1 %4342 }
 0xa11   :  { %11333 = vrcp.f32 %v4343_v38 }
 0xa12   :  { %v4340_v23 = vpop.xlane.xlu0 %4339 }
 0xa13   :  { %11335 = vrcp.f32 %v4340_v23  ;;  %5456 = vrot.lane.b32.xlu1 %v12490_v45, %s11846_s4 }
 0xa16   :  { %v4337_v51 = vpop.xlane.xlu1 %4336 }
 0xa17   :  { %5583 = vrot.lane.b32.xlu1 %v12474_v43, %s11846_s4  ;;  %11337 = vrcp.f32 %v4337_v51 }
 0xa1a   :  { %v4334_v31 = vpop.xlane.xlu0 %4333  ;;  %v11330_v34 = vpop.eup %11329 }
 0xa1b   :  { %5460 = vrot.lane.b32.xlu1 %v12514_v11, %s11846_s4  ;;  %v4349_v16 = vpop.xlane.xlu1 %4348  ;;  %11339 = vrcp.f32 %v4334_v31  ;;  %v4391_v7 = vmul.f32 %v11330_v34, %v13708_v3 }
 0xa1c   :  { %v11332_v4 = vpop.eup %11331  ;;  %11341 = vrcp.f32 %v4349_v16 }
 0xa1d   :  { %v4390_v10 = vmul.f32 %v11332_v4, %v13713_v46 }
 0xa1e   :  { %v4346_v49 = vpop.xlane.xlu0 %4345  ;;  %v11334_v36 = vpop.eup %11333 }
 0xa1f   :  { %5579 = vrot.lane.b32.xlu1 %v12519_v8, %s11846_s4  ;;  %10630 = vmatprep.mubr.msk.f32.mxu0 %vm973_vm0, %v4390_v10  ;;  %11343 = vrcp.f32 %v4346_v49  ;;  %v4355_v11 = vpop.xlane.xlu1 %4354  ;;  %v4395_v46 = vmul.f32 %v11334_v36, %v13718_v29  ;;  %v4845_v29 = vld [vmem:[#allocation10 + $0x58] sm:$0xff] }
 0xa20   :  { %v11336_v43 = vpop.eup %11335  ;;  %10631 = vmatmul.mubr.msk.f32.vlgmr.msra.gmra.mxu0 %vm973_vm0, %v4391_v7  ;;  %11345 = vrcp.f32 %v4355_v11 }
 0xa21   :  { %10651 = vmatpush3.msra.mxu0 %v13519_v63  ;;  %v4394_v45 = vmul.f32 %v11336_v43, %v13723_v6 }
 0xa22   :  { %10652 = vmatprep.subr.mxu0 %v13701_v57  ;;  %v13864_v3 = vpop.xlane.xlu0 %4366 }
 0xa23   :  { %10653 = vmatpush3.msra.mxu0 %v13701_v57  ;;  %5573 = vrot.lane.b32.xlu1 %v12549_v18, %s11846_s4 }
 0xa24   :  { %10644 = vmatprep.mubr.msk.f32.mxu1 %vm973_vm0, %v4394_v45  ;;  %10654 = vmatprep.subr.mxu0 %v13777_v9  ;;  %v11338_v57 = vpop.eup %11337 }
 0xa25   :  { %10645 = vmatmul.mubr.msk.f32.vlgmr.msra.gmra.mxu1 %vm973_vm0, %v4395_v46  ;;  %10655 = vmatpush3.msra.mxu0 %v13777_v9  ;;  %v4393_v19 = vmul.f32 %v11338_v57, %v13729_v58 }
 0xa26   :  { %10665 = vmatpush3.msra.mxu1 %v13784_v47  ;;  %10656 = vmatprep.subr.mxu0 %v4625_v24  ;;  %v4364_v8 = vpop.xlane.xlu1 %4363  ;;  %v4352_v63 = vpop.xlane.xlu0 %4351  ;;  %v4844_v47 = vld [vmem:[#allocation10 + $0x50] sm:$0xff] }
 0xa27   :  { %10666 = vmatprep.subr.mxu1 %v4738_v53  ;;  %11347 = vrcp.f32 %v4364_v8  ;;  %10657 = vmatpush3.msra.mxu0 %v4625_v24  ;;  %v5040_v24 = vld [vmem:[#allocation11 + $0x48] sm:$0xff] }
 0xa28   :  { %10667 = vmatpush3.msra.mxu1 %v4738_v53  ;;  %11349 = vrcp.f32 %v4352_v63  ;;  %5577 = vrot.lane.b32.xlu1 %v12575_v13, %s11846_s4  ;;  %v11340_v18 = vpop.eup %11339 }
 0xa29   :  { %10678 = vmatprep.subr.mxu0 %v4845_v29  ;;  %v4392_v0 = vmul.f32 %v11340_v18, %v13737_v55  ;;  %v11342_v20 = vpop.eup %11341 }
 0xa2a   :  { %v4373_v6 = vpop.xlane.xlu0 %4372  ;;  %v4361_v44 = vpop.xlane.xlu1 %4360  ;;  %v4397_v30 = vmul.f32 %v11342_v20, %v13734_v14 }
 0xa2b   :  { %10633 = vmatprep.mubr.msk.f32.mxu0 %vm973_vm0, %v4392_v0  ;;  %11351 = vrcp.f32 %v4361_v44 }
 0xa2c   :  { %5868 = vrot.lane.b32.xlu1 %v12531_v1, %s11846_s4  ;;  %v11344_v56 = vpop.eup %11343  ;;  %10634 = vmatmul.mubr.msk.f32.gmra.mxu0 %vm973_vm0, %v4393_v19 }
 0xa2d   :  { %v4396_v13 = vmul.f32 %v11344_v56, %v13745_v54  ;;  %v11346_v58 = vpop.eup %11345 }
 0xa2e   :  { %v4358_v9 = vpop.xlane.xlu0 %4357  ;;  %v4399_v48 = vmul.f32 %v11346_v58, %v13743_v2 }
 0xa2f   :  { %11353 = vrcp.f32 %v4358_v9  ;;  %10647 = vmatprep.mubr.msk.f32.mxu1 %vm973_vm0, %v4396_v13 }
 0xa30   :  { %5864 = vrot.lane.b32.xlu1 %v12552_v17, %s11846_s4  ;;  %10648 = vmatmul.mubr.msk.f32.gmra.mxu1 %vm973_vm0, %v4397_v30  ;;  %v15995_v17 = vld [vmem:[#allocation62_spill] sm:$0xff]  ;;  %11355 = vrcp.f32 %v13864_v3 }
 0xa31   :  { %11357 = vrcp.f32 %v4373_v6 }
 0xa32   :  { %v4736_v1 = vpop.permute.xlu0 %4735 }
 0xa33   :  { %10668 = vmatprep.subr.mxu1 %v4736_v1 }
 0xa34   :  { %v11348_v55 = vpop.eup %11347  ;;  %5977 = vrot.lane.b32.xlu1 %v12578_v5, %s11846_s4  ;;  %10669 = vmatpush3.msra.mxu1 %v4736_v1  ;;  %v4843_v5 = vld [vmem:[#allocation10 + $0x48] sm:$0xff] }
 0xa35   :  { %v11350_v26 = vpop.eup %11349  ;;  %v4402_v54 = vmul.f32 %v11348_v55, %v13757_v62  ;;  %v4842_v62 = vld [vmem:[#allocation10 + $0x40] sm:$0xff] }
 0xa36   :  { %v4398_v14 = vmul.f32 %v11350_v26, %v13755_v32  ;;  %v5235_v28 = vpop.permute.xlu0 %5234 }
 0xa37   :  { %10672 = vmatprep.mubr.msk.f32.mxu1 %vm973_vm0, %v4402_v54 }
 0xa38   :  { %5973 = vrot.lane.b32.xlu1 %v15995_v17, %s11846_s4  ;;  %10658 = vmatprep.mubr.msk.f32.mxu0 %vm973_vm0, %v4398_v14  ;;  %v11352_v40 = vpop.eup %11351 }
 0xa39   :  { %10659 = vmatmul.mubr.msk.f32.vlgmr.msra.gmra.mxu0 %vm973_vm0, %v4399_v48  ;;  %v4401_v32 = vmul.f32 %v11352_v40, %v13759_v39  ;;  %v5041_v39 = vld [vmem:[#allocation11 + $0x50] sm:$0xff] }
 0xa3a   :  { %10679 = vmatpush3.msra.mxu0 %v4845_v29  ;;  %v5231_v21 = vpop.permute.xlu0 %5230 }
 0xa3b   :  { %10680 = vmatprep.subr.mxu0 %v4844_v47 }
 0xa3c   :  { %v11354_v22 = vpop.eup %11353  ;;  %10681 = vmatpush3.msra.mxu0 %v4844_v47 }
 0xa3d   :  { %10682 = vmatprep.subr.mxu0 %v4843_v5  ;;  %v4400_v2 = vmul.f32 %v11354_v22, %v13771_v41  ;;  %v11356_v27 = vpop.eup %11355 }
 0xa3e   :  { %10683 = vmatpush3.msra.mxu0 %v4843_v5  ;;  %v4403_v37 = vmul.f32 %v11356_v27, %v13751_v35  ;;  %v13907_v12 = vpop.permute.xlu0 %5220  ;;  %v11358_v53 = vpop.eup %11357 }
 0xa3f   :  { %10684 = vmatprep.subr.mxu0 %v4842_v62  ;;  %10661 = vmatprep.mubr.msk.f32.mxu0 %vm973_vm0, %v4400_v2  ;;  %v4405_v38 = vmul.f32 %v11358_v53, %v13765_v61 }
 0xa40   :  { %10685 = vmatpush3.msra.mxu0 %v4842_v62 }
 0xa41   :  { %10742 = vmatprep.subr.msk.mxu0 %vm973_vm0, %v5235_v28  ;;  %10662 = vmatmul.mubr.msk.f32.gmra.mxu0 %vm973_vm0, %v4401_v32 }
 0xa42   :  { %v5352_v50 = vpop.permute.xlu0 %5351 }
 0xa46   :  { %v13914_v23 = vpop.permute.xlu0 %5224 }
 0xa4a   :  { %v5348_v51 = vpop.permute.xlu0 %5347 }
 0xa4e   :  { %v13916_v34 = vpop.permute.xlu0 %5337 }
 0xa52   :  { %v13918_v16 = vpop.permute.xlu0 %5468 }
 0xa56   :  { %v13922_v7 = vpop.permute.xlu0 %5341 }
 0xa5a   :  { %v13930_v36 = vpop.permute.xlu0 %5464 }
 0xa5e   :  { %v13940_v11 = vpop.permute.xlu0 %5454 }
 0xa5f   :  { %v4370_v59 = vpop.xlane.xlu1 %4369 }
 0xa60   :  { %11359 = vrcp.f32 %v4370_v59 }
 0xa62   :  { %v5586_v57 = vpop.permute.xlu0 %5585 }
 0xa63   :  { %v4734_v41 = vpop.permute.xlu1 %4733 }
 0xa64   :  { %10670 = vmatprep.subr.mxu1 %v4734_v41 }
 0xa65   :  { %10671 = vmatpush3.msra.mxu1 %v4734_v41 }
 0xa66   :  { %10673 = vmatmul.mubr.msk.f32.vlgmr.msra.gmra.mxu1 %vm973_vm0, %v4403_v37  ;;  %10710 = vmatprep.subr.mxu1 %v5042_v25  ;;  %v5459_v58 = vpop.permute.xlu0 %5458  ;;  %v15996_v37 = vld [vmem:[#allocation48_spill] sm:$0xff] }
 0xa67   :  { %10711 = vmatpush3.msra.mxu1 %v5042_v25  ;;  %v5233_v31 = vpop.permute.xlu1 %5232 }
 0xa68   :  { %10712 = vmatprep.subr.mxu1 %v5041_v39 }
 0xa69   :  { %10713 = vmatpush3.msra.mxu1 %v5041_v39  ;;  %v15997_v39 = vld [vmem:[#allocation87_spill] sm:$0xff] }
 0xa6a   :  { %10714 = vmatprep.subr.mxu1 %v5040_v24  ;;  %v5582_v54 = vpop.permute.xlu0 %5581 }
 0xa6b   :  { %10715 = vmatpush3.msra.mxu1 %v5040_v24  ;;  %v5229_v4 = vpop.permute.xlu1 %5228  ;;  %v15998_v24 = vld [vmem:[#allocation44_spill] sm:$0xff] }
 0xa6c   :  { %10716 = vmatprep.subr.mxu1 %v5039_v60 }
 0xa6d   :  { %v11360_v33 = vpop.eup %11359  ;;  %10717 = vmatpush3.msra.mxu1 %v5039_v60  ;;  %v15999_v60 = vld [vmem:[#allocation88_spill] sm:$0xff] }
 0xa6e   :  { %10756 = vmatprep.subr.msk.mxu1 %vm973_vm0, %v5352_v50  ;;  %v4404_v35 = vmul.f32 %v11360_v33, %v13795_v42  ;;  %v5572_v17 = vpop.permute.xlu0 %5571  ;;  %v3689_v53 = vadd.f32 %v15999_v60, %v15998_v24 }
 0xa6f   :  { %v13920_v10 = vpop.permute.xlu1 %5222 }
 0xa70   :  { %10675 = vmatprep.mubr.msk.f32.mxu1 %vm973_vm0, %v4404_v35 }
 0xa71   :  { %10676 = vmatmul.mubr.msk.f32.gmra.mxu1 %vm973_vm0, %v4405_v38 }
 0xa72   :  { %v5576_v22 = vpop.permute.xlu0 %5575 }
 0xa73   :  { %v5350_v49 = vpop.permute.xlu1 %5349 }
 0xa76   :  { %v5871_v2 = vpop.permute.xlu0 %5870 }
 0xa77   :  { %v13934_v43 = vpop.permute.xlu1 %5226 }
 0xa7b   :  { %v5346_v3 = vpop.permute.xlu1 %5345 }
 0xa7f   :  { %v5340_v19 = vpop.permute.xlu1 %5339 }
 0xa83   :  { %v5467_v56 = vpop.permute.xlu1 %5466 }
 0xa87   :  { %v5344_v9 = vpop.permute.xlu1 %5343 }
 0xa8b   :  { %v5463_v13 = vpop.permute.xlu1 %5462 }
 0xa8f   :  { %v5457_v30 = vpop.permute.xlu1 %5456 }
 0xa93   :  { %v5584_v1 = vpop.permute.xlu1 %5583 }
 0xa97   :  { %v5461_v55 = vpop.permute.xlu1 %5460 }
 0xa9b   :  { %v5580_v48 = vpop.permute.xlu1 %5579 }
 0xa9f   :  { %v5574_v5 = vpop.permute.xlu1 %5573 }
 0xaa3   :  { %v5578_v62 = vpop.permute.xlu1 %5577 }
 0xaa7   :  { %v5869_v32 = vpop.permute.xlu1 %5868 }
 0xaab   :  { %v5865_v59 = vpop.permute.xlu1 %5864 }
 0xae0   :  { %v10632_v42 = vpop.f32.mrf.mxu0 }
 0xae2   :  { %v4496_v61 = vpop.f32.mrf.mxu0 }
 0xae3   :  { %10686 = vmatprep.mubr.msk.f32.mxu0 %vm973_vm0, %v4496_v61  ;;  %10718 = vmatprep.mubr.msk.f32.mxu1 %vm973_vm0, %v4496_v61 }
 0xae4   :  { %10687 = vmatmul.mubr.msk.f32.vlgmr.msra.gmra.mxu0 %vm973_vm0, %v10632_v42  ;;  %10719 = vmatmul.mubr.msk.f32.vlgmr.msra.gmra.mxu1 %vm973_vm0, %v10632_v42 }
 0xae5   :  { %10743 = vmatpush3.xpose.msk.msra.mxu0 %vm973_vm0, %v5235_v28  ;;  %10757 = vmatpush3.xpose.msk.msra.mxu1 %vm973_vm0, %v5352_v50  ;;  %v10646_v45 = vpop.f32.mrf.mxu1  ;;  %v5867_v28 = vpop.permute.xlu0 %5866 }
 0xae6   :  { %10744 = vmatprep.subr.msk.mxu0 %vm973_vm0, %v5233_v31  ;;  %10758 = vmatprep.subr.msk.mxu1 %vm973_vm0, %v5350_v49 }
 0xae7   :  { %v4605_v8 = vpop.f32.mrf.mxu1 }
 0xae9   :  { %10745 = vmatpush3.xpose.msk.msra.mxu0 %vm973_vm0, %v5233_v31  ;;  %10759 = vmatpush3.xpose.msk.msra.mxu1 %vm973_vm0, %v5350_v49  ;;  %v5980_v27 = vpop.permute.xlu0 %5979  ;;  %v16000_v31 = vld [vmem:[#allocation59_spill] sm:$0xff] }
 0xaea   :  { %10746 = vmatprep.subr.msk.mxu0 %vm973_vm0, %v5231_v21  ;;  %10760 = vmatprep.subr.msk.mxu1 %vm973_vm0, %v5348_v51 }
 0xaec   :  { %v10635_v46 = vpop.f32.mrf.mxu0 }
 0xaed   :  { %10747 = vmatpush3.xpose.msk.msra.mxu0 %vm973_vm0, %v5231_v21  ;;  %10761 = vmatpush3.xpose.msk.msra.mxu1 %vm973_vm0, %v5348_v51  ;;  %v5978_v21 = vpop.permute.xlu1 %5977  ;;  %v5976_v41 = vpop.permute.xlu0 %5975 }
 0xaee   :  { %10748 = vmatprep.subr.msk.mxu0 %vm973_vm0, %v5229_v4  ;;  %10762 = vmatprep.subr.msk.mxu1 %vm973_vm0, %v5346_v3  ;;  %v4506_v63 = vpop.f32.mrf.mxu0 }
 0xaef   :  { %10689 = vmatprep.mubr.msk.f32.mxu0 %vm973_vm0, %v4506_v63  ;;  %10721 = vmatprep.mubr.msk.f32.mxu1 %vm973_vm0, %v4506_v63  ;;  %v16007_v63 = vld [vmem:[#allocation96_spill] sm:$0xff] }
 0xaf0   :  { %v10649_v29 = vpop.f32.mrf.mxu1  ;;  %10690 = vmatmul.mubr.msk.f32.gmra.mxu0 %vm973_vm0, %v10635_v46  ;;  %10722 = vmatmul.mubr.msk.f32.gmra.mxu1 %vm973_vm0, %v10635_v46 }
 0xaf1   :  { %10749 = vmatpush3.xpose.msk.msra.mxu0 %vm973_vm0, %v5229_v4  ;;  %10763 = vmatpush3.xpose.msk.msra.mxu1 %vm973_vm0, %v5346_v3  ;;  %v5974_v25 = vpop.permute.xlu1 %5973  ;;  %v16005_v3 = vld [vmem:[#allocation95_spill] sm:$0xff] }
 0xaf2   :  { %10692 = vmatprep.mubr.msk.f32.mxu0 %vm973_vm0, %v4605_v8  ;;  %10724 = vmatprep.mubr.msk.f32.mxu1 %vm973_vm0, %v4605_v8  ;;  %v4615_v18 = vpop.f32.mrf.mxu1  ;;  %v16006_v8 = vld [vmem:[#allocation71_spill] sm:$0xff] }
 0xaf3   :  { %10770 = vmatprep.subr.msk.mxu0 %vm973_vm0, %v13918_v16  ;;  %10784 = vmatprep.subr.msk.mxu1 %vm973_vm0, %v5586_v57 }
 0xaf4   :  { %10693 = vmatmul.mubr.msk.f32.gmra.mxu0 %vm973_vm0, %v10646_v45  ;;  %10725 = vmatmul.mubr.msk.f32.gmra.mxu1 %vm973_vm0, %v10646_v45 }
 0xaf5   :  { %10695 = vmatprep.mubr.msk.f32.mxu0 %vm973_vm0, %v4615_v18  ;;  %10727 = vmatprep.mubr.msk.f32.mxu1 %vm973_vm0, %v4615_v18 }
 0xaf8   :  { %10696 = vmatmul.mubr.msk.f32.gmra.mxu0 %vm973_vm0, %v10649_v29  ;;  %10728 = vmatmul.mubr.msk.f32.gmra.mxu1 %vm973_vm0, %v10649_v29  ;;  %v3709_v29 = vadd.f32 %v16007_v63, %v16006_v8 }
 0xaf9   :  { %v10660_v6 = vpop.f32.mrf.mxu0 }
 0xafb   :  { %v4714_v0 = vpop.f32.mrf.mxu0 }
 0xafc   :  { %10698 = vmatprep.mubr.msk.f32.mxu0 %vm973_vm0, %v4714_v0  ;;  %10730 = vmatprep.mubr.msk.f32.mxu1 %vm973_vm0, %v4714_v0 }
 0xafd   :  { %10699 = vmatmul.mubr.msk.f32.gmra.mxu0 %vm973_vm0, %v10660_v6  ;;  %10731 = vmatmul.mubr.msk.f32.gmra.mxu1 %vm973_vm0, %v10660_v6 }
 0xb01   :  { %v10663_v44 = vpop.f32.mrf.mxu0 }
 0xb03   :  { %v4724_v20 = vpop.f32.mrf.mxu0 }
 0xb04   :  { %10701 = vmatprep.mubr.msk.f32.mxu0 %vm973_vm0, %v4724_v20  ;;  %10733 = vmatprep.mubr.msk.f32.mxu1 %vm973_vm0, %v4724_v20  ;;  %v16008_v20 = vld [vmem:[#allocation74_spill] sm:$0xff] }
 0xb05   :  { %10702 = vmatmul.mubr.msk.f32.gmra.mxu0 %vm973_vm0, %v10663_v44  ;;  %10734 = vmatmul.mubr.msk.f32.gmra.mxu1 %vm973_vm0, %v10663_v44 }
 0xb26   :  { %v10674_v26 = vpop.f32.mrf.mxu1 }
 0xb28   :  { %v4823_v14 = vpop.f32.mrf.mxu1 }
 0xb29   :  { %10704 = vmatprep.mubr.msk.f32.mxu0 %vm973_vm0, %v4823_v14  ;;  %10736 = vmatprep.mubr.msk.f32.mxu1 %vm973_vm0, %v4823_v14 }
 0xb2a   :  { %10705 = vmatmul.mubr.msk.f32.gmra.mxu0 %vm973_vm0, %v10674_v26  ;;  %10737 = vmatmul.mubr.msk.f32.gmra.mxu1 %vm973_vm0, %v10674_v26 }
 0xb31   :  { %v10677_v47 = vpop.f32.mrf.mxu1 }
 0xb33   :  { %v4833_v40 = vpop.f32.mrf.mxu1 }
 0xb34   :  { %10707 = vmatprep.mubr.msk.f32.mxu0 %vm973_vm0, %v4833_v40  ;;  %10739 = vmatprep.mubr.msk.f32.mxu1 %vm973_vm0, %v4833_v40  ;;  %v16015_v40 = vld [vmem:[#allocation75_spill] sm:$0xff] }
 0xb35   :  { %10708 = vmatmul.mubr.msk.f32.gmra.mxu0 %vm973_vm0, %v10677_v47  ;;  %10740 = vmatmul.mubr.msk.f32.gmra.mxu1 %vm973_vm0, %v10677_v47  ;;  %v16014_v47 = vld [vmem:[#allocation103_spill] sm:$0xff] }
 0xb36   :  { %10750 = vmatprep.mubr.msk.f32.mxu0 %vm973_vm0, %v13907_v12  ;;  %10764 = vmatprep.mubr.msk.f32.mxu1 %vm973_vm0, %v13916_v34  ;;  %v3544_v12 = vadd.f32 %v15997_v39, %v15996_v37  ;;  %v16001_v34 = vld [vmem:[#allocation91_spill] sm:$0xff] }
 0xb37   :  { %v3554_v4 = vadd.f32 %v16001_v34, %v16000_v31  ;;  %v16018_v37 = vld [vmem:[#allocation107_spill] sm:$0xff] }
 0xb38   :  { %v16021_v31 = vld [vmem:[#allocation111_spill] sm:$0xff] }
 0xb39   :  { %10751 = vmatmul.mubr.msk.f32.vlgmr.msra.gmra.mxu0 %vm973_vm0, %v13920_v10  ;;  %10765 = vmatmul.mubr.msk.f32.vlgmr.msra.gmra.mxu1 %vm973_vm0, %v5340_v19  ;;  %v16003_v10 = vld [vmem:[#allocation92_spill] sm:$0xff] }
 0xb3a   :  { %10771 = vmatpush3.xpose.msk.msra.mxu0 %vm973_vm0, %v13918_v16  ;;  %10785 = vmatpush3.xpose.msk.msra.mxu1 %vm973_vm0, %v5586_v57  ;;  %v16002_v16 = vld [vmem:[#allocation55_spill] sm:$0xff] }
 0xb3b   :  { %10753 = vmatprep.mubr.msk.f32.mxu0 %vm973_vm0, %v13914_v23  ;;  %10767 = vmatprep.mubr.msk.f32.mxu1 %vm973_vm0, %v13922_v7  ;;  %v3699_v7 = vadd.f32 %v16003_v10, %v16002_v16 }
 0xb3c   :  { %10772 = vmatprep.subr.msk.mxu0 %vm973_vm0, %v5467_v56  ;;  %10786 = vmatprep.subr.msk.mxu1 %vm973_vm0, %v5584_v1 }
 0xb3d   :  { %10754 = vmatmul.mubr.msk.f32.gmra.mxu0 %vm973_vm0, %v13934_v43  ;;  %10768 = vmatmul.mubr.msk.f32.gmra.mxu1 %vm973_vm0, %v5344_v9 }
 0xb3e   :  { %10773 = vmatpush3.xpose.msk.msra.mxu0 %vm973_vm0, %v5467_v56  ;;  %10787 = vmatpush3.xpose.msk.msra.mxu1 %vm973_vm0, %v5584_v1  ;;  %v16009_v56 = vld [vmem:[#allocation99_spill] sm:$0xff] }
 0xb3f   :  { %10774 = vmatprep.subr.msk.mxu0 %vm973_vm0, %v13930_v36  ;;  %10778 = vmatprep.mubr.msk.f32.mxu0 %vm973_vm0, %v13940_v11  ;;  %v16004_v11 = vld [vmem:[#allocation68_spill] sm:$0xff]  ;;  %v3574_v9 = vadd.f32 %v16009_v56, %v16008_v20 }
 0xb40   :  { %10788 = vmatprep.subr.msk.mxu1 %vm973_vm0, %v5582_v54  ;;  %10792 = vmatprep.mubr.msk.f32.mxu1 %vm973_vm0, %v5572_v17  ;;  %v3564_v46 = vadd.f32 %v16005_v3, %v16004_v11  ;;  %v16013_v17 = vld [vmem:[#allocation70_spill] sm:$0xff]  ;;  %v16024_v11 = vld [vmem:[#allocation115_spill] sm:$0xff] }
 0xb42   :  { %10775 = vmatpush3.xpose.msk.msra.mxu0 %vm973_vm0, %v13930_v36  ;;  %10789 = vmatpush3.xpose.msk.msra.mxu1 %vm973_vm0, %v5582_v54 }
 0xb43   :  { %10776 = vmatprep.subr.msk.mxu0 %vm973_vm0, %v5463_v13  ;;  %10790 = vmatprep.subr.msk.mxu1 %vm973_vm0, %v5580_v48 }
 0xb46   :  { %10777 = vmatpush3.xpose.msk.msra.mxu0 %vm973_vm0, %v5463_v13  ;;  %10791 = vmatpush3.xpose.msk.msra.mxu1 %vm973_vm0, %v5580_v48  ;;  %v16010_v13 = vld [vmem:[#allocation67_spill] sm:$0xff] }
 0xb47   :  { %10798 = vmatprep.subr.mxu0 %v5871_v2  ;;  %10812 = vmatprep.subr.mxu1 %v5980_v27 }
 0xb49   :  { %10779 = vmatmul.mubr.msk.f32.vlgmr.msra.gmra.mxu0 %vm973_vm0, %v5457_v30  ;;  %10793 = vmatmul.mubr.msk.f32.vlgmr.msra.gmra.mxu1 %vm973_vm0, %v5574_v5  ;;  %v16011_v30 = vld [vmem:[#allocation100_spill] sm:$0xff]  ;;  %v3584_v5 = vadd.f32 %v16014_v47, %v16013_v17 }
 0xb4a   :  { %10781 = vmatprep.mubr.msk.f32.mxu0 %vm973_vm0, %v5459_v58  ;;  %10795 = vmatprep.mubr.msk.f32.mxu1 %vm973_vm0, %v5576_v22  ;;  %v3719_v1 = vadd.f32 %v16011_v30, %v16010_v13  ;;  %v16016_v22 = vld [vmem:[#allocation104_spill] sm:$0xff] }
 0xb4b   :  { %10799 = vmatpush3.msra.mxu0 %v5871_v2  ;;  %10813 = vmatpush3.msra.mxu1 %v5980_v27 }
 0xb4c   :  { %10800 = vmatprep.subr.mxu0 %v5869_v32  ;;  %10814 = vmatprep.subr.mxu1 %v5978_v21 }
 0xb4d   :  { %10801 = vmatpush3.msra.mxu0 %v5869_v32  ;;  %10815 = vmatpush3.msra.mxu1 %v5978_v21 }
 0xb4e   :  { %10782 = vmatmul.mubr.msk.f32.gmra.mxu0 %vm973_vm0, %v5461_v55  ;;  %10796 = vmatmul.mubr.msk.f32.gmra.mxu1 %vm973_vm0, %v5578_v62  ;;  %v3729_v62 = vadd.f32 %v16016_v22, %v16015_v40 }
 0xb4f   :  { %10802 = vmatprep.subr.mxu0 %v5867_v28  ;;  %10816 = vmatprep.subr.mxu1 %v5976_v41 }
 0xb50   :  { %10803 = vmatpush3.msra.mxu0 %v5867_v28  ;;  %10817 = vmatpush3.msra.mxu1 %v5976_v41 }
 0xb51   :  { %10804 = vmatprep.subr.mxu0 %v5865_v59  ;;  %10818 = vmatprep.subr.mxu1 %v5974_v25 }
 0xb52   :  { %10805 = vmatpush3.msra.mxu0 %v5865_v59  ;;  %10819 = vmatpush3.msra.mxu1 %v5974_v25 }
 0xba4   :  { %v10688_v33 = vpop.f32.mrf.mxu0  ;;  %v10720_v50 = vpop.f32.mrf.mxu1 }
 0xba5   :  { %v14023_v35 = vadd.f32 %v10688_v33, %v3544_v12  ;;  %v14025_v38 = vadd.f32 %v10720_v50, %v3689_v53  ;;  %v16019_v12 = vld [vmem:[#allocation108_spill] sm:$0xff] }
 0xba6   :  { %v14027_v23 = vpop.f32.mrf.mxu0  ;;  %v14029_v51 = vpop.f32.mrf.mxu1 }
 0xbb0   :  { %v10691_v42 = vpop.f32.mrf.mxu0  ;;  %v10723_v49 = vpop.f32.mrf.mxu1 }
 0xbb1   :  { %v14035_v61 = vadd.f32 %v10691_v42, %v3554_v4  ;;  %v14037_v36 = vadd.f32 %v10723_v49, %v3699_v7  ;;  %v16022_v4 = vld [vmem:[#allocation112_spill] sm:$0xff] }
 0xbb2   :  { %v14039_v43 = vpop.f32.mrf.mxu0  ;;  %v14041_v45 = vpop.f32.mrf.mxu1 }
 0xbb4   :  { %v10694_v57 = vpop.f32.mrf.mxu0  ;;  %v10726_v18 = vpop.f32.mrf.mxu1 }
 0xbb5   :  { %v14047_v6 = vadd.f32 %v10694_v57, %v3564_v46  ;;  %v14049_v0 = vadd.f32 %v10726_v18, %v3709_v29  ;;  %v16025_v46 = vld [vmem:[#allocation116_spill] sm:$0xff] }
 0xbb6   :  { %v14051_v44 = vpop.f32.mrf.mxu0  ;;  %v14053_v19 = vpop.f32.mrf.mxu1 }
 0xbb8   :  { %v10697_v58 = vpop.f32.mrf.mxu0  ;;  %v10729_v55 = vpop.f32.mrf.mxu1 }
 0xbb9   :  { %v14059_v26 = vadd.f32 %v10697_v58, %v3574_v9  ;;  %v14061_v54 = vadd.f32 %v10729_v55, %v3719_v1 }
 0xbba   :  { %v14063_v14 = vpop.f32.mrf.mxu0  ;;  %v14065_v48 = vpop.f32.mrf.mxu1 }
 0xbbb   :  { %16012 = vst [vmem:[#allocation52_spill] sm:$0xff] %v14063_v14 }
 0xbbd   :  { %v10700_v2 = vpop.f32.mrf.mxu0  ;;  %v10732_v32 = vpop.f32.mrf.mxu1 }
 0xbbe   :  { %v14071_v28 = vadd.f32 %v10700_v2, %v3584_v5  ;;  %v14073_v59 = vadd.f32 %v10732_v32, %v3729_v62 }
 0xbbf   :  { %v14075_v27 = vpop.f32.mrf.mxu0  ;;  %v14077_v21 = vpop.f32.mrf.mxu1 }
 0xbc0   :  { %16017 = vst [vmem:[#allocation53_spill] sm:$0xff] %v14075_v27 }
 0xbc5   :  { %v10703_v41 = vpop.f32.mrf.mxu0  ;;  %v10735_v25 = vpop.f32.mrf.mxu1 }
 0xbc6   :  { %v14080_v39 = vadd.f32 %v10703_v41, %v16018_v37  ;;  %v14083_v24 = vadd.f32 %v10735_v25, %v16019_v12 }
 0xbc7   :  { %v14085_v60 = vpop.f32.mrf.mxu0  ;;  %v14087_v53 = vpop.f32.mrf.mxu1 }
 0xbc8   :  { %16020 = vst [vmem:[#allocation57_spill] sm:$0xff] %v14085_v60 }
 0xbea   :  { %v10706_v33 = vpop.f32.mrf.mxu0  ;;  %v10738_v50 = vpop.f32.mrf.mxu1 }
 0xbeb   :  { %v14090_v34 = vadd.f32 %v10706_v33, %v16021_v31  ;;  %v14093_v16 = vadd.f32 %v10738_v50, %v16022_v4 }
 0xbec   :  { %v14095_v10 = vpop.f32.mrf.mxu0  ;;  %v14097_v7 = vpop.f32.mrf.mxu1 }
 0xbed   :  { %16023 = vst [vmem:[#allocation79_spill] sm:$0xff] %v14095_v10 }
 0xbf5   :  { %v10709_v42 = vpop.f32.mrf.mxu0  ;;  %v10741_v49 = vpop.f32.mrf.mxu1 }
 0xbf6   :  { %v14100_v3 = vadd.f32 %v10709_v42, %v16024_v11  ;;  %v14103_v8 = vadd.f32 %v10741_v49, %v16025_v46 }
 0xbf7   :  { %v14105_v63 = vpop.f32.mrf.mxu0  ;;  %v14107_v29 = vpop.f32.mrf.mxu1 }
 0xbf8   :  { %16026 = vst [vmem:[#allocation49_spill] sm:$0xff] %v14105_v63 }
 0xbf9   :  { %v10752_v57 = vpop.f32.mrf.mxu0  ;;  %v10766_v18 = vpop.f32.mrf.mxu1 }
 0xbfa   :  { %v5691_v20 = vsel %vm973_vm0, %v10752_v57, -inf  ;;  %v5703_v30 = vsel %vm973_vm0, %v10766_v18, -inf }
 0xbfb   :  { %5692 = vmax.xlane.f32.xlu1 %v5691_v20  ;;  %v5318_v56 = vpop.f32.mrf.mxu0  ;;  %v5435_v9 = vpop.f32.mrf.mxu1  ;;  %v16027_v20 = vld [vmem:[#allocation76_spill] sm:$0xff] }
 0xbfc   :  { %v5688_v13 = vsel %vm973_vm0, %v5318_v56, -inf  ;;  %v5700_v58 = vsel %vm973_vm0, %v5435_v9, -inf }
 0xbfd   :  { %5689 = vmax.xlane.f32.xlu0 %v5688_v13  ;;  %v10769_v1 = vpop.f32.mrf.mxu1  ;;  %v10755_v55 = vpop.f32.mrf.mxu0  ;;  %v16028_v13 = vld [vmem:[#allocation61_spill] sm:$0xff] }
 0xbfe   :  { %v5709_v17 = vsel %vm973_vm0, %v10769_v1, -inf  ;;  %v5697_v47 = vsel %vm973_vm0, %v10755_v55, -inf }
 0xbff   :  { %5704 = vmax.xlane.f32.xlu1 %v5703_v30  ;;  %v5328_v5 = vpop.f32.mrf.mxu0  ;;  %v14116_v22 = vpop.f32.mrf.mxu1 }
 0xc00   :  { %v5694_v40 = vsel %vm973_vm0, %v5328_v5, -inf  ;;  %v5706_v25 = vsel %vm973_vm0, %v14116_v22, -inf }
 0xc01   :  { %5701 = vmax.xlane.f32.xlu0 %v5700_v58 }
 0xc03   :  { %5710 = vmax.xlane.f32.xlu1 %v5709_v17 }
 0xc05   :  { %5698 = vmax.xlane.f32.xlu0 %v5697_v47 }
 0xc09   :  { %v14118_v62 = vpop.f32.mrf.mxu0  ;;  %5695 = vmax.xlane.f32.xlu0 %v5694_v40  ;;  %v14122_v32 = vpop.f32.mrf.mxu1 }
 0xc0a   :  { %v5715_v2 = vsel %vm973_vm0, %v14118_v62, -inf  ;;  %v5727_v37 = vsel %vm973_vm0, %v14122_v32, -inf }
 0xc0b   :  { %5716 = vmax.xlane.f32.xlu1 %v5715_v2  ;;  %v14124_v41 = vpop.f32.mrf.mxu0  ;;  %v14130_v12 = vpop.f32.mrf.mxu1 }
 0xc0c   :  { %v5712_v50 = vsel %vm973_vm0, %v14124_v41, -inf  ;;  %v5724_v42 = vsel %vm973_vm0, %v14130_v12, -inf }
 0xc0d   :  { %5707 = vmax.xlane.f32.xlu0 %v5706_v25 }
 0xc0e   :  { %v14132_v33 = vpop.f32.mrf.mxu0  ;;  %v14138_v4 = vpop.f32.mrf.mxu1 }
 0xc0f   :  { %5728 = vmax.xlane.f32.xlu1 %v5727_v37  ;;  %v5721_v31 = vsel %vm973_vm0, %v14132_v33, -inf  ;;  %v5733_v11 = vsel %vm973_vm0, %v14138_v4, -inf }
 0xc10   :  { %v14142_v49 = vpop.f32.mrf.mxu0  ;;  %v14152_v30 = vpop.f32.mrf.mxu1 }
 0xc11   :  { %5713 = vmax.xlane.f32.xlu0 %v5712_v50  ;;  %v5718_v46 = vsel %vm973_vm0, %v14142_v49, -inf  ;;  %v5730_v58 = vsel %vm973_vm0, %v14152_v30, -inf }
 0xc13   :  { %5722 = vmax.xlane.f32.xlu1 %v5721_v31 }
 0xc15   :  { %5725 = vmax.xlane.f32.xlu0 %v5724_v42 }
 0xc17   :  { %5734 = vmax.xlane.f32.xlu1 %v5733_v11 }
 0xc19   :  { %5719 = vmax.xlane.f32.xlu0 %v5718_v46 }
 0xc28   :  { %6086 = vrot.lane.b32.xlu1 %v16027_v20, %s11846_s4 }
 0xc2f   :  { %6088 = vrot.lane.b32.xlu0 %v16028_v13, %s11846_s4 }
 0xc4e   :  { %5731 = vmax.xlane.f32.xlu0 %v5730_v58 }
 0xc84   :  { %v5693_v17 = vpop.xlane.xlu1 %5692 }
 0xc85   :  { %v5737_v47 = vsub.f32 %v10752_v57, %v5693_v17 }
 0xc86   :  { %v5690_v40 = vpop.xlane.xlu0 %5689 }
 0xc87   :  { %v5754_v2 = vmul.f32 1.442695, %v5737_v47  ;;  %v5736_v25 = vsub.f32 %v5318_v56, %v5690_v40 }
 0xc88   :  { %v5705_v37 = vpop.xlane.xlu1 %5704 }
 0xc89   :  { %11361 = vpow2.f32 %v5754_v2  ;;  %v5752_v50 = vmul.f32 1.442695, %v5736_v25  ;;  %v5741_v31 = vsub.f32 %v10766_v18, %v5705_v37 }
 0xc8a   :  { %v5702_v42 = vpop.xlane.xlu0 %5701 }
 0xc8b   :  { %11363 = vpow2.f32 %v5752_v50  ;;  %v5762_v11 = vmul.f32 1.442695, %v5741_v31  ;;  %v5740_v46 = vsub.f32 %v5435_v9, %v5702_v42 }
 0xc8c   :  { %v5711_v20 = vpop.xlane.xlu1 %5710 }
 0xc8d   :  { %11365 = vpow2.f32 %v5762_v11  ;;  %v5760_v13 = vmul.f32 1.442695, %v5740_v46  ;;  %v5743_v63 = vsub.f32 %v10769_v1, %v5711_v20 }
 0xc8e   :  { %v5699_v10 = vpop.xlane.xlu0 %5698 }
 0xc8f   :  { %11367 = vpow2.f32 %v5760_v13  ;;  %v5766_v58 = vmul.f32 1.442695, %v5743_v63  ;;  %v5739_v60 = vsub.f32 %v10755_v55, %v5699_v10 }
 0xc91   :  { %11369 = vpow2.f32 %v5766_v58  ;;  %v5758_v57 = vmul.f32 1.442695, %v5739_v60  ;;  %v16029_v58 = vld [vmem:[#allocation77_spill] sm:$0xff] }
 0xc92   :  { %v5696_v17 = vpop.xlane.xlu0 %5695 }
 0xc93   :  { %11371 = vpow2.f32 %v5758_v57  ;;  %v5738_v56 = vsub.f32 %v5328_v5, %v5696_v17  ;;  %v16030_v57 = vld [vmem:[#allocation63_spill] sm:$0xff] }
 0xc94   :  { %v5717_v17 = vpop.xlane.xlu1 %5716 }
 0xc95   :  { %v5756_v47 = vmul.f32 1.442695, %v5738_v56  ;;  %v16031_v56 = vld [vmem:[#allocation78_spill] sm:$0xff] }
 0xc96   :  { %v14156_v40 = vpop.eup %11361  ;;  %v5708_v18 = vpop.xlane.xlu0 %5707 }
 0xc97   :  { %11373 = vpow2.f32 %v5756_v47  ;;  %v5787_v9 = vsel %vm973_vm0, %v14156_v40, 0.0  ;;  %v16032_v47 = vld [vmem:[#allocation60_spill] sm:$0xff] }
 0xc98   :  { %v14160_v2 = vpop.eup %11363  ;;  %5788 = vadd.xlane.f32.xlu1 %v5787_v9  ;;  %v5729_v9 = vpop.xlane.xlu1 %5728 }
 0xc99   :  { %v5784_v63 = vsel %vm973_vm0, %v14160_v2, 0.0 }
 0xc9a   :  { %v14164_v10 = vpop.eup %11365  ;;  %5785 = vadd.xlane.f32.xlu0 %v5784_v63  ;;  %v5714_v60 = vpop.xlane.xlu0 %5713  ;;  %v5745_v63 = vsub.f32 %v14118_v62, %v5717_v17 }
 0xc9b   :  { %v5799_v1 = vsel %vm973_vm0, %v14164_v10, 0.0 }
 0xc9c   :  { %v14168_v55 = vpop.eup %11367  ;;  %5800 = vadd.xlane.f32.xlu1 %v5799_v1  ;;  %v5742_v1 = vsub.f32 %v14116_v22, %v5708_v18 }
 0xc9d   :  { %v5796_v5 = vsel %vm973_vm0, %v14168_v55, 0.0 }
 0xc9e   :  { %v14172_v25 = vpop.eup %11369  ;;  %5797 = vadd.xlane.f32.xlu0 %v5796_v5  ;;  %v5726_v37 = vpop.xlane.xlu0 %5725 }
 0xc9f   :  { %v5805_v31 = vsel %vm973_vm0, %v14172_v25, 0.0  ;;  %v5723_v5 = vpop.xlane.xlu1 %5722 }
 0xca0   :  { %v14174_v50 = vpop.eup %11371  ;;  %v5747_v27 = vsub.f32 %v14132_v33, %v5723_v5 }
 0xca1   :  { %v5793_v42 = vsel %vm973_vm0, %v14174_v50, 0.0 }
 0xca2   :  { %5806 = vadd.xlane.f32.xlu0 %v5805_v31  ;;  %5794 = vadd.xlane.f32.xlu1 %v5793_v42  ;;  %v5720_v11 = vpop.xlane.xlu0 %5719  ;;  %v5770_v31 = vmul.f32 1.442695, %v5745_v63  ;;  %v5749_v42 = vsub.f32 %v14122_v32, %v5729_v9  ;;  %v5774_v62 = vmul.f32 1.442695, %v5747_v27 }
 0xca3   :  { %v5746_v17 = vsub.f32 %v14142_v49, %v5720_v11 }
 0xca4   :  { %v14180_v46 = vpop.eup %11373  ;;  %11375 = vpow2.f32 %v5770_v31 }
 0xca5   :  { %v5790_v20 = vsel %vm973_vm0, %v14180_v46, 0.0 }
 0xca6   :  { %5791 = vadd.xlane.f32.xlu0 %v5790_v20  ;;  %v14184_v13 = vpop.permute.xlu0 %6088  ;;  %v5764_v20 = vmul.f32 1.442695, %v5742_v1 }
 0xca7   :  { %10826 = vmatprep.subr.mxu0 %v14184_v13 }
 0xca8   :  { %11377 = vpow2.f32 %v5764_v20 }
 0xcb3   :  { %6082 = vrot.lane.b32.xlu1 %v16029_v58, %s11846_s4  ;;  %v5744_v58 = vsub.f32 %v14124_v41, %v5714_v60  ;;  %v5772_v41 = vmul.f32 1.442695, %v5746_v17  ;;  %v14203_v60 = vpop.eup %11375 }
 0xcb5   :  { %v5768_v14 = vmul.f32 1.442695, %v5744_v58  ;;  %v14206_v63 = vpop.eup %11377 }
 0xcb7   :  { %6197 = vrot.lane.b32.xlu1 %v16030_v57, %s11846_s4  ;;  %v5778_v57 = vmul.f32 1.442695, %v5749_v42 }
 0xcb9   :  { %11379 = vpow2.f32 %v5778_v57 }
 0xcba   :  { %11381 = vpow2.f32 %v5768_v14  ;;  %v5811_v14 = vsel %vm973_vm0, %v14203_v60, 0.0 }
 0xcbb   :  { %6195 = vrot.lane.b32.xlu1 %v16031_v56, %s11846_s4  ;;  %v5735_v56 = vpop.xlane.xlu1 %5734  ;;  %11383 = vpow2.f32 %v5774_v62 }
 0xcbc   :  { %6084 = vrot.lane.b32.xlu0 %v16032_v47, %s11846_s4  ;;  %v5748_v47 = vsub.f32 %v14130_v12, %v5726_v37  ;;  %v5751_v22 = vsub.f32 %v14138_v4, %v5735_v56  ;;  %v5802_v37 = vsel %vm973_vm0, %v14206_v63, 0.0 }
 0xcbe   :  { %v5776_v18 = vmul.f32 1.442695, %v5748_v47  ;;  %v5782_v32 = vmul.f32 1.442695, %v5751_v22 }
 0xcbf   :  { %v6087_v62 = vpop.permute.xlu1 %6086 }
 0xcc0   :  { %11385 = vpow2.f32 %v5776_v18 }
 0xcc1   :  { %11387 = vpow2.f32 %v5782_v32 }
 0xcc2   :  { %11389 = vpow2.f32 %v5772_v41 }
 0xcc6   :  { %v14210_v12 = vpop.eup %11379 }
 0xcc7   :  { %v14212_v4 = vpop.eup %11381  ;;  %v5823_v49 = vsel %vm973_vm0, %v14210_v12, 0.0 }
 0xcc8   :  { %v5808_v5 = vsel %vm973_vm0, %v14212_v4, 0.0 }
 0xcd7   :  { %v5732_v33 = vpop.xlane.xlu0 %5731 }
 0xcd8   :  { %v5750_v9 = vsub.f32 %v14152_v30, %v5732_v33  ;;  %v14218_v30 = vpop.eup %11383 }
 0xcd9   :  { %v14220_v11 = vpop.eup %11385  ;;  %v5817_v1 = vsel %vm973_vm0, %v14218_v30, 0.0 }
 0xcda   :  { %v5780_v27 = vmul.f32 1.442695, %v5750_v9  ;;  %v14226_v31 = vpop.eup %11387  ;;  %v5820_v20 = vsel %vm973_vm0, %v14220_v11, 0.0 }
 0xcdb   :  { %5812 = vadd.xlane.f32.xlu0 %v5811_v14  ;;  %v5829_v42 = vsel %vm973_vm0, %v14226_v31, 0.0  ;;  %v14232_v58 = vpop.eup %11389 }
 0xcdc   :  { %11391 = vpow2.f32 %v5780_v27  ;;  %v5814_v57 = vsel %vm973_vm0, %v14232_v58, 0.0 }
 0xcdf   :  { %5824 = vadd.xlane.f32.xlu0 %v5823_v49  ;;  %5803 = vadd.xlane.f32.xlu1 %v5802_v37 }
 0xce3   :  { %5818 = vadd.xlane.f32.xlu0 %v5817_v1  ;;  %5809 = vadd.xlane.f32.xlu1 %v5808_v5 }
 0xce7   :  { %5830 = vadd.xlane.f32.xlu0 %v5829_v42  ;;  %5821 = vadd.xlane.f32.xlu1 %v5820_v20 }
 0xce9   :  { %v14236_v56 = vpop.eup %11391 }
 0xcea   :  { %v5826_v47 = vsel %vm973_vm0, %v14236_v56, 0.0 }
 0xceb   :  { %5815 = vadd.xlane.f32.xlu1 %v5814_v57 }
 0xcef   :  { %5827 = vadd.xlane.f32.xlu1 %v5826_v47 }
 0xcfd   :  { %6193 = vrot.lane.b32.xlu0 %v12541_v52, %s11846_s4 }
 0xd00   :  { %6191 = vrot.lane.b32.xlu1 %v15988_v15, %s11846_s4 }
 0xd21   :  { %v5789_v22 = vpop.xlane.xlu1 %5788 }
 0xd22   :  { %11393 = vrcp.f32 %v5789_v22 }
 0xd23   :  { %v5786_v18 = vpop.xlane.xlu0 %5785 }
 0xd24   :  { %11395 = vrcp.f32 %v5786_v18 }
 0xd25   :  { %v5801_v32 = vpop.xlane.xlu1 %5800 }
 0xd26   :  { %11397 = vrcp.f32 %v5801_v32 }
 0xd27   :  { %v5798_v17 = vpop.xlane.xlu0 %5797 }
 0xd28   :  { %11399 = vrcp.f32 %v5798_v17 }
 0xd2b   :  { %v5795_v41 = vpop.xlane.xlu1 %5794  ;;  %v5807_v33 = vpop.xlane.xlu0 %5806 }
 0xd2c   :  { %11401 = vrcp.f32 %v5795_v41 }
 0xd2f   :  { %v6083_v9 = vpop.permute.xlu1 %6082  ;;  %v5792_v27 = vpop.xlane.xlu0 %5791 }
 0xd30   :  { %v11394_v14 = vpop.eup %11393  ;;  %11403 = vrcp.f32 %v5792_v27 }
 0xd31   :  { %v11396_v52 = vpop.eup %11395  ;;  %v5849_v15 = vmul.f32 %v11394_v14, %v14156_v40  ;;  %11405 = vrcp.f32 %v5807_v33 }
 0xd32   :  { %v5848_v49 = vmul.f32 %v11396_v52, %v14160_v2  ;;  %v6303_v2 = vld [vmem:[#allocation10 + $0x78] sm:$0xff] }
 0xd33   :  { %v6198_v37 = vpop.permute.xlu1 %6197  ;;  %v11398_v1 = vpop.eup %11397 }
 0xd34   :  { %10806 = vmatprep.mubr.msk.f32.mxu0 %vm973_vm0, %v5848_v49  ;;  %10840 = vmatprep.subr.mxu1 %v6198_v37  ;;  %v5853_v20 = vmul.f32 %v11398_v1, %v14164_v10  ;;  %v6085_v57 = vpop.permute.xlu0 %6084 }
 0xd35   :  { %v11400_v5 = vpop.eup %11399  ;;  %10807 = vmatmul.mubr.msk.f32.vlgmr.msra.gmra.mxu0 %vm973_vm0, %v5849_v15 }
 0xd36   :  { %10827 = vmatpush3.msra.mxu0 %v14184_v13  ;;  %v5852_v42 = vmul.f32 %v11400_v5, %v14168_v55 }
 0xd37   :  { %10828 = vmatprep.subr.mxu0 %v6087_v62  ;;  %v6196_v40 = vpop.permute.xlu1 %6195 }
 0xd38   :  { %10829 = vmatpush3.msra.mxu0 %v6087_v62  ;;  %10820 = vmatprep.mubr.msk.f32.mxu1 %vm973_vm0, %v5852_v42 }
 0xd39   :  { %10830 = vmatprep.subr.mxu0 %v6085_v57  ;;  %10821 = vmatmul.mubr.msk.f32.vlgmr.msra.gmra.mxu1 %vm973_vm0, %v5853_v20  ;;  %v11402_v47 = vpop.eup %11401  ;;  %v6500_v20 = vld [vmem:[#allocation11 + $0x78] sm:$0xff] }
 0xd3a   :  { %10831 = vmatpush3.msra.mxu0 %v6085_v57  ;;  %10841 = vmatpush3.msra.mxu1 %v6198_v37  ;;  %v5851_v13 = vmul.f32 %v11402_v47, %v14174_v50  ;;  %v6301_v47 = vld [vmem:[#allocation10 + $0x68] sm:$0xff] }
 0xd3b   :  { %10832 = vmatprep.subr.mxu0 %v6083_v9  ;;  %10842 = vmatprep.subr.mxu1 %v6196_v40 }
 0xd3c   :  { %10833 = vmatpush3.msra.mxu0 %v6083_v9  ;;  %10843 = vmatpush3.msra.mxu1 %v6196_v40 }
 0xd3d   :  { %v11404_v55 = vpop.eup %11403  ;;  %10854 = vmatprep.subr.mxu0 %v6303_v2 }
 0xd3e   :  { %v5850_v10 = vmul.f32 %v11404_v55, %v14180_v46  ;;  %v11406_v27 = vpop.eup %11405  ;;  %v6499_v55 = vld [vmem:[#allocation11 + $0x70] sm:$0xff] }
 0xd3f   :  { %v5855_v49 = vmul.f32 %v11406_v27, %v14172_v25 }
 0xd40   :  { %10809 = vmatprep.mubr.msk.f32.mxu0 %vm973_vm0, %v5850_v10  ;;  %v6300_v10 = vld [vmem:[#allocation10 + $0x60] sm:$0xff] }
 0xd41   :  { %10810 = vmatmul.mubr.msk.f32.gmra.mxu0 %vm973_vm0, %v5851_v13 }
 0xd64   :  { %v5813_v62 = vpop.xlane.xlu0 %5812 }
 0xd68   :  { %v5804_v22 = vpop.xlane.xlu1 %5803  ;;  %v5825_v18 = vpop.xlane.xlu0 %5824 }
 0xd69   :  { %11407 = vrcp.f32 %v5804_v22  ;;  %v6497_v22 = vld [vmem:[#allocation11 + $0x60] sm:$0xff] }
 0xd6a   :  { %11409 = vrcp.f32 %v5813_v62 }
 0xd6c   :  { %v5810_v32 = vpop.xlane.xlu1 %5809  ;;  %v5819_v17 = vpop.xlane.xlu0 %5818 }
 0xd6d   :  { %11411 = vrcp.f32 %v5810_v32 }
 0xd6e   :  { %11413 = vrcp.f32 %v5825_v18 }
 0xd70   :  { %v5822_v41 = vpop.xlane.xlu1 %5821  ;;  %v5831_v9 = vpop.xlane.xlu0 %5830 }
 0xd71   :  { %11415 = vrcp.f32 %v5822_v41 }
 0xd72   :  { %11417 = vrcp.f32 %v5819_v17 }
 0xd74   :  { %v5816_v46 = vpop.xlane.xlu1 %5815  ;;  %v6194_v50 = vpop.permute.xlu0 %6193 }
 0xd75   :  { %11419 = vrcp.f32 %v5816_v46  ;;  %10844 = vmatprep.subr.mxu1 %v6194_v50  ;;  %v6751_v46 = vld [vmem:[#allocation13 + $0x58] sm:$0xff] }
 0xd76   :  { %v11408_v14 = vpop.eup %11407  ;;  %10845 = vmatpush3.msra.mxu1 %v6194_v50  ;;  %11421 = vrcp.f32 %v5831_v9  ;;  %v6754_v9 = vld [vmem:[#allocation13 + $0x70] sm:$0xff] }
 0xd77   :  { %v5854_v33 = vmul.f32 %v11408_v14, %v14206_v63  ;;  %v11410_v15 = vpop.eup %11409  ;;  %v6302_v63 = vld [vmem:[#allocation10 + $0x70] sm:$0xff] }
 0xd78   :  { %v5828_v52 = vpop.xlane.xlu1 %5827  ;;  %v5857_v5 = vmul.f32 %v11410_v15, %v14203_v60  ;;  %v6750_v50 = vld [vmem:[#allocation13 + $0x50] sm:$0xff]  ;;  %v6748_v15 = vld [vmem:[#allocation13 + $0x40] sm:$0xff] }
 0xd79   :  { %11423 = vrcp.f32 %v5828_v52  ;;  %10823 = vmatprep.mubr.msk.f32.mxu1 %vm973_vm0, %v5854_v33 }
 0xd7a   :  { %v11412_v37 = vpop.eup %11411  ;;  %10824 = vmatmul.mubr.msk.f32.gmra.mxu1 %vm973_vm0, %v5855_v49  ;;  %v6749_v49 = vld [vmem:[#allocation13 + $0x48] sm:$0xff] }
 0xd7b   :  { %v5856_v1 = vmul.f32 %v11412_v37, %v14212_v4  ;;  %v11414_v57 = vpop.eup %11413  ;;  %v6747_v37 = vld [vmem:[#allocation13 + $0x38] sm:$0xff] }
 0xd7c   :  { %v6192_v42 = vpop.permute.xlu1 %6191  ;;  %v5861_v4 = vmul.f32 %v11414_v57, %v14210_v12 }
 0xd7d   :  { %10834 = vmatprep.mubr.msk.f32.mxu0 %vm973_vm0, %v5856_v1  ;;  %10846 = vmatprep.subr.mxu1 %v6192_v42  ;;  %v6746_v1 = vld [vmem:[#allocation13 + $0x30] sm:$0xff] }
 0xd7e   :  { %v11416_v40 = vpop.eup %11415  ;;  %10835 = vmatmul.mubr.msk.f32.vlgmr.msra.gmra.mxu0 %vm973_vm0, %v5857_v5  ;;  %10847 = vmatpush3.msra.mxu1 %v6192_v42  ;;  %v6745_v5 = vld [vmem:[#allocation13 + $0x28] sm:$0xff] }
 0xd7f   :  { %v5860_v25 = vmul.f32 %v11416_v40, %v14220_v11  ;;  %10886 = vmatprep.subr.mxu1 %v6500_v20  ;;  %10855 = vmatpush3.msra.mxu0 %v6303_v2  ;;  %v11418_v60 = vpop.eup %11417  ;;  %v6498_v11 = vld [vmem:[#allocation11 + $0x68] sm:$0xff] }
 0xd80   :  { %10856 = vmatprep.subr.mxu0 %v6302_v63  ;;  %v5859_v2 = vmul.f32 %v11418_v60, %v14218_v30  ;;  %v6755_v30 = vld [vmem:[#allocation13 + $0x78] sm:$0xff]  ;;  %v6741_v60 = vld [vmem:[#allocation13 + $0x8] sm:$0xff] }
 0xd81   :  { %10848 = vmatprep.mubr.msk.f32.mxu1 %vm973_vm0, %v5860_v25  ;;  %10857 = vmatpush3.msra.mxu0 %v6302_v63  ;;  %v6744_v63 = vld [vmem:[#allocation13 + $0x20] sm:$0xff]  ;;  %v6743_v25 = vld [vmem:[#allocation13 + $0x18] sm:$0xff] }
 0xd82   :  { %v11420_v13 = vpop.eup %11419  ;;  %10849 = vmatmul.mubr.msk.f32.vlgmr.msra.gmra.mxu1 %vm973_vm0, %v5861_v4  ;;  %10858 = vmatprep.subr.mxu0 %v6301_v47 }
 0xd83   :  { %v5858_v62 = vmul.f32 %v11420_v13, %v14232_v58  ;;  %10887 = vmatpush3.msra.mxu1 %v6500_v20  ;;  %10859 = vmatpush3.msra.mxu0 %v6301_v47  ;;  %v11422_v12 = vpop.eup %11421  ;;  %v6742_v47 = vld [vmem:[#allocation13 + $0x10] sm:$0xff] }
 0xd84   :  { %10888 = vmatprep.subr.mxu1 %v6499_v55  ;;  %10860 = vmatprep.subr.mxu0 %v6300_v10  ;;  %v5863_v58 = vmul.f32 %v11422_v12, %v14226_v31  ;;  %v6753_v31 = vld [vmem:[#allocation13 + $0x68] sm:$0xff]  ;;  %v16033_v12 = vld [vmem:[#allocation51_spill] sm:$0xff] }
 0xd85   :  { %10837 = vmatprep.mubr.msk.f32.mxu0 %vm973_vm0, %v5858_v62  ;;  %10889 = vmatpush3.msra.mxu1 %v6499_v55  ;;  %v6740_v62 = vld [vmem:[#allocation13] sm:$0xff] }
 0xd86   :  { %v11424_v18 = vpop.eup %11423  ;;  %10838 = vmatmul.mubr.msk.f32.gmra.mxu0 %vm973_vm0, %v5859_v2  ;;  %10890 = vmatprep.subr.mxu1 %v6498_v11 }
 0xd87   :  { %v5862_v32 = vmul.f32 %v11424_v18, %v14236_v56  ;;  %10891 = vmatpush3.msra.mxu1 %v6498_v11  ;;  %10861 = vmatpush3.msra.mxu0 %v6300_v10  ;;  %v6752_v56 = vld [vmem:[#allocation13 + $0x60] sm:$0xff] }
 0xd88   :  { %10892 = vmatprep.subr.mxu1 %v6497_v22  ;;  %10918 = vmatprep.subr.mxu0 %v6755_v30 }
 0xd89   :  { %10851 = vmatprep.mubr.msk.f32.mxu1 %vm973_vm0, %v5862_v32  ;;  %10893 = vmatpush3.msra.mxu1 %v6497_v22  ;;  %v16034_v22 = vld [vmem:[#allocation90_spill] sm:$0xff] }
 0xd8a   :  { %10852 = vmatmul.mubr.msk.f32.gmra.mxu1 %vm973_vm0, %v5863_v58  ;;  %v3684_v18 = vadd.f32 %v16034_v22, %v16033_v12  ;;  %v16039_v12 = vld [vmem:[#allocation72_spill] sm:$0xff]  ;;  %v16040_v22 = vld [vmem:[#allocation102_spill] sm:$0xff] }
 0xd8c   :  { %v5204_v58 = vadd.f32 %v14029_v51, %v3684_v18  ;;  %v3714_v18 = vadd.f32 %v16040_v22, %v16039_v12 }
 0xdf5   :  { %v10808_v17 = vpop.f32.mrf.mxu0 }
 0xdf7   :  { %v5954_v41 = vpop.f32.mrf.mxu0 }
 0xdf8   :  { %10862 = vmatprep.mubr.msk.f32.mxu0 %vm973_vm0, %v5954_v41  ;;  %10894 = vmatprep.mubr.msk.f32.mxu1 %vm973_vm0, %v5954_v41 }
 0xdf9   :  { %10863 = vmatmul.mubr.msk.f32.vlgmr.msra.gmra.mxu0 %vm973_vm0, %v10808_v17  ;;  %10895 = vmatmul.mubr.msk.f32.vlgmr.msra.gmra.mxu1 %vm973_vm0, %v10808_v17  ;;  %v10822_v27 = vpop.f32.mrf.mxu1  ;;  %v14316_v17 = vld [vmem:[%s15651_s12] ss:$0 sm:$0xff] }
 0xdfa   :  { %10919 = vmatpush3.msra.mxu0 %v6755_v30 }
 0xdfb   :  { %10920 = vmatprep.subr.mxu0 %v6754_v9  ;;  %v6063_v52 = vpop.f32.mrf.mxu1 }
 0xdfc   :  { %10921 = vmatpush3.msra.mxu0 %v6754_v9 }
 0xdfd   :  { %10922 = vmatprep.subr.mxu0 %v6753_v31 }
 0xdfe   :  { %10923 = vmatpush3.msra.mxu0 %v6753_v31 }
 0xdff   :  { %10924 = vmatprep.subr.mxu0 %v6752_v56 }
 0xe00   :  { %10925 = vmatpush3.msra.mxu0 %v6752_v56 }
 0xe01   :  { %v10811_v14 = vpop.f32.mrf.mxu0  ;;  %10926 = vmatprep.subr.mxu0 %v6751_v46 }
 0xe02   :  { %10927 = vmatpush3.msra.mxu0 %v6751_v46 }
 0xe03   :  { %v5964_v33 = vpop.f32.mrf.mxu0  ;;  %10928 = vmatprep.subr.mxu0 %v6750_v50 }
 0xe04   :  { %10865 = vmatprep.mubr.msk.f32.mxu0 %vm973_vm0, %v5964_v33  ;;  %10897 = vmatprep.mubr.msk.f32.mxu1 %vm973_vm0, %v5964_v33 }
 0xe05   :  { %10866 = vmatmul.mubr.msk.f32.gmra.mxu0 %vm973_vm0, %v10811_v14  ;;  %10898 = vmatmul.mubr.msk.f32.gmra.mxu1 %vm973_vm0, %v10811_v14  ;;  %v16036_v14 = vld [vmem:[#allocation94_spill] sm:$0xff] }
 0xe06   :  { %10868 = vmatprep.mubr.msk.f32.mxu0 %vm973_vm0, %v6063_v52  ;;  %10900 = vmatprep.mubr.msk.f32.mxu1 %vm973_vm0, %v6063_v52 }
 0xe07   :  { %10929 = vmatpush3.msra.mxu0 %v6750_v50 }
 0xe08   :  { %10930 = vmatprep.subr.mxu0 %v6749_v49 }
 0xe09   :  { %10869 = vmatmul.mubr.msk.f32.gmra.mxu0 %vm973_vm0, %v10822_v27  ;;  %10901 = vmatmul.mubr.msk.f32.gmra.mxu1 %vm973_vm0, %v10822_v27  ;;  %v16035_v27 = vld [vmem:[#allocation64_spill] sm:$0xff] }
 0xe0a   :  { %10931 = vmatpush3.msra.mxu0 %v6749_v49  ;;  %v3694_v51 = vadd.f32 %v16036_v14, %v16035_v27 }
 0xe0b   :  { %10932 = vmatprep.subr.mxu0 %v6748_v15 }
 0xe0c   :  { %10933 = vmatpush3.msra.mxu0 %v6748_v15  ;;  %v16037_v15 = vld [vmem:[#allocation73_spill] sm:$0xff] }
 0xe0d   :  { %10934 = vmatprep.subr.mxu0 %v6747_v37 }
 0xe0e   :  { %10935 = vmatpush3.msra.mxu0 %v6747_v37  ;;  %v16038_v37 = vld [vmem:[#allocation98_spill] sm:$0xff] }
 0xe0f   :  { %10936 = vmatprep.subr.mxu0 %v6746_v1 }
 0xe10   :  { %10937 = vmatpush3.msra.mxu0 %v6746_v1  ;;  %v3704_v1 = vadd.f32 %v16038_v37, %v16037_v15 }
 0xe11   :  { %10938 = vmatprep.subr.mxu0 %v6745_v5 }
 0xe12   :  { %10939 = vmatpush3.msra.mxu0 %v6745_v5 }
 0xe13   :  { %10940 = vmatprep.subr.mxu0 %v6744_v63 }
 0xe14   :  { %10941 = vmatpush3.msra.mxu0 %v6744_v63 }
 0xe15   :  { %10942 = vmatprep.subr.mxu0 %v6743_v25 }
 0xe16   :  { %10943 = vmatpush3.msra.mxu0 %v6743_v25 }
 0xe17   :  { %10944 = vmatprep.subr.mxu0 %v6742_v47 }
 0xe18   :  { %10945 = vmatpush3.msra.mxu0 %v6742_v47 }
 0xe19   :  { %10946 = vmatprep.subr.mxu0 %v6741_v60 }
 0xe1a   :  { %10947 = vmatpush3.msra.mxu0 %v6741_v60 }
 0xe1b   :  { %10948 = vmatprep.subr.mxu0 %v6740_v62 }
 0xe1c   :  { %10949 = vmatpush3.msra.mxu0 %v6740_v62 }
 0xe3a   :  { %v10825_v42 = vpop.f32.mrf.mxu1 }
 0xe3c   :  { %v6073_v20 = vpop.f32.mrf.mxu1 }
 0xe3d   :  { %10871 = vmatprep.mubr.msk.f32.mxu0 %vm973_vm0, %v6073_v20  ;;  %10903 = vmatprep.mubr.msk.f32.mxu1 %vm973_vm0, %v6073_v20 }
 0xe3e   :  { %v10836_v57 = vpop.f32.mrf.mxu0  ;;  %10872 = vmatmul.mubr.msk.f32.gmra.mxu0 %vm973_vm0, %v10825_v42  ;;  %10904 = vmatmul.mubr.msk.f32.gmra.mxu1 %vm973_vm0, %v10825_v42 }
 0xe40   :  { %v6172_v40 = vpop.f32.mrf.mxu0 }
 0xe41   :  { %10874 = vmatprep.mubr.msk.f32.mxu0 %vm973_vm0, %v6172_v40  ;;  %10906 = vmatprep.mubr.msk.f32.mxu1 %vm973_vm0, %v6172_v40 }
 0xe42   :  { %10875 = vmatmul.mubr.msk.f32.gmra.mxu0 %vm973_vm0, %v10836_v57  ;;  %10907 = vmatmul.mubr.msk.f32.gmra.mxu1 %vm973_vm0, %v10836_v57  ;;  %v10850_v4 = vpop.f32.mrf.mxu1  ;;  %v5208_v57 = vadd.f32 %v14053_v19, %v3704_v1 }
 0xe44   :  { %v6281_v10 = vpop.f32.mrf.mxu1 }
 0xe46   :  { %v10839_v55 = vpop.f32.mrf.mxu0 }
 0xe48   :  { %v6182_v13 = vpop.f32.mrf.mxu0 }
 0xe49   :  { %10877 = vmatprep.mubr.msk.f32.mxu0 %vm973_vm0, %v6182_v13  ;;  %10909 = vmatprep.mubr.msk.f32.mxu1 %vm973_vm0, %v6182_v13 }
 0xe4a   :  { %v10853_v11 = vpop.f32.mrf.mxu1  ;;  %10878 = vmatmul.mubr.msk.f32.gmra.mxu0 %vm973_vm0, %v10839_v55  ;;  %10910 = vmatmul.mubr.msk.f32.gmra.mxu1 %vm973_vm0, %v10839_v55 }
 0xe4b   :  { %10880 = vmatprep.mubr.msk.f32.mxu0 %vm973_vm0, %v6281_v10  ;;  %10912 = vmatprep.mubr.msk.f32.mxu1 %vm973_vm0, %v6281_v10 }
 0xe4c   :  { %v6291_v2 = vpop.f32.mrf.mxu1 }
 0xe4e   :  { %10881 = vmatmul.mubr.msk.f32.gmra.mxu0 %vm973_vm0, %v10850_v4  ;;  %10913 = vmatmul.mubr.msk.f32.gmra.mxu1 %vm973_vm0, %v10850_v4 }
 0xe4f   :  { %10883 = vmatprep.mubr.msk.f32.mxu0 %vm973_vm0, %v6291_v2  ;;  %10915 = vmatprep.mubr.msk.f32.mxu1 %vm973_vm0, %v6291_v2 }
 0xe52   :  { %10884 = vmatmul.mubr.msk.f32.gmra.mxu0 %vm973_vm0, %v10853_v11  ;;  %10916 = vmatmul.mubr.msk.f32.gmra.mxu1 %vm973_vm0, %v10853_v11 }
 0xeb9   :  { %v10896_v32 = vpop.f32.mrf.mxu1  ;;  %v14332_v13 = vpop.f32.mrf.mxu0 }
 0xeba   :  { %v6663_v30 = vadd.f32 %v10896_v32, %v14025_v38  ;;  %v5206_v38 = vadd.f32 %v14041_v45, %v3694_v51 }
 0xebb   :  { %v6567_v41 = vpop.f32.mrf.mxu1  ;;  %v14334_v19 = vpop.f32.mrf.mxu0 }
 0xebc   :  { %v6662_v9 = vadd.f32 %v6567_v41, %v5204_v58  ;;  %v6709_v31 = vadd.f32 %v14316_v17, %v6663_v30  ;;  %v5210_v30 = vadd.f32 %v14065_v48, %v3714_v18 }
 0xebe   :  { %v6708_v56 = vadd.f32 %v14316_v17, %v6662_v9  ;;  %v6725_v50 = vmax.f32 %v6709_v31, 0.0 }
 0xec0   :  { %v6724_v46 = vmax.f32 %v6708_v56, 0.0 }
 0xec2   :  { %10950 = vmatprep.mubr.f32.mxu0 %v6724_v46  ;;  %v16041_v46 = vld [vmem:[#allocation81_spill] sm:$0xff] }
 0xec3   :  { %10951 = vmatmul.mubr.f32.vlgmr.msra.gmra.mxu0 %v6725_v50  ;;  %v16042_v50 = vld [vmem:[#allocation106_spill] sm:$0xff] }
 0xec4   :  { %v3724_v27 = vadd.f32 %v16042_v50, %v16041_v46 }
 0xec5   :  { %v10899_v33 = vpop.f32.mrf.mxu1  ;;  %v14336_v62 = vpop.f32.mrf.mxu0 }
 0xec6   :  { %v6665_v52 = vadd.f32 %v10899_v33, %v14037_v36 }
 0xec7   :  { %v6577_v49 = vpop.f32.mrf.mxu1 }
 0xec8   :  { %v6664_v5 = vadd.f32 %v6577_v49, %v5206_v38  ;;  %v6711_v42 = vadd.f32 %v14316_v17, %v6665_v52  ;;  %v5212_v52 = vadd.f32 %v14077_v21, %v3724_v27  ;;  %v16043_v21 = vld [vmem:[#allocation82_spill] sm:$0xff] }
 0xec9   :  { %v10902_v20 = vpop.f32.mrf.mxu1  ;;  %v16047_v27 = vld [vmem:[#allocation86_spill] sm:$0xff] }
 0xeca   :  { %v6710_v63 = vadd.f32 %v14316_v17, %v6664_v5  ;;  %v6667_v40 = vadd.f32 %v10902_v20, %v14049_v0  ;;  %v6727_v45 = vmax.f32 %v6711_v42, 0.0  ;;  %v14338_v0 = vpop.f32.mrf.mxu0 }
 0xecb   :  { %v6587_v25 = vpop.f32.mrf.mxu1 }
 0xecc   :  { %v6726_v47 = vmax.f32 %v6710_v63, 0.0  ;;  %v6666_v4 = vadd.f32 %v6587_v25, %v5208_v57  ;;  %v6713_v36 = vadd.f32 %v14316_v17, %v6667_v40  ;;  %v14340_v11 = vpop.f32.mrf.mxu0  ;;  %v16044_v57 = vld [vmem:[#allocation110_spill] sm:$0xff] }
 0xecd   :  { %v3734_v63 = vadd.f32 %v16044_v57, %v16043_v21 }
 0xece   :  { %v6712_v60 = vadd.f32 %v14316_v17, %v6666_v4  ;;  %10953 = vmatprep.mubr.f32.mxu0 %v6726_v47  ;;  %v6729_v10 = vmax.f32 %v6713_v36, 0.0  ;;  %v14342_v2 = vpop.f32.mrf.mxu0 }
 0xecf   :  { %10954 = vmatmul.mubr.f32.gmra.mxu0 %v6727_v45 }
 0xed0   :  { %v6728_v55 = vmax.f32 %v6712_v60, 0.0 }
 0xed2   :  { %10956 = vmatprep.mubr.f32.mxu0 %v6728_v55  ;;  %v16045_v55 = vld [vmem:[#allocation84_spill] sm:$0xff] }
 0xed3   :  { %10957 = vmatmul.mubr.f32.gmra.mxu0 %v6729_v10  ;;  %v16046_v10 = vld [vmem:[#allocation114_spill] sm:$0xff] }
 0xed4   :  { %v3744_v12 = vadd.f32 %v16046_v10, %v16045_v55  ;;  %v16052_v10 = vld [vmem:[#allocation56_spill] sm:$0xff] }
 0xefe   :  { %v10873_v32 = vpop.f32.mrf.mxu0  ;;  %v10905_v58 = vpop.f32.mrf.mxu1 }
 0xeff   :  { %v14348_v41 = vadd.f32 %v10873_v32, %v14059_v26  ;;  %v6669_v9 = vadd.f32 %v10905_v58, %v14061_v54 }
 0xf00   :  { %v14351_v31 = vpop.f32.mrf.mxu0  ;;  %v6597_v56 = vpop.f32.mrf.mxu1 }
 0xf01   :  { %v6668_v14 = vadd.f32 %v6597_v56, %v5210_v30  ;;  %v6715_v51 = vadd.f32 %v14316_v17, %v6669_v9 }
 0xf02   :  { %v10876_v33 = vpop.f32.mrf.mxu0  ;;  %v10908_v38 = vpop.f32.mrf.mxu1 }
 0xf03   :  { %v6714_v48 = vadd.f32 %v14316_v17, %v6668_v14  ;;  %v14359_v26 = vadd.f32 %v10876_v33, %v14071_v28  ;;  %v6671_v54 = vadd.f32 %v10908_v38, %v14073_v59  ;;  %v6731_v1 = vmax.f32 %v6715_v51, 0.0  ;;  %v16048_v14 = vld [vmem:[#allocation118_spill] sm:$0xff] }
 0xf04   :  { %v6607_v49 = vpop.f32.mrf.mxu1  ;;  %v14364_v20 = vpop.f32.mrf.mxu0  ;;  %v5214_v59 = vadd.f32 %v14087_v53, %v3734_v63  ;;  %v5216_v53 = vadd.f32 %v14097_v7, %v3744_v12  ;;  %v3754_v51 = vadd.f32 %v16048_v14, %v16047_v27  ;;  %v16053_v12 = vld [vmem:[#allocation93_spill] sm:$0xff]  ;;  %v6649_v14 = vadd.f32 %v14336_v62, %v14035_v61 }
 0xf05   :  { %v6730_v15 = vmax.f32 %v6714_v48, 0.0  ;;  %v6670_v37 = vadd.f32 %v6607_v49, %v5212_v52  ;;  %v6717_v5 = vadd.f32 %v14316_v17, %v6671_v54 }
 0xf06   :  { %v5218_v54 = vadd.f32 %v14107_v29, %v3754_v51 }
 0xf07   :  { %v6716_v42 = vadd.f32 %v14316_v17, %v6670_v37  ;;  %10959 = vmatprep.mubr.f32.mxu0 %v6730_v15  ;;  %v6733_v28 = vmax.f32 %v6717_v5, 0.0 }
 0xf08   :  { %10960 = vmatmul.mubr.f32.gmra.mxu0 %v6731_v1 }
 0xf09   :  { %v6732_v40 = vmax.f32 %v6716_v42, 0.0 }
 0xf0a   :  { %v10879_v25 = vpop.f32.mrf.mxu0  ;;  %v10911_v47 = vpop.f32.mrf.mxu1 }
 0xf0b   :  { %v14370_v4 = vadd.f32 %v10879_v25, %v14080_v39  ;;  %v6673_v45 = vadd.f32 %v10911_v47, %v14083_v24  ;;  %10962 = vmatprep.mubr.f32.mxu0 %v6732_v40  ;;  %v6647_v40 = vadd.f32 %v14332_v13, %v14023_v35  ;;  %v16051_v13 = vld [vmem:[#allocation29_spill] sm:$0xff] }
 0xf0c   :  { %v14373_v36 = vpop.f32.mrf.mxu0  ;;  %v6617_v60 = vpop.f32.mrf.mxu1  ;;  %10963 = vmatmul.mubr.f32.gmra.mxu0 %v6733_v28  ;;  %v14405_v28 = vld [vmem:[%s15649_s10] ss:$0 sm:$0xff] }
 0xf0d   :  { %v6672_v22 = vadd.f32 %v6617_v60, %v5214_v59  ;;  %v6719_v18 = vadd.f32 %v14316_v17, %v6673_v45  ;;  %v6686_v25 = vadd.f32 %v14405_v28, %v6647_v40  ;;  %v14414_v59 = vld [vmem:[%s15653_s14] ss:$0 sm:$0xff] }
 0xf0e   :  { %v10882_v32 = vpop.f32.mrf.mxu0  ;;  %v10914_v58 = vpop.f32.mrf.mxu1 }
 0xf0f   :  { %v6718_v39 = vadd.f32 %v14316_v17, %v6672_v22  ;;  %v14381_v30 = vadd.f32 %v10882_v32, %v14090_v34  ;;  %v6675_v24 = vadd.f32 %v10914_v58, %v14093_v16  ;;  %v6735_v33 = vmax.f32 %v6719_v18, 0.0  ;;  %v16054_v32 = vld [vmem:[#allocation28_spill] sm:$0xff] }
 0xf10   :  { %v14384_v9 = vpop.f32.mrf.mxu0  ;;  %v6627_v56 = vpop.f32.mrf.mxu1  ;;  %v6909_v60 = vadd.f32 %v6686_v25, %v16051_v13 }
 0xf11   :  { %v6734_v46 = vmax.f32 %v6718_v39, 0.0  ;;  %v6674_v50 = vadd.f32 %v6627_v56, %v5216_v53  ;;  %v6721_v38 = vadd.f32 %v14316_v17, %v6675_v24  ;;  %v6651_v56 = vadd.f32 %v14340_v11, %v14047_v6  ;;  %v16057_v11 = vld [vmem:[#allocation30_spill] sm:$0xff] }
 0xf12   :  { %v10885_v52 = vpop.f32.mrf.mxu0  ;;  %v10917_v7 = vpop.f32.mrf.mxu1 }
 0xf13   :  { %v6720_v48 = vadd.f32 %v14316_v17, %v6674_v50  ;;  %v14391_v34 = vadd.f32 %v10885_v52, %v14100_v3  ;;  %v6677_v16 = vadd.f32 %v10917_v7, %v14103_v8  ;;  %10965 = vmatprep.mubr.f32.mxu0 %v6734_v46  ;;  %v6737_v37 = vmax.f32 %v6721_v38, 0.0  ;;  %v16049_v3 = vld [vmem:[#allocation45_spill] sm:$0xff] }
 0xf14   :  { %v6637_v49 = vpop.f32.mrf.mxu1  ;;  %10966 = vmatmul.mubr.f32.gmra.mxu0 %v6735_v33  ;;  %v16050_v8 = vld [vmem:[#allocation89_spill] sm:$0xff]  ;;  %v14409_v47 = vpop.f32.mrf.mxu0  ;;  %v6690_v38 = vadd.f32 %v14405_v28, %v6651_v56  ;;  %v16068_v56 = vld [vmem:[#allocation80_spill] sm:$0xff] }
 0xf15   :  { %v6736_v15 = vmax.f32 %v6720_v48, 0.0  ;;  %v6676_v1 = vadd.f32 %v6637_v49, %v5218_v54  ;;  %v6723_v5 = vadd.f32 %v14316_v17, %v6677_v16  ;;  %v3539_v63 = vadd.f32 %v16050_v8, %v16049_v3  ;;  %v16055_v46 = vld [vmem:[#allocation65_spill] sm:$0xff] }
 0xf16   :  { %v16056_v50 = vld [vmem:[#allocation97_spill] sm:$0xff] }
 0xf17   :  { %10968 = vmatprep.mubr.f32.mxu0 %v6736_v15  ;;  %v6722_v42 = vadd.f32 %v14316_v17, %v6676_v1  ;;  %v6739_v57 = vmax.f32 %v6723_v5, 0.0  ;;  %v5188_v29 = vadd.f32 %v14027_v23, %v3539_v63  ;;  %v3559_v27 = vadd.f32 %v16056_v50, %v16055_v46  ;;  %v16058_v49 = vld [vmem:[#allocation33_spill] sm:$0xff]  ;;  %v16059_v1 = vld [vmem:[#allocation31_spill] sm:$0xff] }
 0xf18   :  { %10969 = vmatmul.mubr.f32.gmra.mxu0 %v6737_v37  ;;  %v16061_v63 = vld [vmem:[#allocation69_spill] sm:$0xff] }
 0xf19   :  { %v6738_v21 = vmax.f32 %v6722_v42, 0.0  ;;  %v6646_v17 = vadd.f32 %v14334_v19, %v5188_v29  ;;  %v3549_v19 = vadd.f32 %v16053_v12, %v16052_v10  ;;  %v5192_v33 = vadd.f32 %v14051_v44, %v3559_v27  ;;  %v16062_v29 = vld [vmem:[#allocation101_spill] sm:$0xff] }
 0xf1a   :  { %v6913_v44 = vadd.f32 %v6690_v38, %v16058_v49  ;;  %v3569_v40 = vadd.f32 %v16062_v29, %v16061_v63  ;;  %v6692_v10 = vadd.f32 %v14405_v28, %v14348_v41  ;;  %v16069_v46 = vld [vmem:[#allocation109_spill] sm:$0xff] }
 0xf1b   :  { %10971 = vmatprep.mubr.f32.mxu0 %v6738_v21  ;;  %v6685_v23 = vadd.f32 %v14405_v28, %v6646_v17  ;;  %v5190_v53 = vadd.f32 %v14039_v43, %v3549_v19  ;;  %v6650_v7 = vadd.f32 %v14342_v2, %v5192_v33  ;;  %v16063_v17 = vld [vmem:[#allocation52_spill] sm:$0xff]  ;;  %v16071_v33 = vld [vmem:[#allocation57_spill] sm:$0xff] }
 0xf1c   :  { %10972 = vmatmul.mubr.f32.gmra.mxu0 %v6739_v57  ;;  %v16060_v57 = vld [vmem:[#allocation32_spill] sm:$0xff]  ;;  %v5194_v25 = vadd.f32 %v16063_v17, %v3569_v40  ;;  %v16078_v63 = vld [vmem:[#allocation117_spill] sm:$0xff]  ;;  %v6698_v17 = vadd.f32 %v14405_v28, %v14381_v30 }
 0xf1d   :  { %v6908_v58 = vadd.f32 %v6685_v23, %v16054_v32  ;;  %v6648_v24 = vadd.f32 %v14338_v0, %v5190_v53  ;;  %v6688_v0 = vadd.f32 %v14405_v28, %v6649_v14  ;;  %v6689_v37 = vadd.f32 %v14405_v28, %v6650_v7  ;;  %v16064_v23 = vld [vmem:[#allocation66_spill] sm:$0xff]  ;;  %v16067_v53 = vld [vmem:[#allocation35_spill] sm:$0xff] }
 0xf1e   :  { %v6652_v13 = vadd.f32 %v14351_v31, %v5194_v25  ;;  %v6694_v32 = vadd.f32 %v14405_v28, %v14359_v26  ;;  %v3589_v31 = vadd.f32 %v16069_v46, %v16068_v56 }
 0xf1f   :  { %v6687_v51 = vadd.f32 %v14405_v28, %v6648_v24  ;;  %v6911_v5 = vadd.f32 %v6688_v0, %v16059_v1  ;;  %v6912_v3 = vadd.f32 %v6689_v37, %v16060_v57  ;;  %v6915_v24 = vadd.f32 %v6692_v10, %v16067_v53  ;;  %v16072_v0 = vld [vmem:[#allocation37_spill] sm:$0xff]  ;;  %v16076_v37 = vld [vmem:[#allocation79_spill] sm:$0xff]  ;;  %v16081_v10 = vld [vmem:[#allocation38_spill] sm:$0xff] }
 0xf20   :  { %v6691_v12 = vadd.f32 %v14405_v28, %v6652_v13  ;;  %v5198_v38 = vadd.f32 %v16071_v33, %v3589_v31  ;;  %v6917_v7 = vadd.f32 %v6694_v32, %v16072_v0  ;;  %v16085_v0 = vld [vmem:[#allocation42_spill] sm:$0xff] }
 0xf21   :  { %v6910_v48 = vadd.f32 %v6687_v51, %v16057_v11  ;;  %v16070_v51 = vld [vmem:[#allocation34_spill] sm:$0xff]  ;;  %v16074_v11 = vld [vmem:[#allocation113_spill] sm:$0xff] }
 0xf83   :  { %v10952_v45 = vpop.f32.mrf.mxu0 }
 0xf84   :  { %v6835_v35 = vadd.f32 %v10952_v45, %v14414_v59  ;;  %v16065_v45 = vld [vmem:[#allocation105_spill] sm:$0xff] }
 0xf85   :  { %v6829_v55 = vpop.f32.mrf.mxu0 }
 0xf86   :  { %v14421_v22 = vadd.f32 %v6909_v60, %v6835_v35  ;;  %v6830_v18 = vadd.f32 %v14414_v59, %v6829_v55  ;;  %v3579_v35 = vadd.f32 %v16065_v45, %v16064_v23  ;;  %v16066_v60 = vld [vmem:[#allocation53_spill] sm:$0xff] }
 0xf87   :  { %v16080_v45 = vld [vmem:[#allocation49_spill] sm:$0xff] }
 0xf88   :  { %v14426_v39 = vadd.f32 %v6908_v58, %v6830_v18  ;;  %6944 = vadd.xlane.f32.xlu1 %v14421_v22  ;;  %v5196_v55 = vadd.f32 %v16066_v60, %v3579_v35 }
 0xf8a   :  { %6942 = vadd.xlane.f32.xlu0 %v14426_v39  ;;  %v6654_v19 = vadd.f32 %v14364_v20, %v5196_v55  ;;  %v6914_v20 = vadd.f32 %v6691_v12, %v16070_v51 }
 0xf8c   :  { %v6693_v27 = vadd.f32 %v14405_v28, %v6654_v19 }
 0xf8f   :  { %v10955_v43 = vpop.f32.mrf.mxu0 }
 0xf90   :  { %v6845_v54 = vadd.f32 %v10955_v43, %v14414_v59 }
 0xf91   :  { %v6839_v52 = vpop.f32.mrf.mxu0 }
 0xf92   :  { %v6840_v6 = vadd.f32 %v14414_v59, %v6839_v52  ;;  %v14454_v2 = vadd.f32 %v6911_v5, %v6845_v54  ;;  %v6656_v54 = vadd.f32 %v14373_v36, %v5198_v38  ;;  %v6696_v5 = vadd.f32 %v14405_v28, %v14370_v4  ;;  %v16079_v4 = vld [vmem:[#allocation39_spill] sm:$0xff] }
 0xf93   :  { %v10958_v16 = vpop.f32.mrf.mxu0 }
 0xf94   :  { %v14445_v61 = vadd.f32 %v6910_v48, %v6840_v6  ;;  %v6855_v62 = vadd.f32 %v10958_v16, %v14414_v59  ;;  %v16073_v6 = vld [vmem:[#allocation83_spill] sm:$0xff]  ;;  %v6695_v57 = vadd.f32 %v14405_v28, %v6656_v54  ;;  %v6919_v23 = vadd.f32 %v6696_v5, %v16079_v4  ;;  %v7242_v54 = vld [vmem:[#allocation14 + $0x1c8] sm:$0xff]  ;;  %v7239_v5 = vld [vmem:[#allocation14 + $0x1b0] sm:$0xff] }
 0xf95   :  { %v6849_v15 = vpop.f32.mrf.mxu0  ;;  %v3599_v48 = vadd.f32 %v16074_v11, %v16073_v6  ;;  %v7248_v11 = vld [vmem:[#allocation14 + $0x1f8] sm:$0xff] }
 0xf96   :  { %v14451_v42 = vadd.f32 %v6913_v44, %v6855_v62  ;;  %6946 = vadd.xlane.f32.xlu0 %v14445_v61  ;;  %v6850_v21 = vadd.f32 %v14414_v59, %v6849_v15  ;;  %v16075_v44 = vld [vmem:[#allocation36_spill] sm:$0xff]  ;;  %v6918_v12 = vadd.f32 %v6695_v57, %v16081_v10  ;;  %7432 = vmatprep.subr.mxu0 %v7248_v11  ;;  %v7234_v10 = vld [vmem:[#allocation14 + $0x188] sm:$0xff]  ;;  %v7219_v11 = vld [vmem:[#allocation14 + $0x110] sm:$0xff] }
 0xf97   :  { %v6916_v15 = vadd.f32 %v6693_v27, %v16075_v44  ;;  %v5200_v1 = vadd.f32 %v16076_v37, %v3599_v48  ;;  %v7245_v48 = vld [vmem:[#allocation14 + $0x1e0] sm:$0xff]  ;;  %v7240_v37 = vld [vmem:[#allocation14 + $0x1b8] sm:$0xff] }
 0xf98   :  { %6952 = vadd.xlane.f32.xlu1 %v14451_v42  ;;  %v14460_v8 = vadd.f32 %v6912_v3, %v6850_v21  ;;  %v16077_v3 = vld [vmem:[#allocation85_spill] sm:$0xff]  ;;  %v7241_v44 = vld [vmem:[#allocation14 + $0x1c0] sm:$0xff] }
 0xf99   :  { %v6658_v36 = vadd.f32 %v14384_v9, %v5200_v1  ;;  %v3609_v29 = vadd.f32 %v16078_v63, %v16077_v3  ;;  %v7237_v1 = vld [vmem:[#allocation14 + $0x1a0] sm:$0xff] }
 0xf9a   :  { %6948 = vadd.xlane.f32.xlu0 %v14454_v2 }
 0xf9b   :  { %v5202_v35 = vadd.f32 %v16080_v45, %v3609_v29  ;;  %v6697_v60 = vadd.f32 %v14405_v28, %v6658_v36 }
 0xf9d   :  { %v6660_v19 = vadd.f32 %v14409_v47, %v5202_v35 }
 0xf9e   :  { %6950 = vadd.xlane.f32.xlu0 %v14460_v8 }
 0xf9f   :  { %v6699_v47 = vadd.f32 %v14405_v28, %v6660_v19  ;;  %v7233_v19 = vld [vmem:[#allocation14 + $0x180] sm:$0xff] }
 0xfc8   :  { %v10961_v18 = vpop.f32.mrf.mxu0 }
 0xfc9   :  { %v6865_v58 = vadd.f32 %v10961_v18, %v14414_v59 }
 0xfca   :  { %v6859_v50 = vpop.f32.mrf.mxu0 }
 0xfcb   :  { %v14481_v14 = vadd.f32 %v6915_v24, %v6865_v58  ;;  %v6860_v41 = vadd.f32 %v14414_v59, %v6859_v50  ;;  %v16082_v58 = vld [vmem:[#allocation41_spill] sm:$0xff]  ;;  %v6700_v24 = vadd.f32 %v14405_v28, %v14391_v34  ;;  %v16083_v50 = vld [vmem:[#allocation40_spill] sm:$0xff] }
 0xfcc   :  { %v10964_v43 = vpop.f32.mrf.mxu0  ;;  %v6921_v53 = vadd.f32 %v6698_v17, %v16082_v58  ;;  %v6920_v27 = vadd.f32 %v6697_v60, %v16083_v50  ;;  %v7246_v28 = vld [vmem:[#allocation14 + $0x1e8] sm:$0xff]  ;;  %v7232_v50 = vld [vmem:[#allocation14 + $0x178] sm:$0xff] }
 0xfcd   :  { %v14486_v26 = vadd.f32 %v6914_v20, %v6860_v41  ;;  %v6875_v52 = vadd.f32 %v10964_v43, %v14414_v59  ;;  %6956 = vadd.xlane.f32.xlu1 %v14481_v14  ;;  %v16084_v43 = vld [vmem:[#allocation43_spill] sm:$0xff]  ;;  %7271 = vmatprep.subr.mxu1 %v7246_v28  ;;  %v7217_v28 = vld [vmem:[#allocation14 + $0x100] sm:$0xff] }
 0xfce   :  { %v6869_v16 = vpop.f32.mrf.mxu0  ;;  %v6923_v34 = vadd.f32 %v6700_v24, %v16084_v43  ;;  %7272 = vmatpush1.msra.mxu1 %v7245_v48  ;;  %v7222_v43 = vld [vmem:[#allocation14 + $0x128] sm:$0xff] }
 0xfcf   :  { %v14494_v62 = vadd.f32 %v6917_v7, %v6875_v52  ;;  %v6870_v49 = vadd.f32 %v14414_v59, %v6869_v16  ;;  %6954 = vadd.xlane.f32.xlu0 %v14486_v26  ;;  %v6922_v7 = vadd.f32 %v6699_v47, %v16085_v0  ;;  %v7247_v16 = vld [vmem:[#allocation14 + $0x1f0] sm:$0xff]  ;;  %7273 = vmatprep.subr.mxu1 %v7242_v54  ;;  %v7226_v47 = vld [vmem:[#allocation14 + $0x148] sm:$0xff]  ;;  %v7213_v54 = vld [vmem:[#allocation14 + $0xe0] sm:$0xff] }
 0xfd0   :  { %7433 = vmatpush1.msra.mxu0 %v7247_v16  ;;  %7274 = vmatpush1.msra.mxu1 %v7241_v44  ;;  %v7218_v0 = vld [vmem:[#allocation14 + $0x108] sm:$0xff]  ;;  %v7216_v16 = vld [vmem:[#allocation14 + $0xf8] sm:$0xff] }
 0xfd1   :  { %v14502_v21 = vadd.f32 %v6916_v15, %v6870_v49  ;;  %6960 = vadd.xlane.f32.xlu1 %v14494_v62  ;;  %v7244_v49 = vld [vmem:[#allocation14 + $0x1d8] sm:$0xff]  ;;  %v7238_v15 = vld [vmem:[#allocation14 + $0x1a8] sm:$0xff] }
 0xfd2   :  { %7434 = vmatprep.subr.mxu0 %v7244_v49  ;;  %7275 = vmatprep.subr.mxu1 %v7238_v15  ;;  %v7214_v48 = vld [vmem:[#allocation14 + $0xe8] sm:$0xff]  ;;  %v7215_v49 = vld [vmem:[#allocation14 + $0xf0] sm:$0xff]  ;;  %v7209_v15 = vld [vmem:[#allocation14 + $0xc0] sm:$0xff] }
 0xfd3   :  { %6958 = vadd.xlane.f32.xlu0 %v14502_v21  ;;  %7276 = vmatpush1.msra.mxu1 %v7237_v1  ;;  %v7210_v44 = vld [vmem:[#allocation14 + $0xc8] sm:$0xff] }
 0xfd4   :  { %v10967_v40 = vpop.f32.mrf.mxu0  ;;  %7277 = vmatprep.subr.mxu1 %v7234_v10  ;;  %v7206_v1 = vld [vmem:[#allocation14 + $0xa8] sm:$0xff]  ;;  %v7195_v10 = vld [vmem:[#allocation14 + $0x50] sm:$0xff] }
 0xfd5   :  { %v6885_v25 = vadd.f32 %v10967_v40, %v14414_v59  ;;  %7278 = vmatpush1.msra.mxu1 %v7233_v19  ;;  %v7192_v19 = vld [vmem:[#allocation14 + $0x38] sm:$0xff] }
 0xfd6   :  { %v6879_v13 = vpop.f32.mrf.mxu0 }
 0xfd7   :  { %v14516_v55 = vadd.f32 %v6919_v23, %v6885_v25  ;;  %v6880_v9 = vadd.f32 %v14414_v59, %v6879_v13 }
 0xfd8   :  { %v10970_v18 = vpop.f32.mrf.mxu0 }
 0xfd9   :  { %v14521_v32 = vadd.f32 %v6918_v12, %v6880_v9  ;;  %v6895_v30 = vadd.f32 %v10970_v18, %v14414_v59  ;;  %6964 = vadd.xlane.f32.xlu1 %v14516_v55  ;;  %v7236_v12 = vld [vmem:[#allocation14 + $0x198] sm:$0xff] }
 0xfda   :  { %v6889_v56 = vpop.f32.mrf.mxu0 }
 0xfdb   :  { %v14528_v46 = vadd.f32 %v6921_v53, %v6895_v30  ;;  %v6890_v31 = vadd.f32 %v14414_v59, %v6889_v56  ;;  %6962 = vadd.xlane.f32.xlu0 %v14521_v32  ;;  %v7235_v30 = vld [vmem:[#allocation14 + $0x190] sm:$0xff] }
 0xfdc   :  { %v10973_v51 = vpop.f32.mrf.mxu0 }
 0xfdd   :  { %v14534_v41 = vadd.f32 %v6920_v27, %v6890_v31  ;;  %6968 = vadd.xlane.f32.xlu1 %v14528_v46  ;;  %v6905_v20 = vadd.f32 %v10973_v51, %v14414_v59  ;;  %v7230_v31 = vld [vmem:[#allocation14 + $0x168] sm:$0xff]  ;;  %v7231_v27 = vld [vmem:[#allocation14 + $0x170] sm:$0xff]  ;;  %v7228_v51 = vld [vmem:[#allocation14 + $0x158] sm:$0xff] }
 0xfde   :  { %v6899_v33 = vpop.f32.mrf.mxu0  ;;  %7279 = vmatprep.subr.mxu1 %v7230_v31  ;;  %v11856_v31 = vmov 0.0  }
 0xfdf   :  { %6966 = vadd.xlane.f32.xlu0 %v14534_v41  ;;  %v14540_v38 = vadd.f32 %v6923_v34, %v6905_v20  ;;  %v6900_v52 = vadd.f32 %v14414_v59, %v6899_v33  ;;  %v7243_v59 = vld [vmem:[#allocation14 + $0x1d0] sm:$0xff]  ;;  %v7224_v34 = vld [vmem:[#allocation14 + $0x138] sm:$0xff]  ;;  %v7221_v33 = vld [vmem:[#allocation14 + $0x120] sm:$0xff]  ;;  %7335 = vmatprep.mubr.f32.mxu1 %v11856_v31 }
 0xfe0   :  { %7435 = vmatpush1.msra.mxu0 %v7243_v59  ;;  %v7227_v20 = vld [vmem:[#allocation14 + $0x150] sm:$0xff]  ;;  %v7212_v59 = vld [vmem:[#allocation14 + $0xd8] sm:$0xff]  ;;  %7496 = vmatprep.mubr.f32.mxu0 %v11856_v31 }
 0xfe1   :  { %v14544_v6 = vadd.f32 %v6922_v7, %v6900_v52  ;;  %6972 = vadd.xlane.f32.xlu1 %v14540_v38  ;;  %7436 = vmatprep.subr.mxu0 %v7240_v37  ;;  %v7223_v52 = vld [vmem:[#allocation14 + $0x130] sm:$0xff]  ;;  %v7220_v7 = vld [vmem:[#allocation14 + $0x118] sm:$0xff] }
 0xfe2   :  { %7437 = vmatpush1.msra.mxu0 %v7239_v5  ;;  %v7211_v37 = vld [vmem:[#allocation14 + $0xd0] sm:$0xff]  ;;  %v7208_v5 = vld [vmem:[#allocation14 + $0xb8] sm:$0xff] }
 0xfe3   :  { %6970 = vadd.xlane.f32.xlu0 %v14544_v6  ;;  %7438 = vmatprep.subr.mxu0 %v7236_v12  ;;  %v7190_v12 = vld [vmem:[#allocation14 + $0x28] sm:$0xff] }
 0xfe4   :  { %7439 = vmatpush1.msra.mxu0 %v7235_v30  ;;  %v7191_v30 = vld [vmem:[#allocation14 + $0x30] sm:$0xff] }
 0xfe5   :  { %7440 = vmatprep.subr.mxu0 %v7232_v50 }
 0xfe6   :  { %7441 = vmatpush1.msra.mxu0 %v7231_v27 }
 0xfe7   :  { %7442 = vmatprep.subr.mxu0 %v7228_v51 }
 0xfe8   :  { %7443 = vmatpush1.msra.mxu0 %v7227_v20 }
 0xfe9   :  { %7444 = vmatprep.subr.mxu0 %v7224_v34 }
 0xfea   :  { %7445 = vmatpush1.msra.mxu0 %v7223_v52 }
 0xfeb   :  { %7446 = vmatprep.subr.mxu0 %v7220_v7 }
 0xfec   :  { %7447 = vmatpush1.msra.mxu0 %v7219_v11 }
 0xfed   :  { %7448 = vmatprep.subr.mxu0 %v7216_v16 }
 0xfee   :  { %7449 = vmatpush1.msra.mxu0 %v7215_v49 }
 0xfef   :  { %7450 = vmatprep.subr.mxu0 %v7212_v59 }
 0xff0   :  { %7451 = vmatpush1.msra.mxu0 %v7211_v37 }
 0xff1   :  { %7452 = vmatprep.subr.mxu0 %v7208_v5 }
0x1011   :  { %v6945_v57 = vpop.xlane.xlu1 %6944 }
0x1012   :  { %v6975_v36 = vmul.f32 0.0078125, %v6945_v57  ;;  %v7205_v57 = vld [vmem:[#allocation14 + $0xa0] sm:$0xff] }
0x1013   :  { %v6943_v3 = vpop.xlane.xlu0 %6942 }
0x1014   :  { %v14549_v63 = vsub.f32 %v14421_v22, %v6975_v36  ;;  %v6974_v29 = vmul.f32 0.0078125, %v6943_v3  ;;  %v7207_v36 = vld [vmem:[#allocation14 + $0xb0] sm:$0xff]  ;;  %v7202_v3 = vld [vmem:[#allocation14 + $0x88] sm:$0xff] }
0x1015   :  { %7453 = vmatpush1.msra.mxu0 %v7207_v36 }
0x1016   :  { %v14552_v40 = vsub.f32 %v14426_v39, %v6974_v29  ;;  %v7007_v17 = vmul.f32 %v14549_v63, %v14549_v63  ;;  %v7204_v29 = vld [vmem:[#allocation14 + $0x98] sm:$0xff] }
0x1017   :  { %7454 = vmatprep.subr.mxu0 %v7204_v29 }
0x1018   :  { %7024 = vadd.xlane.f32.xlu1 %v7007_v17  ;;  %v7006_v25 = vmul.f32 %v14552_v40, %v14552_v40  ;;  %v7201_v17 = vld [vmem:[#allocation14 + $0x80] sm:$0xff] }
0x101a   :  { %7022 = vadd.xlane.f32.xlu0 %v7006_v25  ;;  %v7203_v25 = vld [vmem:[#allocation14 + $0x90] sm:$0xff] }
0x101b   :  { %7455 = vmatpush1.msra.mxu0 %v7203_v25 }
0x101f   :  { %v6947_v4 = vpop.xlane.xlu0 %6946 }
0x1020   :  { %v6976_v23 = vmul.f32 0.0078125, %v6947_v4  ;;  %v7198_v4 = vld [vmem:[#allocation14 + $0x68] sm:$0xff] }
0x1021   :  { %v6953_v45 = vpop.xlane.xlu1 %6952 }
0x1022   :  { %v14559_v35 = vsub.f32 %v14445_v61, %v6976_v23  ;;  %v6979_v13 = vmul.f32 0.0078125, %v6953_v45  ;;  %v7200_v23 = vld [vmem:[#allocation14 + $0x78] sm:$0xff]  ;;  %v7197_v45 = vld [vmem:[#allocation14 + $0x60] sm:$0xff] }
0x1023   :  { %v6949_v22 = vpop.xlane.xlu0 %6948  ;;  %7456 = vmatprep.subr.mxu0 %v7200_v23 }
0x1024   :  { %v6977_v60 = vmul.f32 0.0078125, %v6949_v22  ;;  %v7008_v39 = vmul.f32 %v14559_v35, %v14559_v35  ;;  %v14567_v61 = vsub.f32 %v14451_v42, %v6979_v13  ;;  %v7229_v42 = vld [vmem:[#allocation14 + $0x160] sm:$0xff]  ;;  %v7199_v22 = vld [vmem:[#allocation14 + $0x70] sm:$0xff]  ;;  %v7194_v13 = vld [vmem:[#allocation14 + $0x48] sm:$0xff] }
0x1025   :  { %7280 = vmatpush1.msra.mxu1 %v7229_v42  ;;  %7457 = vmatpush1.msra.mxu0 %v7199_v22 }
0x1026   :  { %v14564_v9 = vsub.f32 %v14454_v2, %v6977_v60  ;;  %7026 = vadd.xlane.f32.xlu0 %v7008_v39  ;;  %v7011_v24 = vmul.f32 %v14567_v61, %v14567_v61  ;;  %7281 = vmatprep.subr.mxu1 %v7226_v47  ;;  %v7196_v60 = vld [vmem:[#allocation14 + $0x58] sm:$0xff]  ;;  %v7193_v39 = vld [vmem:[#allocation14 + $0x40] sm:$0xff] }
0x1027   :  { %v6951_v18 = vpop.xlane.xlu0 %6950  ;;  %7458 = vmatprep.subr.mxu0 %v7196_v60 }
0x1028   :  { %v6978_v58 = vmul.f32 0.0078125, %v6951_v18  ;;  %v7009_v53 = vmul.f32 %v14564_v9, %v14564_v9  ;;  %v7189_v18 = vld [vmem:[#allocation14 + $0x20] sm:$0xff]  ;;  %7459 = vmatpush1.msra.mxu0 %v7195_v10 }
0x1029   :  { %7460 = vmatprep.subr.mxu0 %v7192_v19 }
0x102a   :  { %v14572_v2 = vsub.f32 %v14460_v8, %v6978_v58  ;;  %7028 = vadd.xlane.f32.xlu1 %v7009_v53  ;;  %v7225_v8 = vld [vmem:[#allocation14 + $0x140] sm:$0xff]  ;;  %v7186_v58 = vld [vmem:[#allocation14 + $0x8] sm:$0xff]  ;;  %v7188_v53 = vld [vmem:[#allocation14 + $0x18] sm:$0xff]  ;;  %7461 = vmatpush1.msra.mxu0 %v7191_v30 }
0x102b   :  { %7282 = vmatpush1.msra.mxu1 %v7225_v8  ;;  %7462 = vmatprep.subr.mxu0 %v7188_v53 }
0x102c   :  { %v7010_v56 = vmul.f32 %v14572_v2, %v14572_v2  ;;  %7283 = vmatprep.subr.mxu1 %v7222_v43 }
0x102d   :  { %7284 = vmatpush1.msra.mxu1 %v7221_v33 }
0x102e   :  { %7032 = vadd.xlane.f32.xlu1 %v7011_v24  ;;  %7030 = vadd.xlane.f32.xlu0 %v7010_v56  ;;  %v7185_v24 = vld [vmem:[#allocation14] sm:$0xff]  ;;  %v7187_v56 = vld [vmem:[#allocation14 + $0x10] sm:$0xff] }
0x102f   :  { %7285 = vmatprep.subr.mxu1 %v7218_v0  ;;  %7463 = vmatpush1.msra.mxu0 %v7187_v56  ;;  %v14635_v56 = vld [vmem:[%s15654_s15] ss:$0 sm:$0xff] }
0x1030   :  { %7286 = vmatpush1.msra.mxu1 %v7217_v28 }
0x1031   :  { %7287 = vmatprep.subr.mxu1 %v7214_v48 }
0x1032   :  { %7288 = vmatpush1.msra.mxu1 %v7213_v54 }
0x1033   :  { %7289 = vmatprep.subr.mxu1 %v7210_v44 }
0x1034   :  { %7290 = vmatpush1.msra.mxu1 %v7209_v15 }
0x1035   :  { %7291 = vmatprep.subr.mxu1 %v7206_v1 }
0x1036   :  { %7292 = vmatpush1.msra.mxu1 %v7205_v57 }
0x1037   :  { %7293 = vmatprep.subr.mxu1 %v7202_v3 }
0x1038   :  { %7294 = vmatpush1.msra.mxu1 %v7201_v17 }
0x1039   :  { %7295 = vmatprep.subr.mxu1 %v7198_v4 }
0x103a   :  { %7296 = vmatpush1.msra.mxu1 %v7197_v45 }
0x103b   :  { %7297 = vmatprep.subr.mxu1 %v7194_v13 }
0x103c   :  { %7298 = vmatpush1.msra.mxu1 %v7193_v39 }
0x103d   :  { %7299 = vmatprep.subr.mxu1 %v7190_v12 }
0x103e   :  { %7300 = vmatpush1.msra.mxu1 %v7189_v18 }
0x103f   :  { %7301 = vmatprep.subr.mxu1 %v7186_v58 }
0x1040   :  { %7302 = vmatpush1.msra.mxu1 %v7185_v24 }
0x1056   :  { %v6957_v50 = vpop.xlane.xlu1 %6956 }
0x1057   :  { %v6981_v42 = vmul.f32 0.0078125, %v6957_v50 }
0x1058   :  { %v6955_v27 = vpop.xlane.xlu0 %6954 }
0x1059   :  { %v14581_v47 = vsub.f32 %v14481_v14, %v6981_v42  ;;  %v6980_v51 = vmul.f32 0.0078125, %v6955_v27 }
0x105a   :  { %v6961_v8 = vpop.xlane.xlu1 %6960 }
0x105b   :  { %v14584_v20 = vsub.f32 %v14486_v26, %v6980_v51  ;;  %v6983_v43 = vmul.f32 0.0078125, %v6961_v8  ;;  %v7013_v34 = vmul.f32 %v14581_v47, %v14581_v47 }
0x105c   :  { %v6959_v33 = vpop.xlane.xlu0 %6958 }
0x105d   :  { %v14589_v52 = vsub.f32 %v14494_v62, %v6983_v43  ;;  %v6982_v0 = vmul.f32 0.0078125, %v6959_v33  ;;  %7036 = vadd.xlane.f32.xlu1 %v7013_v34  ;;  %v7012_v7 = vmul.f32 %v14584_v20, %v14584_v20  ;;  %v14641_v43 = vld [vmem:[%s15655_s16] ss:$0 sm:$0xff] }
0x105f   :  { %v14594_v14 = vsub.f32 %v14502_v21, %v6982_v0  ;;  %7034 = vadd.xlane.f32.xlu0 %v7012_v7  ;;  %v7015_v26 = vmul.f32 %v14589_v52, %v14589_v52 }
0x1061   :  { %7040 = vadd.xlane.f32.xlu1 %v7015_v26  ;;  %v7014_v28 = vmul.f32 %v14594_v14, %v14594_v14 }
0x1062   :  { %v6965_v11 = vpop.xlane.xlu1 %6964 }
0x1063   :  { %v6985_v48 = vmul.f32 0.0078125, %v6965_v11  ;;  %7038 = vadd.xlane.f32.xlu0 %v7014_v28 }
0x1064   :  { %v6963_v62 = vpop.xlane.xlu0 %6962 }
0x1065   :  { %v14601_v16 = vsub.f32 %v14516_v55, %v6985_v48  ;;  %v6984_v54 = vmul.f32 0.0078125, %v6963_v62 }
0x1066   :  { %v6969_v49 = vpop.xlane.xlu1 %6968 }
0x1067   :  { %v14604_v21 = vsub.f32 %v14521_v32, %v6984_v54  ;;  %v6987_v44 = vmul.f32 0.0078125, %v6969_v49  ;;  %v7017_v59 = vmul.f32 %v14601_v16, %v14601_v16 }
0x1068   :  { %v6967_v15 = vpop.xlane.xlu0 %6966 }
0x1069   :  { %v14609_v37 = vsub.f32 %v14528_v46, %v6987_v44  ;;  %v6986_v1 = vmul.f32 0.0078125, %v6967_v15  ;;  %7044 = vadd.xlane.f32.xlu1 %v7017_v59  ;;  %v7016_v5 = vmul.f32 %v14604_v21, %v14604_v21 }
0x106a   :  { %v6973_v57 = vpop.xlane.xlu1 %6972 }
0x106b   :  { %v14614_v55 = vsub.f32 %v14534_v41, %v6986_v1  ;;  %7042 = vadd.xlane.f32.xlu0 %v7016_v5  ;;  %v7019_v32 = vmul.f32 %v14609_v37, %v14609_v37  ;;  %v6989_v36 = vmul.f32 0.0078125, %v6973_v57 }
0x106c   :  { %v6971_v3 = vpop.xlane.xlu0 %6970 }
0x106d   :  { %7048 = vadd.xlane.f32.xlu1 %v7019_v32  ;;  %v7018_v46 = vmul.f32 %v14614_v55, %v14614_v55  ;;  %v14621_v29 = vsub.f32 %v14540_v38, %v6989_v36  ;;  %v6988_v17 = vmul.f32 0.0078125, %v6971_v3 }
0x106f   :  { %7046 = vadd.xlane.f32.xlu0 %v7018_v46  ;;  %v14624_v25 = vsub.f32 %v14544_v6, %v6988_v17  ;;  %v7021_v41 = vmul.f32 %v14621_v29, %v14621_v29 }
0x1071   :  { %7052 = vadd.xlane.f32.xlu1 %v7021_v41  ;;  %v7020_v4 = vmul.f32 %v14624_v25, %v14624_v25 }
0x1073   :  { %7050 = vadd.xlane.f32.xlu0 %v7020_v4 }
0x10a1   :  { %v7025_v23 = vpop.xlane.xlu1 %7024 }
0x10a2   :  { %v7055_v45 = vmul.f32 0.0078125, %v7025_v23 }
0x10a3   :  { %v7023_v22 = vpop.xlane.xlu0 %7022 }
0x10a4   :  { %v7071_v13 = vadd.f32 1e-12, %v7055_v45  ;;  %v7054_v60 = vmul.f32 0.0078125, %v7023_v22 }
0x10a6   :  { %11425 = vrsqrt.f32 %v7071_v13  ;;  %v7070_v38 = vadd.f32 1e-12, %v7054_v60 }
0x10a8   :  { %11427 = vrsqrt.f32 %v7070_v38 }
0x10af   :  { %v7027_v39 = vpop.xlane.xlu0 %7026 }
0x10b0   :  { %v7056_v10 = vmul.f32 0.0078125, %v7027_v39 }
0x10b2   :  { %v7072_v6 = vadd.f32 1e-12, %v7056_v10 }
0x10b3   :  { %v11426_v12 = vpop.eup %11425  ;;  %v7029_v19 = vpop.xlane.xlu1 %7028 }
0x10b4   :  { %11429 = vrsqrt.f32 %v7072_v6  ;;  %v7057_v18 = vmul.f32 0.0078125, %v7029_v19  ;;  %v7103_v24 = vmul.f32 %v11426_v12, %v14549_v63 }
0x10b5   :  { %v11428_v30 = vpop.eup %11427 }
0x10b6   :  { %v7102_v58 = vmul.f32 %v11428_v30, %v14552_v40  ;;  %v7073_v53 = vadd.f32 1e-12, %v7057_v18  ;;  %v7125_v33 = vmul.f32 %v14635_v56, %v7103_v24 }
0x10b7   :  { %v7033_v50 = vpop.xlane.xlu1 %7032  ;;  %v7031_v42 = vpop.xlane.xlu0 %7030 }
0x10b8   :  { %v7124_v27 = vmul.f32 %v14635_v56, %v7102_v58  ;;  %11431 = vrsqrt.f32 %v7073_v53  ;;  %v7059_v51 = vmul.f32 0.0078125, %v7033_v50  ;;  %v7058_v8 = vmul.f32 0.0078125, %v7031_v42 }
0x10b9   :  { %v14652_v0 = vadd.f32 %v14641_v43, %v7125_v33 }
0x10ba   :  { %v7075_v40 = vadd.f32 1e-12, %v7059_v51  ;;  %v7074_v34 = vadd.f32 1e-12, %v7058_v8  ;;  %v14644_v63 = vadd.f32 %v14641_v43, %v7124_v27 }
0x10bb   :  { %16087 = vst [vmem:[#allocation47_spill] sm:$0xff] %v14652_v0 }
0x10bc   :  { %16086 = vst [vmem:[#allocation46_spill] sm:$0xff] %v14644_v63  ;;  %11433 = vrsqrt.f32 %v7075_v40  ;;  %7336 = vmatmul.mubr.f32.vlgmr.msra.gmra.mxu1 %v14644_v63  ;;  %7497 = vmatmul.mubr.f32.vlgmr.msra.gmra.mxu0 %v14644_v63 }
0x10bd   :  { %11435 = vrsqrt.f32 %v7074_v34  ;;  %7341 = vmatprep.mubr.f32.mxu1 %v11856_v31  ;;  %7502 = vmatprep.mubr.f32.mxu0 %v11856_v31 }
0x10c0   :  { %7342 = vmatmul.mubr.f32.gmra.mxu1 %v14652_v0  ;;  %7503 = vmatmul.mubr.f32.gmra.mxu0 %v14652_v0 }
0x10c1   :  { %v11430_v7 = vpop.eup %11429  ;;  %7347 = vmatprep.mubr.f32.mxu1 %v11856_v31  ;;  %7508 = vmatprep.mubr.f32.mxu0 %v11856_v31 }
0x10c2   :  { %v7104_v26 = vmul.f32 %v11430_v7, %v14559_v35 }
0x10c4   :  { %v7126_v28 = vmul.f32 %v14635_v56, %v7104_v26 }
0x10c5   :  { %v11432_v11 = vpop.eup %11431 }
0x10c6   :  { %v14661_v48 = vadd.f32 %v14641_v43, %v7126_v28  ;;  %v7105_v62 = vmul.f32 %v11432_v11, %v14564_v9 }
0x10c8   :  { %16088 = vst [vmem:[#allocation54_spill] sm:$0xff] %v14661_v48  ;;  %7348 = vmatmul.mubr.f32.gmra.mxu1 %v14661_v48  ;;  %7509 = vmatmul.mubr.f32.gmra.mxu0 %v14661_v48  ;;  %v7127_v54 = vmul.f32 %v14635_v56, %v7105_v62 }
0x10c9   :  { %v11434_v49 = vpop.eup %11433  ;;  %7353 = vmatprep.mubr.f32.mxu1 %v11856_v31  ;;  %7514 = vmatprep.mubr.f32.mxu0 %v11856_v31 }
0x10ca   :  { %v11436_v35 = vpop.eup %11435  ;;  %v14670_v44 = vadd.f32 %v14641_v43, %v7127_v54  ;;  %v7107_v15 = vmul.f32 %v11434_v49, %v14567_v61 }
0x10cb   :  { %v7106_v59 = vmul.f32 %v11436_v35, %v14572_v2 }
0x10cc   :  { %16089 = vst [vmem:[#allocation50_spill] sm:$0xff] %v14670_v44  ;;  %7354 = vmatmul.mubr.f32.gmra.mxu1 %v14670_v44  ;;  %7515 = vmatmul.mubr.f32.gmra.mxu0 %v14670_v44  ;;  %v7129_v5 = vmul.f32 %v14635_v56, %v7107_v15  ;;  %v8232_v15 = vld [vmem:[#allocation16 + $0x1f8] sm:$0xff] }
0x10cd   :  { %7359 = vmatprep.mubr.f32.mxu1 %v11856_v31  ;;  %7520 = vmatprep.mubr.f32.mxu0 %v11856_v31  ;;  %v7128_v9 = vmul.f32 %v14635_v56, %v7106_v59  ;;  %v8200_v59 = vld [vmem:[#allocation16 + $0xf8] sm:$0xff] }
0x10ce   :  { %v14688_v61 = vadd.f32 %v14641_v43, %v7129_v5  ;;  %9822 = vmatprep.subr.mxu1 %v8200_v59  ;;  %9902 = vmatprep.subr.mxu0 %v8232_v15  ;;  %v8193_v59 = vld [vmem:[#allocation16 + $0xc0] sm:$0xff] }
0x10cf   :  { %v14680_v1 = vadd.f32 %v14641_v43, %v7128_v9  ;;  %v8225_v15 = vld [vmem:[#allocation16 + $0x1c0] sm:$0xff] }
0x10d0   :  { %16091 = vst [vmem:[#allocation62_spill] sm:$0xff] %v14688_v61 }
0x10d1   :  { %16090 = vst [vmem:[#allocation58_spill] sm:$0xff] %v14680_v1  ;;  %7360 = vmatmul.mubr.f32.gmra.mxu1 %v14680_v1  ;;  %7521 = vmatmul.mubr.f32.gmra.mxu0 %v14680_v1 }
0x10d2   :  { %7365 = vmatprep.mubr.f32.mxu1 %v11856_v31  ;;  %7526 = vmatprep.mubr.f32.mxu0 %v11856_v31 }
0x10d5   :  { %7366 = vmatmul.mubr.f32.gmra.mxu1 %v14688_v61  ;;  %7527 = vmatmul.mubr.f32.gmra.mxu0 %v14688_v61 }
0x10d6   :  { %7371 = vmatprep.mubr.f32.mxu1 %v11856_v31  ;;  %7532 = vmatprep.mubr.f32.mxu0 %v11856_v31 }
0x10e6   :  { %v7037_v2 = vpop.xlane.xlu1 %7036 }
0x10e7   :  { %v7061_v57 = vmul.f32 0.0078125, %v7037_v2  ;;  %v8184_v2 = vld [vmem:[#allocation16 + $0x78] sm:$0xff] }
0x10e8   :  { %v7035_v32 = vpop.xlane.xlu0 %7034  ;;  %9823 = vmatpush3.msra.mxu1 %v8184_v2 }
0x10e9   :  { %v7077_v36 = vadd.f32 1e-12, %v7061_v57  ;;  %v7060_v3 = vmul.f32 0.0078125, %v7035_v32  ;;  %v8216_v57 = vld [vmem:[#allocation16 + $0x178] sm:$0xff] }
0x10ea   :  { %v7041_v46 = vpop.xlane.xlu1 %7040  ;;  %9903 = vmatpush3.msra.mxu0 %v8216_v57  ;;  %v8224_v57 = vld [vmem:[#allocation16 + $0x1b8] sm:$0xff] }
0x10eb   :  { %11437 = vrsqrt.f32 %v7077_v36  ;;  %v7076_v17 = vadd.f32 1e-12, %v7060_v3  ;;  %v7063_v41 = vmul.f32 0.0078125, %v7041_v46  ;;  %v8199_v36 = vld [vmem:[#allocation16 + $0xf0] sm:$0xff] }
0x10ec   :  { %v7039_v4 = vpop.xlane.xlu0 %7038  ;;  %v8231_v3 = vld [vmem:[#allocation16 + $0x1f0] sm:$0xff]  ;;  %9824 = vmatprep.subr.mxu1 %v8199_v36  ;;  %v8208_v36 = vld [vmem:[#allocation16 + $0x138] sm:$0xff] }
0x10ed   :  { %11439 = vrsqrt.f32 %v7076_v17  ;;  %v7062_v23 = vmul.f32 0.0078125, %v7039_v4  ;;  %v7079_v45 = vadd.f32 1e-12, %v7063_v41  ;;  %v8183_v46 = vld [vmem:[#allocation16 + $0x70] sm:$0xff]  ;;  %9904 = vmatprep.subr.mxu0 %v8231_v3 }
0x10ee   :  { %v8215_v17 = vld [vmem:[#allocation16 + $0x170] sm:$0xff]  ;;  %9825 = vmatpush3.msra.mxu1 %v8183_v46 }
0x10ef   :  { %v7078_v22 = vadd.f32 1e-12, %v7062_v23  ;;  %9905 = vmatpush3.msra.mxu0 %v8215_v17  ;;  %v8191_v3 = vld [vmem:[#allocation16 + $0xb0] sm:$0xff] }
0x10f0   :  { %v8223_v46 = vld [vmem:[#allocation16 + $0x1b0] sm:$0xff] }
0x10f1   :  { %11441 = vrsqrt.f32 %v7078_v22  ;;  %v8230_v22 = vld [vmem:[#allocation16 + $0x1e8] sm:$0xff]  ;;  %v8207_v17 = vld [vmem:[#allocation16 + $0x130] sm:$0xff] }
0x10f2   :  { %v7045_v13 = vpop.xlane.xlu1 %7044  ;;  %11443 = vrsqrt.f32 %v7079_v45  ;;  %v8198_v45 = vld [vmem:[#allocation16 + $0xe8] sm:$0xff]  ;;  %9906 = vmatprep.subr.mxu0 %v8230_v22  ;;  %v8221_v22 = vld [vmem:[#allocation16 + $0x1a0] sm:$0xff] }
0x10f3   :  { %v7065_v60 = vmul.f32 0.0078125, %v7045_v13  ;;  %v8182_v13 = vld [vmem:[#allocation16 + $0x68] sm:$0xff]  ;;  %9826 = vmatprep.subr.mxu1 %v8198_v45  ;;  %v8189_v45 = vld [vmem:[#allocation16 + $0xa0] sm:$0xff] }
0x10f4   :  { %v7043_v38 = vpop.xlane.xlu0 %7042  ;;  %9827 = vmatpush3.msra.mxu1 %v8182_v13  ;;  %v8173_v13 = vld [vmem:[#allocation16 + $0x20] sm:$0xff] }
0x10f5   :  { %v7064_v39 = vmul.f32 0.0078125, %v7043_v38  ;;  %v7081_v10 = vadd.f32 1e-12, %v7065_v60  ;;  %v8214_v60 = vld [vmem:[#allocation16 + $0x168] sm:$0xff] }
0x10f6   :  { %v7049_v12 = vpop.xlane.xlu1 %7048  ;;  %9907 = vmatpush3.msra.mxu0 %v8214_v60  ;;  %v8205_v60 = vld [vmem:[#allocation16 + $0x120] sm:$0xff] }
0x10f7   :  { %v7080_v6 = vadd.f32 1e-12, %v7064_v39  ;;  %v7067_v53 = vmul.f32 0.0078125, %v7049_v12  ;;  %v8229_v12 = vld [vmem:[#allocation16 + $0x1e0] sm:$0xff] }
0x10f8   :  { %v11438_v19 = vpop.eup %11437  ;;  %v7047_v18 = vpop.xlane.xlu0 %7046  ;;  %9908 = vmatprep.subr.mxu0 %v8229_v12  ;;  %v8187_v12 = vld [vmem:[#allocation16 + $0x90] sm:$0xff] }
0x10f9   :  { %11445 = vrsqrt.f32 %v7080_v6  ;;  %v7066_v30 = vmul.f32 0.0078125, %v7047_v18  ;;  %v7109_v24 = vmul.f32 %v11438_v19, %v14581_v47  ;;  %v7083_v40 = vadd.f32 1e-12, %v7067_v53  ;;  %v8197_v6 = vld [vmem:[#allocation16 + $0xe0] sm:$0xff] }
0x10fa   :  { %v11440_v58 = vpop.eup %11439  ;;  %11447 = vrsqrt.f32 %v7081_v10  ;;  %v7053_v33 = vpop.xlane.xlu1 %7052  ;;  %v8181_v19 = vld [vmem:[#allocation16 + $0x60] sm:$0xff]  ;;  %9828 = vmatprep.subr.mxu1 %v8197_v6  ;;  %v8204_v6 = vld [vmem:[#allocation16 + $0x118] sm:$0xff] }
0x10fb   :  { %v7082_v50 = vadd.f32 1e-12, %v7066_v30  ;;  %v7108_v42 = vmul.f32 %v11440_v58, %v14584_v20  ;;  %v7131_v34 = vmul.f32 %v14635_v56, %v7109_v24  ;;  %v7069_v20 = vmul.f32 0.0078125, %v7053_v33  ;;  %v8213_v18 = vld [vmem:[#allocation16 + $0x160] sm:$0xff]  ;;  %9829 = vmatpush3.msra.mxu1 %v8181_v19  ;;  %v8196_v24 = vld [vmem:[#allocation16 + $0xd8] sm:$0xff]  ;;  %v8227_v33 = vld [vmem:[#allocation16 + $0x1d0] sm:$0xff] }
0x10fc   :  { %v7051_v27 = vpop.xlane.xlu0 %7050  ;;  %9909 = vmatpush3.msra.mxu0 %v8213_v18  ;;  %9830 = vmatprep.subr.mxu1 %v8196_v24  ;;  %v8219_v19 = vld [vmem:[#allocation16 + $0x190] sm:$0xff]  ;;  %v8170_v24 = vld [vmem:[#allocation16 + $0x8] sm:$0xff] }
0x10fd   :  { %v7130_v51 = vmul.f32 %v14635_v56, %v7108_v42  ;;  %11449 = vrsqrt.f32 %v7082_v50  ;;  %v7068_v7 = vmul.f32 0.0078125, %v7051_v27  ;;  %v14707_v62 = vadd.f32 %v14641_v43, %v7131_v34  ;;  %v8228_v50 = vld [vmem:[#allocation16 + $0x1d8] sm:$0xff]  ;;  %v8195_v34 = vld [vmem:[#allocation16 + $0xd0] sm:$0xff] }
0x10fe   :  { %v11442_v8 = vpop.eup %11441  ;;  %11451 = vrsqrt.f32 %v7083_v40  ;;  %v7085_v35 = vadd.f32 1e-12, %v7069_v20  ;;  %v8180_v42 = vld [vmem:[#allocation16 + $0x58] sm:$0xff]  ;;  %9910 = vmatprep.subr.mxu0 %v8228_v50  ;;  %v8171_v18 = vld [vmem:[#allocation16 + $0x10] sm:$0xff]  ;;  %v8202_v50 = vld [vmem:[#allocation16 + $0x108] sm:$0xff] }
0x10ff   :  { %v14699_v26 = vadd.f32 %v14641_v43, %v7130_v51  ;;  %v7110_v28 = vmul.f32 %v11442_v8, %v14594_v14  ;;  %v11444_v47 = vpop.eup %11443  ;;  %v7084_v11 = vadd.f32 1e-12, %v7068_v7  ;;  %16093 = vst [vmem:[#allocation87_spill] sm:$0xff] %v14707_v62  ;;  %v8212_v27 = vld [vmem:[#allocation16 + $0x158] sm:$0xff]  ;;  %9831 = vmatpush3.msra.mxu1 %v8180_v42  ;;  %v8179_v7 = vld [vmem:[#allocation16 + $0x50] sm:$0xff]  ;;  %v8185_v42 = vld [vmem:[#allocation16 + $0x80] sm:$0xff] }
0x1100   :  { %v7111_v49 = vmul.f32 %v11444_v47, %v14589_v52  ;;  %9911 = vmatpush3.msra.mxu0 %v8212_v27  ;;  %9832 = vmatprep.subr.mxu1 %v8195_v34  ;;  %v8217_v27 = vld [vmem:[#allocation16 + $0x180] sm:$0xff]  ;;  %v7251_v34 = vlaneseq }
0x1101   :  { %16092 = vst [vmem:[#allocation48_spill] sm:$0xff] %v14699_v26  ;;  %7372 = vmatmul.mubr.f32.gmra.mxu1 %v14699_v26  ;;  %7533 = vmatmul.mubr.f32.gmra.mxu0 %v14699_v26  ;;  %v7132_v54 = vmul.f32 %v14635_v56, %v7110_v28  ;;  %11453 = vrsqrt.f32 %v7084_v11  ;;  %v8211_v28 = vld [vmem:[#allocation16 + $0x150] sm:$0xff]  ;;  %v8194_v11 = vld [vmem:[#allocation16 + $0xc8] sm:$0xff] }
0x1102   :  { %7377 = vmatprep.mubr.f32.mxu1 %v11856_v31  ;;  %7538 = vmatprep.mubr.f32.mxu0 %v11856_v31  ;;  %v7133_v5 = vmul.f32 %v14635_v56, %v7111_v49  ;;  %11455 = vrsqrt.f32 %v7085_v35  ;;  %v8178_v49 = vld [vmem:[#allocation16 + $0x48] sm:$0xff] }
0x1103   :  { %v14716_v9 = vadd.f32 %v14641_v43, %v7132_v54  ;;  %9912 = vmatprep.subr.mxu0 %v8227_v33  ;;  %9833 = vmatpush3.msra.mxu1 %v8179_v7  ;;  %v8226_v54 = vld [vmem:[#allocation16 + $0x1c8] sm:$0xff]  ;;  %v7252_v33 = vshrl.u32 %v7251_v34, 7 }
0x1104   :  { %9913 = vmatpush3.msra.mxu0 %v8211_v28  ;;  %9834 = vmatprep.subr.mxu1 %v8194_v11 }
0x1105   :  { %7378 = vmatmul.mubr.f32.gmra.mxu1 %v14707_v62  ;;  %7539 = vmatmul.mubr.f32.gmra.mxu0 %v14707_v62  ;;  %16094 = vst [vmem:[#allocation44_spill] sm:$0xff] %v14716_v9  ;;  %v7253_v7 = vsub.s32 0, %v7252_v33  ;;  %v7261_v28 = vsub.s32 2, %v7252_v33  ;;  %v7265_v11 = vsub.s32 3, %v7252_v33 }
0x1106   :  { %v11446_v14 = vpop.eup %11445  ;;  %7383 = vmatprep.mubr.f32.mxu1 %v11856_v31  ;;  %7544 = vmatprep.mubr.f32.mxu0 %v11856_v31 }
0x1107   :  { %v7112_v52 = vmul.f32 %v11446_v14, %v14604_v21  ;;  %v11448_v32 = vpop.eup %11447  ;;  %v14725_v21 = vadd.f32 %v14641_v43, %v7133_v5  ;;  %v8210_v14 = vld [vmem:[#allocation16 + $0x148] sm:$0xff]  ;;  %9914 = vmatprep.subr.mxu0 %v8226_v54  ;;  %9835 = vmatpush3.msra.mxu1 %v8178_v49  ;;  %v8177_v5 = vld [vmem:[#allocation16 + $0x40] sm:$0xff] }
0x1108   :  { %v7113_v4 = vmul.f32 %v11448_v32, %v14601_v16  ;;  %9915 = vmatpush3.msra.mxu0 %v8210_v14  ;;  %9836 = vmatprep.subr.mxu1 %v8193_v59  ;;  %v8176_v32 = vld [vmem:[#allocation16 + $0x38] sm:$0xff] }
0x1109   :  { %7384 = vmatmul.mubr.f32.gmra.mxu1 %v14716_v9  ;;  %7545 = vmatmul.mubr.f32.gmra.mxu0 %v14716_v9  ;;  %16095 = vst [vmem:[#allocation88_spill] sm:$0xff] %v14725_v21  ;;  %v7134_v41 = vmul.f32 %v14635_v56, %v7112_v52  ;;  %v8209_v52 = vld [vmem:[#allocation16 + $0x140] sm:$0xff] }
0x110a   :  { %7389 = vmatprep.mubr.f32.mxu1 %v11856_v31  ;;  %7550 = vmatprep.mubr.f32.mxu0 %v11856_v31  ;;  %v11450_v23 = vpop.eup %11449  ;;  %v7135_v39 = vmul.f32 %v14635_v56, %v7113_v4  ;;  %v8174_v4 = vld [vmem:[#allocation16 + $0x28] sm:$0xff] }
0x110b   :  { %v11452_v38 = vpop.eup %11451  ;;  %v14734_v16 = vadd.f32 %v14641_v43, %v7134_v41  ;;  %v7114_v10 = vmul.f32 %v11450_v23, %v14614_v55  ;;  %9916 = vmatprep.subr.mxu0 %v8225_v15  ;;  %9837 = vmatpush3.msra.mxu1 %v8177_v5  ;;  %v8222_v41 = vld [vmem:[#allocation16 + $0x1a8] sm:$0xff] }
0x110c   :  { %v14743_v30 = vadd.f32 %v14641_v43, %v7135_v39  ;;  %v7115_v58 = vmul.f32 %v11452_v38, %v14609_v37  ;;  %9917 = vmatpush3.msra.mxu0 %v8209_v52  ;;  %v8206_v23 = vld [vmem:[#allocation16 + $0x128] sm:$0xff]  ;;  %v8188_v38 = vld [vmem:[#allocation16 + $0x98] sm:$0xff] }
0x110d   :  { %7390 = vmatmul.mubr.f32.gmra.mxu1 %v14725_v21  ;;  %7551 = vmatmul.mubr.f32.gmra.mxu0 %v14725_v21  ;;  %16096 = vst [vmem:[#allocation59_spill] sm:$0xff] %v14734_v16  ;;  %v7136_v55 = vmul.f32 %v14635_v56, %v7114_v10  ;;  %v8220_v39 = vld [vmem:[#allocation16 + $0x198] sm:$0xff] }
0x110e   :  { %7395 = vmatprep.mubr.f32.mxu1 %v11856_v31  ;;  %7556 = vmatprep.mubr.f32.mxu0 %v11856_v31  ;;  %16097 = vst [vmem:[#allocation91_spill] sm:$0xff] %v14743_v30  ;;  %v11454_v53 = vpop.eup %11453  ;;  %v7137_v37 = vmul.f32 %v14635_v56, %v7115_v58  ;;  %v8172_v10 = vld [vmem:[#allocation16 + $0x18] sm:$0xff]  ;;  %v8186_v58 = vld [vmem:[#allocation16 + $0x88] sm:$0xff] }
0x110f   :  { %v14752_v51 = vadd.f32 %v14641_v43, %v7136_v55  ;;  %v7116_v8 = vmul.f32 %v11454_v53, %v14624_v25  ;;  %v11456_v40 = vpop.eup %11455  ;;  %9918 = vmatprep.subr.mxu0 %v8224_v57  ;;  %v8203_v55 = vld [vmem:[#allocation16 + $0x110] sm:$0xff]  ;;  %v8218_v53 = vld [vmem:[#allocation16 + $0x188] sm:$0xff] }
0x1110   :  { %v14761_v47 = vadd.f32 %v14641_v43, %v7137_v37  ;;  %v7117_v20 = vmul.f32 %v11456_v40, %v14621_v29  ;;  %9919 = vmatpush3.msra.mxu0 %v8208_v36  ;;  %v8169_v37 = vld [vmem:[#allocation16] sm:$0xff]  ;;  %v14782_v40 = vld [vmem:[#allocation17 + $0x78] sm:$0xff] }
0x1111   :  { %7396 = vmatmul.mubr.f32.gmra.mxu1 %v14734_v16  ;;  %7557 = vmatmul.mubr.f32.gmra.mxu0 %v14734_v16  ;;  %16098 = vst [vmem:[#allocation55_spill] sm:$0xff] %v14752_v51  ;;  %v7138_v25 = vmul.f32 %v14635_v56, %v7116_v8  ;;  %v8201_v8 = vld [vmem:[#allocation16 + $0x100] sm:$0xff] }
0x1112   :  { %7401 = vmatprep.mubr.f32.mxu1 %v11856_v31  ;;  %7562 = vmatprep.mubr.f32.mxu0 %v11856_v31  ;;  %16099 = vst [vmem:[#allocation92_spill] sm:$0xff] %v14761_v47  ;;  %v7139_v29 = vmul.f32 %v14635_v56, %v7117_v20  ;;  %v8192_v56 = vld [vmem:[#allocation16 + $0xb8] sm:$0xff]  ;;  %v7257_v20 = vsub.s32 1, %v7252_v33 }
0x1113   :  { %v14770_v35 = vadd.f32 %v14641_v43, %v7138_v25  ;;  %9838 = vmatprep.subr.mxu1 %v8192_v56  ;;  %9920 = vmatprep.subr.mxu0 %v8223_v46  ;;  %v7249_v25 = vld [vmem:[%s15657_s18] sm:$0xf] }
0x1114   :  { %v14778_v2 = vadd.f32 %v14641_v43, %v7139_v29  ;;  %9839 = vmatpush3.msra.mxu1 %v8176_v32  ;;  %v8190_v43 = vld [vmem:[#allocation16 + $0xa8] sm:$0xff]  ;;  %9921 = vmatpush3.msra.mxu0 %v8207_v17  ;;  %v14788_v54 = vrot.slane %v7249_v25, %v7253_v7  ;;  %v14790_v49 = vrot.slane %v7249_v25, %v7261_v28 }
0x1115   :  { %7402 = vmatmul.mubr.f32.gmra.mxu1 %v14743_v30  ;;  %7563 = vmatmul.mubr.f32.gmra.mxu0 %v14743_v30  ;;  %16100 = vst [vmem:[#allocation68_spill] sm:$0xff] %v14770_v35  ;;  %v14792_v59 = vrot.slane %v7249_v25, %v7257_v20  ;;  %v14794_v15 = vrot.slane %v7249_v25, %v7265_v11 }
0x1116   :  { %7407 = vmatprep.mubr.f32.mxu1 %v11856_v31  ;;  %7568 = vmatprep.mubr.f32.mxu0 %v11856_v31  ;;  %16101 = vst [vmem:[#allocation95_spill] sm:$0xff] %v14778_v2 }
0x1117   :  { %9840 = vmatprep.subr.mxu1 %v8191_v3  ;;  %9922 = vmatprep.subr.mxu0 %v8222_v41 }
0x1118   :  { %9923 = vmatpush3.msra.mxu0 %v8206_v23 }
0x1119   :  { %7408 = vmatmul.mubr.f32.gmra.mxu1 %v14752_v51  ;;  %7569 = vmatmul.mubr.f32.gmra.mxu0 %v14752_v51 }
0x111a   :  { %7413 = vmatprep.mubr.f32.mxu1 %v11856_v31  ;;  %7574 = vmatprep.mubr.f32.mxu0 %v11856_v31 }
0x111b   :  { %9924 = vmatprep.subr.mxu0 %v8221_v22 }
0x111c   :  { %9925 = vmatpush3.msra.mxu0 %v8205_v60 }
0x111d   :  { %7414 = vmatmul.mubr.f32.gmra.mxu1 %v14761_v47  ;;  %7575 = vmatmul.mubr.f32.gmra.mxu0 %v14761_v47 }
0x111e   :  { %7419 = vmatprep.mubr.f32.mxu1 %v11856_v31  ;;  %7580 = vmatprep.mubr.f32.mxu0 %v11856_v31 }
0x111f   :  { %9926 = vmatprep.subr.mxu0 %v8220_v39 }
0x1120   :  { %9927 = vmatpush3.msra.mxu0 %v8204_v6 }
0x1121   :  { %7420 = vmatmul.mubr.f32.gmra.mxu1 %v14770_v35  ;;  %7581 = vmatmul.mubr.f32.gmra.mxu0 %v14770_v35 }
0x1122   :  { %7425 = vmatprep.mubr.f32.mxu1 %v11856_v31  ;;  %7586 = vmatprep.mubr.f32.mxu0 %v11856_v31  ;;  %v8175_v31 = vld [vmem:[#allocation16 + $0x30] sm:$0xff] }
0x1123   :  { %9841 = vmatpush3.msra.mxu1 %v8175_v31  ;;  %9928 = vmatprep.subr.mxu0 %v8219_v19 }
0x1124   :  { %9842 = vmatprep.subr.mxu1 %v8190_v43  ;;  %9929 = vmatpush3.msra.mxu0 %v8203_v55 }
0x1125   :  { %7426 = vmatmul.mubr.f32.gmra.mxu1 %v14778_v2  ;;  %7587 = vmatmul.mubr.f32.gmra.mxu0 %v14778_v2 }
0x1126   :  { %9843 = vmatpush3.msra.mxu1 %v8174_v4  ;;  %9930 = vmatprep.subr.mxu0 %v8218_v53 }
0x1127   :  { %9844 = vmatprep.subr.mxu1 %v8189_v45  ;;  %9931 = vmatpush3.msra.mxu0 %v8202_v50 }
0x1128   :  { %9845 = vmatpush3.msra.mxu1 %v8173_v13  ;;  %9932 = vmatprep.subr.mxu0 %v8217_v27 }
0x1129   :  { %9846 = vmatprep.subr.mxu1 %v8188_v38  ;;  %9933 = vmatpush3.msra.mxu0 %v8201_v8 }
0x112a   :  { %9847 = vmatpush3.msra.mxu1 %v8172_v10 }
0x112b   :  { %9848 = vmatprep.subr.mxu1 %v8187_v12 }
0x112c   :  { %9849 = vmatpush3.msra.mxu1 %v8171_v18 }
0x112d   :  { %9850 = vmatprep.subr.mxu1 %v8186_v58 }
0x112e   :  { %9851 = vmatpush3.msra.mxu1 %v8170_v24 }
0x112f   :  { %9852 = vmatprep.subr.mxu1 %v8185_v42 }
0x1130   :  { %9853 = vmatpush3.msra.mxu1 %v8169_v37 }
0x1131   :  { %10974 = vmatprep.subr.mxu1 %v14782_v40 }
0x117c   :  { %v7337_v14 = vpop.f32.mrf.mxu1  ;;  %v7498_v29 = vpop.f32.mrf.mxu0 }
0x117d   :  { %v14797_v5 = vadd.f32 %v7337_v14, %v14788_v54  ;;  %v14800_v52 = vadd.f32 %v7498_v29, %v14790_v49 }
0x117e   :  { %v7339_v56 = vpop.f32.mrf.mxu1  ;;  %v7500_v57 = vpop.f32.mrf.mxu0 }
0x117f   :  { %v7657_v32 = vmul.f32 0.044715, %v14797_v5  ;;  %v7659_v36 = vmul.f32 0.044715, %v14800_v52  ;;  %v7340_v3 = vadd.f32 %v7339_v56, %v14792_v59  ;;  %v14806_v46 = vadd.f32 %v7500_v57, %v14794_v15 }
0x1180   :  { %v7343_v31 = vpop.f32.mrf.mxu1  ;;  %v7504_v17 = vpop.f32.mrf.mxu0 }
0x1181   :  { %v7721_v43 = vmul.f32 %v7657_v32, %v14797_v5  ;;  %v7723_v41 = vmul.f32 %v7659_v36, %v14800_v52  ;;  %v14811_v4 = vadd.f32 %v7343_v31, %v14788_v54  ;;  %v7658_v23 = vmul.f32 0.044715, %v7340_v3 }
0x1182   :  { %v7660_v45 = vmul.f32 0.044715, %v14806_v46  ;;  %v7345_v22 = vpop.f32.mrf.mxu1  ;;  %v14817_v38 = vadd.f32 %v7504_v17, %v14790_v49  ;;  %v7506_v55 = vpop.f32.mrf.mxu0 }
0x1183   :  { %v7785_v13 = vmul.f32 %v7721_v43, %v14797_v5  ;;  %v7787_v60 = vmul.f32 %v7723_v41, %v14800_v52  ;;  %v7722_v39 = vmul.f32 %v7658_v23, %v7340_v3  ;;  %v14821_v6 = vadd.f32 %v7345_v22, %v14792_v59 }
0x1184   :  { %v7724_v10 = vmul.f32 %v7660_v45, %v14806_v46  ;;  %v7661_v18 = vmul.f32 0.044715, %v14811_v4  ;;  %v7663_v27 = vmul.f32 0.044715, %v14817_v38  ;;  %v14831_v8 = vadd.f32 %v7506_v55, %v14794_v15 }
0x1185   :  { %v7849_v12 = vadd.f32 %v7785_v13, %v14797_v5  ;;  %v7851_v19 = vadd.f32 %v7787_v60, %v14800_v52  ;;  %v7662_v58 = vmul.f32 0.044715, %v14821_v6  ;;  %v7786_v53 = vmul.f32 %v7722_v39, %v7340_v3 }
0x1186   :  { %v7788_v24 = vmul.f32 %v7724_v10, %v14806_v46  ;;  %v7725_v25 = vmul.f32 %v7661_v18, %v14811_v4  ;;  %v7727_v32 = vmul.f32 %v7663_v27, %v14817_v38  ;;  %v7664_v36 = vmul.f32 0.044715, %v14831_v8 }
0x1187   :  { %v7913_v50 = vmul.f32 0.7978846, %v7849_v12  ;;  %v7915_v42 = vmul.f32 0.7978846, %v7851_v19  ;;  %v7726_v37 = vmul.f32 %v7662_v58, %v14821_v6  ;;  %v7850_v7 = vadd.f32 %v7786_v53, %v7340_v3 }
0x1188   :  { %v7349_v34 = vpop.f32.mrf.mxu1  ;;  %v7510_v33 = vpop.f32.mrf.mxu0  ;;  %v7852_v28 = vadd.f32 %v7788_v24, %v14806_v46  ;;  %v7789_v23 = vmul.f32 %v7725_v25, %v14811_v4  ;;  %v14861_v18 = vmul.f32 0.5, %v14797_v5  ;;  %v14864_v55 = vmul.f32 0.5, %v14800_v52 }
0x1189   :  { %11457 = vtanh.f32 %v7913_v50  ;;  %v14836_v20 = vadd.f32 %v7349_v34, %v14788_v54  ;;  %v14839_v11 = vadd.f32 %v7510_v33, %v14790_v49  ;;  %v7914_v56 = vmul.f32 0.7978846, %v7850_v7 }
0x118a   :  { %11459 = vtanh.f32 %v7915_v42  ;;  %v7351_v14 = vpop.f32.mrf.mxu1  ;;  %v7512_v29 = vpop.f32.mrf.mxu0  ;;  %v7916_v57 = vmul.f32 0.7978846, %v7852_v28  ;;  %v7790_v41 = vmul.f32 %v7726_v37, %v14821_v6  ;;  %v14866_v58 = vmul.f32 0.5, %v7340_v3 }
0x118b   :  { %v7665_v31 = vmul.f32 0.044715, %v14836_v20  ;;  %11461 = vtanh.f32 %v7914_v56  ;;  %v7667_v45 = vmul.f32 0.044715, %v14839_v11  ;;  %v14848_v22 = vadd.f32 %v7351_v14, %v14792_v59 }
0x118c   :  { %v7355_v17 = vpop.f32.mrf.mxu1  ;;  %v7516_v43 = vpop.f32.mrf.mxu0  ;;  %v14854_v60 = vadd.f32 %v7512_v29, %v14794_v15  ;;  %11463 = vtanh.f32 %v7916_v57  ;;  %v7854_v19 = vadd.f32 %v7790_v41, %v14821_v6  ;;  %v7791_v53 = vmul.f32 %v7727_v32, %v14817_v38 }
0x118d   :  { %v14851_v13 = vadd.f32 %v7355_v17, %v14788_v54  ;;  %v14857_v39 = vadd.f32 %v7516_v43, %v14790_v49  ;;  %v7729_v24 = vmul.f32 %v7665_v31, %v14836_v20  ;;  %v7728_v27 = vmul.f32 %v7664_v36, %v14831_v8 }
0x118e   :  { %v7357_v10 = vpop.f32.mrf.mxu1  ;;  %v7518_v12 = vpop.f32.mrf.mxu0  ;;  %v7731_v37 = vmul.f32 %v7667_v45, %v14839_v11  ;;  %v14875_v33 = vmul.f32 0.5, %v14806_v46  ;;  %v7918_v52 = vmul.f32 0.7978846, %v7854_v19  ;;  %v14878_v3 = vadd.f32 %v7789_v23, %v14811_v4 }
0x118f   :  { %v7669_v50 = vmul.f32 0.044715, %v14851_v13  ;;  %v7671_v42 = vmul.f32 0.044715, %v14857_v39  ;;  %v7666_v7 = vmul.f32 0.044715, %v14848_v22  ;;  %v14883_v25 = vadd.f32 %v7357_v10, %v14792_v59 }
0x1190   :  { %v7668_v28 = vmul.f32 0.044715, %v14854_v60  ;;  %v14886_v14 = vadd.f32 %v7518_v12, %v14794_v15  ;;  %11465 = vtanh.f32 %v7918_v52  ;;  %v7855_v32 = vadd.f32 %v7791_v53, %v14817_v38 }
0x1191   :  { %v7361_v34 = vpop.f32.mrf.mxu1  ;;  %v7522_v5 = vpop.f32.mrf.mxu0  ;;  %v7793_v36 = vmul.f32 %v7729_v24, %v14836_v20  ;;  %v7733_v31 = vmul.f32 %v7669_v50, %v14851_v13  ;;  %v7735_v17 = vmul.f32 %v7671_v42, %v14857_v39  ;;  %v7795_v43 = vmul.f32 %v7731_v37, %v14839_v11 }
0x1192   :  { %v14889_v29 = vadd.f32 %v7361_v34, %v14788_v54  ;;  %v14892_v46 = vadd.f32 %v7522_v5, %v14790_v49  ;;  %v14904_v12 = vmul.f32 0.5, %v14821_v6  ;;  %v7730_v53 = vmul.f32 %v7666_v7, %v14848_v22 }
0x1193   :  { %v7363_v56 = vpop.f32.mrf.mxu1  ;;  %v7524_v57 = vpop.f32.mrf.mxu0  ;;  %v7670_v24 = vmul.f32 0.044715, %v14883_v25  ;;  %v7732_v34 = vmul.f32 %v7668_v28, %v14854_v60  ;;  %v7672_v5 = vmul.f32 0.044715, %v14886_v14  ;;  %v7857_v7 = vadd.f32 %v7793_v36, %v14836_v20 }
0x1194   :  { %v7673_v41 = vmul.f32 0.044715, %v14889_v29  ;;  %v14901_v23 = vadd.f32 %v7363_v56, %v14792_v59  ;;  %v7675_v50 = vmul.f32 0.044715, %v14892_v46  ;;  %v14910_v42 = vadd.f32 %v7524_v57, %v14794_v15 }
0x1195   :  { %v7367_v45 = vpop.f32.mrf.mxu1  ;;  %v7528_v10 = vpop.f32.mrf.mxu0  ;;  %v7797_v56 = vmul.f32 %v7733_v31, %v14851_v13  ;;  %v7799_v2 = vmul.f32 %v7735_v17, %v14857_v39  ;;  %v7859_v28 = vadd.f32 %v7795_v43, %v14839_v11  ;;  %v7736_v17 = vmul.f32 %v7672_v5, %v14886_v14 }
0x1196   :  { %v11458_v19 = vpop.eup %11457  ;;  %v14915_v52 = vadd.f32 %v7367_v45, %v14788_v54  ;;  %v14918_v6 = vadd.f32 %v7528_v10, %v14790_v49  ;;  %v7737_v57 = vmul.f32 %v7673_v41, %v14889_v29  ;;  %v7674_v51 = vmul.f32 0.044715, %v14901_v23 }
0x1197   :  { %v11460_v37 = vpop.eup %11459  ;;  %v8041_v47 = vadd.f32 1.0, %v11458_v19  ;;  %v7792_v45 = vmul.f32 %v7728_v27, %v14831_v8  ;;  %v7734_v10 = vmul.f32 %v7670_v24, %v14883_v25  ;;  %v7739_v16 = vmul.f32 %v7675_v50, %v14892_v46  ;;  %v7369_v62 = vpop.f32.mrf.mxu1 }
0x1198   :  { %v11462_v35 = vpop.eup %11461  ;;  %v8043_v30 = vadd.f32 1.0, %v11460_v37  ;;  %v7676_v36 = vmul.f32 0.044715, %v14910_v42  ;;  %v7677_v41 = vmul.f32 0.044715, %v14915_v52  ;;  %v7861_v43 = vadd.f32 %v7797_v56, %v14851_v13  ;;  %v7530_v61 = vpop.f32.mrf.mxu0 }
0x1199   :  { %v11464_v31 = vpop.eup %11463  ;;  %v7679_v19 = vmul.f32 0.044715, %v14918_v6  ;;  %v8042_v21 = vadd.f32 1.0, %v11462_v35  ;;  %v14935_v9 = vadd.f32 %v7799_v2, %v14857_v39  ;;  %v7801_v27 = vmul.f32 %v7737_v57, %v14889_v29 }
0x119a   :  { %v8044_v24 = vadd.f32 1.0, %v11464_v31  ;;  %v8105_v50 = vmul.f32 %v8041_v47, %v14861_v18  ;;  %v14940_v37 = vmul.f32 %v7674_v51, %v14901_v23  ;;  %v7856_v26 = vadd.f32 %v7792_v45, %v14831_v8 }
0x119b   :  { %v8106_v5 = vmul.f32 %v8042_v21, %v14866_v58  ;;  %v8107_v35 = vmul.f32 %v8043_v30, %v14864_v55  ;;  %v7803_v56 = vmul.f32 %v7739_v16, %v14892_v46  ;;  %v14947_v2 = vmul.f32 %v7676_v36, %v14910_v42  ;;  %v8553_v58 = vld [vmem:[#allocation17 + $0x70] sm:$0xff] }
0x119c   :  { %v8108_v57 = vmul.f32 %v8044_v24, %v14875_v33  ;;  %v7741_v47 = vmul.f32 %v7677_v41, %v14915_v52  ;;  %v7743_v51 = vmul.f32 %v7679_v19, %v14918_v6  ;;  %v7920_v18 = vmul.f32 0.7978846, %v7856_v26 }
0x119d   :  { %8297 = vmatprep.mubr.f32.mxu1 %v8106_v5  ;;  %v7917_v21 = vmul.f32 0.7978846, %v14878_v3  ;;  %v11466_v45 = vpop.eup %11465  ;;  %v7865_v30 = vadd.f32 %v7801_v27, %v14889_v29  ;;  %v14955_v16 = vadd.f32 %v7369_v62, %v14792_v59  ;;  %v7919_v55 = vmul.f32 0.7978846, %v7855_v32  ;;  %v8552_v3 = vld [vmem:[#allocation17 + $0x68] sm:$0xff]  ;;  %v8551_v27 = vld [vmem:[#allocation17 + $0x60] sm:$0xff] }
0x119e   :  { %8442 = vmatprep.mubr.f32.mxu0 %v8108_v57  ;;  %8298 = vmatmul.mubr.f32.vlgmr.msra.gmra.mxu1 %v8105_v50  ;;  %v7794_v33 = vmul.f32 %v7730_v53, %v14848_v22  ;;  %v14959_v36 = vadd.f32 %v7530_v61, %v14794_v15  ;;  %v8046_v31 = vadd.f32 1.0, %v11466_v45  ;;  %11467 = vtanh.f32 %v7920_v18  ;;  %v8550_v5 = vld [vmem:[#allocation17 + $0x58] sm:$0xff] }
0x119f   :  { %8443 = vmatmul.mubr.f32.vlgmr.msra.gmra.mxu0 %v8107_v35  ;;  %v7796_v26 = vmul.f32 %v7732_v34, %v14854_v60  ;;  %10975 = vmatpush3.msra.mxu1 %v14782_v40  ;;  %v7867_v41 = vadd.f32 %v7803_v56, %v14892_v46  ;;  %11469 = vtanh.f32 %v7917_v21  ;;  %v7921_v19 = vmul.f32 0.7978846, %v7857_v7  ;;  %v8549_v21 = vld [vmem:[#allocation17 + $0x50] sm:$0xff] }
0x11a0   :  { %v7858_v62 = vadd.f32 %v7794_v33, %v14848_v22  ;;  %10976 = vmatprep.subr.mxu1 %v8553_v58  ;;  %v8110_v32 = vmul.f32 %v8046_v31, %v14904_v12  ;;  %11471 = vtanh.f32 %v7919_v55  ;;  %v7923_v53 = vmul.f32 0.7978846, %v7859_v28  ;;  %v8548_v55 = vld [vmem:[#allocation17 + $0x48] sm:$0xff] }
0x11a1   :  { %v7860_v61 = vadd.f32 %v7796_v26, %v14854_v60  ;;  %10977 = vmatpush3.msra.mxu1 %v8553_v58  ;;  %v7678_v34 = vmul.f32 0.044715, %v14955_v16  ;;  %11473 = vtanh.f32 %v7921_v19  ;;  %v7798_v40 = vmul.f32 %v7734_v10, %v14883_v25 }
0x11a2   :  { %v7922_v24 = vmul.f32 0.7978846, %v7858_v62  ;;  %10978 = vmatprep.subr.mxu1 %v8552_v3  ;;  %v7680_v50 = vmul.f32 0.044715, %v14959_v36  ;;  %8302 = vmatprep.mubr.f32.mxu1 %v8110_v32  ;;  %11475 = vtanh.f32 %v7923_v53  ;;  %v7800_v12 = vmul.f32 %v7736_v17, %v14886_v14 }
0x11a3   :  { %v7924_v7 = vmul.f32 0.7978846, %v7860_v61  ;;  %10979 = vmatpush3.msra.mxu1 %v8552_v3  ;;  %v7805_v28 = vmul.f32 %v7741_v47, %v14915_v52  ;;  %v7862_v35 = vadd.f32 %v7798_v40, %v14883_v25  ;;  %v7925_v56 = vmul.f32 0.7978846, %v7861_v43  ;;  %v8547_v3 = vld [vmem:[#allocation17 + $0x40] sm:$0xff] }
0x11a4   :  { %11477 = vtanh.f32 %v7922_v24  ;;  %10980 = vmatprep.subr.mxu1 %v8551_v27  ;;  %v7807_v57 = vmul.f32 %v7743_v51, %v14918_v6  ;;  %v7864_v10 = vadd.f32 %v7800_v12, %v14886_v14  ;;  %v7927_v18 = vmul.f32 0.7978846, %v14935_v9  ;;  %v8545_v12 = vld [vmem:[#allocation17 + $0x30] sm:$0xff] }
0x11a5   :  { %11479 = vtanh.f32 %v7924_v7  ;;  %10981 = vmatpush3.msra.mxu1 %v8551_v27  ;;  %v7742_v17 = vmul.f32 %v7678_v34, %v14955_v16  ;;  %v7926_v58 = vmul.f32 0.7978846, %v7862_v35  ;;  %v7802_v47 = vmul.f32 %v14940_v37, %v14901_v23 }
0x11a6   :  { %11481 = vtanh.f32 %v7925_v56  ;;  %10982 = vmatprep.subr.mxu1 %v8550_v5  ;;  %v7744_v43 = vmul.f32 %v7680_v50, %v14959_v36  ;;  %v7928_v45 = vmul.f32 0.7978846, %v7864_v10  ;;  %v7804_v51 = vmul.f32 %v14947_v2, %v14910_v42 }
0x11a7   :  { %11483 = vtanh.f32 %v7927_v18  ;;  %10983 = vmatpush3.msra.mxu1 %v8550_v5  ;;  %v7869_v9 = vadd.f32 %v7805_v28, %v14915_v52  ;;  %v7866_v33 = vadd.f32 %v7802_v47, %v14901_v23  ;;  %v7929_v31 = vmul.f32 0.7978846, %v7865_v30  ;;  %v8546_v30 = vld [vmem:[#allocation17 + $0x38] sm:$0xff] }
0x11a8   :  { %11485 = vtanh.f32 %v7926_v58  ;;  %10984 = vmatprep.subr.mxu1 %v8549_v21  ;;  %v7868_v37 = vadd.f32 %v7804_v51, %v14910_v42  ;;  %v7931_v26 = vmul.f32 0.7978846, %v7867_v41  ;;  %v7871_v62 = vadd.f32 %v7807_v57, %v14918_v6  ;;  %v8543_v51 = vld [vmem:[#allocation17 + $0x20] sm:$0xff] }
0x11a9   :  { %11487 = vtanh.f32 %v7928_v45  ;;  %10985 = vmatpush3.msra.mxu1 %v8549_v21  ;;  %v7930_v19 = vmul.f32 0.7978846, %v7866_v33  ;;  %v7806_v2 = vmul.f32 %v7742_v17, %v14955_v16  ;;  %v7808_v61 = vmul.f32 %v7744_v43, %v14959_v36  ;;  %v8544_v17 = vld [vmem:[#allocation17 + $0x28] sm:$0xff] }
0x11aa   :  { %11489 = vtanh.f32 %v7929_v31  ;;  %10986 = vmatprep.subr.mxu1 %v8548_v55  ;;  %v7932_v32 = vmul.f32 0.7978846, %v7868_v37  ;;  %v7600_v27 = vmul.f32 0.5, %v14831_v8  ;;  %v7933_v34 = vmul.f32 0.7978846, %v7869_v9 }
0x11ab   :  { %11491 = vtanh.f32 %v7931_v26  ;;  %10987 = vmatpush3.msra.mxu1 %v8548_v55  ;;  %v11468_v53 = vpop.eup %11467  ;;  %v7870_v41 = vadd.f32 %v7806_v2, %v14955_v16  ;;  %v7597_v50 = vmul.f32 0.5, %v14811_v4  ;;  %v7872_v7 = vadd.f32 %v7808_v61, %v14959_v36 }
0x11ac   :  { %11493 = vtanh.f32 %v7930_v19  ;;  %10988 = vmatprep.subr.mxu1 %v8547_v3  ;;  %v11470_v24 = vpop.eup %11469  ;;  %v8048_v40 = vadd.f32 1.0, %v11468_v53  ;;  %v7935_v56 = vmul.f32 0.7978846, %v7871_v62  ;;  %v7599_v10 = vmul.f32 0.5, %v14817_v38  ;;  %v8542_v62 = vld [vmem:[#allocation17 + $0x18] sm:$0xff] }
0x11ad   :  { %11495 = vtanh.f32 %v7932_v32  ;;  %10989 = vmatpush3.msra.mxu1 %v8547_v3  ;;  %v11472_v5 = vpop.eup %11471  ;;  %v8045_v28 = vadd.f32 1.0, %v11470_v24  ;;  %v7934_v35 = vmul.f32 0.7978846, %v7870_v41  ;;  %v7936_v21 = vmul.f32 0.7978846, %v7872_v7 }
0x11ae   :  { %11497 = vtanh.f32 %v7933_v34  ;;  %10990 = vmatprep.subr.mxu1 %v8546_v30  ;;  %v11474_v8 = vpop.eup %11473  ;;  %v8112_v57 = vmul.f32 %v8048_v40, %v7600_v27  ;;  %v8047_v18 = vadd.f32 1.0, %v11472_v5  ;;  %v7602_v9 = vmul.f32 0.5, %v14848_v22 }
0x11af   :  { %10991 = vmatpush3.msra.mxu1 %v8546_v30  ;;  %v11476_v4 = vpop.eup %11475  ;;  %v8109_v58 = vmul.f32 %v8045_v28, %v7597_v50  ;;  %11499 = vtanh.f32 %v7934_v35  ;;  %v8049_v45 = vadd.f32 1.0, %v11474_v8  ;;  %v7604_v37 = vmul.f32 0.5, %v14854_v60 }
0x11b0   :  { %10992 = vmatprep.subr.mxu1 %v8545_v12  ;;  %8447 = vmatprep.mubr.f32.mxu0 %v8112_v57  ;;  %v8111_v43 = vmul.f32 %v8047_v18, %v7599_v10  ;;  %11501 = vtanh.f32 %v7936_v21  ;;  %v8051_v33 = vadd.f32 1.0, %v11476_v4  ;;  %v7601_v3 = vmul.f32 0.5, %v14836_v20  ;;  %v8541_v20 = vld [vmem:[#allocation17 + $0x10] sm:$0xff]  ;;  %v8540_v57 = vld [vmem:[#allocation17 + $0x8] sm:$0xff] }
0x11b1   :  { %v11478_v47 = vpop.eup %11477  ;;  %10993 = vmatpush3.msra.mxu1 %v8545_v12  ;;  %11503 = vtanh.f32 %v7935_v56  ;;  %v7603_v32 = vmul.f32 0.5, %v14839_v11  ;;  %v7606_v60 = vmul.f32 0.5, %v14883_v25  ;;  %v7608_v11 = vmul.f32 0.5, %v14886_v14 }
0x11b2   :  { %v11480_v55 = vpop.eup %11479  ;;  %8303 = vmatmul.mubr.f32.gmra.mxu1 %v8109_v58  ;;  %v8050_v38 = vadd.f32 1.0, %v11478_v47  ;;  %10994 = vmatprep.subr.mxu1 %v8544_v17  ;;  %v8113_v30 = vmul.f32 %v8049_v45, %v7601_v3  ;;  %v7605_v7 = vmul.f32 0.5, %v14851_v13  ;;  %v7607_v28 = vmul.f32 0.5, %v14857_v39  ;;  %v8539_v47 = vld [vmem:[#allocation17] sm:$0xff] }
0x11b3   :  { %v11482_v31 = vpop.eup %11481  ;;  %8448 = vmatmul.mubr.f32.gmra.mxu0 %v8111_v43  ;;  %v8052_v26 = vadd.f32 1.0, %v11480_v55  ;;  %10995 = vmatpush3.msra.mxu1 %v8544_v17  ;;  %v8115_v41 = vmul.f32 %v8051_v33, %v7603_v32  ;;  %v7610_v14 = vmul.f32 0.5, %v14901_v23  ;;  %v7612_v39 = vmul.f32 0.5, %v14910_v42 }
0x11b4   :  { %v11484_v19 = vpop.eup %11483  ;;  %v8114_v2 = vmul.f32 %v8050_v38, %v7602_v9  ;;  %10996 = vmatprep.subr.mxu1 %v8543_v51  ;;  %v8053_v53 = vadd.f32 1.0, %v11482_v31  ;;  %v7609_v58 = vmul.f32 0.5, %v14889_v29  ;;  %v7611_v45 = vmul.f32 0.5, %v14892_v46 }
0x11b5   :  { %v11486_v61 = vpop.eup %11485  ;;  %v8116_v22 = vmul.f32 %v8052_v26, %v7604_v37  ;;  %10997 = vmatpush3.msra.mxu1 %v8543_v51  ;;  %v8055_v24 = vadd.f32 1.0, %v11484_v19  ;;  %v7614_v31 = vmul.f32 0.5, %v14955_v16  ;;  %v7616_v29 = vmul.f32 0.5, %v14959_v36 }
0x11b6   :  { %v11488_v27 = vpop.eup %11487  ;;  %8307 = vmatprep.mubr.f32.mxu1 %v8114_v2  ;;  %v8054_v34 = vadd.f32 1.0, %v11486_v61  ;;  %10998 = vmatprep.subr.mxu1 %v8542_v62  ;;  %v8117_v56 = vmul.f32 %v8053_v53, %v7605_v7  ;;  %v7613_v46 = vmul.f32 0.5, %v14915_v52  ;;  %v7615_v3 = vmul.f32 0.5, %v14918_v6 }
0x11b7   :  { %v11490_v40 = vpop.eup %11489  ;;  %8452 = vmatprep.mubr.f32.mxu0 %v8116_v22  ;;  %8308 = vmatmul.mubr.f32.gmra.mxu1 %v8113_v30  ;;  %v8056_v50 = vadd.f32 1.0, %v11488_v27  ;;  %v8119_v18 = vmul.f32 %v8055_v24, %v7607_v28 }
0x11b8   :  { %v11492_v12 = vpop.eup %11491  ;;  %8453 = vmatmul.mubr.f32.gmra.mxu0 %v8115_v41  ;;  %v8118_v5 = vmul.f32 %v8054_v34, %v7606_v60  ;;  %10999 = vmatpush3.msra.mxu1 %v8542_v62  ;;  %v8057_v8 = vadd.f32 1.0, %v11490_v40 }
0x11b9   :  { %v11494_v35 = vpop.eup %11493  ;;  %v8120_v25 = vmul.f32 %v8056_v50, %v7608_v11  ;;  %11000 = vmatprep.subr.mxu1 %v8541_v20  ;;  %v8059_v17 = vadd.f32 1.0, %v11492_v12 }
0x11ba   :  { %v11496_v10 = vpop.eup %11495  ;;  %8312 = vmatprep.mubr.f32.mxu1 %v8118_v5  ;;  %v8058_v21 = vadd.f32 1.0, %v11494_v35  ;;  %11001 = vmatpush3.msra.mxu1 %v8541_v20  ;;  %v8121_v23 = vmul.f32 %v8057_v8, %v7609_v58 }
0x11bb   :  { %v11498_v13 = vpop.eup %11497  ;;  %8457 = vmatprep.mubr.f32.mxu0 %v8120_v25  ;;  %8313 = vmatmul.mubr.f32.gmra.mxu1 %v8117_v56  ;;  %v8060_v4 = vadd.f32 1.0, %v11496_v10  ;;  %v8123_v33 = vmul.f32 %v8059_v17, %v7611_v45 }
0x11bc   :  { %8458 = vmatmul.mubr.f32.gmra.mxu0 %v8119_v18  ;;  %v8122_v43 = vmul.f32 %v8058_v21, %v7610_v14  ;;  %11002 = vmatprep.subr.mxu1 %v8540_v57  ;;  %v11500_v51 = vpop.eup %11499  ;;  %v8061_v9 = vadd.f32 1.0, %v11498_v13 }
0x11bd   :  { %v8124_v55 = vmul.f32 %v8060_v4, %v7612_v39  ;;  %11003 = vmatpush3.msra.mxu1 %v8540_v57  ;;  %v11502_v38 = vpop.eup %11501  ;;  %v8062_v42 = vadd.f32 1.0, %v11500_v51 }
0x11be   :  { %8317 = vmatprep.mubr.f32.mxu1 %v8122_v43  ;;  %11004 = vmatprep.subr.mxu1 %v8539_v47  ;;  %v11504_v37 = vpop.eup %11503  ;;  %v8064_v26 = vadd.f32 1.0, %v11502_v38  ;;  %v8125_v30 = vmul.f32 %v8061_v9, %v7613_v46 }
0x11bf   :  { %8462 = vmatprep.mubr.f32.mxu0 %v8124_v55  ;;  %8318 = vmatmul.mubr.f32.gmra.mxu1 %v8121_v23  ;;  %v8126_v2 = vmul.f32 %v8062_v42, %v7614_v31  ;;  %v8063_v32 = vadd.f32 1.0, %v11504_v37 }
0x11c0   :  { %8463 = vmatmul.mubr.f32.gmra.mxu0 %v8123_v33  ;;  %11005 = vmatpush3.msra.mxu1 %v8539_v47  ;;  %v8128_v22 = vmul.f32 %v8064_v26, %v7616_v29 }
0x11c1   :  { %v7373_v62 = vpop.f32.mrf.mxu1  ;;  %v7534_v19 = vpop.f32.mrf.mxu0  ;;  %8322 = vmatprep.mubr.f32.mxu1 %v8126_v2  ;;  %v8127_v27 = vmul.f32 %v8063_v32, %v7615_v3 }
0x11c2   :  { %v7374_v61 = vadd.f32 %v7373_v62, %v14788_v54  ;;  %v15011_v16 = vadd.f32 %v7534_v19, %v14790_v49  ;;  %8467 = vmatprep.mubr.f32.mxu0 %v8128_v22 }
0x11c3   :  { %v7375_v53 = vpop.f32.mrf.mxu1  ;;  %v7536_v36 = vpop.f32.mrf.mxu0  ;;  %8323 = vmatmul.mubr.f32.gmra.mxu1 %v8125_v30 }
0x11c4   :  { %v7681_v52 = vmul.f32 0.044715, %v7374_v61  ;;  %8468 = vmatmul.mubr.f32.gmra.mxu0 %v8127_v27  ;;  %v7683_v60 = vmul.f32 0.044715, %v15011_v16  ;;  %v15015_v34 = vadd.f32 %v7375_v53, %v14792_v59  ;;  %v15018_v24 = vadd.f32 %v7536_v36, %v14794_v15 }
0x11c5   :  { %v7379_v6 = vpop.f32.mrf.mxu1  ;;  %v7540_v41 = vpop.f32.mrf.mxu0  ;;  %v15040_v17 = vmul.f32 0.5, %v7374_v61  ;;  %v15043_v13 = vmul.f32 0.5, %v15011_v16 }
0x11c6   :  { %v15021_v20 = vadd.f32 %v7379_v6, %v14788_v54  ;;  %v15024_v40 = vadd.f32 %v7540_v41, %v14790_v49  ;;  %v7745_v7 = vmul.f32 %v7681_v52, %v7374_v61  ;;  %v7747_v25 = vmul.f32 %v7683_v60, %v15011_v16 }
0x11c7   :  { %v7381_v11 = vpop.f32.mrf.mxu1  ;;  %v7542_v50 = vpop.f32.mrf.mxu0  ;;  %v7682_v56 = vmul.f32 0.044715, %v15015_v34  ;;  %v7684_v8 = vmul.f32 0.044715, %v15018_v24  ;;  %16105 = vst [vmem:[#allocation99_spill] sm:$0xff] %v15040_v17  ;;  %16106 = vst [vmem:[#allocation67_spill] sm:$0xff] %v15043_v13 }
0x11c8   :  { %16102 = vst [vmem:[#allocation71_spill] sm:$0xff] %v15024_v40  ;;  %v7685_v12 = vmul.f32 0.044715, %v15021_v20  ;;  %v7687_v5 = vmul.f32 0.044715, %v15024_v40  ;;  %v15035_v10 = vadd.f32 %v7381_v11, %v14792_v59  ;;  %v7809_v39 = vmul.f32 %v7745_v7, %v7374_v61 }
0x11c9   :  { %v7385_v28 = vpop.f32.mrf.mxu1  ;;  %v7546_v35 = vpop.f32.mrf.mxu0  ;;  %v15047_v58 = vadd.f32 %v7542_v50, %v14794_v15  ;;  %v15056_v9 = vmul.f32 0.5, %v15015_v34  ;;  %v7811_v38 = vmul.f32 %v7747_v25, %v15011_v16  ;;  %v15060_v33 = vmul.f32 %v7682_v56, %v15015_v34 }
0x11ca   :  { %v15032_v57 = vadd.f32 %v7385_v28, %v14788_v54  ;;  %v15038_v18 = vadd.f32 %v7546_v35, %v14790_v49  ;;  %v7749_v4 = vmul.f32 %v7685_v12, %v15021_v20  ;;  %v7751_v43 = vmul.f32 %v7687_v5, %v15024_v40 }
0x11cb   :  { %v7387_v14 = vpop.f32.mrf.mxu1  ;;  %v7548_v21 = vpop.f32.mrf.mxu0  ;;  %v15063_v31 = vmul.f32 %v7684_v8, %v15018_v24  ;;  %v15066_v42 = vmul.f32 0.5, %v15018_v24  ;;  %v7686_v37 = vmul.f32 0.044715, %v15035_v10  ;;  %v15078_v19 = vadd.f32 %v7809_v39, %v7374_v61 }
0x11cc   :  { %16103 = vst [vmem:[#allocation96_spill] sm:$0xff] %v15032_v57  ;;  %16104 = vst [vmem:[#allocation74_spill] sm:$0xff] %v15038_v18  ;;  %v7689_v47 = vmul.f32 0.044715, %v15032_v57  ;;  %v7691_v45 = vmul.f32 0.044715, %v15038_v18  ;;  %v15053_v51 = vadd.f32 %v7387_v14, %v14792_v59  ;;  %v15070_v29 = vadd.f32 %v7548_v21, %v14794_v15 }
0x11cd   :  { %v7391_v55 = vpop.f32.mrf.mxu1  ;;  %v7552_v23 = vpop.f32.mrf.mxu0  ;;  %v7813_v2 = vmul.f32 %v7749_v4, %v15021_v20  ;;  %v7688_v32 = vmul.f32 0.044715, %v15047_v58  ;;  %v7815_v30 = vmul.f32 %v7751_v43, %v15024_v40  ;;  %v15098_v50 = vadd.f32 %v7811_v38, %v15011_v16 }
0x11ce   :  { %v15073_v26 = vadd.f32 %v7391_v55, %v14788_v54  ;;  %v15076_v46 = vadd.f32 %v7552_v23, %v14790_v49  ;;  %v7753_v22 = vmul.f32 %v7689_v47, %v15032_v57  ;;  %v7755_v53 = vmul.f32 %v7691_v45, %v15038_v18 }
0x11cf   :  { %v7393_v3 = vpop.f32.mrf.mxu1  ;;  %v7554_v62 = vpop.f32.mrf.mxu0  ;;  %v7690_v36 = vmul.f32 0.044715, %v15053_v51  ;;  %v15101_v7 = vmul.f32 %v7686_v37, %v15035_v10  ;;  %v7692_v12 = vmul.f32 0.044715, %v15070_v29  ;;  %v15108_v25 = vmul.f32 %v7688_v32, %v15047_v58 }
0x11d0   :  { %16107 = vst [vmem:[#allocation100_spill] sm:$0xff] %v15073_v26  ;;  %16108 = vst [vmem:[#allocation70_spill] sm:$0xff] %v15076_v46  ;;  %v15087_v27 = vadd.f32 %v7393_v3, %v14792_v59  ;;  %v7693_v61 = vmul.f32 0.044715, %v15073_v26  ;;  %v7695_v41 = vmul.f32 0.044715, %v15076_v46  ;;  %v15105_v5 = vadd.f32 %v7554_v62, %v14794_v15 }
0x11d1   :  { %v7397_v52 = vpop.f32.mrf.mxu1  ;;  %v7558_v6 = vpop.f32.mrf.mxu0  ;;  %v7817_v56 = vmul.f32 %v7753_v22, %v15032_v57  ;;  %v15114_v14 = vadd.f32 %v7813_v2, %v15021_v20  ;;  %v15117_v21 = vadd.f32 %v7815_v30, %v15024_v40  ;;  %v7819_v39 = vmul.f32 %v7755_v53, %v15038_v18 }
0x11d2   :  { %v15092_v60 = vadd.f32 %v7397_v52, %v14788_v54  ;;  %v15095_v11 = vadd.f32 %v7558_v6, %v14790_v49  ;;  %v15121_v4 = vmul.f32 %v7690_v36, %v15053_v51  ;;  %v7757_v45 = vmul.f32 %v7693_v61, %v15073_v26 }
0x11d3   :  { %v7399_v28 = vpop.f32.mrf.mxu1  ;;  %v7560_v35 = vpop.f32.mrf.mxu0  ;;  %v7759_v55 = vmul.f32 %v7695_v41, %v15076_v46  ;;  %v7694_v23 = vmul.f32 0.044715, %v15087_v27  ;;  %v15130_v37 = vmul.f32 %v7692_v12, %v15070_v29  ;;  %v7696_v3 = vmul.f32 0.044715, %v15105_v5 }
0x11d4   :  { %16109 = vst [vmem:[#allocation103_spill] sm:$0xff] %v15092_v60  ;;  %16110 = vst [vmem:[#allocation75_spill] sm:$0xff] %v15095_v11  ;;  %v7697_v8 = vmul.f32 0.044715, %v15092_v60  ;;  %v7699_v16 = vmul.f32 0.044715, %v15095_v11  ;;  %v15134_v62 = vadd.f32 %v7399_v28, %v14792_v59  ;;  %v15140_v30 = vadd.f32 %v7817_v56, %v15032_v57 }
0x11d5   :  { %v7403_v47 = vpop.f32.mrf.mxu1  ;;  %v7564_v43 = vpop.f32.mrf.mxu0  ;;  %v15145_v52 = vadd.f32 %v7560_v35, %v14794_v15  ;;  %v15148_v6 = vadd.f32 %v7819_v39, %v15038_v18  ;;  %v15164_v39 = vmul.f32 %v7696_v3, %v15105_v5 }
0x11d6   :  { %v15127_v38 = vadd.f32 %v7403_v47, %v14788_v54  ;;  %v15137_v2 = vadd.f32 %v7564_v43, %v14790_v49  ;;  %v7761_v53 = vmul.f32 %v7697_v8, %v15092_v60  ;;  %v7763_v36 = vmul.f32 %v7699_v16, %v15095_v11 }
0x11d7   :  { %v7405_v32 = vpop.f32.mrf.mxu1  ;;  %v7566_v22 = vpop.f32.mrf.mxu0  ;;  %v7821_v47 = vmul.f32 %v7757_v45, %v15073_v26  ;;  %v7823_v8 = vmul.f32 %v7759_v55, %v15076_v46  ;;  %v15158_v16 = vmul.f32 %v7694_v23, %v15087_v27  ;;  %v7698_v43 = vmul.f32 0.044715, %v15134_v62 }
0x11d8   :  { %16111 = vst [vmem:[#allocation104_spill] sm:$0xff] %v15127_v38  ;;  %16112 = vst [vmem:[#allocation107_spill] sm:$0xff] %v15137_v2  ;;  %v7701_v61 = vmul.f32 0.044715, %v15127_v38  ;;  %v7703_v41 = vmul.f32 0.044715, %v15137_v2  ;;  %v15153_v12 = vadd.f32 %v7405_v32, %v14792_v59  ;;  %v15168_v32 = vadd.f32 %v7566_v22, %v14794_v15 }
0x11d9   :  { %v7409_v28 = vpop.f32.mrf.mxu1  ;;  %v7570_v56 = vpop.f32.mrf.mxu0  ;;  %v7825_v55 = vmul.f32 %v7761_v53, %v15092_v60  ;;  %v7827_v23 = vmul.f32 %v7763_v36, %v15095_v11  ;;  %v15184_v57 = vadd.f32 %v7821_v47, %v15073_v26  ;;  %v15187_v53 = vadd.f32 %v7823_v8, %v15076_v46 }
0x11da   :  { %16113 = vst [vmem:[#allocation108_spill] sm:$0xff] %v15153_v12  ;;  %v15161_v35 = vadd.f32 %v7409_v28, %v14788_v54  ;;  %16114 = vst [vmem:[#allocation111_spill] sm:$0xff] %v15168_v32  ;;  %v15171_v1 = vadd.f32 %v7570_v56, %v14790_v49  ;;  %v7700_v28 = vmul.f32 0.044715, %v15145_v52  ;;  %v7765_v3 = vmul.f32 %v7701_v61, %v15127_v38 }
0x11db   :  { %v7411_v45 = vpop.f32.mrf.mxu1  ;;  %v7572_v44 = vpop.f32.mrf.mxu0  ;;  %v7767_v0 = vmul.f32 %v7703_v41, %v15137_v2  ;;  %v7702_v22 = vmul.f32 0.044715, %v15153_v12  ;;  %16115 = vst [vmem:[#allocation112_spill] sm:$0xff] %v15187_v53  ;;  %v7704_v61 = vmul.f32 0.044715, %v15168_v32  ;;  %v15202_v8 = vadd.f32 %v7825_v55, %v15092_v60 }
0x11dc   :  { %v7705_v48 = vmul.f32 0.044715, %v15161_v35  ;;  %v15181_v63 = vadd.f32 %v7411_v45, %v14792_v59  ;;  %v7707_v36 = vmul.f32 0.044715, %v15171_v1  ;;  %v15191_v40 = vadd.f32 %v7572_v44, %v14794_v15 }
0x11dd   :  { %v7415_v56 = vpop.f32.mrf.mxu1  ;;  %v7576_v18 = vpop.f32.mrf.mxu0  ;;  %16117 = vst [vmem:[#allocation116_spill] sm:$0xff] %v15202_v8  ;;  %v15205_v46 = vadd.f32 %v7827_v23, %v15095_v11  ;;  %v15208_v44 = vmul.f32 %v7698_v43, %v15134_v62  ;;  %v15211_v53 = vmul.f32 %v7700_v28, %v15145_v52 }
0x11de   :  { %16116 = vst [vmem:[#allocation115_spill] sm:$0xff] %v15191_v40  ;;  %v7769_v41 = vmul.f32 %v7705_v48, %v15161_v35  ;;  %v15196_v45 = vadd.f32 %v7415_v56, %v14788_v54  ;;  %v15199_v13 = vadd.f32 %v7576_v18, %v14790_v49  ;;  %v7829_v48 = vmul.f32 %v7765_v3, %v15127_v38 }
0x11df   :  { %v7417_v47 = vpop.f32.mrf.mxu1  ;;  %v7578_v26 = vpop.f32.mrf.mxu0  ;;  %16118 = vst [vmem:[#allocation76_spill] sm:$0xff] %v15205_v46  ;;  %16119 = vst [vmem:[#allocation61_spill] sm:$0xff] %v15211_v53  ;;  %v7831_v56 = vmul.f32 %v7767_v0, %v15137_v2  ;;  %v15216_v18 = vmul.f32 %v7702_v22, %v15153_v12  ;;  %v7706_v17 = vmul.f32 0.044715, %v15181_v63  ;;  %v7771_v23 = vmul.f32 %v7707_v36, %v15171_v1 }
0x11e0   :  { %v7708_v11 = vmul.f32 0.044715, %v15191_v40  ;;  %v15228_v3 = vmul.f32 %v7704_v61, %v15168_v32  ;;  %v7833_v0 = vmul.f32 %v7769_v41, %v15161_v35  ;;  %v7709_v22 = vmul.f32 0.044715, %v15196_v45 }
0x11e1   :  { %16120 = vst [vmem:[#allocation77_spill] sm:$0xff] %v15216_v18  ;;  %v7421_v55 = vpop.f32.mrf.mxu1  ;;  %v7582_v60 = vpop.f32.mrf.mxu0  ;;  %v7711_v18 = vmul.f32 0.044715, %v15199_v13  ;;  %v15234_v36 = vadd.f32 %v7417_v47, %v14792_v59  ;;  %v15241_v61 = vadd.f32 %v7829_v48, %v15127_v38  ;;  %v15244_v41 = vadd.f32 %v7831_v56, %v15137_v2 }
0x11e2   :  { %v15222_v43 = vadd.f32 %v7421_v55, %v14788_v54  ;;  %v15225_v28 = vadd.f32 %v7582_v60, %v14790_v49  ;;  %16121 = vst [vmem:[#allocation63_spill] sm:$0xff] %v15228_v3  ;;  %v7810_v60 = vmul.f32 %v15060_v33, %v15015_v34  ;;  %v15247_v3 = vmul.f32 %v7706_v17, %v15181_v63 }
0x11e3   :  { %v7423_v12 = vpop.f32.mrf.mxu1  ;;  %v7812_v47 = vmul.f32 %v15063_v31, %v15018_v24  ;;  %v7835_v32 = vmul.f32 %v7771_v23, %v15171_v1  ;;  %v15253_v8 = vmul.f32 %v7708_v11, %v15191_v40  ;;  %v15256_v53 = vadd.f32 %v7578_v26, %v14794_v15  ;;  %v7584_v38 = vpop.f32.mrf.mxu0 }
0x11e4   :  { %v7713_v46 = vmul.f32 0.044715, %v15222_v43  ;;  %v7715_v55 = vmul.f32 0.044715, %v15225_v28  ;;  %v7874_v33 = vadd.f32 %v7810_v60, %v15015_v34  ;;  %v15260_v56 = vadd.f32 %v7833_v0, %v15161_v35 }
0x11e5   :  { %16122 = vst [vmem:[#allocation78_spill] sm:$0xff] %v15253_v8  ;;  %v7427_v48 = vpop.f32.mrf.mxu1  ;;  %v7773_v17 = vmul.f32 %v7709_v22, %v15196_v45  ;;  %v7775_v2 = vmul.f32 %v7711_v18, %v15199_v13  ;;  %v7876_v31 = vadd.f32 %v7812_v47, %v15018_v24  ;;  %v7710_v23 = vmul.f32 0.044715, %v15234_v36 }
0x11e6   :  { %v7777_v11 = vmul.f32 %v7713_v46, %v15222_v43  ;;  %v7779_v26 = vmul.f32 %v7715_v55, %v15225_v28  ;;  %v7938_v8 = vmul.f32 0.7978846, %v7874_v33  ;;  %v15269_v34 = vadd.f32 %v7423_v12, %v14792_v59 }
0x11e7   :  { %v7940_v40 = vmul.f32 0.7978846, %v7876_v31  ;;  %v7937_v0 = vmul.f32 0.7978846, %v15078_v19  ;;  %v15273_v22 = vadd.f32 %v7427_v48, %v14788_v54  ;;  %v15276_v18 = vadd.f32 %v7835_v32, %v15171_v1  ;;  %v7588_v19 = vpop.f32.mrf.mxu0 }
0x11e8   :  { %v7712_v24 = vmul.f32 0.044715, %v15256_v53  ;;  %11505 = vtanh.f32 %v7938_v8  ;;  %v15280_v46 = vadd.f32 %v7584_v38, %v14794_v15  ;;  %v7837_v55 = vmul.f32 %v7773_v17, %v15196_v45 }
0x11e9   :  { %v7839_v60 = vmul.f32 %v7775_v2, %v15199_v13  ;;  %11507 = vtanh.f32 %v7940_v40  ;;  %v7939_v12 = vmul.f32 0.7978846, %v15098_v50  ;;  %v7841_v54 = vmul.f32 %v7777_v11, %v15222_v43 }
0x11ea   :  { %11509 = vtanh.f32 %v7937_v0  ;;  %v7717_v32 = vmul.f32 0.044715, %v15273_v22  ;;  %v7814_v47 = vmul.f32 %v15101_v7, %v15035_v10  ;;  %v7843_v8 = vmul.f32 %v7779_v26, %v15225_v28  ;;  %v7429_v0 = vpop.f32.mrf.mxu1 }
0x11eb   :  { %v7714_v38 = vmul.f32 0.044715, %v15269_v34  ;;  %11511 = vtanh.f32 %v7939_v12  ;;  %v7816_v2 = vmul.f32 %v15108_v25, %v15047_v58  ;;  %v15294_v40 = vmul.f32 %v7710_v23, %v15234_v36 }
0x11ec   :  { %v7716_v50 = vmul.f32 0.044715, %v15280_v46  ;;  %v15298_v33 = vadd.f32 %v7588_v19, %v14790_v49  ;;  %v7878_v48 = vadd.f32 %v7814_v47, %v15035_v10  ;;  %v15302_v7 = vadd.f32 %v7837_v55, %v15196_v45  ;;  %v7590_v19 = vpop.f32.mrf.mxu0 }
0x11ed   :  { %v15305_v17 = vmul.f32 %v7712_v24, %v15256_v53  ;;  %v7880_v31 = vadd.f32 %v7816_v2, %v15047_v58  ;;  %v7941_v25 = vmul.f32 0.7978846, %v15114_v14  ;;  %v15310_v23 = vadd.f32 %v7839_v60, %v15199_v13 }
0x11ee   :  { %v15313_v11 = vadd.f32 %v7841_v54, %v15222_v43  ;;  %v7781_v49 = vmul.f32 %v7717_v32, %v15273_v22  ;;  %v7942_v26 = vmul.f32 0.7978846, %v7878_v48  ;;  %v15317_v55 = vadd.f32 %v7843_v8, %v15225_v28 }
0x11ef   :  { %v15320_v24 = vmul.f32 %v7714_v38, %v15269_v34  ;;  %v7944_v12 = vmul.f32 0.7978846, %v7880_v31  ;;  %11513 = vtanh.f32 %v7941_v25  ;;  %v15323_v14 = vmul.f32 %v7716_v50, %v15280_v46 }
0x11f0   :  { %v7719_v60 = vmul.f32 0.044715, %v15298_v33  ;;  %v15327_v54 = vmul.f32 0.5, %v15035_v10  ;;  %11515 = vtanh.f32 %v7942_v26  ;;  %v15330_v32 = vadd.f32 %v7429_v0, %v14792_v59 }
0x11f1   :  { %11517 = vtanh.f32 %v7944_v12  ;;  %v7943_v47 = vmul.f32 0.7978846, %v15117_v21  ;;  %v7818_v8 = vmul.f32 %v15121_v4, %v15053_v51  ;;  %v7845_v38 = vmul.f32 %v7781_v49, %v15273_v22 }
0x11f2   :  { %v15337_v2 = vmul.f32 0.5, %v15047_v58  ;;  %v15340_v50 = vadd.f32 %v7590_v19, %v14794_v15  ;;  %v7820_v10 = vmul.f32 %v15130_v37, %v15070_v29  ;;  %v15345_v48 = vmul.f32 0.5, %v15021_v20 }
0x11f3   :  { %11519 = vtanh.f32 %v7943_v47  ;;  %v7882_v59 = vadd.f32 %v7818_v8, %v15053_v51  ;;  %v7945_v21 = vmul.f32 0.7978846, %v15140_v30  ;;  %v7783_v4 = vmul.f32 %v7719_v60, %v15298_v33 }
0x11f4   :  { %v7884_v31 = vadd.f32 %v7820_v10, %v15070_v29  ;;  %v7947_v58 = vmul.f32 0.7978846, %v15148_v6  ;;  %v7822_v15 = vmul.f32 %v15158_v16, %v15087_v27  ;;  %v7718_v37 = vmul.f32 0.044715, %v15330_v32 }
0x11f5   :  { %v11506_v25 = vpop.eup %11505  ;;  %v7946_v49 = vmul.f32 0.7978846, %v7882_v59  ;;  %11521 = vtanh.f32 %v7945_v21  ;;  %v7824_v20 = vmul.f32 %v15164_v39, %v15105_v5  ;;  %v7720_v6 = vmul.f32 0.044715, %v15340_v50 }
0x11f6   :  { %v11508_v26 = vpop.eup %11507  ;;  %v8066_v0 = vadd.f32 1.0, %v11506_v25  ;;  %v7948_v30 = vmul.f32 0.7978846, %v7884_v31  ;;  %11523 = vtanh.f32 %v7947_v58  ;;  %v7886_v12 = vadd.f32 %v7822_v15, %v15087_v27  ;;  %v16123_v15 = vld [vmem:[#allocation99_spill] sm:$0xff] }
0x11f7   :  { %v11510_v19 = vpop.eup %11509  ;;  %v8068_v60 = vadd.f32 1.0, %v11508_v26  ;;  %11525 = vtanh.f32 %v7946_v49  ;;  %v7888_v16 = vadd.f32 %v7824_v20, %v15105_v5  ;;  %v7949_v58 = vmul.f32 0.7978846, %v15184_v57  ;;  %v16124_v49 = vld [vmem:[#allocation112_spill] sm:$0xff] }
0x11f8   :  { %v11512_v47 = vpop.eup %11511  ;;  %v8130_v8 = vmul.f32 %v8066_v0, %v15056_v9  ;;  %v8065_v10 = vadd.f32 1.0, %v11510_v19  ;;  %11527 = vtanh.f32 %v7948_v30  ;;  %v7950_v59 = vmul.f32 0.7978846, %v7886_v12  ;;  %v16125_v9 = vld [vmem:[#allocation67_spill] sm:$0xff] }
0x11f9   :  { %v8132_v39 = vmul.f32 %v8068_v60, %v15066_v42  ;;  %v8067_v21 = vadd.f32 1.0, %v11512_v47  ;;  %v7952_v31 = vmul.f32 0.7978846, %v7888_v16  ;;  %v15365_v26 = vadd.f32 %v7845_v38, %v15273_v22  ;;  %v16126_v30 = vld [vmem:[#allocation71_spill] sm:$0xff]  ;;  %v16127_v60 = vld [vmem:[#allocation61_spill] sm:$0xff] }
0x11fa   :  { %8327 = vmatprep.mubr.f32.mxu1 %v8130_v8  ;;  %v8129_v25 = vmul.f32 %v8065_v10, %v16123_v15  ;;  %11529 = vtanh.f32 %v7950_v59  ;;  %v7951_v20 = vmul.f32 0.7978846, %v16124_v49  ;;  %v7623_v12 = vmul.f32 0.5, %v16126_v30  ;;  %v16128_v59 = vld [vmem:[#allocation116_spill] sm:$0xff] }
0x11fb   :  { %8472 = vmatprep.mubr.f32.mxu0 %v8132_v39  ;;  %v8131_v0 = vmul.f32 %v8067_v21, %v16125_v9  ;;  %11531 = vtanh.f32 %v7952_v31  ;;  %v7826_v42 = vmul.f32 %v15208_v44, %v15134_v62  ;;  %v15373_v57 = vmul.f32 %v7783_v4, %v15298_v33  ;;  %v16129_v31 = vld [vmem:[#allocation76_spill] sm:$0xff] }
0x11fc   :  { %v11514_v19 = vpop.eup %11513  ;;  %8328 = vmatmul.mubr.f32.gmra.mxu1 %v8129_v25  ;;  %v15376_v38 = vmul.f32 %v7718_v37, %v15330_v32  ;;  %11533 = vtanh.f32 %v7949_v58  ;;  %v7828_v16 = vmul.f32 %v16127_v60, %v15145_v52  ;;  %v7953_v44 = vmul.f32 0.7978846, %v16128_v59  ;;  %v16131_v60 = vld [vmem:[#allocation77_spill] sm:$0xff] }
0x11fd   :  { %v11516_v47 = vpop.eup %11515  ;;  %8473 = vmatmul.mubr.f32.gmra.mxu0 %v8131_v0  ;;  %v8069_v8 = vadd.f32 1.0, %v11514_v19  ;;  %11535 = vtanh.f32 %v7951_v20  ;;  %v7890_v10 = vadd.f32 %v7826_v42, %v15134_v62  ;;  %v15383_v4 = vmul.f32 %v7720_v6, %v15340_v50  ;;  %v16130_v19 = vld [vmem:[#allocation108_spill] sm:$0xff] }
0x11fe   :  { %v11518_v39 = vpop.eup %11517  ;;  %v8070_v21 = vadd.f32 1.0, %v11516_v47  ;;  %v7892_v37 = vadd.f32 %v7828_v16, %v15145_v52  ;;  %v7955_v58 = vmul.f32 0.7978846, %v16129_v31  ;;  %v7626_v25 = vmul.f32 0.5, %v15053_v51 }
0x11ff   :  { %v8072_v15 = vadd.f32 1.0, %v11518_v39  ;;  %v7954_v49 = vmul.f32 0.7978846, %v7890_v10  ;;  %11537 = vtanh.f32 %v7953_v44  ;;  %v8133_v0 = vmul.f32 %v8069_v8, %v15345_v48  ;;  %v16132_v10 = vld [vmem:[#allocation96_spill] sm:$0xff]  ;;  %v16133_v44 = vld [vmem:[#allocation111_spill] sm:$0xff] }
0x1200   :  { %v11520_v9 = vpop.eup %11519  ;;  %v8134_v20 = vmul.f32 %v8070_v21, %v15327_v54  ;;  %v7956_v30 = vmul.f32 0.7978846, %v7892_v37  ;;  %11539 = vtanh.f32 %v7955_v58  ;;  %v7830_v16 = vmul.f32 %v16131_v60, %v16130_v19  ;;  %v16134_v54 = vld [vmem:[#allocation63_spill] sm:$0xff] }
0x1201   :  { %v8136_v42 = vmul.f32 %v8072_v15, %v15337_v2  ;;  %v8071_v6 = vadd.f32 1.0, %v11520_v9  ;;  %11541 = vtanh.f32 %v7954_v49  ;;  %v7628_v51 = vmul.f32 0.5, %v15070_v29  ;;  %v16135_v2 = vld [vmem:[#allocation74_spill] sm:$0xff] }
0x1202   :  { %v11522_v47 = vpop.eup %11521  ;;  %8332 = vmatprep.mubr.f32.mxu1 %v8134_v20  ;;  %v7625_v59 = vmul.f32 0.5, %v16132_v10  ;;  %11543 = vtanh.f32 %v7956_v30  ;;  %v7832_v39 = vmul.f32 %v16134_v54, %v16133_v44  ;;  %v7627_v21 = vmul.f32 0.5, %v16135_v2 }
0x1203   :  { %v11524_v48 = vpop.eup %11523  ;;  %8477 = vmatprep.mubr.f32.mxu0 %v8136_v42  ;;  %8333 = vmatmul.mubr.f32.gmra.mxu1 %v8133_v0  ;;  %v8135_v8 = vmul.f32 %v8071_v6, %v7623_v12  ;;  %v7894_v37 = vadd.f32 %v7830_v16, %v16130_v19  ;;  %v7957_v31 = vmul.f32 0.7978846, %v15241_v61  ;;  %v8073_v15 = vadd.f32 1.0, %v11522_v47  ;;  %v16136_v47 = vld [vmem:[#allocation100_spill] sm:$0xff] }
0x1204   :  { %v11526_v58 = vpop.eup %11525  ;;  %v7630_v29 = vmul.f32 0.5, %v15087_v27  ;;  %v7896_v49 = vadd.f32 %v7832_v39, %v16133_v44  ;;  %v7959_v9 = vmul.f32 0.7978846, %v15244_v41  ;;  %v8075_v42 = vadd.f32 1.0, %v11524_v48 }
0x1205   :  { %v11528_v20 = vpop.eup %11527  ;;  %8478 = vmatmul.mubr.f32.gmra.mxu0 %v8135_v8  ;;  %v8074_v30 = vadd.f32 1.0, %v11526_v58  ;;  %v7958_v0 = vmul.f32 0.7978846, %v7894_v37  ;;  %11545 = vtanh.f32 %v7957_v31  ;;  %v7632_v6 = vmul.f32 0.5, %v15105_v5  ;;  %v16137_v31 = vld [vmem:[#allocation115_spill] sm:$0xff]  ;;  %v16138_v58 = vld [vmem:[#allocation78_spill] sm:$0xff] }
0x1206   :  { %v8076_v12 = vadd.f32 1.0, %v11528_v20  ;;  %v7960_v60 = vmul.f32 0.7978846, %v7896_v49  ;;  %11547 = vtanh.f32 %v7959_v9  ;;  %v7629_v10 = vmul.f32 0.5, %v16136_v47  ;;  %v8738_v49 = vld [vmem:[#allocation19 + $0x78] sm:$0xff] }
0x1207   :  { %v11530_v61 = vpop.eup %11529  ;;  %v8138_v16 = vmul.f32 %v8074_v30, %v7626_v25  ;;  %11549 = vtanh.f32 %v7958_v0  ;;  %v7834_v27 = vmul.f32 %v15247_v3, %v15181_v63  ;;  %v8137_v39 = vmul.f32 %v8073_v15, %v7625_v59  ;;  %v16139_v30 = vld [vmem:[#allocation70_spill] sm:$0xff]  ;;  %11030 = vmatprep.subr.mxu0 %v8738_v49 }
0x1208   :  { %v11532_v41 = vpop.eup %11531  ;;  %v8140_v54 = vmul.f32 %v8076_v12, %v7628_v51  ;;  %v8078_v8 = vadd.f32 1.0, %v11530_v61  ;;  %11551 = vtanh.f32 %v7960_v60  ;;  %v8139_v2 = vmul.f32 %v8075_v42, %v7627_v21  ;;  %v8737_v15 = vld [vmem:[#allocation19 + $0x70] sm:$0xff]  ;;  %11031 = vmatpush3.msra.mxu0 %v8738_v49 }
0x1209   :  { %v11534_v48 = vpop.eup %11533  ;;  %8337 = vmatprep.mubr.f32.mxu1 %v8138_v16  ;;  %v8080_v37 = vadd.f32 1.0, %v11532_v41  ;;  %v7898_v5 = vadd.f32 %v7834_v27, %v15181_v63  ;;  %v7836_v25 = vmul.f32 %v16138_v58, %v16137_v31  ;;  %v7631_v51 = vmul.f32 0.5, %v16139_v30  ;;  %11032 = vmatprep.subr.mxu0 %v8737_v15 }
0x120a   :  { %v11536_v9 = vpop.eup %11535  ;;  %8482 = vmatprep.mubr.f32.mxu0 %v8140_v54  ;;  %8338 = vmatmul.mubr.f32.gmra.mxu1 %v8137_v39  ;;  %v8142_v20 = vmul.f32 %v8078_v8, %v7630_v29  ;;  %v8077_v3 = vadd.f32 1.0, %v11534_v48  ;;  %v7961_v59 = vmul.f32 0.7978846, %v15260_v56  ;;  %v15415_v61 = vadd.f32 %v15373_v57, %v15298_v33  ;;  %v8736_v56 = vld [vmem:[#allocation19 + $0x68] sm:$0xff] }
0x120b   :  { %8483 = vmatmul.mubr.f32.gmra.mxu0 %v8139_v2  ;;  %v8144_v0 = vmul.f32 %v8080_v37, %v7632_v6  ;;  %v8079_v21 = vadd.f32 1.0, %v11536_v9  ;;  %v7962_v42 = vmul.f32 0.7978846, %v7898_v5  ;;  %v7900_v12 = vadd.f32 %v7836_v25, %v16137_v31  ;;  %v16140_v5 = vld [vmem:[#allocation103_spill] sm:$0xff] }
0x120c   :  { %v11538_v60 = vpop.eup %11537  ;;  %8342 = vmatprep.mubr.f32.mxu1 %v8142_v20  ;;  %v8141_v29 = vmul.f32 %v8077_v3, %v7629_v10  ;;  %11553 = vtanh.f32 %v7961_v59  ;;  %v7963_v16 = vmul.f32 0.7978846, %v15276_v18  ;;  %v7634_v27 = vmul.f32 0.5, %v15134_v62  ;;  %11033 = vmatpush3.msra.mxu0 %v8737_v15  ;;  %v8735_v18 = vld [vmem:[#allocation19 + $0x60] sm:$0xff] }
0x120d   :  { %v11540_v47 = vpop.eup %11539  ;;  %8487 = vmatprep.mubr.f32.mxu0 %v8144_v0  ;;  %v8143_v6 = vmul.f32 %v8079_v21, %v7631_v51  ;;  %11555 = vtanh.f32 %v7962_v42  ;;  %v7964_v41 = vmul.f32 0.7978846, %v7900_v12  ;;  %v7636_v57 = vmul.f32 0.5, %v15145_v52  ;;  %11034 = vmatprep.subr.mxu0 %v8736_v56  ;;  %v16141_v52 = vld [vmem:[#allocation75_spill] sm:$0xff] }
0x120e   :  { %v11542_v54 = vpop.eup %11541  ;;  %8343 = vmatmul.mubr.f32.gmra.mxu1 %v8141_v29  ;;  %v8081_v39 = vadd.f32 1.0, %v11538_v60  ;;  %11557 = vtanh.f32 %v7963_v16  ;;  %v7838_v10 = vmul.f32 %v15294_v40, %v15234_v36  ;;  %v8083_v2 = vadd.f32 1.0, %v11540_v47  ;;  %11035 = vmatpush3.msra.mxu0 %v8736_v56  ;;  %v8734_v40 = vld [vmem:[#allocation19 + $0x58] sm:$0xff] }
0x120f   :  { %v11544_v8 = vpop.eup %11543  ;;  %8488 = vmatmul.mubr.f32.gmra.mxu0 %v8143_v6  ;;  %v8082_v48 = vadd.f32 1.0, %v11542_v54  ;;  %11559 = vtanh.f32 %v7964_v41  ;;  %v7840_v62 = vmul.f32 %v15305_v17, %v15256_v53  ;;  %v7633_v58 = vmul.f32 0.5, %v16140_v5  ;;  %11036 = vmatprep.subr.mxu0 %v8735_v18 }
0x1210   :  { %v8084_v37 = vadd.f32 1.0, %v11544_v8  ;;  %v7635_v25 = vmul.f32 0.5, %v16141_v52  ;;  %v7902_v49 = vadd.f32 %v7838_v10, %v15234_v36  ;;  %v7638_v20 = vmul.f32 0.5, %v16130_v19  ;;  %11037 = vmatpush3.msra.mxu0 %v8735_v18 }
0x1211   :  { %v8146_v9 = vmul.f32 %v8082_v48, %v7634_v27  ;;  %v7904_v3 = vadd.f32 %v7840_v62, %v15256_v53  ;;  %v7965_v30 = vmul.f32 0.7978846, %v15302_v7  ;;  %v8145_v59 = vmul.f32 %v8081_v39, %v7633_v58  ;;  %11038 = vmatprep.subr.mxu0 %v8734_v40 }
0x1212   :  { %v11546_v51 = vpop.eup %11545  ;;  %v8148_v17 = vmul.f32 %v8084_v37, %v7636_v57  ;;  %v7966_v15 = vmul.f32 0.7978846, %v7902_v49  ;;  %v7967_v0 = vmul.f32 0.7978846, %v15310_v23  ;;  %v8147_v42 = vmul.f32 %v8083_v2, %v7635_v25  ;;  %11039 = vmatpush3.msra.mxu0 %v8734_v40  ;;  %v16143_v57 = vld [vmem:[#allocation107_spill] sm:$0xff] }
0x1213   :  { %v11548_v21 = vpop.eup %11547  ;;  %8347 = vmatprep.mubr.f32.mxu1 %v8146_v9  ;;  %v7968_v12 = vmul.f32 0.7978846, %v7904_v3  ;;  %11561 = vtanh.f32 %v7965_v30  ;;  %v7842_v19 = vmul.f32 %v15320_v24, %v15269_v34  ;;  %v7640_v7 = vmul.f32 0.5, %v16133_v44  ;;  %v16142_v24 = vld [vmem:[#allocation104_spill] sm:$0xff] }
0x1214   :  { %v11550_v60 = vpop.eup %11549  ;;  %8492 = vmatprep.mubr.f32.mxu0 %v8148_v17  ;;  %8348 = vmatmul.mubr.f32.gmra.mxu1 %v8145_v59  ;;  %v8085_v29 = vadd.f32 1.0, %v11546_v51  ;;  %11563 = vtanh.f32 %v7966_v15  ;;  %v7844_v23 = vmul.f32 %v15323_v14, %v15280_v46  ;;  %v8087_v47 = vadd.f32 1.0, %v11548_v21 }
0x1215   :  { %v11552_v16 = vpop.eup %11551  ;;  %8493 = vmatmul.mubr.f32.gmra.mxu0 %v8147_v42  ;;  %v8086_v56 = vadd.f32 1.0, %v11550_v60  ;;  %11565 = vtanh.f32 %v7968_v12  ;;  %v7906_v6 = vadd.f32 %v7842_v19, %v15269_v34  ;;  %v7637_v41 = vmul.f32 0.5, %v16142_v24 }
0x1216   :  { %v8088_v27 = vadd.f32 1.0, %v11552_v16  ;;  %11567 = vtanh.f32 %v7967_v0  ;;  %v7908_v54 = vadd.f32 %v7844_v23, %v15280_v46  ;;  %v7639_v39 = vmul.f32 0.5, %v16143_v57 }
0x1217   :  { %v8150_v44 = vmul.f32 %v8086_v56, %v7638_v20  ;;  %v7970_v10 = vmul.f32 0.7978846, %v7906_v6  ;;  %v7969_v14 = vmul.f32 0.7978846, %v15313_v11  ;;  %v8149_v8 = vmul.f32 %v8085_v29, %v7637_v41 }
0x1218   :  { %v8152_v18 = vmul.f32 %v8088_v27, %v7640_v7  ;;  %v7972_v48 = vmul.f32 0.7978846, %v7908_v54  ;;  %v7971_v2 = vmul.f32 0.7978846, %v15317_v55  ;;  %v8151_v37 = vmul.f32 %v8087_v47, %v7639_v39 }
0x1219   :  { %v11554_v62 = vpop.eup %11553  ;;  %8352 = vmatprep.mubr.f32.mxu1 %v8150_v44  ;;  %v7642_v5 = vmul.f32 0.5, %v15181_v63  ;;  %11569 = vtanh.f32 %v7970_v10  ;;  %v7846_v58 = vmul.f32 %v15376_v38, %v15330_v32  ;;  %v7644_v25 = vmul.f32 0.5, %v16137_v31 }
0x121a   :  { %v11556_v52 = vpop.eup %11555  ;;  %8497 = vmatprep.mubr.f32.mxu0 %v8152_v18  ;;  %8353 = vmatmul.mubr.f32.gmra.mxu1 %v8149_v8  ;;  %v8089_v11 = vadd.f32 1.0, %v11554_v62  ;;  %11571 = vtanh.f32 %v7972_v48  ;;  %v7848_v49 = vmul.f32 %v15383_v4, %v15340_v50  ;;  %v7973_v9 = vmul.f32 0.7978846, %v15365_v26 }
0x121b   :  { %v11558_v55 = vpop.eup %11557  ;;  %8498 = vmatmul.mubr.f32.gmra.mxu0 %v8151_v37  ;;  %v8090_v40 = vadd.f32 1.0, %v11556_v52  ;;  %11573 = vtanh.f32 %v7969_v14  ;;  %v7910_v63 = vadd.f32 %v7846_v58, %v15330_v32  ;;  %v7641_v38 = vmul.f32 0.5, %v15161_v35 }
0x121c   :  { %v11560_v20 = vpop.eup %11559  ;;  %v8091_v3 = vadd.f32 1.0, %v11558_v55  ;;  %11575 = vtanh.f32 %v7971_v2  ;;  %v7912_v31 = vadd.f32 %v7848_v49, %v15340_v50  ;;  %v7643_v59 = vmul.f32 0.5, %v15171_v1 }
0x121d   :  { %v8154_v30 = vmul.f32 %v8090_v40, %v7642_v5  ;;  %v8092_v51 = vadd.f32 1.0, %v11560_v20  ;;  %v7974_v17 = vmul.f32 0.7978846, %v7910_v63  ;;  %11577 = vtanh.f32 %v7973_v9 }
0x121e   :  { %v8153_v4 = vmul.f32 %v8089_v11, %v7641_v38  ;;  %v7976_v15 = vmul.f32 0.7978846, %v7912_v31  ;;  %v7975_v0 = vmul.f32 0.7978846, %v15415_v61  ;;  %v8155_v35 = vmul.f32 %v8091_v3, %v7643_v59  ;;  %v16145_v38 = vld [vmem:[#allocation47_spill] sm:$0xff]  ;;  %v16146_v3 = vld [vmem:[#allocation54_spill] sm:$0xff] }
0x121f   :  { %8357 = vmatprep.mubr.f32.mxu1 %v8154_v30  ;;  %v8156_v21 = vmul.f32 %v8092_v51, %v7644_v25  ;;  %11579 = vtanh.f32 %v7974_v17  ;;  %v7646_v60 = vmul.f32 0.5, %v15234_v36  ;;  %v7648_v29 = vmul.f32 0.5, %v15256_v53  ;;  %v16149_v31 = vld [vmem:[#allocation62_spill] sm:$0xff]  ;;  %v16151_v30 = vld [vmem:[#allocation87_spill] sm:$0xff]  ;;  %v16152_v17 = vld [vmem:[#allocation44_spill] sm:$0xff] }
0x1220   :  { %v11562_v26 = vpop.eup %11561  ;;  %8358 = vmatmul.mubr.f32.gmra.mxu1 %v8153_v4  ;;  %11581 = vtanh.f32 %v7976_v15  ;;  %v7645_v23 = vmul.f32 0.5, %v15196_v45  ;;  %v7647_v56 = vmul.f32 0.5, %v15199_v13  ;;  %v7650_v36 = vmul.f32 0.5, %v15269_v34  ;;  %v8733_v51 = vld [vmem:[#allocation19 + $0x50] sm:$0xff]  ;;  %v16153_v4 = vld [vmem:[#allocation88_spill] sm:$0xff]  ;;  %v16154_v59 = vld [vmem:[#allocation59_spill] sm:$0xff] }
0x1221   :  { %v11564_v42 = vpop.eup %11563  ;;  %8502 = vmatprep.mubr.f32.mxu0 %v8156_v21  ;;  %v8093_v12 = vadd.f32 1.0, %v11562_v26  ;;  %11583 = vtanh.f32 %v7975_v0  ;;  %v7652_v53 = vmul.f32 0.5, %v15280_v46  ;;  %v7649_v13 = vmul.f32 0.5, %v15222_v43  ;;  %11040 = vmatprep.subr.mxu0 %v8733_v51  ;;  %v16155_v15 = vld [vmem:[#allocation91_spill] sm:$0xff]  ;;  %v8732_v0 = vld [vmem:[#allocation19 + $0x48] sm:$0xff]  ;;  %v16157_v26 = vld [vmem:[#allocation92_spill] sm:$0xff] }
0x1222   :  { %v11566_v19 = vpop.eup %11565  ;;  %8503 = vmatmul.mubr.f32.gmra.mxu0 %v8155_v35  ;;  %v8094_v7 = vadd.f32 1.0, %v11564_v42  ;;  %v7651_v48 = vmul.f32 0.5, %v15225_v28  ;;  %v7654_v46 = vmul.f32 0.5, %v15330_v32  ;;  %v7656_v43 = vmul.f32 0.5, %v15340_v50  ;;  %v16144_v32 = vld [vmem:[#allocation46_spill] sm:$0xff]  ;;  %v16156_v21 = vld [vmem:[#allocation55_spill] sm:$0xff] }
0x1223   :  { %v11568_v1 = vpop.eup %11567  ;;  %v8096_v61 = vadd.f32 1.0, %v11566_v19  ;;  %v8157_v27 = vmul.f32 %v8093_v12, %v7645_v23  ;;  %v7653_v49 = vmul.f32 0.5, %v15273_v22  ;;  %v7655_v55 = vmul.f32 0.5, %v15298_v33  ;;  %v16147_v50 = vld [vmem:[#allocation50_spill] sm:$0xff]  ;;  %v16150_v33 = vld [vmem:[#allocation48_spill] sm:$0xff]  ;;  %11041 = vmatpush3.msra.mxu0 %v8733_v51  ;;  %v16159_v12 = vld [vmem:[#allocation95_spill] sm:$0xff] }
0x1224   :  { %v8158_v16 = vmul.f32 %v8094_v7, %v7646_v60  ;;  %v8095_v47 = vadd.f32 1.0, %v11568_v1  ;;  %v16148_v22 = vld [vmem:[#allocation58_spill] sm:$0xff]  ;;  %11042 = vmatprep.subr.mxu0 %v8732_v0  ;;  %v16158_v35 = vld [vmem:[#allocation68_spill] sm:$0xff]  ;;  %v8730_v19 = vld [vmem:[#allocation19 + $0x38] sm:$0xff] }
0x1225   :  { %v8160_v6 = vmul.f32 %v8096_v61, %v7648_v29  ;;  %11043 = vmatpush3.msra.mxu0 %v8732_v0  ;;  %v8731_v42 = vld [vmem:[#allocation19 + $0x40] sm:$0xff]  ;;  %v8729_v60 = vld [vmem:[#allocation19 + $0x30] sm:$0xff]  ;;  %v8728_v29 = vld [vmem:[#allocation19 + $0x28] sm:$0xff] }
0x1226   :  { %v11570_v24 = vpop.eup %11569  ;;  %8362 = vmatprep.mubr.f32.mxu1 %v8158_v16  ;;  %v8159_v41 = vmul.f32 %v8095_v47, %v7647_v56  ;;  %11044 = vmatprep.subr.mxu0 %v8731_v42  ;;  %v8727_v23 = vld [vmem:[#allocation19 + $0x20] sm:$0xff]  ;;  %v8726_v16 = vld [vmem:[#allocation19 + $0x18] sm:$0xff]  ;;  %v8725_v47 = vld [vmem:[#allocation19 + $0x10] sm:$0xff] }
0x1227   :  { %v11572_v54 = vpop.eup %11571  ;;  %8507 = vmatprep.mubr.f32.mxu0 %v8160_v6  ;;  %8363 = vmatmul.mubr.f32.gmra.mxu1 %v8157_v27  ;;  %v8098_v44 = vadd.f32 1.0, %v11570_v24 }
0x1228   :  { %v11574_v57 = vpop.eup %11573  ;;  %8508 = vmatmul.mubr.f32.gmra.mxu0 %v8159_v41  ;;  %v8100_v45 = vadd.f32 1.0, %v11572_v54  ;;  %v8724_v41 = vld [vmem:[#allocation19 + $0x8] sm:$0xff] }
0x1229   :  { %v11576_v39 = vpop.eup %11575  ;;  %v8162_v10 = vmul.f32 %v8098_v44, %v7650_v36  ;;  %v8097_v14 = vadd.f32 1.0, %v11574_v57  ;;  %11045 = vmatpush3.msra.mxu0 %v8731_v42  ;;  %v8723_v57 = vld [vmem:[#allocation19] sm:$0xff] }
0x122a   :  { %v11578_v18 = vpop.eup %11577  ;;  %v8164_v8 = vmul.f32 %v8100_v45, %v7652_v53  ;;  %v8099_v2 = vadd.f32 1.0, %v11576_v39  ;;  %11046 = vmatprep.subr.mxu0 %v8730_v19 }
0x122b   :  { %8367 = vmatprep.mubr.f32.mxu1 %v8162_v10  ;;  %v8161_v62 = vmul.f32 %v8097_v14, %v7649_v13  ;;  %v8101_v5 = vadd.f32 1.0, %v11578_v18  ;;  %11047 = vmatpush3.msra.mxu0 %v8730_v19 }
0x122c   :  { %v11580_v37 = vpop.eup %11579  ;;  %8512 = vmatprep.mubr.f32.mxu0 %v8164_v8  ;;  %v8163_v34 = vmul.f32 %v8099_v2, %v7651_v48  ;;  %11048 = vmatprep.subr.mxu0 %v8729_v60 }
0x122d   :  { %v11582_v58 = vpop.eup %11581  ;;  %8368 = vmatmul.mubr.f32.gmra.mxu1 %v8161_v62  ;;  %v8102_v52 = vadd.f32 1.0, %v11580_v37  ;;  %v8165_v9 = vmul.f32 %v8101_v5, %v7653_v49  ;;  %11049 = vmatpush3.msra.mxu0 %v8729_v60 }
0x122e   :  { %v11584_v25 = vpop.eup %11583  ;;  %8513 = vmatmul.mubr.f32.gmra.mxu0 %v8163_v34  ;;  %v8104_v11 = vadd.f32 1.0, %v11582_v58  ;;  %11050 = vmatprep.subr.mxu0 %v8728_v29 }
0x122f   :  { %v8166_v28 = vmul.f32 %v8102_v52, %v7654_v46  ;;  %v8103_v40 = vadd.f32 1.0, %v11584_v25  ;;  %11051 = vmatpush3.msra.mxu0 %v8728_v29 }
0x1230   :  { %v8168_v63 = vmul.f32 %v8104_v11, %v7656_v43  ;;  %11052 = vmatprep.subr.mxu0 %v8727_v23 }
0x1231   :  { %8372 = vmatprep.mubr.f32.mxu1 %v8166_v28  ;;  %v8167_v20 = vmul.f32 %v8103_v40, %v7655_v55  ;;  %11053 = vmatpush3.msra.mxu0 %v8727_v23 }
0x1232   :  { %8517 = vmatprep.mubr.f32.mxu0 %v8168_v63  ;;  %8373 = vmatmul.mubr.f32.gmra.mxu1 %v8165_v9 }
0x1233   :  { %8518 = vmatmul.mubr.f32.gmra.mxu0 %v8167_v20  ;;  %11006 = vmatprep.mubr.f32.mxu1 %v16144_v32 }
0x1234   :  { %11054 = vmatprep.subr.mxu0 %v8726_v16 }
0x1235   :  { %11055 = vmatpush3.msra.mxu0 %v8726_v16 }
0x1236   :  { %11007 = vmatmul.mubr.f32.vlgmr.msra.gmra.mxu1 %v16145_v38  ;;  %11056 = vmatprep.subr.mxu0 %v8725_v47 }
0x1237   :  { %11009 = vmatprep.mubr.f32.mxu1 %v16146_v3  ;;  %11057 = vmatpush3.msra.mxu0 %v8725_v47  ;;  %v9276_v47 = vld [vmem:[%s15661_s22] ss:$0 sm:$0xff] }
0x1238   :  { %11058 = vmatprep.subr.mxu0 %v8724_v41 }
0x1239   :  { %11059 = vmatpush3.msra.mxu0 %v8724_v41 }
0x123a   :  { %11010 = vmatmul.mubr.f32.gmra.mxu1 %v16147_v50  ;;  %11060 = vmatprep.subr.mxu0 %v8723_v57 }
0x123b   :  { %11012 = vmatprep.mubr.f32.mxu1 %v16148_v22  ;;  %11061 = vmatpush3.msra.mxu0 %v8723_v57 }
0x123e   :  { %11013 = vmatmul.mubr.f32.gmra.mxu1 %v16149_v31 }
0x123f   :  { %11015 = vmatprep.mubr.f32.mxu1 %v16150_v33 }
0x1242   :  { %11016 = vmatmul.mubr.f32.gmra.mxu1 %v16151_v30 }
0x1243   :  { %11018 = vmatprep.mubr.f32.mxu1 %v16152_v17 }
0x1246   :  { %11019 = vmatmul.mubr.f32.gmra.mxu1 %v16153_v4 }
0x1247   :  { %11021 = vmatprep.mubr.f32.mxu1 %v16154_v59 }
0x124a   :  { %11022 = vmatmul.mubr.f32.gmra.mxu1 %v16155_v15 }
0x124b   :  { %11024 = vmatprep.mubr.f32.mxu1 %v16156_v21 }
0x124e   :  { %11025 = vmatmul.mubr.f32.gmra.mxu1 %v16157_v26 }
0x124f   :  { %11027 = vmatprep.mubr.f32.mxu1 %v16158_v35 }
0x1252   :  { %11028 = vmatmul.mubr.f32.gmra.mxu1 %v16159_v12 }
0x125e   :  { %v9854_v7 = vpop.f32.mrf.mxu1 }
0x1260   :  { %v9855_v1 = vpop.f32.mrf.mxu1 }
0x1261   :  { %v15482_v61 = vadd.f32 %v9855_v1, %v9854_v7 }
0x1272   :  { %v9857_v56 = vpop.f32.mrf.mxu1 }
0x1274   :  { %v9858_v6 = vpop.f32.mrf.mxu1 }
0x1275   :  { %v15484_v27 = vadd.f32 %v9858_v6, %v9857_v56 }
0x1277   :  { %v9860_v24 = vpop.f32.mrf.mxu1 }
0x1279   :  { %v9861_v54 = vpop.f32.mrf.mxu1 }
0x127a   :  { %v15486_v36 = vadd.f32 %v9861_v54, %v9860_v24 }
0x127b   :  { %v9863_v44 = vpop.f32.mrf.mxu1 }
0x127d   :  { %v9864_v53 = vpop.f32.mrf.mxu1 }
0x127e   :  { %v15488_v45 = vadd.f32 %v9864_v53, %v9863_v44 }
0x127f   :  { %v9866_v39 = vpop.f32.mrf.mxu1 }
0x1281   :  { %v9867_v10 = vpop.f32.mrf.mxu1 }
0x1282   :  { %v15490_v13 = vadd.f32 %v9867_v10, %v9866_v39 }
0x1283   :  { %v9869_v14 = vpop.f32.mrf.mxu1 }
0x1285   :  { %v9870_v18 = vpop.f32.mrf.mxu1 }
0x1286   :  { %v15492_v8 = vadd.f32 %v9870_v18, %v9869_v14 }
0x12bc   :  { %v9872_v48 = vpop.f32.mrf.mxu1 }
0x12be   :  { %v9873_v2 = vpop.f32.mrf.mxu1 }
0x12bf   :  { %v15494_v62 = vadd.f32 %v9873_v2, %v9872_v48 }
0x12c3   :  { %v9875_v37 = vpop.f32.mrf.mxu1 }
0x12c5   :  { %v9876_v34 = vpop.f32.mrf.mxu1 }
0x12c6   :  { %v15496_v5 = vadd.f32 %v9876_v34, %v9875_v37 }
0x12ca   :  { %v9878_v58 = vpop.f32.mrf.mxu1 }
0x12cc   :  { %v9879_v46 = vpop.f32.mrf.mxu1 }
0x12cd   :  { %v15498_v52 = vadd.f32 %v9879_v46, %v9878_v58 }
0x12ce   :  { %v9881_v25 = vpop.f32.mrf.mxu1 }
0x12d0   :  { %v9882_v43 = vpop.f32.mrf.mxu1 }
0x12d1   :  { %v15500_v11 = vadd.f32 %v9882_v43, %v9881_v25 }
0x12d4   :  { %v9884_v49 = vpop.f32.mrf.mxu1 }
0x12d6   :  { %v9885_v28 = vpop.f32.mrf.mxu1 }
0x12d7   :  { %v15502_v55 = vadd.f32 %v9885_v28, %v9884_v49 }
0x12da   :  { %v9887_v40 = vpop.f32.mrf.mxu1 }
0x12dc   :  { %v9888_v63 = vpop.f32.mrf.mxu1 }
0x12dd   :  { %v15504_v9 = vadd.f32 %v9888_v63, %v9887_v40 }
0x12e0   :  { %v9890_v20 = vpop.f32.mrf.mxu1 }
0x12e2   :  { %v9891_v51 = vpop.f32.mrf.mxu1 }
0x12e3   :  { %v15506_v0 = vadd.f32 %v9891_v51, %v9890_v20 }
0x12e5   :  { %16160 = vst [vmem:[#allocation60_spill] sm:$0xff] %v15506_v0 }
0x12e7   :  { %v9893_v42 = vpop.f32.mrf.mxu1 }
0x12e9   :  { %v9894_v19 = vpop.f32.mrf.mxu1 }
0x12ea   :  { %v15508_v60 = vadd.f32 %v9894_v19, %v9893_v42 }
0x12ed   :  { %v9896_v7 = vpop.f32.mrf.mxu1 }
0x12ef   :  { %v9897_v1 = vpop.f32.mrf.mxu1 }
0x12f0   :  { %v15510_v29 = vadd.f32 %v9897_v1, %v9896_v7 }
0x12f2   :  { %16161 = vst [vmem:[#allocation51_spill] sm:$0xff] %v15510_v29  ;;  %v9899_v23 = vpop.f32.mrf.mxu1  ;;  %v15546_v29 = vld [vmem:[%s15659_s20] ss:$0 sm:$0xff]  ;;  %s11857_s20 = smov [#allocation20]  }
0x12f4   :  { %v9900_v16 = vpop.f32.mrf.mxu1 }
0x12f5   :  { %v15512_v56 = vadd.f32 %v9900_v16, %v9899_v23 }
0x12f6   :  { %v11008_v6 = vpop.f32.mrf.mxu1 }
0x12f7   :  { %16162 = vst [vmem:[#allocation90_spill] sm:$0xff] %v15512_v56  ;;  %v8634_v24 = vadd.f32 %v11008_v6, %v9276_v47 }
0x12f8   :  { %v8628_v41 = vpop.f32.mrf.mxu1 }
0x12f9   :  { %v8629_v54 = vadd.f32 %v9276_v47, %v8628_v41  ;;  %v8708_v53 = vmax.f32 %v8634_v24, 0.0 }
0x12fa   :  { %v11011_v44 = vpop.f32.mrf.mxu1 }
0x12fb   :  { %v8707_v57 = vmax.f32 %v8629_v54, 0.0  ;;  %v8644_v39 = vadd.f32 %v11011_v44, %v9276_v47 }
0x12fc   :  { %v8638_v10 = vpop.f32.mrf.mxu1 }
0x12fd   :  { %v8639_v14 = vadd.f32 %v9276_v47, %v8638_v10  ;;  %11062 = vmatprep.mubr.f32.mxu0 %v8707_v57  ;;  %v8710_v2 = vmax.f32 %v8644_v39, 0.0 }
0x12fe   :  { %v11014_v18 = vpop.f32.mrf.mxu1  ;;  %11063 = vmatmul.mubr.f32.vlgmr.msra.gmra.mxu0 %v8708_v53 }
0x12ff   :  { %v8709_v48 = vmax.f32 %v8639_v14, 0.0  ;;  %v8654_v37 = vadd.f32 %v11014_v18, %v9276_v47 }
0x1300   :  { %v8648_v34 = vpop.f32.mrf.mxu1 }
0x1301   :  { %v8649_v58 = vadd.f32 %v9276_v47, %v8648_v34  ;;  %11065 = vmatprep.mubr.f32.mxu0 %v8709_v48  ;;  %v8712_v43 = vmax.f32 %v8654_v37, 0.0 }
0x1302   :  { %v11017_v46 = vpop.f32.mrf.mxu1  ;;  %11066 = vmatmul.mubr.f32.gmra.mxu0 %v8710_v2 }
0x1303   :  { %v8711_v25 = vmax.f32 %v8649_v58, 0.0  ;;  %v8664_v49 = vadd.f32 %v11017_v46, %v9276_v47 }
0x1304   :  { %v8658_v28 = vpop.f32.mrf.mxu1 }
0x1305   :  { %v8659_v40 = vadd.f32 %v9276_v47, %v8658_v28  ;;  %11068 = vmatprep.mubr.f32.mxu0 %v8711_v25  ;;  %v8714_v51 = vmax.f32 %v8664_v49, 0.0  ;;  %v9934_v25 = vpop.f32.mrf.mxu0 }
0x1306   :  { %v11020_v63 = vpop.f32.mrf.mxu1  ;;  %11069 = vmatmul.mubr.f32.gmra.mxu0 %v8712_v43 }
0x1307   :  { %v8713_v20 = vmax.f32 %v8659_v40, 0.0  ;;  %v8674_v42 = vadd.f32 %v11020_v63, %v9276_v47  ;;  %v9935_v43 = vpop.f32.mrf.mxu0 }
0x1308   :  { %v8668_v19 = vpop.f32.mrf.mxu1  ;;  %v9936_v35 = vadd.f32 %v9935_v43, %v9934_v25  ;;  %v7170_v25 = vadd.f32 %v15546_v29, %v16145_v38 }
0x1309   :  { %v8669_v7 = vadd.f32 %v9276_v47, %v8668_v19  ;;  %11071 = vmatprep.mubr.f32.mxu0 %v8713_v20  ;;  %v8716_v16 = vmax.f32 %v8674_v42, 0.0  ;;  %v9937_v49 = vpop.f32.mrf.mxu0 }
0x130a   :  { %v11023_v1 = vpop.f32.mrf.mxu1  ;;  %11072 = vmatmul.mubr.f32.gmra.mxu0 %v8714_v51 }
0x130b   :  { %v8715_v23 = vmax.f32 %v8669_v7, 0.0  ;;  %v8684_v6 = vadd.f32 %v11023_v1, %v9276_v47  ;;  %v9938_v28 = vpop.f32.mrf.mxu0 }
0x130c   :  { %v8678_v24 = vpop.f32.mrf.mxu1 }
0x130d   :  { %v8679_v41 = vadd.f32 %v9276_v47, %v8678_v24  ;;  %11074 = vmatprep.mubr.f32.mxu0 %v8715_v23  ;;  %v8718_v57 = vmax.f32 %v8684_v6, 0.0  ;;  %v9940_v40 = vpop.f32.mrf.mxu0 }
0x130e   :  { %v11026_v54 = vpop.f32.mrf.mxu1  ;;  %11075 = vmatmul.mubr.f32.gmra.mxu0 %v8716_v16 }
0x130f   :  { %v8717_v44 = vmax.f32 %v8679_v41, 0.0  ;;  %v8694_v53 = vadd.f32 %v11026_v54, %v9276_v47  ;;  %v9941_v63 = vpop.f32.mrf.mxu0 }
0x1310   :  { %v8688_v39 = vpop.f32.mrf.mxu1 }
0x1311   :  { %v8689_v10 = vadd.f32 %v9276_v47, %v8688_v39  ;;  %11077 = vmatprep.mubr.f32.mxu0 %v8717_v44  ;;  %v8720_v48 = vmax.f32 %v8694_v53, 0.0  ;;  %v9943_v20 = vpop.f32.mrf.mxu0 }
0x1312   :  { %v11029_v14 = vpop.f32.mrf.mxu1  ;;  %11078 = vmatmul.mubr.f32.gmra.mxu0 %v8718_v57 }
0x1313   :  { %v8719_v18 = vmax.f32 %v8689_v10, 0.0  ;;  %v8704_v2 = vadd.f32 %v11029_v14, %v9276_v47  ;;  %v9944_v51 = vpop.f32.mrf.mxu0 }
0x1314   :  { %v8698_v37 = vpop.f32.mrf.mxu1  ;;  %v9945_v56 = vadd.f32 %v9944_v51, %v9943_v20  ;;  %v7169_v20 = vadd.f32 %v15546_v29, %v16144_v32 }
0x1315   :  { %v8699_v34 = vadd.f32 %v9276_v47, %v8698_v37  ;;  %11080 = vmatprep.mubr.f32.mxu0 %v8719_v18  ;;  %v8722_v46 = vmax.f32 %v8704_v2, 0.0  ;;  %v9946_v42 = vpop.f32.mrf.mxu0 }
0x1316   :  { %11081 = vmatmul.mubr.f32.gmra.mxu0 %v8720_v48  ;;  %v8460_v0 = vadd.f32 %v9945_v56, %v15488_v45 }
0x1317   :  { %v8721_v58 = vmax.f32 %v8699_v34, 0.0  ;;  %v9947_v19 = vpop.f32.mrf.mxu0 }
0x1318   :  { %v9948_v51 = vadd.f32 %v9947_v19, %v9946_v42 }
0x1319   :  { %11083 = vmatprep.mubr.f32.mxu0 %v8721_v58  ;;  %v9949_v7 = vpop.f32.mrf.mxu0  ;;  %v9939_v58 = vadd.f32 %v9938_v28, %v9937_v49  ;;  %v8445_v49 = vadd.f32 %v9936_v35, %v15482_v61  ;;  %v9942_v28 = vadd.f32 %v9941_v63, %v9940_v40 }
0x131a   :  { %11084 = vmatmul.mubr.f32.gmra.mxu0 %v8722_v46 }
0x131b   :  { %v9950_v1 = vpop.f32.mrf.mxu0  ;;  %v8450_v12 = vadd.f32 %v9939_v58, %v15484_v27  ;;  %v8455_v35 = vadd.f32 %v9942_v28, %v15486_v36  ;;  %v8523_v40 = vadd.f32 %v8445_v49, %v7169_v20 }
0x131c   :  { %v9951_v43 = vadd.f32 %v9950_v1, %v9949_v7 }
0x131d   :  { %v9952_v23 = vpop.f32.mrf.mxu0  ;;  %v8524_v26 = vadd.f32 %v8450_v12, %v7170_v25  ;;  %v7171_v12 = vadd.f32 %v15546_v29, %v16146_v3 }
0x131e   :  { %v8470_v63 = vadd.f32 %v9951_v43, %v15492_v8 }
0x131f   :  { %v9953_v47 = vpop.f32.mrf.mxu0  ;;  %v8525_v8 = vadd.f32 %v8455_v35, %v7171_v12 }
0x1320   :  { %v9954_v36 = vadd.f32 %v9953_v47, %v9952_v23  ;;  %v7176_v23 = vadd.f32 %v15546_v29, %v16151_v30 }
0x1321   :  { %v9955_v16 = vpop.f32.mrf.mxu0 }
0x1322   :  { %v8475_v47 = vadd.f32 %v9954_v36, %v15494_v62 }
0x1323   :  { %v9956_v6 = vpop.f32.mrf.mxu0 }
0x1324   :  { %v9957_v56 = vadd.f32 %v9956_v6, %v9955_v16  ;;  %v7173_v16 = vadd.f32 %v15546_v29, %v16148_v22 }
0x1325   :  { %v15517_v24 = vpop.f32.mrf.mxu0 }
0x1327   :  { %v15519_v41 = vpop.f32.mrf.mxu0 }
0x1328   :  { %v9960_v25 = vadd.f32 %v15519_v41, %v15517_v24 }
0x1329   :  { %v9961_v54 = vpop.f32.mrf.mxu0 }
0x132b   :  { %v9962_v44 = vpop.f32.mrf.mxu0 }
0x132d   :  { %v15521_v57 = vpop.f32.mrf.mxu0 }
0x132f   :  { %v15523_v53 = vpop.f32.mrf.mxu0 }
0x1330   :  { %v9966_v24 = vadd.f32 %v15523_v53, %v15521_v57 }
0x1331   :  { %v15525_v39 = vpop.f32.mrf.mxu0 }
0x1333   :  { %v15527_v10 = vpop.f32.mrf.mxu0 }
0x1335   :  { %v15529_v14 = vpop.f32.mrf.mxu0 }
0x1337   :  { %v15531_v18 = vpop.f32.mrf.mxu0 }
0x1339   :  { %v15533_v48 = vpop.f32.mrf.mxu0 }
0x133b   :  { %v15535_v2 = vpop.f32.mrf.mxu0 }
0x133c   :  { %v9975_v57 = vadd.f32 %v15535_v2, %v15533_v48 }
0x133d   :  { %v15537_v37 = vpop.f32.mrf.mxu0 }
0x133e   :  { %16163 = vst [vmem:[#allocation64_spill] sm:$0xff] %v15537_v37  ;;  %v15554_v37 = vld [vmem:[%s15663_s24] ss:$0 sm:$0xff]  ;;  %s8928_s24 = sshll.u32 %s11857_s20, 4  ;;  %s8929_s24 = int_to_ptr.vmem [resolvable:$true] %s8928_s24 }
0x133f   :  { %v15539_v34 = vpop.f32.mrf.mxu0  ;;  %s11805_s21 = scalar_lea.vmem %s8929_s24, 2048  ;;  %p11810_p0 = scmp.lt.s32.totalorder %s8929_s24, %s8929_s24 }
0x1340   :  { %16164 = vst [vmem:[#allocation94_spill] sm:$0xff] %v15539_v34  ;;  %p11806_p13 = scmp.ne.s32.totalorder %s8929_s24, %s11805_s21  ;;  %p11811_p1 = scmp.lt.s32.totalorder %s11805_s21, %s11805_s21 }
0x1341   :  { %v15541_v46 = vpop.f32.mrf.mxu0 }
0x1342   :  { %p11812_p2 = por %p11811_p1, %p11810_p0 }
0x1343   :  { %v15549_v21 = vpop.f32.mrf.mxu0 }
0x1344   :  { %16165 = vst [vmem:[#allocation73_spill] sm:$0xff] %v15549_v21  ;;  %v7172_v21 = vadd.f32 %v15546_v29, %v16147_v50  ;;  %v8465_v50 = vadd.f32 %v9948_v51, %v15490_v13  ;;  %v7178_v51 = vadd.f32 %v15546_v29, %v16153_v4  ;;  %p11813_p3 = pnand %p11812_p2, %p11806_p13 }
0x1346   :  { %v8526_v42 = vadd.f32 %v8460_v0, %v7172_v21  ;;  %v8480_v21 = vadd.f32 %v9957_v56, %v15496_v5  ;;  %v9963_v0 = vadd.f32 %v9962_v44, %v9961_v54  ;;  %v8527_v28 = vadd.f32 %v8465_v50, %v7173_v16  ;;  %v16167_v50 = vld [vmem:[#allocation92_spill] sm:$0xff]  ;;  %v16172_v16 = vld [vmem:[#allocation90_spill] sm:$0xff] }
0x1347   :  { %v9969_v5 = vadd.f32 %v15527_v10, %v15525_v39  ;;  %v7175_v44 = vadd.f32 %v15546_v29, %v16150_v33  ;;  %v8485_v39 = vadd.f32 %v9960_v25, %v15498_v52  ;;  %v8495_v52 = vadd.f32 %v9966_v24, %v15502_v55 }
0x1348   :  { %v8530_v20 = vadd.f32 %v8480_v21, %v7176_v23  ;;  %v7179_v56 = vadd.f32 %v15546_v29, %v16154_v59 }
0x134b   :  { %v16166_v55 = vld [vmem:[#allocation73_spill] sm:$0xff] }
0x13be   :  { %v11064_v34 = vpop.f32.mrf.mxu0 }
0x13bf   :  { %v8818_v27 = vadd.f32 %v11064_v34, %v15554_v37 }
0x13c0   :  { %v8812_v58 = vpop.f32.mrf.mxu0 }
0x13c1   :  { %v8892_v61 = vadd.f32 %v8818_v27, %v8524_v26  ;;  %v8813_v38 = vadd.f32 %v15554_v37, %v8812_v58  ;;  %v7174_v26 = vadd.f32 %v15546_v29, %v16149_v31  ;;  %v8490_v27 = vadd.f32 %v9963_v0, %v15500_v11 }
0x13c2   :  { %v11067_v45 = vpop.f32.mrf.mxu0  ;;  %v8529_v58 = vadd.f32 %v8475_v47, %v7175_v44  ;;  %v8500_v11 = vadd.f32 %v9969_v5, %v15504_v9  ;;  %v9972_v9 = vadd.f32 %v15531_v18, %v15529_v14  ;;  %v8533_v14 = vadd.f32 %v8495_v52, %v7179_v56  ;;  %v16174_v47 = vld [vmem:[#allocation51_spill] sm:$0xff] }
0x13c3   :  { %8908 = vst [vmem:[#allocation20 + $0x8] sm:$0xff] %v8892_v61  ;;  %v8891_v32 = vadd.f32 %v8813_v38, %v8523_v40  ;;  %v8828_v19 = vadd.f32 %v11067_v45, %v15554_v37  ;;  %v8528_v49 = vadd.f32 %v8470_v63, %v7174_v26  ;;  %v7177_v61 = vadd.f32 %v15546_v29, %v16152_v17  ;;  %v16168_v26 = vld [vmem:[#allocation60_spill] sm:$0xff] }
0x13c4   :  { %v8822_v7 = vpop.f32.mrf.mxu0  ;;  %v8532_v40 = vadd.f32 %v8490_v27, %v7178_v51  ;;  %v7180_v63 = vadd.f32 %v15546_v29, %v16155_v15  ;;  %v8505_v36 = vadd.f32 %v9972_v9, %v16168_v26 }
0x13c5   :  { %8907 = vst [vmem:[#allocation20] sm:$0xff] %v8891_v32  ;;  %v8894_v1 = vadd.f32 %v8828_v19, %v8526_v42  ;;  %v8823_v34 = vadd.f32 %v15554_v37, %v8822_v7  ;;  %v8531_v17 = vadd.f32 %v8485_v39, %v7177_v61  ;;  %v8510_v32 = vadd.f32 %v9975_v57, %v15508_v60 }
0x13c6   :  { %v11070_v3 = vpop.f32.mrf.mxu0  ;;  %v8534_v48 = vadd.f32 %v8500_v11, %v7180_v63  ;;  %v9981_v42 = vadd.f32 %v16166_v55, %v15541_v46  ;;  %v7182_v7 = vadd.f32 %v15546_v29, %v16167_v50  ;;  %v16171_v46 = vld [vmem:[#allocation55_spill] sm:$0xff] }
0x13c7   :  { %8910 = vst [vmem:[#allocation20 + $0x18] sm:$0xff] %v8894_v1  ;;  %v8893_v13 = vadd.f32 %v8823_v34, %v8525_v8  ;;  %v8838_v6 = vadd.f32 %v11070_v3, %v15554_v37  ;;  %v16169_v1 = vld [vmem:[#allocation64_spill] sm:$0xff]  ;;  %v16170_v8 = vld [vmem:[#allocation94_spill] sm:$0xff]  ;;  %v7181_v3 = vadd.f32 %v15546_v29, %v16171_v46 }
0x13c8   :  { %v8832_v31 = vpop.f32.mrf.mxu0  ;;  %v9978_v34 = vadd.f32 %v16170_v8, %v16169_v1  ;;  %v8520_v21 = vadd.f32 %v9981_v42, %v16172_v16 }
0x13c9   :  { %8909 = vst [vmem:[#allocation20 + $0x10] sm:$0xff] %v8893_v13  ;;  %v8896_v43 = vadd.f32 %v8838_v6, %v8528_v49  ;;  %v8833_v22 = vadd.f32 %v15554_v37, %v8832_v31  ;;  %v8536_v13 = vadd.f32 %v8510_v32, %v7182_v7  ;;  %v16173_v31 = vld [vmem:[#allocation95_spill] sm:$0xff] }
0x13ca   :  { %v11073_v54 = vpop.f32.mrf.mxu0  ;;  %v7184_v23 = vadd.f32 %v15546_v29, %v16173_v31  ;;  %v8515_v25 = vadd.f32 %v9978_v34, %v16174_v47 }
0x13cb   :  { %8912 = vst [vmem:[#allocation20 + $0x28] sm:$0xff] %v8896_v43  ;;  %v8895_v30 = vadd.f32 %v8833_v22, %v8527_v28  ;;  %v8848_v62 = vadd.f32 %v11073_v54, %v15554_v37  ;;  %v8535_v22 = vadd.f32 %v8505_v36, %v7181_v3 }
0x13cc   :  { %v8842_v41 = vpop.f32.mrf.mxu0  ;;  %v8538_v27 = vadd.f32 %v8520_v21, %v7184_v23 }
0x13cd   :  { %8911 = vst [vmem:[#allocation20 + $0x20] sm:$0xff] %v8895_v30  ;;  %v8898_v10 = vadd.f32 %v8848_v62, %v8530_v20  ;;  %v8843_v33 = vadd.f32 %v15554_v37, %v8842_v41  ;;  %v16175_v20 = vld [vmem:[#allocation68_spill] sm:$0xff] }
0x13ce   :  { %v11076_v35 = vpop.f32.mrf.mxu0  ;;  %v7183_v62 = vadd.f32 %v15546_v29, %v16175_v20 }
0x13cf   :  { %8914 = vst [vmem:[#allocation20 + $0x38] sm:$0xff] %v8898_v10  ;;  %v8897_v53 = vadd.f32 %v8843_v33, %v8529_v58  ;;  %v8858_v4 = vadd.f32 %v11076_v35, %v15554_v37 }
0x13d0   :  { %v8852_v38 = vpop.f32.mrf.mxu0  ;;  %v8537_v51 = vadd.f32 %v8515_v25, %v7183_v62 }
0x13d1   :  { %8913 = vst [vmem:[#allocation20 + $0x30] sm:$0xff] %v8897_v53  ;;  %v8900_v45 = vadd.f32 %v8858_v4, %v8532_v40  ;;  %v8853_v12 = vadd.f32 %v15554_v37, %v8852_v38 }
0x13d2   :  { %v11079_v2 = vpop.f32.mrf.mxu0 }
0x13d3   :  { %8916 = vst [vmem:[#allocation20 + $0x48] sm:$0xff] %v8900_v45  ;;  %v8899_v15 = vadd.f32 %v8853_v12, %v8531_v17  ;;  %v8868_v19 = vadd.f32 %v11079_v2, %v15554_v37 }
0x13d4   :  { %v8862_v18 = vpop.f32.mrf.mxu0 }
0x13d5   :  { %8915 = vst [vmem:[#allocation20 + $0x40] sm:$0xff] %v8899_v15  ;;  %v8902_v59 = vadd.f32 %v8868_v19, %v8534_v48  ;;  %v8863_v60 = vadd.f32 %v15554_v37, %v8862_v18 }
0x13d6   :  { %v11082_v49 = vpop.f32.mrf.mxu0 }
0x13d7   :  { %8918 = vst [vmem:[#allocation20 + $0x58] sm:$0xff] %v8902_v59  ;;  %v8901_v0 = vadd.f32 %v8863_v60, %v8533_v14  ;;  %v8878_v6 = vadd.f32 %v11082_v49, %v15554_v37 }
0x13d8   :  { %v8872_v28 = vpop.f32.mrf.mxu0 }
0x13d9   :  { %8917 = vst [vmem:[#allocation20 + $0x50] sm:$0xff] %v8901_v0  ;;  %v8904_v43 = vadd.f32 %v8878_v6, %v8536_v13  ;;  %v8873_v5 = vadd.f32 %v15554_v37, %v8872_v28 }
0x13da   :  { %v11085_v54 = vpop.f32.mrf.mxu0 }
0x13db   :  { %8920 = vst [vmem:[#allocation20 + $0x68] sm:$0xff] %v8904_v43  ;;  %v8903_v44 = vadd.f32 %v8873_v5, %v8535_v22  ;;  %v8888_v30 = vadd.f32 %v11085_v54, %v15554_v37 }
0x13dc   :  { %v8882_v24 = vpop.f32.mrf.mxu0 }
0x13dd   :  { %8919 = vst [vmem:[#allocation20 + $0x60] sm:$0xff] %v8903_v44  ;;  %v8906_v41 = vadd.f32 %v8888_v30, %v8538_v27  ;;  %v8883_v39 = vadd.f32 %v15554_v37, %v8882_v24 }
0x13df   :  { %8922 = vst [vmem:[#allocation20 + $0x78] sm:$0xff] %v8906_v41  ;;  %v8905_v10 = vadd.f32 %v8883_v39, %v8537_v51 }
0x13e1   :  { %8921 = vst [vmem:[#allocation20 + $0x70] sm:$0xff] %v8905_v10 }
0x13e2   :  { %11816 = shalt.err (!%p11813_p3)
}
0x13e3   :  { %8934 = dma.vmem_to_hbm [thread:$0]  %s8929_s24, 2048, %s15664_s25, [#allocation4], %s11841_s3, %s11841_s3, %s11842_s26  }
0x13e4   :  { %11837 = dma.done.wait [#allocation4], 2048  }
0x13e5   :  { %11838 = vsyncadd [#allocation4], 4294965248 }
0x13e6   :  { %8938 = vsyncpa [#allocation3], 1 }
0x13e7   :  { %8939 = vsyncpa [#allocation6], 1 }
0x13e8   :  { %8940 = vsyncpa [#allocation9], 1 }
0x13e9   :  { %8941 = vsyncpa [#allocation12], 1 }
0x13ea   :  { %8942 = vsyncpa [#allocation15], 1 }
0x13eb   :  { %8943 = vsyncpa [#allocation18], 1 }
0x13ec   :  { %8944 = vsyncpa [#allocation4], 1 }

</bundles_post_ra>
